<compile_context>
chip_gen: v6e
topology: v6e:2x2x1
jax: 0.10.0
libtpu: 0.0.40
codegen_flags: <defaults>
</compile_context>

<pallas_src>
import functools

import jax
import jax.numpy as jnp
import numpy as np
from jax.experimental import pallas as pl
from jax.experimental.pallas import tpu as pltpu

EPS = 1e-5
_GELU_C = 0.7978845608028654  # sqrt(2/pi), GPT-2 "gelu_new"


# --------------------------------------------------------------------------
# Fused Pallas kernel: in_layer + wpe + all transformer blocks + final LN +
# out_layer.  One grid step per block of whole series.
# --------------------------------------------------------------------------
def _fused_stack_kernel(
    patches_ref,   # (R, P)        R = series_in_block * n_patch
    rowb_ref,      # (R, D)        in_layer bias + positional embedding rows
    in_w_ref,      # (P, D)
    hw_ref,        # (L*4*H, D+1, hd)  per-head [Wq|Wk|Wv|proj^T], bias row D
    fcwb_ref,      # (L, D+1, Dff)     fc weight rows 0:D, bias row D
    mlp_w_ref,     # (L, Dff, D)
    vec_ref,       # (6L+2, D)  [ln1_g,ln1_b,proj_b,ln2_g,ln2_b,mlp_b]*L+[lnf_g,lnf_b]
    owb_ref,       # (D+1, P)   out_layer weight rows 0:D, bias row D
    o_ref,         # (R, P)
    *, n_layers, n_heads, n_patch, num_loss_patch):
    R, P = patches_ref.shape
    D = rowb_ref.shape[1]
    H = n_heads
    N = n_patch
    num_series = R // N

    def vrow(i):                           # (1, D) row of the packed table
        return vec_ref[i:i + 1, :]

    def layer_norm(x, g, b):
        mu = jnp.mean(x, axis=-1, keepdims=True)
        xc = x - mu
        var = jnp.mean(xc * xc, axis=-1, keepdims=True)
        return (xc * jax.lax.rsqrt(var + 1e-5)) * g + b

    # ---- block-diagonal causal + "prediction patches hidden" mask, built
    # in-kernel from iota compares (no operand, no vector integer division).
    rows_i = jax.lax.broadcasted_iota(jnp.int32, (R, R), 0)
    cols_i = jax.lax.broadcasted_iota(jnp.int32, (R, R), 1)
    r_ser = jnp.zeros((R, R), jnp.int32)
    c_ser = jnp.zeros((R, R), jnp.int32)
    for b in range(1, num_series):         # static, tiny (num_series-1 cmps)
        bnd = b * N
        r_ser = r_ser + (rows_i >= bnd).astype(jnp.int32)
        c_ser = c_ser + (cols_i >= bnd).astype(jnp.int32)
    c_pat = cols_i - c_ser * N
    allowed = ((r_ser == c_ser) & (cols_i <= rows_i)
               & ((c_pat < (N - num_loss_patch)) | (cols_i == rows_i)))
    bias = jnp.where(allowed, jnp.float32(0.0), jnp.float32(-1e30))

    # ---- in_layer + (in_b + wpe) rows, fused.
    h = (jnp.dot(patches_ref[...], in_w_ref[...],
                 preferred_element_type=jnp.float32) + rowb_ref[...])   # (R, D)

    def head_block(l, s, hh):
        idx = (l * 4 + s) * H + hh
        return hw_ref[idx, 0:D, :], hw_ref[idx, D:D + 1, :]

    for l in range(n_layers):
        # ---------------- attention ----------------
        x1 = layer_norm(h, vrow(6 * l + 0), vrow(6 * l + 1))
        a = None
        for hh in range(H):
            wq, bq = head_block(l, 0, hh)          # 1/sqrt(hd) folded in
            wk, bk = head_block(l, 1, hh)
            wv, bv = head_block(l, 2, hh)
            wpT, _ = head_block(l, 3, hh)          # (D, hd) = proj block ^T
            q = jnp.dot(x1, wq, preferred_element_type=jnp.float32) + bq
            k = jnp.dot(x1, wk, preferred_element_type=jnp.float32) + bk
            v = jnp.dot(x1, wv, preferred_element_type=jnp.float32) + bv
            s = jax.lax.dot_general(q, k, (((1,), (1,)), ((), ())),
                                    preferred_element_type=jnp.float32) + bias
            m = jnp.max(s, axis=-1, keepdims=True)
            p = jnp.exp(s - m)
            denom = jnp.sum(p, axis=-1, keepdims=True)
            attn = p * pl.reciprocal(denom, approx=True)   # EUP recip
            o_h = jnp.dot(attn, v, preferred_element_type=jnp.float32)
            # distribute the output projection over heads (no lane concat):
            contrib = jax.lax.dot_general(o_h, wpT, (((1,), (1,)), ((), ())),
                                          preferred_element_type=jnp.float32)
            a = contrib if a is None else a + contrib
        h = h + a + vrow(6 * l + 2)                 # proj_b, fused residual

        # ---------------- MLP ----------------
        x2 = layer_norm(h, vrow(6 * l + 3), vrow(6 * l + 4))
        u = (jnp.dot(x2, fcwb_ref[l, 0:D, :], preferred_element_type=jnp.float32)
             + fcwb_ref[l, D:D + 1, :])
        u = 0.5 * u * (1.0 + jnp.tanh(_GELU_C * (u + 0.044715 * u * u * u)))
        u = (jnp.dot(u, mlp_w_ref[l], preferred_element_type=jnp.float32)
             + vrow(6 * l + 5))
        h = h + u                                   # fused residual

    h = layer_norm(h, vrow(6 * n_layers), vrow(6 * n_layers + 1))
    out = (jnp.dot(h, owb_ref[0:D, :], preferred_element_type=jnp.float32)
           + owb_ref[D:D + 1, :])                   # (R, P)
    # NOTE: at these toy sizes the 8-lane output (1.5 KB total) makes the
    # masked-store penalty negligible; for real GPT-2 sizes keep D on lanes
    # and emit a wide lane-dense epilogue instead.
    o_ref[...] = out.astype(o_ref.dtype)


# --------------------------------------------------------------------------
# Plain-JAX glue: RevIN, patching
# --------------------------------------------------------------------------
def revin_norm(x, w, b):
    mean = jnp.mean(x, axis=1, keepdims=True)
    stdev = jnp.sqrt(jnp.var(x, axis=1, keepdims=True) + EPS)
    xn = (x - mean) / stdev
    return xn * w + b, mean, stdev


def revin_normalize_with(y, mean, stdev, w, b):
    return (y - mean) / stdev * w + b


def revin_denorm(x, mean, stdev, w, b):
    x = (x - b) / (w + EPS * EPS)
    return x * stdev + mean


def make_patches(x_blm, patch_len, stride):
    # (B, L, M) -> (B*M, n_patches, patch_len)   (torch.unfold semantics)
    B, L, M = x_blm.shape
    x = jnp.transpose(x_blm, (0, 2, 1))
    n = (L - patch_len) // stride + 1
    starts = np.arange(n) * stride
    idx = starts[:, None] + np.arange(patch_len)[None, :]
    return x[:, :, idx].reshape(B * M, n, patch_len)


def build_attn_bias(n_patch, num_loss_patch):
    # Used only by the pure-JAX reference.
    j = np.arange(n_patch)
    causal = j[None, :] <= j[:, None]
    my = np.ones((n_patch, n_patch), dtype=bool)
    my[:, n_patch - num_loss_patch:] = False
    for i in range(n_patch - num_loss_patch, n_patch):
        my[i, i] = True
    return np.where(causal & my, 0.0, -1e30).astype(np.float32)


# --------------------------------------------------------------------------
# Host-side weight packing (constant-folded under jit)
# --------------------------------------------------------------------------
def _pack_weights(params, cfg, n_patch, bm):
    D, Dff = cfg["d_model"], cfg["d_ff"]
    H = cfg["n_heads"]
    hd = D // H
    scale = 1.0 / float(np.sqrt(hd))

    # (in_b + wpe) row table, tiled once per series in the block.
    rowb = params["in_b"][None, :] + jnp.tile(params["wpe"][:n_patch], (bm, 1))

    hw_blocks = []
    for lp in params["layers"]:
        aw, ab, pw = lp["attn_w"], lp["attn_b"], lp["proj_w"]
        for s in range(4):
            for hh in range(H):
                if s < 3:
                    wcol = aw[:, s * D + hh * hd: s * D + (hh + 1) * hd]
                    bcol = ab[s * D + hh * hd: s * D + (hh + 1) * hd]
                    if s == 0:                       # fold softmax scale into Q
                        wcol = wcol * scale
                        bcol = bcol * scale
                    blk = jnp.concatenate([wcol, bcol[None, :]], axis=0)
                else:                                # transposed proj block
                    wpT = pw[hh * hd:(hh + 1) * hd, :].T        # (D, hd)
                    blk = jnp.concatenate(
                        [wpT, jnp.zeros((1, hd), jnp.float32)], axis=0)
                hw_blocks.append(blk)
    hw = jnp.stack(hw_blocks, axis=0)                # (L*4*H, D+1, hd)

    fcwb = jnp.stack(
        [jnp.concatenate([lp["fc_w"], lp["fc_b"][None, :]], axis=0)
         for lp in params["layers"]], axis=0)        # (L, D+1, Dff)
    mlp_w = jnp.stack([lp["mlp_proj_w"] for lp in params["layers"]], axis=0)

    vec_rows = []
    for lp in params["layers"]:
        vec_rows += [lp["ln1_g"], lp["ln1_b"], lp["proj_b"],
                     lp["ln2_g"], lp["ln2_b"], lp["mlp_proj_b"]]
    vec_rows += [params["lnf_g"], params["lnf_b"]]
    vec_pack = jnp.stack(vec_rows, axis=0)           # (6L+2, D)

    owb = jnp.concatenate([params["out_w"], params["out_b"][None, :]], axis=0)
    return rowb, hw, fcwb, mlp_w, vec_pack, owb


# --------------------------------------------------------------------------
# Forward pass
# --------------------------------------------------------------------------
def forward(params, cfg, x, y):
    B, L, M = x.shape
    P, S = cfg["patch_len"], cfg["stride"]
    D, Dff = cfg["d_model"], cfg["d_ff"]
    n_layers, n_heads = cfg["n_layers"], cfg["n_heads"]
    nlp = cfg["num_loss_patch"]

    # RevIN norm (stats from x, reused for y)
    xn, mean, stdev = revin_norm(x, params["revin_w"], params["revin_b"])
    yn = revin_normalize_with(y, mean, stdev, params["revin_w"], params["revin_b"])

    # Patch both series; in_layer runs once on the concatenation inside the
    # kernel (identical weights -> same result as concat-after-projection).
    xp = make_patches(xn, P, S)
    yp = make_patches(yn, P, S)
    patches = jnp.concatenate([xp, yp], axis=1)              # (BM, N, P)
    BM, N, _ = patches.shape

    # grid=(1,) on single-TC chips (v5e/v6e): the 2-step grid is pure serial
    # overhead there.  On v7x keep a 2-way series split so the "parallel"
    # axis can shard across the 2 TensorCores.
    is_v7 = any("v7" in d.device_kind.lower() for d in jax.devices())
    num_blocks = 2 if (is_v7 and BM % 2 == 0 and ((BM // 2) * N) % 8 == 0) else 1
    bm_blk = BM // num_blocks
    R_blk = bm_blk * N

    patches2d = patches.reshape(BM * N, P)
    rowb, hw, fcwb, mlp_w, vec_pack, owb = _pack_weights(params, cfg, N, bm_blk)

    full = lambda shape: pl.BlockSpec(shape, lambda g, n=len(shape): (0,) * n)

    out2d = pl.pallas_call(
        functools.partial(_fused_stack_kernel,
                          n_layers=n_layers, n_heads=n_heads,
                          n_patch=N, num_loss_patch=nlp),
        out_shape=jax.ShapeDtypeStruct((BM * N, P), jnp.float32),
        grid=(num_blocks,),
        in_specs=[
            pl.BlockSpec((R_blk, P), lambda g: (g, 0)),      # patches rows
            pl.BlockSpec((R_blk, D), lambda g: (g, 0)),      # in_b + wpe rows
            full((P, D)),                                    # in_layer weight
            full((n_layers * 4 * n_heads, D + 1, D // n_heads)),  # head slabs
            full((n_layers, D + 1, Dff)),                    # fc weight+bias
            full((n_layers, Dff, D)),                        # mlp proj weight
            full((6 * n_layers + 2, D)),                     # LN/bias row table
            full((D + 1, P)),                                # out weight+bias
        ],
        out_specs=pl.BlockSpec((R_blk, P), lambda g: (g, 0)),
        compiler_params=pltpu.CompilerParams(
            dimension_semantics=(
                ("parallel",) if num_blocks > 1 else ("arbitrary",))),
    )(patches2d, rowb, params["in_w"], hw, fcwb, mlp_w, vec_pack, owb)

    # rearrange '(b m) n p -> b (n p) m', denorm, 'b (n p) m -> b m n p'
    out = out2d.reshape(B, M, N, P).transpose(0, 2, 3, 1).reshape(B, N * P, M)
    out = revin_denorm(out, mean, stdev, params["revin_w"], params["revin_b"])
    out = out.reshape(B, N, P, M).transpose(0, 3, 1, 2)
    return out  # (B, M, patch_num, patch_len)


# --------------------------------------------------------------------------
# Pure-JAX reference (same math, standard ops) for a sanity check
# --------------------------------------------------------------------------
def reference_forward(params, cfg, x, y):
    B, L, M = x.shape
    P, S = cfg["patch_len"], cfg["stride"]
    D, H = cfg["d_model"], cfg["n_heads"]
    hd = D // H

    xn, mean, stdev = revin_norm(x, params["revin_w"], params["revin_b"])
    yn = revin_normalize_with(y, mean, stdev, params["revin_w"], params["revin_b"])
    xp = make_patches(xn, P, S)
    yp = make_patches(yn, P, S)
    patches = jnp.concatenate([xp, yp], axis=1)
    BM, N, _ = patches.shape

    def ln(t, g, b):
        mu = t.mean(-1, keepdims=True)
        v = ((t - mu) ** 2).mean(-1, keepdims=True)
        return (t - mu) * jax.lax.rsqrt(v + 1e-5) * g + b

    bias = jnp.asarray(build_attn_bias(N, cfg["num_loss_patch"]))
    h = patches @ params["in_w"] + params["in_b"] + params["wpe"][:N][None]
    for lp in params["layers"]:
        x1 = ln(h, lp["ln1_g"], lp["ln1_b"])
        qkv = x1 @ lp["attn_w"] + lp["attn_b"]
        q, k, v = jnp.split(qkv, 3, axis=-1)
        q = q.reshape(BM, N, H, hd).transpose(0, 2, 1, 3)
        k = k.reshape(BM, N, H, hd).transpose(0, 2, 1, 3)
        v = v.reshape(BM, N, H, hd).transpose(0, 2, 1, 3)
        s = jnp.einsum("bhqd,bhkd->bhqk", q, k) / np.sqrt(hd) + bias
        a = jax.nn.softmax(s, axis=-1)
        o = jnp.einsum("bhqk,bhkd->bhqd", a, v).transpose(0, 2, 1, 3).reshape(BM, N, D)
        h = h + o @ lp["proj_w"] + lp["proj_b"]
        x2 = ln(h, lp["ln2_g"], lp["ln2_b"])
        u = x2 @ lp["fc_w"] + lp["fc_b"]
        u = 0.5 * u * (1.0 + jnp.tanh(_GELU_C * (u + 0.044715 * u ** 3)))
        h = h + u @ lp["mlp_proj_w"] + lp["mlp_proj_b"]
    h = ln(h, params["lnf_g"], params["lnf_b"])
    out = h @ params["out_w"] + params["out_b"]
    out = out.reshape(B, M, N, P).transpose(0, 2, 3, 1).reshape(B, N * P, M)
    out = revin_denorm(out, mean, stdev, params["revin_w"], params["revin_b"])
    return out.reshape(B, N, P, M).transpose(0, 3, 1, 2)


# --------------------------------------------------------------------------
# Deterministic parameter init
# --------------------------------------------------------------------------
def init_params(key, cfg):
    P, D, Dff = cfg["patch_len"], cfg["d_model"], cfg["d_ff"]
    n_layers, max_pos, M = cfg["n_layers"], cfg["max_pos"], cfg["enc_in"]

    def nrm(k, shape, scale=0.02):
        return scale * jax.random.normal(k, shape, dtype=jnp.float32)

    keys = iter(jax.random.split(key, 8 + 8 * n_layers))
    params = {
        "revin_w": jnp.ones((M,), jnp.float32),
        "revin_b": jnp.zeros((M,), jnp.float32),
        "in_w": nrm(next(keys), (P, D)),
        "in_b": jnp.zeros((D,), jnp.float32),
        "out_w": nrm(next(keys), (D, P)),
        "out_b": jnp.zeros((P,), jnp.float32),
        "wpe": nrm(next(keys), (max_pos, D), scale=0.01),
        "lnf_g": jnp.ones((D,), jnp.float32),
        "lnf_b": jnp.zeros((D,), jnp.float32),
        "layers": [],
    }
    for _ in range(n_layers):
        params["layers"].append({
            "ln1_g": jnp.ones((D,), jnp.float32),
            "ln1_b": jnp.zeros((D,), jnp.float32),
            "attn_w": nrm(next(keys), (D, 3 * D)),
            "attn_b": jnp.zeros((3 * D,), jnp.float32),
            "proj_w": nrm(next(keys), (D, D)),
            "proj_b": jnp.zeros((D,), jnp.float32),
            "ln2_g": jnp.ones((D,), jnp.float32),
            "ln2_b": jnp.zeros((D,), jnp.float32),
            "fc_w": nrm(next(keys), (D, Dff)),
            "fc_b": jnp.zeros((Dff,), jnp.float32),
            "mlp_proj_w": nrm(next(keys), (Dff, D)),
            "mlp_proj_b": jnp.zeros((D,), jnp.float32),
        })
    return params


# --------------------------------------------------------------------------
if __name__ == "__main__":
    cfg = dict(
        enc_in=4, history_len=32, pred_len=16, patch_len=8, stride=8,
        d_model=32, d_ff=128, n_heads=4, n_layers=2, max_pos=64,
    )
    n_x = (cfg["history_len"] - cfg["patch_len"]) // cfg["stride"] + 1
    n_y = (cfg["pred_len"] - cfg["patch_len"]) // cfg["stride"] + 1
    cfg["patch_num"] = n_x + n_y
    cfg["num_loss_patch"] = n_y

    B, L, M = 2, cfg["history_len"], cfg["enc_in"]
    key = jax.random.PRNGKey(0)
    kx, ky, kp = jax.random.split(key, 3)
    x = jax.random.normal(kx, (B, L, M), dtype=jnp.float32)
    y = jax.random.normal(ky, (B, cfg["pred_len"], M), dtype=jnp.float32)
    params = init_params(kp, cfg)

    out = jax.block_until_ready(jax.jit(functools.partial(forward, params, cfg))(x, y))
    assert out.shape == (B, M, cfg["patch_num"], cfg["patch_len"]), out.shape
    assert bool(jnp.all(jnp.isfinite(out)))

    ref = jax.block_until_ready(
        jax.jit(functools.partial(reference_forward, params, cfg))(x, y))
    np.testing.assert_allclose(np.asarray(out), np.asarray(ref),
                               rtol=2e-2, atol=2e-2)
    print("KERNEL_OK")
</pallas_src>

<mosaic_0001>
module attributes {stable_mosaic.version = 11 : i64} {
  func.func @_fused_stack_kernel(%arg0: i32, %arg1: memref<48x8xf32, #tpu.memory_space<vmem>>, %arg2: memref<48x32xf32, #tpu.memory_space<vmem>>, %arg3: memref<8x32xf32, #tpu.memory_space<vmem>>, %arg4: memref<32x33x8xf32, #tpu.memory_space<vmem>>, %arg5: memref<2x33x128xf32, #tpu.memory_space<vmem>>, %arg6: memref<2x128x32xf32, #tpu.memory_space<vmem>>, %arg7: memref<14x32xf32, #tpu.memory_space<vmem>>, %arg8: memref<33x8xf32, #tpu.memory_space<vmem>>, %arg9: memref<48x8xf32, #tpu.memory_space<vmem>>) attributes {dimension_semantics = [#tpu.dimension_semantics<arbitrary>], iteration_bounds = array<i64: 1>, scalar_prefetch = 0 : i64, scratch_operands = 0 : i64, tpu.core_type = #tpu.core_type<tc>, window_params = [{transform_indices = @transform_0, window_bounds = array<i64: 48, 8>}, {transform_indices = @transform_1, window_bounds = array<i64: 48, 32>}, {pipeline_mode = #tpu.pipeline_mode<synchronous>, transform_indices = @transform_2, window_bounds = array<i64: 8, 32>}, {pipeline_mode = #tpu.pipeline_mode<synchronous>, transform_indices = @transform_3, window_bounds = array<i64: 32, 33, 8>}, {pipeline_mode = #tpu.pipeline_mode<synchronous>, transform_indices = @transform_4, window_bounds = array<i64: 2, 33, 128>}, {pipeline_mode = #tpu.pipeline_mode<synchronous>, transform_indices = @transform_5, window_bounds = array<i64: 2, 128, 32>}, {pipeline_mode = #tpu.pipeline_mode<synchronous>, transform_indices = @transform_6, window_bounds = array<i64: 14, 32>}, {pipeline_mode = #tpu.pipeline_mode<synchronous>, transform_indices = @transform_7, window_bounds = array<i64: 33, 8>}, {transform_indices = @transform_8, window_bounds = array<i64: 48, 8>}]} {
    %0 = tpu.iota {dimensions = array<i32: 0>} : vector<48x48xi32>
    %1 = tpu.iota {dimensions = array<i32: 1>} : vector<48x48xi32>
    %c0_i32 = arith.constant 0 : i32
    %2 = vector.broadcast %c0_i32 : i32 to vector<48x48xi32>
    %c0_i32_0 = arith.constant 0 : i32
    %3 = vector.broadcast %c0_i32_0 : i32 to vector<48x48xi32>
    %c6_i32 = arith.constant 6 : i32
    %4 = vector.broadcast %c6_i32 : i32 to vector<48x48xi32>
    %5 = arith.cmpi sge, %0, %4 : vector<48x48xi32>
    %6 = arith.extui %5 : vector<48x48xi1> to vector<48x48xi32>
    %7 = arith.addi %2, %6 : vector<48x48xi32>
    %c6_i32_1 = arith.constant 6 : i32
    %8 = vector.broadcast %c6_i32_1 : i32 to vector<48x48xi32>
    %9 = arith.cmpi sge, %1, %8 : vector<48x48xi32>
    %10 = arith.extui %9 : vector<48x48xi1> to vector<48x48xi32>
    %11 = arith.addi %3, %10 : vector<48x48xi32>
    %c12_i32 = arith.constant 12 : i32
    %12 = vector.broadcast %c12_i32 : i32 to vector<48x48xi32>
    %13 = arith.cmpi sge, %0, %12 : vector<48x48xi32>
    %14 = arith.extui %13 : vector<48x48xi1> to vector<48x48xi32>
    %15 = arith.addi %7, %14 : vector<48x48xi32>
    %c12_i32_2 = arith.constant 12 : i32
    %16 = vector.broadcast %c12_i32_2 : i32 to vector<48x48xi32>
    %17 = arith.cmpi sge, %1, %16 : vector<48x48xi32>
    %18 = arith.extui %17 : vector<48x48xi1> to vector<48x48xi32>
    %19 = arith.addi %11, %18 : vector<48x48xi32>
    %c18_i32 = arith.constant 18 : i32
    %20 = vector.broadcast %c18_i32 : i32 to vector<48x48xi32>
    %21 = arith.cmpi sge, %0, %20 : vector<48x48xi32>
    %22 = arith.extui %21 : vector<48x48xi1> to vector<48x48xi32>
    %23 = arith.addi %15, %22 : vector<48x48xi32>
    %c18_i32_3 = arith.constant 18 : i32
    %24 = vector.broadcast %c18_i32_3 : i32 to vector<48x48xi32>
    %25 = arith.cmpi sge, %1, %24 : vector<48x48xi32>
    %26 = arith.extui %25 : vector<48x48xi1> to vector<48x48xi32>
    %27 = arith.addi %19, %26 : vector<48x48xi32>
    %c24_i32 = arith.constant 24 : i32
    %28 = vector.broadcast %c24_i32 : i32 to vector<48x48xi32>
    %29 = arith.cmpi sge, %0, %28 : vector<48x48xi32>
    %30 = arith.extui %29 : vector<48x48xi1> to vector<48x48xi32>
    %31 = arith.addi %23, %30 : vector<48x48xi32>
    %c24_i32_4 = arith.constant 24 : i32
    %32 = vector.broadcast %c24_i32_4 : i32 to vector<48x48xi32>
    %33 = arith.cmpi sge, %1, %32 : vector<48x48xi32>
    %34 = arith.extui %33 : vector<48x48xi1> to vector<48x48xi32>
    %35 = arith.addi %27, %34 : vector<48x48xi32>
    %c30_i32 = arith.constant 30 : i32
    %36 = vector.broadcast %c30_i32 : i32 to vector<48x48xi32>
    %37 = arith.cmpi sge, %0, %36 : vector<48x48xi32>
    %38 = arith.extui %37 : vector<48x48xi1> to vector<48x48xi32>
    %39 = arith.addi %31, %38 : vector<48x48xi32>
    %c30_i32_5 = arith.constant 30 : i32
    %40 = vector.broadcast %c30_i32_5 : i32 to vector<48x48xi32>
    %41 = arith.cmpi sge, %1, %40 : vector<48x48xi32>
    %42 = arith.extui %41 : vector<48x48xi1> to vector<48x48xi32>
    %43 = arith.addi %35, %42 : vector<48x48xi32>
    %c36_i32 = arith.constant 36 : i32
    %44 = vector.broadcast %c36_i32 : i32 to vector<48x48xi32>
    %45 = arith.cmpi sge, %0, %44 : vector<48x48xi32>
    %46 = arith.extui %45 : vector<48x48xi1> to vector<48x48xi32>
    %47 = arith.addi %39, %46 : vector<48x48xi32>
    %c36_i32_6 = arith.constant 36 : i32
    %48 = vector.broadcast %c36_i32_6 : i32 to vector<48x48xi32>
    %49 = arith.cmpi sge, %1, %48 : vector<48x48xi32>
    %50 = arith.extui %49 : vector<48x48xi1> to vector<48x48xi32>
    %51 = arith.addi %43, %50 : vector<48x48xi32>
    %c42_i32 = arith.constant 42 : i32
    %52 = vector.broadcast %c42_i32 : i32 to vector<48x48xi32>
    %53 = arith.cmpi sge, %0, %52 : vector<48x48xi32>
    %54 = arith.extui %53 : vector<48x48xi1> to vector<48x48xi32>
    %55 = arith.addi %47, %54 : vector<48x48xi32>
    %c42_i32_7 = arith.constant 42 : i32
    %56 = vector.broadcast %c42_i32_7 : i32 to vector<48x48xi32>
    %57 = arith.cmpi sge, %1, %56 : vector<48x48xi32>
    %58 = arith.extui %57 : vector<48x48xi1> to vector<48x48xi32>
    %59 = arith.addi %51, %58 : vector<48x48xi32>
    %c6_i32_8 = arith.constant 6 : i32
    %60 = vector.broadcast %c6_i32_8 : i32 to vector<48x48xi32>
    %61 = arith.muli %59, %60 : vector<48x48xi32>
    %62 = arith.subi %1, %61 : vector<48x48xi32>
    %63 = arith.cmpi eq, %55, %59 : vector<48x48xi32>
    %64 = arith.cmpi sle, %1, %0 : vector<48x48xi32>
    %65 = arith.andi %63, %64 : vector<48x48xi1>
    %c4_i32 = arith.constant 4 : i32
    %66 = vector.broadcast %c4_i32 : i32 to vector<48x48xi32>
    %67 = arith.cmpi slt, %62, %66 : vector<48x48xi32>
    %68 = arith.cmpi eq, %1, %0 : vector<48x48xi32>
    %69 = arith.ori %67, %68 : vector<48x48xi1>
    %70 = arith.andi %65, %69 : vector<48x48xi1>
    %cst = arith.constant 0.000000e+00 : f32
    %cst_9 = arith.constant -1.000000e+30 : f32
    %71 = vector.broadcast %cst : f32 to vector<48x48xf32>
    %72 = vector.broadcast %cst_9 : f32 to vector<48x48xf32>
    %73 = arith.select %70, %71, %72 : vector<48x48xi1>, vector<48x48xf32>
    %c0 = arith.constant 0 : index
    %c0_10 = arith.constant 0 : index
    %74 = vector.load %arg1[%c0, %c0_10] : memref<48x8xf32, #tpu.memory_space<vmem>>, vector<48x8xf32>
    %c0_11 = arith.constant 0 : index
    %c0_12 = arith.constant 0 : index
    %75 = vector.load %arg3[%c0_11, %c0_12] : memref<8x32xf32, #tpu.memory_space<vmem>>, vector<8x32xf32>
    %cst_13 = arith.constant dense<0.000000e+00> : vector<48x32xf32>
    %76 = tpu.matmul %74, %75, %cst_13 {dimension_numbers = #tpu.dot_dimension_numbers<[1], [0], [0], [1], [0, 0, 1, 1], [], []>} : vector<48x8xf32>, vector<8x32xf32>, vector<48x32xf32> -> vector<48x32xf32>
    %c0_14 = arith.constant 0 : index
    %c0_15 = arith.constant 0 : index
    %77 = vector.load %arg2[%c0_14, %c0_15] : memref<48x32xf32, #tpu.memory_space<vmem>>, vector<48x32xf32>
    %78 = arith.addf %76, %77 : vector<48x32xf32>
    %c0_16 = arith.constant 0 : index
    %c0_17 = arith.constant 0 : index
    %79 = vector.load %arg7[%c0_16, %c0_17] : memref<14x32xf32, #tpu.memory_space<vmem>>, vector<1x32xf32>
    %c1 = arith.constant 1 : index
    %c0_18 = arith.constant 0 : index
    %80 = vector.load %arg7[%c1, %c0_18] : memref<14x32xf32, #tpu.memory_space<vmem>>, vector<1x32xf32>
    %cst_19 = arith.constant dense<0.000000e+00> : vector<48xf32>
    %81 = vector.multi_reduction <add>, %78, %cst_19 [1] : vector<48x32xf32> to vector<48xf32>
    %82 = vector.shape_cast %81 : vector<48xf32> to vector<48x1xf32>
    %cst_20 = arith.constant 3.200000e+01 : f32
    %83 = vector.broadcast %cst_20 : f32 to vector<48x1xf32>
    %84 = arith.divf %82, %83 : vector<48x1xf32>
    %85 = vector.broadcast %84 : vector<48x1xf32> to vector<48x32xf32>
    %86 = arith.subf %78, %85 : vector<48x32xf32>
    %87 = arith.mulf %86, %86 : vector<48x32xf32>
    %cst_21 = arith.constant dense<0.000000e+00> : vector<48xf32>
    %88 = vector.multi_reduction <add>, %87, %cst_21 [1] : vector<48x32xf32> to vector<48xf32>
    %89 = vector.shape_cast %88 : vector<48xf32> to vector<48x1xf32>
    %cst_22 = arith.constant 3.200000e+01 : f32
    %90 = vector.broadcast %cst_22 : f32 to vector<48x1xf32>
    %91 = arith.divf %89, %90 : vector<48x1xf32>
    %cst_23 = arith.constant 9.99999974E-6 : f32
    %92 = vector.broadcast %cst_23 : f32 to vector<48x1xf32>
    %93 = arith.addf %91, %92 : vector<48x1xf32>
    %94 = math.rsqrt %93 : vector<48x1xf32>
    %95 = vector.broadcast %94 : vector<48x1xf32> to vector<48x32xf32>
    %96 = arith.mulf %86, %95 : vector<48x32xf32>
    %97 = vector.broadcast %79 : vector<1x32xf32> to vector<48x32xf32>
    %98 = arith.mulf %96, %97 : vector<48x32xf32>
    %99 = vector.broadcast %80 : vector<1x32xf32> to vector<48x32xf32>
    %100 = arith.addf %98, %99 : vector<48x32xf32>
    %c0_24 = arith.constant 0 : index
    %c0_25 = arith.constant 0 : index
    %c0_26 = arith.constant 0 : index
    %101 = vector.load %arg4[%c0_24, %c0_25, %c0_26] : memref<32x33x8xf32, #tpu.memory_space<vmem>>, vector<1x32x8xf32>
    %102 = vector.shape_cast %101 : vector<1x32x8xf32> to vector<32x8xf32>
    %c0_27 = arith.constant 0 : index
    %c32 = arith.constant 32 : index
    %c0_28 = arith.constant 0 : index
    %103 = vector.load %arg4[%c0_27, %c32, %c0_28] : memref<32x33x8xf32, #tpu.memory_space<vmem>>, vector<1x1x8xf32>
    %104 = vector.shape_cast %103 : vector<1x1x8xf32> to vector<1x8xf32>
    %c4 = arith.constant 4 : index
    %c0_29 = arith.constant 0 : index
    %c0_30 = arith.constant 0 : index
    %105 = vector.load %arg4[%c4, %c0_29, %c0_30] : memref<32x33x8xf32, #tpu.memory_space<vmem>>, vector<1x32x8xf32>
    %106 = vector.shape_cast %105 : vector<1x32x8xf32> to vector<32x8xf32>
    %c4_31 = arith.constant 4 : index
    %c32_32 = arith.constant 32 : index
    %c0_33 = arith.constant 0 : index
    %107 = vector.load %arg4[%c4_31, %c32_32, %c0_33] : memref<32x33x8xf32, #tpu.memory_space<vmem>>, vector<1x1x8xf32>
    %108 = vector.shape_cast %107 : vector<1x1x8xf32> to vector<1x8xf32>
    %c8 = arith.constant 8 : index
    %c0_34 = arith.constant 0 : index
    %c0_35 = arith.constant 0 : index
    %109 = vector.load %arg4[%c8, %c0_34, %c0_35] : memref<32x33x8xf32, #tpu.memory_space<vmem>>, vector<1x32x8xf32>
    %110 = vector.shape_cast %109 : vector<1x32x8xf32> to vector<32x8xf32>
    %c8_36 = arith.constant 8 : index
    %c32_37 = arith.constant 32 : index
    %c0_38 = arith.constant 0 : index
    %111 = vector.load %arg4[%c8_36, %c32_37, %c0_38] : memref<32x33x8xf32, #tpu.memory_space<vmem>>, vector<1x1x8xf32>
    %112 = vector.shape_cast %111 : vector<1x1x8xf32> to vector<1x8xf32>
    %c12 = arith.constant 12 : index
    %c0_39 = arith.constant 0 : index
    %c0_40 = arith.constant 0 : index
    %113 = vector.load %arg4[%c12, %c0_39, %c0_40] : memref<32x33x8xf32, #tpu.memory_space<vmem>>, vector<1x32x8xf32>
    %114 = vector.shape_cast %113 : vector<1x32x8xf32> to vector<32x8xf32>
    %cst_41 = arith.constant dense<0.000000e+00> : vector<48x8xf32>
    %115 = tpu.matmul %100, %102, %cst_41 {dimension_numbers = #tpu.dot_dimension_numbers<[1], [0], [0], [1], [0, 0, 1, 1], [], []>} : vector<48x32xf32>, vector<32x8xf32>, vector<48x8xf32> -> vector<48x8xf32>
    %116 = vector.broadcast %104 : vector<1x8xf32> to vector<48x8xf32>
    %117 = arith.addf %115, %116 : vector<48x8xf32>
    %cst_42 = arith.constant dense<0.000000e+00> : vector<48x8xf32>
    %118 = tpu.matmul %100, %106, %cst_42 {dimension_numbers = #tpu.dot_dimension_numbers<[1], [0], [0], [1], [0, 0, 1, 1], [], []>} : vector<48x32xf32>, vector<32x8xf32>, vector<48x8xf32> -> vector<48x8xf32>
    %119 = vector.broadcast %108 : vector<1x8xf32> to vector<48x8xf32>
    %120 = arith.addf %118, %119 : vector<48x8xf32>
    %cst_43 = arith.constant dense<0.000000e+00> : vector<48x8xf32>
    %121 = tpu.matmul %100, %110, %cst_43 {dimension_numbers = #tpu.dot_dimension_numbers<[1], [0], [0], [1], [0, 0, 1, 1], [], []>} : vector<48x32xf32>, vector<32x8xf32>, vector<48x8xf32> -> vector<48x8xf32>
    %122 = vector.broadcast %112 : vector<1x8xf32> to vector<48x8xf32>
    %123 = arith.addf %121, %122 : vector<48x8xf32>
    %cst_44 = arith.constant dense<0.000000e+00> : vector<48x48xf32>
    %124 = tpu.matmul %117, %120, %cst_44 {dimension_numbers = #tpu.dot_dimension_numbers<[1], [1], [0], [0], [0, 0, 1, 0], [], []>} : vector<48x8xf32>, vector<48x8xf32>, vector<48x48xf32> -> vector<48x48xf32>
    %125 = arith.addf %124, %73 : vector<48x48xf32>
    %cst_45 = arith.constant dense<0xFF800000> : vector<48xf32>
    %126 = vector.multi_reduction <maximumf>, %125, %cst_45 [1] : vector<48x48xf32> to vector<48xf32>
    %127 = vector.shape_cast %126 : vector<48xf32> to vector<48x1xf32>
    %128 = vector.broadcast %127 : vector<48x1xf32> to vector<48x48xf32>
    %129 = arith.subf %125, %128 : vector<48x48xf32>
    %130 = math.exp %129 : vector<48x48xf32>
    %cst_46 = arith.constant dense<0.000000e+00> : vector<48xf32>
    %131 = vector.multi_reduction <add>, %130, %cst_46 [1] : vector<48x48xf32> to vector<48xf32>
    %132 = vector.shape_cast %131 : vector<48xf32> to vector<48x1xf32>
    %133 = tpu.reciprocal %132 {approx = true} : vector<48x1xf32> -> vector<48x1xf32>
    %134 = vector.broadcast %133 : vector<48x1xf32> to vector<48x48xf32>
    %135 = arith.mulf %130, %134 : vector<48x48xf32>
    %cst_47 = arith.constant dense<0.000000e+00> : vector<48x8xf32>
    %136 = tpu.matmul %135, %123, %cst_47 {dimension_numbers = #tpu.dot_dimension_numbers<[1], [0], [0], [1], [0, 0, 1, 1], [], []>} : vector<48x48xf32>, vector<48x8xf32>, vector<48x8xf32> -> vector<48x8xf32>
    %cst_48 = arith.constant dense<0.000000e+00> : vector<48x32xf32>
    %137 = tpu.matmul %136, %114, %cst_48 {dimension_numbers = #tpu.dot_dimension_numbers<[1], [1], [0], [0], [0, 0, 1, 0], [], []>} : vector<48x8xf32>, vector<32x8xf32>, vector<48x32xf32> -> vector<48x32xf32>
    %c1_49 = arith.constant 1 : index
    %c0_50 = arith.constant 0 : index
    %c0_51 = arith.constant 0 : index
    %138 = vector.load %arg4[%c1_49, %c0_50, %c0_51] : memref<32x33x8xf32, #tpu.memory_space<vmem>>, vector<1x32x8xf32>
    %139 = vector.shape_cast %138 : vector<1x32x8xf32> to vector<32x8xf32>
    %c1_52 = arith.constant 1 : index
    %c32_53 = arith.constant 32 : index
    %c0_54 = arith.constant 0 : index
    %140 = vector.load %arg4[%c1_52, %c32_53, %c0_54] : memref<32x33x8xf32, #tpu.memory_space<vmem>>, vector<1x1x8xf32>
    %141 = vector.shape_cast %140 : vector<1x1x8xf32> to vector<1x8xf32>
    %c5 = arith.constant 5 : index
    %c0_55 = arith.constant 0 : index
    %c0_56 = arith.constant 0 : index
    %142 = vector.load %arg4[%c5, %c0_55, %c0_56] : memref<32x33x8xf32, #tpu.memory_space<vmem>>, vector<1x32x8xf32>
    %143 = vector.shape_cast %142 : vector<1x32x8xf32> to vector<32x8xf32>
    %c5_57 = arith.constant 5 : index
    %c32_58 = arith.constant 32 : index
    %c0_59 = arith.constant 0 : index
    %144 = vector.load %arg4[%c5_57, %c32_58, %c0_59] : memref<32x33x8xf32, #tpu.memory_space<vmem>>, vector<1x1x8xf32>
    %145 = vector.shape_cast %144 : vector<1x1x8xf32> to vector<1x8xf32>
    %c9 = arith.constant 9 : index
    %c0_60 = arith.constant 0 : index
    %c0_61 = arith.constant 0 : index
    %146 = vector.load %arg4[%c9, %c0_60, %c0_61] : memref<32x33x8xf32, #tpu.memory_space<vmem>>, vector<1x32x8xf32>
    %147 = vector.shape_cast %146 : vector<1x32x8xf32> to vector<32x8xf32>
    %c9_62 = arith.constant 9 : index
    %c32_63 = arith.constant 32 : index
    %c0_64 = arith.constant 0 : index
    %148 = vector.load %arg4[%c9_62, %c32_63, %c0_64] : memref<32x33x8xf32, #tpu.memory_space<vmem>>, vector<1x1x8xf32>
    %149 = vector.shape_cast %148 : vector<1x1x8xf32> to vector<1x8xf32>
    %c13 = arith.constant 13 : index
    %c0_65 = arith.constant 0 : index
    %c0_66 = arith.constant 0 : index
    %150 = vector.load %arg4[%c13, %c0_65, %c0_66] : memref<32x33x8xf32, #tpu.memory_space<vmem>>, vector<1x32x8xf32>
    %151 = vector.shape_cast %150 : vector<1x32x8xf32> to vector<32x8xf32>
    %cst_67 = arith.constant dense<0.000000e+00> : vector<48x8xf32>
    %152 = tpu.matmul %100, %139, %cst_67 {dimension_numbers = #tpu.dot_dimension_numbers<[1], [0], [0], [1], [0, 0, 1, 1], [], []>} : vector<48x32xf32>, vector<32x8xf32>, vector<48x8xf32> -> vector<48x8xf32>
    %153 = vector.broadcast %141 : vector<1x8xf32> to vector<48x8xf32>
    %154 = arith.addf %152, %153 : vector<48x8xf32>
    %cst_68 = arith.constant dense<0.000000e+00> : vector<48x8xf32>
    %155 = tpu.matmul %100, %143, %cst_68 {dimension_numbers = #tpu.dot_dimension_numbers<[1], [0], [0], [1], [0, 0, 1, 1], [], []>} : vector<48x32xf32>, vector<32x8xf32>, vector<48x8xf32> -> vector<48x8xf32>
    %156 = vector.broadcast %145 : vector<1x8xf32> to vector<48x8xf32>
    %157 = arith.addf %155, %156 : vector<48x8xf32>
    %cst_69 = arith.constant dense<0.000000e+00> : vector<48x8xf32>
    %158 = tpu.matmul %100, %147, %cst_69 {dimension_numbers = #tpu.dot_dimension_numbers<[1], [0], [0], [1], [0, 0, 1, 1], [], []>} : vector<48x32xf32>, vector<32x8xf32>, vector<48x8xf32> -> vector<48x8xf32>
    %159 = vector.broadcast %149 : vector<1x8xf32> to vector<48x8xf32>
    %160 = arith.addf %158, %159 : vector<48x8xf32>
    %cst_70 = arith.constant dense<0.000000e+00> : vector<48x48xf32>
    %161 = tpu.matmul %154, %157, %cst_70 {dimension_numbers = #tpu.dot_dimension_numbers<[1], [1], [0], [0], [0, 0, 1, 0], [], []>} : vector<48x8xf32>, vector<48x8xf32>, vector<48x48xf32> -> vector<48x48xf32>
    %162 = arith.addf %161, %73 : vector<48x48xf32>
    %cst_71 = arith.constant dense<0xFF800000> : vector<48xf32>
    %163 = vector.multi_reduction <maximumf>, %162, %cst_71 [1] : vector<48x48xf32> to vector<48xf32>
    %164 = vector.shape_cast %163 : vector<48xf32> to vector<48x1xf32>
    %165 = vector.broadcast %164 : vector<48x1xf32> to vector<48x48xf32>
    %166 = arith.subf %162, %165 : vector<48x48xf32>
    %167 = math.exp %166 : vector<48x48xf32>
    %cst_72 = arith.constant dense<0.000000e+00> : vector<48xf32>
    %168 = vector.multi_reduction <add>, %167, %cst_72 [1] : vector<48x48xf32> to vector<48xf32>
    %169 = vector.shape_cast %168 : vector<48xf32> to vector<48x1xf32>
    %170 = tpu.reciprocal %169 {approx = true} : vector<48x1xf32> -> vector<48x1xf32>
    %171 = vector.broadcast %170 : vector<48x1xf32> to vector<48x48xf32>
    %172 = arith.mulf %167, %171 : vector<48x48xf32>
    %cst_73 = arith.constant dense<0.000000e+00> : vector<48x8xf32>
    %173 = tpu.matmul %172, %160, %cst_73 {dimension_numbers = #tpu.dot_dimension_numbers<[1], [0], [0], [1], [0, 0, 1, 1], [], []>} : vector<48x48xf32>, vector<48x8xf32>, vector<48x8xf32> -> vector<48x8xf32>
    %cst_74 = arith.constant dense<0.000000e+00> : vector<48x32xf32>
    %174 = tpu.matmul %173, %151, %cst_74 {dimension_numbers = #tpu.dot_dimension_numbers<[1], [1], [0], [0], [0, 0, 1, 0], [], []>} : vector<48x8xf32>, vector<32x8xf32>, vector<48x32xf32> -> vector<48x32xf32>
    %175 = arith.addf %137, %174 : vector<48x32xf32>
    %c2 = arith.constant 2 : index
    %c0_75 = arith.constant 0 : index
    %c0_76 = arith.constant 0 : index
    %176 = vector.load %arg4[%c2, %c0_75, %c0_76] : memref<32x33x8xf32, #tpu.memory_space<vmem>>, vector<1x32x8xf32>
    %177 = vector.shape_cast %176 : vector<1x32x8xf32> to vector<32x8xf32>
    %c2_77 = arith.constant 2 : index
    %c32_78 = arith.constant 32 : index
    %c0_79 = arith.constant 0 : index
    %178 = vector.load %arg4[%c2_77, %c32_78, %c0_79] : memref<32x33x8xf32, #tpu.memory_space<vmem>>, vector<1x1x8xf32>
    %179 = vector.shape_cast %178 : vector<1x1x8xf32> to vector<1x8xf32>
    %c6 = arith.constant 6 : index
    %c0_80 = arith.constant 0 : index
    %c0_81 = arith.constant 0 : index
    %180 = vector.load %arg4[%c6, %c0_80, %c0_81] : memref<32x33x8xf32, #tpu.memory_space<vmem>>, vector<1x32x8xf32>
    %181 = vector.shape_cast %180 : vector<1x32x8xf32> to vector<32x8xf32>
    %c6_82 = arith.constant 6 : index
    %c32_83 = arith.constant 32 : index
    %c0_84 = arith.constant 0 : index
    %182 = vector.load %arg4[%c6_82, %c32_83, %c0_84] : memref<32x33x8xf32, #tpu.memory_space<vmem>>, vector<1x1x8xf32>
    %183 = vector.shape_cast %182 : vector<1x1x8xf32> to vector<1x8xf32>
    %c10 = arith.constant 10 : index
    %c0_85 = arith.constant 0 : index
    %c0_86 = arith.constant 0 : index
    %184 = vector.load %arg4[%c10, %c0_85, %c0_86] : memref<32x33x8xf32, #tpu.memory_space<vmem>>, vector<1x32x8xf32>
    %185 = vector.shape_cast %184 : vector<1x32x8xf32> to vector<32x8xf32>
    %c10_87 = arith.constant 10 : index
    %c32_88 = arith.constant 32 : index
    %c0_89 = arith.constant 0 : index
    %186 = vector.load %arg4[%c10_87, %c32_88, %c0_89] : memref<32x33x8xf32, #tpu.memory_space<vmem>>, vector<1x1x8xf32>
    %187 = vector.shape_cast %186 : vector<1x1x8xf32> to vector<1x8xf32>
    %c14 = arith.constant 14 : index
    %c0_90 = arith.constant 0 : index
    %c0_91 = arith.constant 0 : index
    %188 = vector.load %arg4[%c14, %c0_90, %c0_91] : memref<32x33x8xf32, #tpu.memory_space<vmem>>, vector<1x32x8xf32>
    %189 = vector.shape_cast %188 : vector<1x32x8xf32> to vector<32x8xf32>
    %cst_92 = arith.constant dense<0.000000e+00> : vector<48x8xf32>
    %190 = tpu.matmul %100, %177, %cst_92 {dimension_numbers = #tpu.dot_dimension_numbers<[1], [0], [0], [1], [0, 0, 1, 1], [], []>} : vector<48x32xf32>, vector<32x8xf32>, vector<48x8xf32> -> vector<48x8xf32>
    %191 = vector.broadcast %179 : vector<1x8xf32> to vector<48x8xf32>
    %192 = arith.addf %190, %191 : vector<48x8xf32>
    %cst_93 = arith.constant dense<0.000000e+00> : vector<48x8xf32>
    %193 = tpu.matmul %100, %181, %cst_93 {dimension_numbers = #tpu.dot_dimension_numbers<[1], [0], [0], [1], [0, 0, 1, 1], [], []>} : vector<48x32xf32>, vector<32x8xf32>, vector<48x8xf32> -> vector<48x8xf32>
    %194 = vector.broadcast %183 : vector<1x8xf32> to vector<48x8xf32>
    %195 = arith.addf %193, %194 : vector<48x8xf32>
    %cst_94 = arith.constant dense<0.000000e+00> : vector<48x8xf32>
    %196 = tpu.matmul %100, %185, %cst_94 {dimension_numbers = #tpu.dot_dimension_numbers<[1], [0], [0], [1], [0, 0, 1, 1], [], []>} : vector<48x32xf32>, vector<32x8xf32>, vector<48x8xf32> -> vector<48x8xf32>
    %197 = vector.broadcast %187 : vector<1x8xf32> to vector<48x8xf32>
    %198 = arith.addf %196, %197 : vector<48x8xf32>
    %cst_95 = arith.constant dense<0.000000e+00> : vector<48x48xf32>
    %199 = tpu.matmul %192, %195, %cst_95 {dimension_numbers = #tpu.dot_dimension_numbers<[1], [1], [0], [0], [0, 0, 1, 0], [], []>} : vector<48x8xf32>, vector<48x8xf32>, vector<48x48xf32> -> vector<48x48xf32>
    %200 = arith.addf %199, %73 : vector<48x48xf32>
    %cst_96 = arith.constant dense<0xFF800000> : vector<48xf32>
    %201 = vector.multi_reduction <maximumf>, %200, %cst_96 [1] : vector<48x48xf32> to vector<48xf32>
    %202 = vector.shape_cast %201 : vector<48xf32> to vector<48x1xf32>
    %203 = vector.broadcast %202 : vector<48x1xf32> to vector<48x48xf32>
    %204 = arith.subf %200, %203 : vector<48x48xf32>
    %205 = math.exp %204 : vector<48x48xf32>
    %cst_97 = arith.constant dense<0.000000e+00> : vector<48xf32>
    %206 = vector.multi_reduction <add>, %205, %cst_97 [1] : vector<48x48xf32> to vector<48xf32>
    %207 = vector.shape_cast %206 : vector<48xf32> to vector<48x1xf32>
    %208 = tpu.reciprocal %207 {approx = true} : vector<48x1xf32> -> vector<48x1xf32>
    %209 = vector.broadcast %208 : vector<48x1xf32> to vector<48x48xf32>
    %210 = arith.mulf %205, %209 : vector<48x48xf32>
    %cst_98 = arith.constant dense<0.000000e+00> : vector<48x8xf32>
    %211 = tpu.matmul %210, %198, %cst_98 {dimension_numbers = #tpu.dot_dimension_numbers<[1], [0], [0], [1], [0, 0, 1, 1], [], []>} : vector<48x48xf32>, vector<48x8xf32>, vector<48x8xf32> -> vector<48x8xf32>
    %cst_99 = arith.constant dense<0.000000e+00> : vector<48x32xf32>
    %212 = tpu.matmul %211, %189, %cst_99 {dimension_numbers = #tpu.dot_dimension_numbers<[1], [1], [0], [0], [0, 0, 1, 0], [], []>} : vector<48x8xf32>, vector<32x8xf32>, vector<48x32xf32> -> vector<48x32xf32>
    %213 = arith.addf %175, %212 : vector<48x32xf32>
    %c3 = arith.constant 3 : index
    %c0_100 = arith.constant 0 : index
    %c0_101 = arith.constant 0 : index
    %214 = vector.load %arg4[%c3, %c0_100, %c0_101] : memref<32x33x8xf32, #tpu.memory_space<vmem>>, vector<1x32x8xf32>
    %215 = vector.shape_cast %214 : vector<1x32x8xf32> to vector<32x8xf32>
    %c3_102 = arith.constant 3 : index
    %c32_103 = arith.constant 32 : index
    %c0_104 = arith.constant 0 : index
    %216 = vector.load %arg4[%c3_102, %c32_103, %c0_104] : memref<32x33x8xf32, #tpu.memory_space<vmem>>, vector<1x1x8xf32>
    %217 = vector.shape_cast %216 : vector<1x1x8xf32> to vector<1x8xf32>
    %c7 = arith.constant 7 : index
    %c0_105 = arith.constant 0 : index
    %c0_106 = arith.constant 0 : index
    %218 = vector.load %arg4[%c7, %c0_105, %c0_106] : memref<32x33x8xf32, #tpu.memory_space<vmem>>, vector<1x32x8xf32>
    %219 = vector.shape_cast %218 : vector<1x32x8xf32> to vector<32x8xf32>
    %c7_107 = arith.constant 7 : index
    %c32_108 = arith.constant 32 : index
    %c0_109 = arith.constant 0 : index
    %220 = vector.load %arg4[%c7_107, %c32_108, %c0_109] : memref<32x33x8xf32, #tpu.memory_space<vmem>>, vector<1x1x8xf32>
    %221 = vector.shape_cast %220 : vector<1x1x8xf32> to vector<1x8xf32>
    %c11 = arith.constant 11 : index
    %c0_110 = arith.constant 0 : index
    %c0_111 = arith.constant 0 : index
    %222 = vector.load %arg4[%c11, %c0_110, %c0_111] : memref<32x33x8xf32, #tpu.memory_space<vmem>>, vector<1x32x8xf32>
    %223 = vector.shape_cast %222 : vector<1x32x8xf32> to vector<32x8xf32>
    %c11_112 = arith.constant 11 : index
    %c32_113 = arith.constant 32 : index
    %c0_114 = arith.constant 0 : index
    %224 = vector.load %arg4[%c11_112, %c32_113, %c0_114] : memref<32x33x8xf32, #tpu.memory_space<vmem>>, vector<1x1x8xf32>
    %225 = vector.shape_cast %224 : vector<1x1x8xf32> to vector<1x8xf32>
    %c15 = arith.constant 15 : index
    %c0_115 = arith.constant 0 : index
    %c0_116 = arith.constant 0 : index
    %226 = vector.load %arg4[%c15, %c0_115, %c0_116] : memref<32x33x8xf32, #tpu.memory_space<vmem>>, vector<1x32x8xf32>
    %227 = vector.shape_cast %226 : vector<1x32x8xf32> to vector<32x8xf32>
    %cst_117 = arith.constant dense<0.000000e+00> : vector<48x8xf32>
    %228 = tpu.matmul %100, %215, %cst_117 {dimension_numbers = #tpu.dot_dimension_numbers<[1], [0], [0], [1], [0, 0, 1, 1], [], []>} : vector<48x32xf32>, vector<32x8xf32>, vector<48x8xf32> -> vector<48x8xf32>
    %229 = vector.broadcast %217 : vector<1x8xf32> to vector<48x8xf32>
    %230 = arith.addf %228, %229 : vector<48x8xf32>
    %cst_118 = arith.constant dense<0.000000e+00> : vector<48x8xf32>
    %231 = tpu.matmul %100, %219, %cst_118 {dimension_numbers = #tpu.dot_dimension_numbers<[1], [0], [0], [1], [0, 0, 1, 1], [], []>} : vector<48x32xf32>, vector<32x8xf32>, vector<48x8xf32> -> vector<48x8xf32>
    %232 = vector.broadcast %221 : vector<1x8xf32> to vector<48x8xf32>
    %233 = arith.addf %231, %232 : vector<48x8xf32>
    %cst_119 = arith.constant dense<0.000000e+00> : vector<48x8xf32>
    %234 = tpu.matmul %100, %223, %cst_119 {dimension_numbers = #tpu.dot_dimension_numbers<[1], [0], [0], [1], [0, 0, 1, 1], [], []>} : vector<48x32xf32>, vector<32x8xf32>, vector<48x8xf32> -> vector<48x8xf32>
    %235 = vector.broadcast %225 : vector<1x8xf32> to vector<48x8xf32>
    %236 = arith.addf %234, %235 : vector<48x8xf32>
    %cst_120 = arith.constant dense<0.000000e+00> : vector<48x48xf32>
    %237 = tpu.matmul %230, %233, %cst_120 {dimension_numbers = #tpu.dot_dimension_numbers<[1], [1], [0], [0], [0, 0, 1, 0], [], []>} : vector<48x8xf32>, vector<48x8xf32>, vector<48x48xf32> -> vector<48x48xf32>
    %238 = arith.addf %237, %73 : vector<48x48xf32>
    %cst_121 = arith.constant dense<0xFF800000> : vector<48xf32>
    %239 = vector.multi_reduction <maximumf>, %238, %cst_121 [1] : vector<48x48xf32> to vector<48xf32>
    %240 = vector.shape_cast %239 : vector<48xf32> to vector<48x1xf32>
    %241 = vector.broadcast %240 : vector<48x1xf32> to vector<48x48xf32>
    %242 = arith.subf %238, %241 : vector<48x48xf32>
    %243 = math.exp %242 : vector<48x48xf32>
    %cst_122 = arith.constant dense<0.000000e+00> : vector<48xf32>
    %244 = vector.multi_reduction <add>, %243, %cst_122 [1] : vector<48x48xf32> to vector<48xf32>
    %245 = vector.shape_cast %244 : vector<48xf32> to vector<48x1xf32>
    %246 = tpu.reciprocal %245 {approx = true} : vector<48x1xf32> -> vector<48x1xf32>
    %247 = vector.broadcast %246 : vector<48x1xf32> to vector<48x48xf32>
    %248 = arith.mulf %243, %247 : vector<48x48xf32>
    %cst_123 = arith.constant dense<0.000000e+00> : vector<48x8xf32>
    %249 = tpu.matmul %248, %236, %cst_123 {dimension_numbers = #tpu.dot_dimension_numbers<[1], [0], [0], [1], [0, 0, 1, 1], [], []>} : vector<48x48xf32>, vector<48x8xf32>, vector<48x8xf32> -> vector<48x8xf32>
    %cst_124 = arith.constant dense<0.000000e+00> : vector<48x32xf32>
    %250 = tpu.matmul %249, %227, %cst_124 {dimension_numbers = #tpu.dot_dimension_numbers<[1], [1], [0], [0], [0, 0, 1, 0], [], []>} : vector<48x8xf32>, vector<32x8xf32>, vector<48x32xf32> -> vector<48x32xf32>
    %251 = arith.addf %213, %250 : vector<48x32xf32>
    %252 = arith.addf %78, %251 : vector<48x32xf32>
    %c2_125 = arith.constant 2 : index
    %c0_126 = arith.constant 0 : index
    %253 = vector.load %arg7[%c2_125, %c0_126] : memref<14x32xf32, #tpu.memory_space<vmem>>, vector<1x32xf32>
    %254 = vector.broadcast %253 : vector<1x32xf32> to vector<48x32xf32>
    %255 = arith.addf %252, %254 : vector<48x32xf32>
    %c3_127 = arith.constant 3 : index
    %c0_128 = arith.constant 0 : index
    %256 = vector.load %arg7[%c3_127, %c0_128] : memref<14x32xf32, #tpu.memory_space<vmem>>, vector<1x32xf32>
    %c4_129 = arith.constant 4 : index
    %c0_130 = arith.constant 0 : index
    %257 = vector.load %arg7[%c4_129, %c0_130] : memref<14x32xf32, #tpu.memory_space<vmem>>, vector<1x32xf32>
    %cst_131 = arith.constant dense<0.000000e+00> : vector<48xf32>
    %258 = vector.multi_reduction <add>, %255, %cst_131 [1] : vector<48x32xf32> to vector<48xf32>
    %259 = vector.shape_cast %258 : vector<48xf32> to vector<48x1xf32>
    %cst_132 = arith.constant 3.200000e+01 : f32
    %260 = vector.broadcast %cst_132 : f32 to vector<48x1xf32>
    %261 = arith.divf %259, %260 : vector<48x1xf32>
    %262 = vector.broadcast %261 : vector<48x1xf32> to vector<48x32xf32>
    %263 = arith.subf %255, %262 : vector<48x32xf32>
    %264 = arith.mulf %263, %263 : vector<48x32xf32>
    %cst_133 = arith.constant dense<0.000000e+00> : vector<48xf32>
    %265 = vector.multi_reduction <add>, %264, %cst_133 [1] : vector<48x32xf32> to vector<48xf32>
    %266 = vector.shape_cast %265 : vector<48xf32> to vector<48x1xf32>
    %cst_134 = arith.constant 3.200000e+01 : f32
    %267 = vector.broadcast %cst_134 : f32 to vector<48x1xf32>
    %268 = arith.divf %266, %267 : vector<48x1xf32>
    %cst_135 = arith.constant 9.99999974E-6 : f32
    %269 = vector.broadcast %cst_135 : f32 to vector<48x1xf32>
    %270 = arith.addf %268, %269 : vector<48x1xf32>
    %271 = math.rsqrt %270 : vector<48x1xf32>
    %272 = vector.broadcast %271 : vector<48x1xf32> to vector<48x32xf32>
    %273 = arith.mulf %263, %272 : vector<48x32xf32>
    %274 = vector.broadcast %256 : vector<1x32xf32> to vector<48x32xf32>
    %275 = arith.mulf %273, %274 : vector<48x32xf32>
    %276 = vector.broadcast %257 : vector<1x32xf32> to vector<48x32xf32>
    %277 = arith.addf %275, %276 : vector<48x32xf32>
    %c0_136 = arith.constant 0 : index
    %c0_137 = arith.constant 0 : index
    %c0_138 = arith.constant 0 : index
    %278 = vector.load %arg5[%c0_136, %c0_137, %c0_138] : memref<2x33x128xf32, #tpu.memory_space<vmem>>, vector<1x32x128xf32>
    %279 = vector.shape_cast %278 : vector<1x32x128xf32> to vector<32x128xf32>
    %cst_139 = arith.constant dense<0.000000e+00> : vector<48x128xf32>
    %280 = tpu.matmul %277, %279, %cst_139 {dimension_numbers = #tpu.dot_dimension_numbers<[1], [0], [0], [1], [0, 0, 1, 1], [], []>} : vector<48x32xf32>, vector<32x128xf32>, vector<48x128xf32> -> vector<48x128xf32>
    %c0_140 = arith.constant 0 : index
    %c32_141 = arith.constant 32 : index
    %c0_142 = arith.constant 0 : index
    %281 = vector.load %arg5[%c0_140, %c32_141, %c0_142] : memref<2x33x128xf32, #tpu.memory_space<vmem>>, vector<1x1x128xf32>
    %282 = vector.shape_cast %281 : vector<1x1x128xf32> to vector<1x128xf32>
    %283 = vector.broadcast %282 : vector<1x128xf32> to vector<48x128xf32>
    %284 = arith.addf %280, %283 : vector<48x128xf32>
    %cst_143 = arith.constant 5.000000e-01 : f32
    %285 = vector.broadcast %cst_143 : f32 to vector<48x128xf32>
    %286 = arith.mulf %285, %284 : vector<48x128xf32>
    %cst_144 = arith.constant 4.471500e-02 : f32
    %287 = vector.broadcast %cst_144 : f32 to vector<48x128xf32>
    %288 = arith.mulf %287, %284 : vector<48x128xf32>
    %289 = arith.mulf %288, %284 : vector<48x128xf32>
    %290 = arith.mulf %289, %284 : vector<48x128xf32>
    %291 = arith.addf %284, %290 : vector<48x128xf32>
    %cst_145 = arith.constant 0.797884583 : f32
    %292 = vector.broadcast %cst_145 : f32 to vector<48x128xf32>
    %293 = arith.mulf %292, %291 : vector<48x128xf32>
    %294 = math.tanh %293 : vector<48x128xf32>
    %cst_146 = arith.constant 1.000000e+00 : f32
    %295 = vector.broadcast %cst_146 : f32 to vector<48x128xf32>
    %296 = arith.addf %295, %294 : vector<48x128xf32>
    %297 = arith.mulf %286, %296 : vector<48x128xf32>
    %c0_147 = arith.constant 0 : index
    %c0_148 = arith.constant 0 : index
    %c0_149 = arith.constant 0 : index
    %298 = vector.load %arg6[%c0_147, %c0_148, %c0_149] : memref<2x128x32xf32, #tpu.memory_space<vmem>>, vector<1x128x32xf32>
    %299 = vector.shape_cast %298 : vector<1x128x32xf32> to vector<128x32xf32>
    %cst_150 = arith.constant dense<0.000000e+00> : vector<48x32xf32>
    %300 = tpu.matmul %297, %299, %cst_150 {dimension_numbers = #tpu.dot_dimension_numbers<[1], [0], [0], [1], [0, 0, 1, 1], [], []>} : vector<48x128xf32>, vector<128x32xf32>, vector<48x32xf32> -> vector<48x32xf32>
    %c5_151 = arith.constant 5 : index
    %c0_152 = arith.constant 0 : index
    %301 = vector.load %arg7[%c5_151, %c0_152] : memref<14x32xf32, #tpu.memory_space<vmem>>, vector<1x32xf32>
    %302 = vector.broadcast %301 : vector<1x32xf32> to vector<48x32xf32>
    %303 = arith.addf %300, %302 : vector<48x32xf32>
    %304 = arith.addf %255, %303 : vector<48x32xf32>
    %c6_153 = arith.constant 6 : index
    %c0_154 = arith.constant 0 : index
    %305 = vector.load %arg7[%c6_153, %c0_154] : memref<14x32xf32, #tpu.memory_space<vmem>>, vector<1x32xf32>
    %c7_155 = arith.constant 7 : index
    %c0_156 = arith.constant 0 : index
    %306 = vector.load %arg7[%c7_155, %c0_156] : memref<14x32xf32, #tpu.memory_space<vmem>>, vector<1x32xf32>
    %cst_157 = arith.constant dense<0.000000e+00> : vector<48xf32>
    %307 = vector.multi_reduction <add>, %304, %cst_157 [1] : vector<48x32xf32> to vector<48xf32>
    %308 = vector.shape_cast %307 : vector<48xf32> to vector<48x1xf32>
    %cst_158 = arith.constant 3.200000e+01 : f32
    %309 = vector.broadcast %cst_158 : f32 to vector<48x1xf32>
    %310 = arith.divf %308, %309 : vector<48x1xf32>
    %311 = vector.broadcast %310 : vector<48x1xf32> to vector<48x32xf32>
    %312 = arith.subf %304, %311 : vector<48x32xf32>
    %313 = arith.mulf %312, %312 : vector<48x32xf32>
    %cst_159 = arith.constant dense<0.000000e+00> : vector<48xf32>
    %314 = vector.multi_reduction <add>, %313, %cst_159 [1] : vector<48x32xf32> to vector<48xf32>
    %315 = vector.shape_cast %314 : vector<48xf32> to vector<48x1xf32>
    %cst_160 = arith.constant 3.200000e+01 : f32
    %316 = vector.broadcast %cst_160 : f32 to vector<48x1xf32>
    %317 = arith.divf %315, %316 : vector<48x1xf32>
    %cst_161 = arith.constant 9.99999974E-6 : f32
    %318 = vector.broadcast %cst_161 : f32 to vector<48x1xf32>
    %319 = arith.addf %317, %318 : vector<48x1xf32>
    %320 = math.rsqrt %319 : vector<48x1xf32>
    %321 = vector.broadcast %320 : vector<48x1xf32> to vector<48x32xf32>
    %322 = arith.mulf %312, %321 : vector<48x32xf32>
    %323 = vector.broadcast %305 : vector<1x32xf32> to vector<48x32xf32>
    %324 = arith.mulf %322, %323 : vector<48x32xf32>
    %325 = vector.broadcast %306 : vector<1x32xf32> to vector<48x32xf32>
    %326 = arith.addf %324, %325 : vector<48x32xf32>
    %c16 = arith.constant 16 : index
    %c0_162 = arith.constant 0 : index
    %c0_163 = arith.constant 0 : index
    %327 = vector.load %arg4[%c16, %c0_162, %c0_163] : memref<32x33x8xf32, #tpu.memory_space<vmem>>, vector<1x32x8xf32>
    %328 = vector.shape_cast %327 : vector<1x32x8xf32> to vector<32x8xf32>
    %c16_164 = arith.constant 16 : index
    %c32_165 = arith.constant 32 : index
    %c0_166 = arith.constant 0 : index
    %329 = vector.load %arg4[%c16_164, %c32_165, %c0_166] : memref<32x33x8xf32, #tpu.memory_space<vmem>>, vector<1x1x8xf32>
    %330 = vector.shape_cast %329 : vector<1x1x8xf32> to vector<1x8xf32>
    %c20 = arith.constant 20 : index
    %c0_167 = arith.constant 0 : index
    %c0_168 = arith.constant 0 : index
    %331 = vector.load %arg4[%c20, %c0_167, %c0_168] : memref<32x33x8xf32, #tpu.memory_space<vmem>>, vector<1x32x8xf32>
    %332 = vector.shape_cast %331 : vector<1x32x8xf32> to vector<32x8xf32>
    %c20_169 = arith.constant 20 : index
    %c32_170 = arith.constant 32 : index
    %c0_171 = arith.constant 0 : index
    %333 = vector.load %arg4[%c20_169, %c32_170, %c0_171] : memref<32x33x8xf32, #tpu.memory_space<vmem>>, vector<1x1x8xf32>
    %334 = vector.shape_cast %333 : vector<1x1x8xf32> to vector<1x8xf32>
    %c24 = arith.constant 24 : index
    %c0_172 = arith.constant 0 : index
    %c0_173 = arith.constant 0 : index
    %335 = vector.load %arg4[%c24, %c0_172, %c0_173] : memref<32x33x8xf32, #tpu.memory_space<vmem>>, vector<1x32x8xf32>
    %336 = vector.shape_cast %335 : vector<1x32x8xf32> to vector<32x8xf32>
    %c24_174 = arith.constant 24 : index
    %c32_175 = arith.constant 32 : index
    %c0_176 = arith.constant 0 : index
    %337 = vector.load %arg4[%c24_174, %c32_175, %c0_176] : memref<32x33x8xf32, #tpu.memory_space<vmem>>, vector<1x1x8xf32>
    %338 = vector.shape_cast %337 : vector<1x1x8xf32> to vector<1x8xf32>
    %c28 = arith.constant 28 : index
    %c0_177 = arith.constant 0 : index
    %c0_178 = arith.constant 0 : index
    %339 = vector.load %arg4[%c28, %c0_177, %c0_178] : memref<32x33x8xf32, #tpu.memory_space<vmem>>, vector<1x32x8xf32>
    %340 = vector.shape_cast %339 : vector<1x32x8xf32> to vector<32x8xf32>
    %cst_179 = arith.constant dense<0.000000e+00> : vector<48x8xf32>
    %341 = tpu.matmul %326, %328, %cst_179 {dimension_numbers = #tpu.dot_dimension_numbers<[1], [0], [0], [1], [0, 0, 1, 1], [], []>} : vector<48x32xf32>, vector<32x8xf32>, vector<48x8xf32> -> vector<48x8xf32>
    %342 = vector.broadcast %330 : vector<1x8xf32> to vector<48x8xf32>
    %343 = arith.addf %341, %342 : vector<48x8xf32>
    %cst_180 = arith.constant dense<0.000000e+00> : vector<48x8xf32>
    %344 = tpu.matmul %326, %332, %cst_180 {dimension_numbers = #tpu.dot_dimension_numbers<[1], [0], [0], [1], [0, 0, 1, 1], [], []>} : vector<48x32xf32>, vector<32x8xf32>, vector<48x8xf32> -> vector<48x8xf32>
    %345 = vector.broadcast %334 : vector<1x8xf32> to vector<48x8xf32>
    %346 = arith.addf %344, %345 : vector<48x8xf32>
    %cst_181 = arith.constant dense<0.000000e+00> : vector<48x8xf32>
    %347 = tpu.matmul %326, %336, %cst_181 {dimension_numbers = #tpu.dot_dimension_numbers<[1], [0], [0], [1], [0, 0, 1, 1], [], []>} : vector<48x32xf32>, vector<32x8xf32>, vector<48x8xf32> -> vector<48x8xf32>
    %348 = vector.broadcast %338 : vector<1x8xf32> to vector<48x8xf32>
    %349 = arith.addf %347, %348 : vector<48x8xf32>
    %cst_182 = arith.constant dense<0.000000e+00> : vector<48x48xf32>
    %350 = tpu.matmul %343, %346, %cst_182 {dimension_numbers = #tpu.dot_dimension_numbers<[1], [1], [0], [0], [0, 0, 1, 0], [], []>} : vector<48x8xf32>, vector<48x8xf32>, vector<48x48xf32> -> vector<48x48xf32>
    %351 = arith.addf %350, %73 : vector<48x48xf32>
    %cst_183 = arith.constant dense<0xFF800000> : vector<48xf32>
    %352 = vector.multi_reduction <maximumf>, %351, %cst_183 [1] : vector<48x48xf32> to vector<48xf32>
    %353 = vector.shape_cast %352 : vector<48xf32> to vector<48x1xf32>
    %354 = vector.broadcast %353 : vector<48x1xf32> to vector<48x48xf32>
    %355 = arith.subf %351, %354 : vector<48x48xf32>
    %356 = math.exp %355 : vector<48x48xf32>
    %cst_184 = arith.constant dense<0.000000e+00> : vector<48xf32>
    %357 = vector.multi_reduction <add>, %356, %cst_184 [1] : vector<48x48xf32> to vector<48xf32>
    %358 = vector.shape_cast %357 : vector<48xf32> to vector<48x1xf32>
    %359 = tpu.reciprocal %358 {approx = true} : vector<48x1xf32> -> vector<48x1xf32>
    %360 = vector.broadcast %359 : vector<48x1xf32> to vector<48x48xf32>
    %361 = arith.mulf %356, %360 : vector<48x48xf32>
    %cst_185 = arith.constant dense<0.000000e+00> : vector<48x8xf32>
    %362 = tpu.matmul %361, %349, %cst_185 {dimension_numbers = #tpu.dot_dimension_numbers<[1], [0], [0], [1], [0, 0, 1, 1], [], []>} : vector<48x48xf32>, vector<48x8xf32>, vector<48x8xf32> -> vector<48x8xf32>
    %cst_186 = arith.constant dense<0.000000e+00> : vector<48x32xf32>
    %363 = tpu.matmul %362, %340, %cst_186 {dimension_numbers = #tpu.dot_dimension_numbers<[1], [1], [0], [0], [0, 0, 1, 0], [], []>} : vector<48x8xf32>, vector<32x8xf32>, vector<48x32xf32> -> vector<48x32xf32>
    %c17 = arith.constant 17 : index
    %c0_187 = arith.constant 0 : index
    %c0_188 = arith.constant 0 : index
    %364 = vector.load %arg4[%c17, %c0_187, %c0_188] : memref<32x33x8xf32, #tpu.memory_space<vmem>>, vector<1x32x8xf32>
    %365 = vector.shape_cast %364 : vector<1x32x8xf32> to vector<32x8xf32>
    %c17_189 = arith.constant 17 : index
    %c32_190 = arith.constant 32 : index
    %c0_191 = arith.constant 0 : index
    %366 = vector.load %arg4[%c17_189, %c32_190, %c0_191] : memref<32x33x8xf32, #tpu.memory_space<vmem>>, vector<1x1x8xf32>
    %367 = vector.shape_cast %366 : vector<1x1x8xf32> to vector<1x8xf32>
    %c21 = arith.constant 21 : index
    %c0_192 = arith.constant 0 : index
    %c0_193 = arith.constant 0 : index
    %368 = vector.load %arg4[%c21, %c0_192, %c0_193] : memref<32x33x8xf32, #tpu.memory_space<vmem>>, vector<1x32x8xf32>
    %369 = vector.shape_cast %368 : vector<1x32x8xf32> to vector<32x8xf32>
    %c21_194 = arith.constant 21 : index
    %c32_195 = arith.constant 32 : index
    %c0_196 = arith.constant 0 : index
    %370 = vector.load %arg4[%c21_194, %c32_195, %c0_196] : memref<32x33x8xf32, #tpu.memory_space<vmem>>, vector<1x1x8xf32>
    %371 = vector.shape_cast %370 : vector<1x1x8xf32> to vector<1x8xf32>
    %c25 = arith.constant 25 : index
    %c0_197 = arith.constant 0 : index
    %c0_198 = arith.constant 0 : index
    %372 = vector.load %arg4[%c25, %c0_197, %c0_198] : memref<32x33x8xf32, #tpu.memory_space<vmem>>, vector<1x32x8xf32>
    %373 = vector.shape_cast %372 : vector<1x32x8xf32> to vector<32x8xf32>
    %c25_199 = arith.constant 25 : index
    %c32_200 = arith.constant 32 : index
    %c0_201 = arith.constant 0 : index
    %374 = vector.load %arg4[%c25_199, %c32_200, %c0_201] : memref<32x33x8xf32, #tpu.memory_space<vmem>>, vector<1x1x8xf32>
    %375 = vector.shape_cast %374 : vector<1x1x8xf32> to vector<1x8xf32>
    %c29 = arith.constant 29 : index
    %c0_202 = arith.constant 0 : index
    %c0_203 = arith.constant 0 : index
    %376 = vector.load %arg4[%c29, %c0_202, %c0_203] : memref<32x33x8xf32, #tpu.memory_space<vmem>>, vector<1x32x8xf32>
    %377 = vector.shape_cast %376 : vector<1x32x8xf32> to vector<32x8xf32>
    %cst_204 = arith.constant dense<0.000000e+00> : vector<48x8xf32>
    %378 = tpu.matmul %326, %365, %cst_204 {dimension_numbers = #tpu.dot_dimension_numbers<[1], [0], [0], [1], [0, 0, 1, 1], [], []>} : vector<48x32xf32>, vector<32x8xf32>, vector<48x8xf32> -> vector<48x8xf32>
    %379 = vector.broadcast %367 : vector<1x8xf32> to vector<48x8xf32>
    %380 = arith.addf %378, %379 : vector<48x8xf32>
    %cst_205 = arith.constant dense<0.000000e+00> : vector<48x8xf32>
    %381 = tpu.matmul %326, %369, %cst_205 {dimension_numbers = #tpu.dot_dimension_numbers<[1], [0], [0], [1], [0, 0, 1, 1], [], []>} : vector<48x32xf32>, vector<32x8xf32>, vector<48x8xf32> -> vector<48x8xf32>
    %382 = vector.broadcast %371 : vector<1x8xf32> to vector<48x8xf32>
    %383 = arith.addf %381, %382 : vector<48x8xf32>
    %cst_206 = arith.constant dense<0.000000e+00> : vector<48x8xf32>
    %384 = tpu.matmul %326, %373, %cst_206 {dimension_numbers = #tpu.dot_dimension_numbers<[1], [0], [0], [1], [0, 0, 1, 1], [], []>} : vector<48x32xf32>, vector<32x8xf32>, vector<48x8xf32> -> vector<48x8xf32>
    %385 = vector.broadcast %375 : vector<1x8xf32> to vector<48x8xf32>
    %386 = arith.addf %384, %385 : vector<48x8xf32>
    %cst_207 = arith.constant dense<0.000000e+00> : vector<48x48xf32>
    %387 = tpu.matmul %380, %383, %cst_207 {dimension_numbers = #tpu.dot_dimension_numbers<[1], [1], [0], [0], [0, 0, 1, 0], [], []>} : vector<48x8xf32>, vector<48x8xf32>, vector<48x48xf32> -> vector<48x48xf32>
    %388 = arith.addf %387, %73 : vector<48x48xf32>
    %cst_208 = arith.constant dense<0xFF800000> : vector<48xf32>
    %389 = vector.multi_reduction <maximumf>, %388, %cst_208 [1] : vector<48x48xf32> to vector<48xf32>
    %390 = vector.shape_cast %389 : vector<48xf32> to vector<48x1xf32>
    %391 = vector.broadcast %390 : vector<48x1xf32> to vector<48x48xf32>
    %392 = arith.subf %388, %391 : vector<48x48xf32>
    %393 = math.exp %392 : vector<48x48xf32>
    %cst_209 = arith.constant dense<0.000000e+00> : vector<48xf32>
    %394 = vector.multi_reduction <add>, %393, %cst_209 [1] : vector<48x48xf32> to vector<48xf32>
    %395 = vector.shape_cast %394 : vector<48xf32> to vector<48x1xf32>
    %396 = tpu.reciprocal %395 {approx = true} : vector<48x1xf32> -> vector<48x1xf32>
    %397 = vector.broadcast %396 : vector<48x1xf32> to vector<48x48xf32>
    %398 = arith.mulf %393, %397 : vector<48x48xf32>
    %cst_210 = arith.constant dense<0.000000e+00> : vector<48x8xf32>
    %399 = tpu.matmul %398, %386, %cst_210 {dimension_numbers = #tpu.dot_dimension_numbers<[1], [0], [0], [1], [0, 0, 1, 1], [], []>} : vector<48x48xf32>, vector<48x8xf32>, vector<48x8xf32> -> vector<48x8xf32>
    %cst_211 = arith.constant dense<0.000000e+00> : vector<48x32xf32>
    %400 = tpu.matmul %399, %377, %cst_211 {dimension_numbers = #tpu.dot_dimension_numbers<[1], [1], [0], [0], [0, 0, 1, 0], [], []>} : vector<48x8xf32>, vector<32x8xf32>, vector<48x32xf32> -> vector<48x32xf32>
    %401 = arith.addf %363, %400 : vector<48x32xf32>
    %c18 = arith.constant 18 : index
    %c0_212 = arith.constant 0 : index
    %c0_213 = arith.constant 0 : index
    %402 = vector.load %arg4[%c18, %c0_212, %c0_213] : memref<32x33x8xf32, #tpu.memory_space<vmem>>, vector<1x32x8xf32>
    %403 = vector.shape_cast %402 : vector<1x32x8xf32> to vector<32x8xf32>
    %c18_214 = arith.constant 18 : index
    %c32_215 = arith.constant 32 : index
    %c0_216 = arith.constant 0 : index
    %404 = vector.load %arg4[%c18_214, %c32_215, %c0_216] : memref<32x33x8xf32, #tpu.memory_space<vmem>>, vector<1x1x8xf32>
    %405 = vector.shape_cast %404 : vector<1x1x8xf32> to vector<1x8xf32>
    %c22 = arith.constant 22 : index
    %c0_217 = arith.constant 0 : index
    %c0_218 = arith.constant 0 : index
    %406 = vector.load %arg4[%c22, %c0_217, %c0_218] : memref<32x33x8xf32, #tpu.memory_space<vmem>>, vector<1x32x8xf32>
    %407 = vector.shape_cast %406 : vector<1x32x8xf32> to vector<32x8xf32>
    %c22_219 = arith.constant 22 : index
    %c32_220 = arith.constant 32 : index
    %c0_221 = arith.constant 0 : index
    %408 = vector.load %arg4[%c22_219, %c32_220, %c0_221] : memref<32x33x8xf32, #tpu.memory_space<vmem>>, vector<1x1x8xf32>
    %409 = vector.shape_cast %408 : vector<1x1x8xf32> to vector<1x8xf32>
    %c26 = arith.constant 26 : index
    %c0_222 = arith.constant 0 : index
    %c0_223 = arith.constant 0 : index
    %410 = vector.load %arg4[%c26, %c0_222, %c0_223] : memref<32x33x8xf32, #tpu.memory_space<vmem>>, vector<1x32x8xf32>
    %411 = vector.shape_cast %410 : vector<1x32x8xf32> to vector<32x8xf32>
    %c26_224 = arith.constant 26 : index
    %c32_225 = arith.constant 32 : index
    %c0_226 = arith.constant 0 : index
    %412 = vector.load %arg4[%c26_224, %c32_225, %c0_226] : memref<32x33x8xf32, #tpu.memory_space<vmem>>, vector<1x1x8xf32>
    %413 = vector.shape_cast %412 : vector<1x1x8xf32> to vector<1x8xf32>
    %c30 = arith.constant 30 : index
    %c0_227 = arith.constant 0 : index
    %c0_228 = arith.constant 0 : index
    %414 = vector.load %arg4[%c30, %c0_227, %c0_228] : memref<32x33x8xf32, #tpu.memory_space<vmem>>, vector<1x32x8xf32>
    %415 = vector.shape_cast %414 : vector<1x32x8xf32> to vector<32x8xf32>
    %cst_229 = arith.constant dense<0.000000e+00> : vector<48x8xf32>
    %416 = tpu.matmul %326, %403, %cst_229 {dimension_numbers = #tpu.dot_dimension_numbers<[1], [0], [0], [1], [0, 0, 1, 1], [], []>} : vector<48x32xf32>, vector<32x8xf32>, vector<48x8xf32> -> vector<48x8xf32>
    %417 = vector.broadcast %405 : vector<1x8xf32> to vector<48x8xf32>
    %418 = arith.addf %416, %417 : vector<48x8xf32>
    %cst_230 = arith.constant dense<0.000000e+00> : vector<48x8xf32>
    %419 = tpu.matmul %326, %407, %cst_230 {dimension_numbers = #tpu.dot_dimension_numbers<[1], [0], [0], [1], [0, 0, 1, 1], [], []>} : vector<48x32xf32>, vector<32x8xf32>, vector<48x8xf32> -> vector<48x8xf32>
    %420 = vector.broadcast %409 : vector<1x8xf32> to vector<48x8xf32>
    %421 = arith.addf %419, %420 : vector<48x8xf32>
    %cst_231 = arith.constant dense<0.000000e+00> : vector<48x8xf32>
    %422 = tpu.matmul %326, %411, %cst_231 {dimension_numbers = #tpu.dot_dimension_numbers<[1], [0], [0], [1], [0, 0, 1, 1], [], []>} : vector<48x32xf32>, vector<32x8xf32>, vector<48x8xf32> -> vector<48x8xf32>
    %423 = vector.broadcast %413 : vector<1x8xf32> to vector<48x8xf32>
    %424 = arith.addf %422, %423 : vector<48x8xf32>
    %cst_232 = arith.constant dense<0.000000e+00> : vector<48x48xf32>
    %425 = tpu.matmul %418, %421, %cst_232 {dimension_numbers = #tpu.dot_dimension_numbers<[1], [1], [0], [0], [0, 0, 1, 0], [], []>} : vector<48x8xf32>, vector<48x8xf32>, vector<48x48xf32> -> vector<48x48xf32>
    %426 = arith.addf %425, %73 : vector<48x48xf32>
    %cst_233 = arith.constant dense<0xFF800000> : vector<48xf32>
    %427 = vector.multi_reduction <maximumf>, %426, %cst_233 [1] : vector<48x48xf32> to vector<48xf32>
    %428 = vector.shape_cast %427 : vector<48xf32> to vector<48x1xf32>
    %429 = vector.broadcast %428 : vector<48x1xf32> to vector<48x48xf32>
    %430 = arith.subf %426, %429 : vector<48x48xf32>
    %431 = math.exp %430 : vector<48x48xf32>
    %cst_234 = arith.constant dense<0.000000e+00> : vector<48xf32>
    %432 = vector.multi_reduction <add>, %431, %cst_234 [1] : vector<48x48xf32> to vector<48xf32>
    %433 = vector.shape_cast %432 : vector<48xf32> to vector<48x1xf32>
    %434 = tpu.reciprocal %433 {approx = true} : vector<48x1xf32> -> vector<48x1xf32>
    %435 = vector.broadcast %434 : vector<48x1xf32> to vector<48x48xf32>
    %436 = arith.mulf %431, %435 : vector<48x48xf32>
    %cst_235 = arith.constant dense<0.000000e+00> : vector<48x8xf32>
    %437 = tpu.matmul %436, %424, %cst_235 {dimension_numbers = #tpu.dot_dimension_numbers<[1], [0], [0], [1], [0, 0, 1, 1], [], []>} : vector<48x48xf32>, vector<48x8xf32>, vector<48x8xf32> -> vector<48x8xf32>
    %cst_236 = arith.constant dense<0.000000e+00> : vector<48x32xf32>
    %438 = tpu.matmul %437, %415, %cst_236 {dimension_numbers = #tpu.dot_dimension_numbers<[1], [1], [0], [0], [0, 0, 1, 0], [], []>} : vector<48x8xf32>, vector<32x8xf32>, vector<48x32xf32> -> vector<48x32xf32>
    %439 = arith.addf %401, %438 : vector<48x32xf32>
    %c19 = arith.constant 19 : index
    %c0_237 = arith.constant 0 : index
    %c0_238 = arith.constant 0 : index
    %440 = vector.load %arg4[%c19, %c0_237, %c0_238] : memref<32x33x8xf32, #tpu.memory_space<vmem>>, vector<1x32x8xf32>
    %441 = vector.shape_cast %440 : vector<1x32x8xf32> to vector<32x8xf32>
    %c19_239 = arith.constant 19 : index
    %c32_240 = arith.constant 32 : index
    %c0_241 = arith.constant 0 : index
    %442 = vector.load %arg4[%c19_239, %c32_240, %c0_241] : memref<32x33x8xf32, #tpu.memory_space<vmem>>, vector<1x1x8xf32>
    %443 = vector.shape_cast %442 : vector<1x1x8xf32> to vector<1x8xf32>
    %c23 = arith.constant 23 : index
    %c0_242 = arith.constant 0 : index
    %c0_243 = arith.constant 0 : index
    %444 = vector.load %arg4[%c23, %c0_242, %c0_243] : memref<32x33x8xf32, #tpu.memory_space<vmem>>, vector<1x32x8xf32>
    %445 = vector.shape_cast %444 : vector<1x32x8xf32> to vector<32x8xf32>
    %c23_244 = arith.constant 23 : index
    %c32_245 = arith.constant 32 : index
    %c0_246 = arith.constant 0 : index
    %446 = vector.load %arg4[%c23_244, %c32_245, %c0_246] : memref<32x33x8xf32, #tpu.memory_space<vmem>>, vector<1x1x8xf32>
    %447 = vector.shape_cast %446 : vector<1x1x8xf32> to vector<1x8xf32>
    %c27 = arith.constant 27 : index
    %c0_247 = arith.constant 0 : index
    %c0_248 = arith.constant 0 : index
    %448 = vector.load %arg4[%c27, %c0_247, %c0_248] : memref<32x33x8xf32, #tpu.memory_space<vmem>>, vector<1x32x8xf32>
    %449 = vector.shape_cast %448 : vector<1x32x8xf32> to vector<32x8xf32>
    %c27_249 = arith.constant 27 : index
    %c32_250 = arith.constant 32 : index
    %c0_251 = arith.constant 0 : index
    %450 = vector.load %arg4[%c27_249, %c32_250, %c0_251] : memref<32x33x8xf32, #tpu.memory_space<vmem>>, vector<1x1x8xf32>
    %451 = vector.shape_cast %450 : vector<1x1x8xf32> to vector<1x8xf32>
    %c31 = arith.constant 31 : index
    %c0_252 = arith.constant 0 : index
    %c0_253 = arith.constant 0 : index
    %452 = vector.load %arg4[%c31, %c0_252, %c0_253] : memref<32x33x8xf32, #tpu.memory_space<vmem>>, vector<1x32x8xf32>
    %453 = vector.shape_cast %452 : vector<1x32x8xf32> to vector<32x8xf32>
    %cst_254 = arith.constant dense<0.000000e+00> : vector<48x8xf32>
    %454 = tpu.matmul %326, %441, %cst_254 {dimension_numbers = #tpu.dot_dimension_numbers<[1], [0], [0], [1], [0, 0, 1, 1], [], []>} : vector<48x32xf32>, vector<32x8xf32>, vector<48x8xf32> -> vector<48x8xf32>
    %455 = vector.broadcast %443 : vector<1x8xf32> to vector<48x8xf32>
    %456 = arith.addf %454, %455 : vector<48x8xf32>
    %cst_255 = arith.constant dense<0.000000e+00> : vector<48x8xf32>
    %457 = tpu.matmul %326, %445, %cst_255 {dimension_numbers = #tpu.dot_dimension_numbers<[1], [0], [0], [1], [0, 0, 1, 1], [], []>} : vector<48x32xf32>, vector<32x8xf32>, vector<48x8xf32> -> vector<48x8xf32>
    %458 = vector.broadcast %447 : vector<1x8xf32> to vector<48x8xf32>
    %459 = arith.addf %457, %458 : vector<48x8xf32>
    %cst_256 = arith.constant dense<0.000000e+00> : vector<48x8xf32>
    %460 = tpu.matmul %326, %449, %cst_256 {dimension_numbers = #tpu.dot_dimension_numbers<[1], [0], [0], [1], [0, 0, 1, 1], [], []>} : vector<48x32xf32>, vector<32x8xf32>, vector<48x8xf32> -> vector<48x8xf32>
    %461 = vector.broadcast %451 : vector<1x8xf32> to vector<48x8xf32>
    %462 = arith.addf %460, %461 : vector<48x8xf32>
    %cst_257 = arith.constant dense<0.000000e+00> : vector<48x48xf32>
    %463 = tpu.matmul %456, %459, %cst_257 {dimension_numbers = #tpu.dot_dimension_numbers<[1], [1], [0], [0], [0, 0, 1, 0], [], []>} : vector<48x8xf32>, vector<48x8xf32>, vector<48x48xf32> -> vector<48x48xf32>
    %464 = arith.addf %463, %73 : vector<48x48xf32>
    %cst_258 = arith.constant dense<0xFF800000> : vector<48xf32>
    %465 = vector.multi_reduction <maximumf>, %464, %cst_258 [1] : vector<48x48xf32> to vector<48xf32>
    %466 = vector.shape_cast %465 : vector<48xf32> to vector<48x1xf32>
    %467 = vector.broadcast %466 : vector<48x1xf32> to vector<48x48xf32>
    %468 = arith.subf %464, %467 : vector<48x48xf32>
    %469 = math.exp %468 : vector<48x48xf32>
    %cst_259 = arith.constant dense<0.000000e+00> : vector<48xf32>
    %470 = vector.multi_reduction <add>, %469, %cst_259 [1] : vector<48x48xf32> to vector<48xf32>
    %471 = vector.shape_cast %470 : vector<48xf32> to vector<48x1xf32>
    %472 = tpu.reciprocal %471 {approx = true} : vector<48x1xf32> -> vector<48x1xf32>
    %473 = vector.broadcast %472 : vector<48x1xf32> to vector<48x48xf32>
    %474 = arith.mulf %469, %473 : vector<48x48xf32>
    %cst_260 = arith.constant dense<0.000000e+00> : vector<48x8xf32>
    %475 = tpu.matmul %474, %462, %cst_260 {dimension_numbers = #tpu.dot_dimension_numbers<[1], [0], [0], [1], [0, 0, 1, 1], [], []>} : vector<48x48xf32>, vector<48x8xf32>, vector<48x8xf32> -> vector<48x8xf32>
    %cst_261 = arith.constant dense<0.000000e+00> : vector<48x32xf32>
    %476 = tpu.matmul %475, %453, %cst_261 {dimension_numbers = #tpu.dot_dimension_numbers<[1], [1], [0], [0], [0, 0, 1, 0], [], []>} : vector<48x8xf32>, vector<32x8xf32>, vector<48x32xf32> -> vector<48x32xf32>
    %477 = arith.addf %439, %476 : vector<48x32xf32>
    %478 = arith.addf %304, %477 : vector<48x32xf32>
    %c8_262 = arith.constant 8 : index
    %c0_263 = arith.constant 0 : index
    %479 = vector.load %arg7[%c8_262, %c0_263] : memref<14x32xf32, #tpu.memory_space<vmem>>, vector<1x32xf32>
    %480 = vector.broadcast %479 : vector<1x32xf32> to vector<48x32xf32>
    %481 = arith.addf %478, %480 : vector<48x32xf32>
    %c9_264 = arith.constant 9 : index
    %c0_265 = arith.constant 0 : index
    %482 = vector.load %arg7[%c9_264, %c0_265] : memref<14x32xf32, #tpu.memory_space<vmem>>, vector<1x32xf32>
    %c10_266 = arith.constant 10 : index
    %c0_267 = arith.constant 0 : index
    %483 = vector.load %arg7[%c10_266, %c0_267] : memref<14x32xf32, #tpu.memory_space<vmem>>, vector<1x32xf32>
    %cst_268 = arith.constant dense<0.000000e+00> : vector<48xf32>
    %484 = vector.multi_reduction <add>, %481, %cst_268 [1] : vector<48x32xf32> to vector<48xf32>
    %485 = vector.shape_cast %484 : vector<48xf32> to vector<48x1xf32>
    %cst_269 = arith.constant 3.200000e+01 : f32
    %486 = vector.broadcast %cst_269 : f32 to vector<48x1xf32>
    %487 = arith.divf %485, %486 : vector<48x1xf32>
    %488 = vector.broadcast %487 : vector<48x1xf32> to vector<48x32xf32>
    %489 = arith.subf %481, %488 : vector<48x32xf32>
    %490 = arith.mulf %489, %489 : vector<48x32xf32>
    %cst_270 = arith.constant dense<0.000000e+00> : vector<48xf32>
    %491 = vector.multi_reduction <add>, %490, %cst_270 [1] : vector<48x32xf32> to vector<48xf32>
    %492 = vector.shape_cast %491 : vector<48xf32> to vector<48x1xf32>
    %cst_271 = arith.constant 3.200000e+01 : f32
    %493 = vector.broadcast %cst_271 : f32 to vector<48x1xf32>
    %494 = arith.divf %492, %493 : vector<48x1xf32>
    %cst_272 = arith.constant 9.99999974E-6 : f32
    %495 = vector.broadcast %cst_272 : f32 to vector<48x1xf32>
    %496 = arith.addf %494, %495 : vector<48x1xf32>
    %497 = math.rsqrt %496 : vector<48x1xf32>
    %498 = vector.broadcast %497 : vector<48x1xf32> to vector<48x32xf32>
    %499 = arith.mulf %489, %498 : vector<48x32xf32>
    %500 = vector.broadcast %482 : vector<1x32xf32> to vector<48x32xf32>
    %501 = arith.mulf %499, %500 : vector<48x32xf32>
    %502 = vector.broadcast %483 : vector<1x32xf32> to vector<48x32xf32>
    %503 = arith.addf %501, %502 : vector<48x32xf32>
    %c1_273 = arith.constant 1 : index
    %c0_274 = arith.constant 0 : index
    %c0_275 = arith.constant 0 : index
    %504 = vector.load %arg5[%c1_273, %c0_274, %c0_275] : memref<2x33x128xf32, #tpu.memory_space<vmem>>, vector<1x32x128xf32>
    %505 = vector.shape_cast %504 : vector<1x32x128xf32> to vector<32x128xf32>
    %cst_276 = arith.constant dense<0.000000e+00> : vector<48x128xf32>
    %506 = tpu.matmul %503, %505, %cst_276 {dimension_numbers = #tpu.dot_dimension_numbers<[1], [0], [0], [1], [0, 0, 1, 1], [], []>} : vector<48x32xf32>, vector<32x128xf32>, vector<48x128xf32> -> vector<48x128xf32>
    %c1_277 = arith.constant 1 : index
    %c32_278 = arith.constant 32 : index
    %c0_279 = arith.constant 0 : index
    %507 = vector.load %arg5[%c1_277, %c32_278, %c0_279] : memref<2x33x128xf32, #tpu.memory_space<vmem>>, vector<1x1x128xf32>
    %508 = vector.shape_cast %507 : vector<1x1x128xf32> to vector<1x128xf32>
    %509 = vector.broadcast %508 : vector<1x128xf32> to vector<48x128xf32>
    %510 = arith.addf %506, %509 : vector<48x128xf32>
    %cst_280 = arith.constant 5.000000e-01 : f32
    %511 = vector.broadcast %cst_280 : f32 to vector<48x128xf32>
    %512 = arith.mulf %511, %510 : vector<48x128xf32>
    %cst_281 = arith.constant 4.471500e-02 : f32
    %513 = vector.broadcast %cst_281 : f32 to vector<48x128xf32>
    %514 = arith.mulf %513, %510 : vector<48x128xf32>
    %515 = arith.mulf %514, %510 : vector<48x128xf32>
    %516 = arith.mulf %515, %510 : vector<48x128xf32>
    %517 = arith.addf %510, %516 : vector<48x128xf32>
    %cst_282 = arith.constant 0.797884583 : f32
    %518 = vector.broadcast %cst_282 : f32 to vector<48x128xf32>
    %519 = arith.mulf %518, %517 : vector<48x128xf32>
    %520 = math.tanh %519 : vector<48x128xf32>
    %cst_283 = arith.constant 1.000000e+00 : f32
    %521 = vector.broadcast %cst_283 : f32 to vector<48x128xf32>
    %522 = arith.addf %521, %520 : vector<48x128xf32>
    %523 = arith.mulf %512, %522 : vector<48x128xf32>
    %c1_284 = arith.constant 1 : index
    %c0_285 = arith.constant 0 : index
    %c0_286 = arith.constant 0 : index
    %524 = vector.load %arg6[%c1_284, %c0_285, %c0_286] : memref<2x128x32xf32, #tpu.memory_space<vmem>>, vector<1x128x32xf32>
    %525 = vector.shape_cast %524 : vector<1x128x32xf32> to vector<128x32xf32>
    %cst_287 = arith.constant dense<0.000000e+00> : vector<48x32xf32>
    %526 = tpu.matmul %523, %525, %cst_287 {dimension_numbers = #tpu.dot_dimension_numbers<[1], [0], [0], [1], [0, 0, 1, 1], [], []>} : vector<48x128xf32>, vector<128x32xf32>, vector<48x32xf32> -> vector<48x32xf32>
    %c11_288 = arith.constant 11 : index
    %c0_289 = arith.constant 0 : index
    %527 = vector.load %arg7[%c11_288, %c0_289] : memref<14x32xf32, #tpu.memory_space<vmem>>, vector<1x32xf32>
    %528 = vector.broadcast %527 : vector<1x32xf32> to vector<48x32xf32>
    %529 = arith.addf %526, %528 : vector<48x32xf32>
    %530 = arith.addf %481, %529 : vector<48x32xf32>
    %c12_290 = arith.constant 12 : index
    %c0_291 = arith.constant 0 : index
    %531 = vector.load %arg7[%c12_290, %c0_291] : memref<14x32xf32, #tpu.memory_space<vmem>>, vector<1x32xf32>
    %c13_292 = arith.constant 13 : index
    %c0_293 = arith.constant 0 : index
    %532 = vector.load %arg7[%c13_292, %c0_293] : memref<14x32xf32, #tpu.memory_space<vmem>>, vector<1x32xf32>
    %cst_294 = arith.constant dense<0.000000e+00> : vector<48xf32>
    %533 = vector.multi_reduction <add>, %530, %cst_294 [1] : vector<48x32xf32> to vector<48xf32>
    %534 = vector.shape_cast %533 : vector<48xf32> to vector<48x1xf32>
    %cst_295 = arith.constant 3.200000e+01 : f32
    %535 = vector.broadcast %cst_295 : f32 to vector<48x1xf32>
    %536 = arith.divf %534, %535 : vector<48x1xf32>
    %537 = vector.broadcast %536 : vector<48x1xf32> to vector<48x32xf32>
    %538 = arith.subf %530, %537 : vector<48x32xf32>
    %539 = arith.mulf %538, %538 : vector<48x32xf32>
    %cst_296 = arith.constant dense<0.000000e+00> : vector<48xf32>
    %540 = vector.multi_reduction <add>, %539, %cst_296 [1] : vector<48x32xf32> to vector<48xf32>
    %541 = vector.shape_cast %540 : vector<48xf32> to vector<48x1xf32>
    %cst_297 = arith.constant 3.200000e+01 : f32
    %542 = vector.broadcast %cst_297 : f32 to vector<48x1xf32>
    %543 = arith.divf %541, %542 : vector<48x1xf32>
    %cst_298 = arith.constant 9.99999974E-6 : f32
    %544 = vector.broadcast %cst_298 : f32 to vector<48x1xf32>
    %545 = arith.addf %543, %544 : vector<48x1xf32>
    %546 = math.rsqrt %545 : vector<48x1xf32>
    %547 = vector.broadcast %546 : vector<48x1xf32> to vector<48x32xf32>
    %548 = arith.mulf %538, %547 : vector<48x32xf32>
    %549 = vector.broadcast %531 : vector<1x32xf32> to vector<48x32xf32>
    %550 = arith.mulf %548, %549 : vector<48x32xf32>
    %551 = vector.broadcast %532 : vector<1x32xf32> to vector<48x32xf32>
    %552 = arith.addf %550, %551 : vector<48x32xf32>
    %c0_299 = arith.constant 0 : index
    %c0_300 = arith.constant 0 : index
    %553 = vector.load %arg8[%c0_299, %c0_300] : memref<33x8xf32, #tpu.memory_space<vmem>>, vector<32x8xf32>
    %cst_301 = arith.constant dense<0.000000e+00> : vector<48x8xf32>
    %554 = tpu.matmul %552, %553, %cst_301 {dimension_numbers = #tpu.dot_dimension_numbers<[1], [0], [0], [1], [0, 0, 1, 1], [], []>} : vector<48x32xf32>, vector<32x8xf32>, vector<48x8xf32> -> vector<48x8xf32>
    %c32_302 = arith.constant 32 : index
    %c0_303 = arith.constant 0 : index
    %555 = vector.load %arg8[%c32_302, %c0_303] : memref<33x8xf32, #tpu.memory_space<vmem>>, vector<1x8xf32>
    %556 = vector.broadcast %555 : vector<1x8xf32> to vector<48x8xf32>
    %557 = arith.addf %554, %556 : vector<48x8xf32>
    %c0_304 = arith.constant 0 : index
    %c0_305 = arith.constant 0 : index
    %558 = vector.load %arg9[%c0_304, %c0_305] : memref<48x8xf32, #tpu.memory_space<vmem>>, vector<48x8xf32>
    tpu.vector_store %arg9[%c0_304, %c0_305], %557 {strides = array<i32>} : memref<48x8xf32, #tpu.memory_space<vmem>>, vector<48x8xf32>,
    return
  }
  func.func @transform_0(%arg0: i32) -> (i32, i32) {
    %c0_i32 = arith.constant 0 : i32
    %c0_i32_0 = arith.constant 0 : i32
    return %arg0, %c0_i32 : i32, i32
  }
  func.func @transform_1(%arg0: i32) -> (i32, i32) {
    %c0_i32 = arith.constant 0 : i32
    %c0_i32_0 = arith.constant 0 : i32
    return %arg0, %c0_i32 : i32, i32
  }
  func.func @transform_2(%arg0: i32) -> (i32, i32) {
    %c0_i32 = arith.constant 0 : i32
    %c0_i32_0 = arith.constant 0 : i32
    %c0_i32_1 = arith.constant 0 : i32
    return %c0_i32, %c0_i32_0 : i32, i32
  }
  func.func @transform_3(%arg0: i32) -> (i32, i32, i32) {
    %c0_i32 = arith.constant 0 : i32
    %c0_i32_0 = arith.constant 0 : i32
    %c0_i32_1 = arith.constant 0 : i32
    %c0_i32_2 = arith.constant 0 : i32
    return %c0_i32, %c0_i32_0, %c0_i32_1 : i32, i32, i32
  }
  func.func @transform_4(%arg0: i32) -> (i32, i32, i32) {
    %c0_i32 = arith.constant 0 : i32
    %c0_i32_0 = arith.constant 0 : i32
    %c0_i32_1 = arith.constant 0 : i32
    %c0_i32_2 = arith.constant 0 : i32
    return %c0_i32, %c0_i32_0, %c0_i32_1 : i32, i32, i32
  }
  func.func @transform_5(%arg0: i32) -> (i32, i32, i32) {
    %c0_i32 = arith.constant 0 : i32
    %c0_i32_0 = arith.constant 0 : i32
    %c0_i32_1 = arith.constant 0 : i32
    %c0_i32_2 = arith.constant 0 : i32
    return %c0_i32, %c0_i32_0, %c0_i32_1 : i32, i32, i32
  }
  func.func @transform_6(%arg0: i32) -> (i32, i32) {
    %c0_i32 = arith.constant 0 : i32
    %c0_i32_0 = arith.constant 0 : i32
    %c0_i32_1 = arith.constant 0 : i32
    return %c0_i32, %c0_i32_0 : i32, i32
  }
  func.func @transform_7(%arg0: i32) -> (i32, i32) {
    %c0_i32 = arith.constant 0 : i32
    %c0_i32_0 = arith.constant 0 : i32
    %c0_i32_1 = arith.constant 0 : i32
    return %c0_i32, %c0_i32_0 : i32, i32
  }
  func.func @transform_8(%arg0: i32) -> (i32, i32) {
    %c0_i32 = arith.constant 0 : i32
    %c0_i32_0 = arith.constant 0 : i32
    return %arg0, %c0_i32 : i32, i32
  }
}

</mosaic_0001>

<bundles_post_ra>
// kernel: tile.7
= control target key start
LH: loop header
LB: loop body
LE: loop exit
PB: predicated region body
PF: predicated region fallthrough
CT: control target
= control target key end

     0   :  { %vm3_vm0 = vcmask 261120   ;;  %s120_s0 = inlined_call_operand.vmem [shape: f32[8,6,32], index: 0, kind: input, shape index: {}]   ;;  %s121_s1 = inlined_call_operand.vmem [shape: f32[48,32], index: 1, kind: output, shape index: {}]  }
   0x1   :  { %v2_v0 = vld [vmem:[%s120_s0] sm:$0x3f]   ;;  %v40_v1 = vld [vmem:[%s120_s0 + $0x8] sm:$0x3f]   ;;  %v42_v2 = vld [vmem:[%s120_s0 + $0x10] sm:$0x3f]  }
   0x2   :  { %4 = vst.msk [vmem:[%s121_s1] sm:$0x3f] %vm3_vm0, %v2_v0   ;;  %41 = vst.msk [vmem:[%s121_s1 + $0x6] sm:$0x3f] %vm3_vm0, %v40_v1   ;;  %v44_v3 = vld [vmem:[%s120_s0 + $0x18] sm:$0x3f]  }
   0x3   :  { %43 = vst.msk [vmem:[%s121_s1 + $0xc] sm:$0x3f] %vm3_vm0, %v42_v2   ;;  %v46_v4 = vld [vmem:[%s120_s0 + $0x20] sm:$0x3f]   ;;  %v48_v5 = vld [vmem:[%s120_s0 + $0x28] sm:$0x3f]  }
   0x4   :  { %45 = vst.msk [vmem:[%s121_s1 + $0x12] sm:$0x3f] %vm3_vm0, %v44_v3   ;;  %47 = vst.msk [vmem:[%s121_s1 + $0x18] sm:$0x3f] %vm3_vm0, %v46_v4   ;;  %v50_v6 = vld [vmem:[%s120_s0 + $0x30] sm:$0x3f]  }
   0x5   :  { %49 = vst.msk [vmem:[%s121_s1 + $0x1e] sm:$0x3f] %vm3_vm0, %v48_v5   ;;  %v52_v7 = vld [vmem:[%s120_s0 + $0x38] sm:$0x3f]   ;;  %51 = vst.msk [vmem:[%s121_s1 + $0x24] sm:$0x3f] %vm3_vm0, %v50_v6  }
   0x6   :  { %53 = vst.msk [vmem:[%s121_s1 + $0x2a] sm:$0x3f] %vm3_vm0, %v52_v7  }

// kernel: forward.1
= control target key start
LH: loop header
LB: loop body
LE: loop exit
PB: predicated region body
PF: predicated region fallthrough
CT: control target
= control target key end

     0   :  { %13 = vsyncpa [#allocation3], 0  ;;  %s10113_s27 = smov [#allocation2]   ;;  %s11930_s0 = inlined_call_operand.vmem [shape: f32[48,8], index: 0, kind: input, shape index: {}]   ;;  %s11931_s1 = inlined_call_operand.vmem [shape: f32[48,32], index: 1, kind: input, shape index: {}]   ;;  %s11932_s2 = inlined_call_operand.vmem [shape: f32[8,32], index: 2, kind: input, shape index: {}]   ;;  %s11933_s3 = inlined_call_operand.hbm [shape: f32[32,33,8], index: 3, kind: input, shape index: {}]   ;;  %s11934_s4 = inlined_call_operand.vmem [shape: f32[2,33,128], index: 4, kind: input, shape index: {}]   ;;  %s11935_s5 = inlined_call_operand.vmem [shape: f32[2,128,32], index: 5, kind: input, shape index: {}]   ;;  %s11936_s6 = inlined_call_operand.vmem [shape: f32[14,32], index: 6, kind: input, shape index: {}]   ;;  %s11937_s7 = inlined_call_operand.vmem [shape: f32[33,8], index: 7, kind: input, shape index: {}]   ;;  %s11938_s8 = inlined_call_operand.vmem [shape: f32[48,8], index: 8, kind: output, shape index: {}]  }
   0x1   :  { %s25_s28 = sshll.u32 %s10113_s27, 4  ;;  %s26_s28 = int_to_ptr.vmem [resolvable:$true] %s25_s28 }
   0x2   :  { %s10099_s29 = scalar_lea.vmem %s26_s28, 20480  ;;  %p10104_p1 = scmp.lt.s32.totalorder %s26_s28, %s26_s28 }
   0x3   :  { %p10100_p0 = scmp.ne.s32.totalorder %s26_s28, %s10099_s29  ;;  %p10105_p2 = scmp.lt.s32.totalorder %s10099_s29, %s10099_s29 }
   0x5   :  { %p10106_p3 = por %p10105_p2, %p10104_p1 }
   0x7   :  { %p10107_p4 = pnand %p10106_p3, %p10100_p0 }
   0x9   :  { %10110 = shalt.err (!%p10107_p4)
}
   0xa   :  { %s10114_s30 = smov 128   ;;  %s10115_s9 = smov 8  }
   0xb   :  { %31 = dma.hbm_to_vmem [thread:$0]  %s11933_s3, 20480, %s26_s28, [#allocation3], %s10114_s30, %s10114_s30, %s10115_s9  }
   0xc   :  { %10111 = dma.done.wait [#allocation3], 20480  }
   0xd   :  { %10112 = vsyncadd [#allocation3], 4294946816  ;;  %vm11940_vm0 = vcmask 64512   ;;  %v243_v0 = vld [vmem:[%s11932_s2] sm:$0xff]  ;;  %v238_v2 = vld [vmem:[%s11930_s0 + $0x8] sm:$0xff]  ;;  %vm11939_vm1 = vcmask 261120  }
   0xe   :  { %v237_v1 = vld [vmem:[%s11930_s0] sm:$0xff]  ;;  %8778 = vmatprep.subr.mxu0 %v243_v0  ;;  %v239_v3 = vld [vmem:[%s11930_s0 + $0x10] sm:$0xff]  ;;  %v240_v4 = vld [vmem:[%s11930_s0 + $0x18] sm:$0xff] }
   0xf   :  { %8780 = vmatprep.mubr.msk.f32.mxu0 %vm11940_vm0, %v237_v1  ;;  %8779 = vmatpush3.msra.mxu0 %v243_v0  ;;  %v241_v5 = vld [vmem:[%s11930_s0 + $0x20] sm:$0xff]  ;;  %v242_v6 = vld [vmem:[%s11930_s0 + $0x28] sm:$0xff]  ;;  %v247_v12 = vld [vmem:[%s11931_s1 + $0x18] sm:$0xff] }
  0x10   :  { %8781 = vmatmul.mubr.msk.f32.vlgmr.msra.gmra.mxu0 %vm11940_vm0, %v238_v2  ;;  %v244_v8 = vld [vmem:[%s11931_s1] sm:$0xff]  ;;  %v245_v9 = vld [vmem:[%s11931_s1 + $0x8] sm:$0xff]  ;;  %v246_v14 = vld [vmem:[%s11931_s1 + $0x10] sm:$0xff] }
  0x11   :  { %8783 = vmatprep.mubr.msk.f32.mxu0 %vm11940_vm0, %v239_v3  ;;  %v249_v20 = vld [vmem:[%s11931_s1 + $0x28] sm:$0xff]  ;;  %v248_v22 = vld [vmem:[%s11931_s1 + $0x20] sm:$0xff]  ;;  %v469_v61 = vld [vmem:[#allocation2 + $0x18] sm:$0xff] }
  0x12   :  { %8789 = vmatprep.subr.mxu0 %v469_v61  ;;  %9802 = vmatprep.subr.mxu1 %v469_v61  ;;  %v468_v62 = vld [vmem:[#allocation2 + $0x10] sm:$0xff]  ;;  %v467_v63 = vld [vmem:[#allocation2 + $0x8] sm:$0xff]  ;;  %v466_v0 = vld [vmem:[#allocation2] sm:$0xff] }
  0x13   :  { %8790 = vmatpush3.msra.mxu0 %v469_v61  ;;  %9806 = vmatpush3.msra.mxu1 %v469_v61  ;;  %v475_v1 = vld [vmem:[#allocation2 + $0xb8] sm:$0xff] }
  0x14   :  { %8784 = vmatmul.mubr.msk.f32.gmra.mxu0 %vm11940_vm0, %v240_v4  ;;  %8791 = vmatprep.subr.mxu0 %v468_v62  ;;  %v10271_v2 = vld [vmem:[#allocation2 + $0x158] sm:$0xff] }
  0x15   :  { %8786 = vmatprep.mubr.msk.f32.mxu0 %vm11940_vm0, %v241_v5  ;;  %9803 = vmatprep.subr.mxu1 %v468_v62 }
  0x16   :  { %8792 = vmatpush3.msra.mxu0 %v468_v62  ;;  %9807 = vmatpush3.msra.mxu1 %v468_v62 }
  0x17   :  { %8793 = vmatprep.subr.mxu0 %v467_v63  ;;  %9804 = vmatprep.subr.mxu1 %v467_v63 }
  0x18   :  { %8787 = vmatmul.mubr.msk.f32.gmra.mxu0 %vm11940_vm0, %v242_v6  ;;  %9808 = vmatpush3.msra.mxu1 %v467_v63 }
  0x19   :  { %8794 = vmatpush3.msra.mxu0 %v467_v63  ;;  %9805 = vmatprep.subr.mxu1 %v466_v0 }
  0x1a   :  { %8795 = vmatprep.subr.mxu0 %v466_v0  ;;  %9809 = vmatpush3.msra.mxu1 %v466_v0 }
  0x1b   :  { %8796 = vmatpush3.msra.mxu0 %v466_v0  ;;  %8823 = vmatprep.subr.mxu1 %v10271_v2 }
  0x1c   :  { %8806 = vmatprep.subr.mxu0 %v475_v1 }
  0xd0   :  { %v8782_v7 = vpop.f32.mrf.mxu0 }
  0xd1   :  { %v10207_v15 = vadd.f32 %v8782_v7, %v245_v9 }
  0xd2   :  { %v335_v10 = vpop.f32.mrf.mxu0 }
  0xd3   :  { %v10199_v11 = vadd.f32 %v335_v10, %v244_v8  ;;  %v370_v24 = vsel %vm11939_vm1, %v10207_v15, 0.0 }
  0xd4   :  { %v8785_v13 = vpop.f32.mrf.mxu0 }
  0xd5   :  { %v367_v16 = vsel %vm11939_vm1, %v10199_v11, 0.0  ;;  %v10211_v18 = vadd.f32 %v8785_v13, %v247_v12 }
  0xd6   :  { %v345_v17 = vpop.f32.mrf.mxu0  ;;  %368 = vadd.xlane.f32.xlu0 %v367_v16 }
  0xd7   :  { %v10213_v19 = vadd.f32 %v345_v17, %v246_v14  ;;  %v376_v28 = vsel %vm11939_vm1, %v10211_v18, 0.0 }
  0xd8   :  { %v8788_v21 = vpop.f32.mrf.mxu0 }
  0xd9   :  { %v373_v23 = vsel %vm11939_vm1, %v10213_v19, 0.0  ;;  %v10225_v26 = vadd.f32 %v8788_v21, %v249_v20 }
  0xda   :  { %v355_v25 = vpop.f32.mrf.mxu0  ;;  %374 = vadd.xlane.f32.xlu1 %v373_v23  ;;  %371 = vadd.xlane.f32.xlu0 %v370_v24 }
  0xdb   :  { %v10227_v27 = vadd.f32 %v355_v25, %v248_v22  ;;  %v382_v30 = vsel %vm11939_vm1, %v10225_v26, 0.0 }
  0xdd   :  { %v379_v29 = vsel %vm11939_vm1, %v10227_v27, 0.0 }
  0xde   :  { %377 = vadd.xlane.f32.xlu1 %v376_v28  ;;  %380 = vadd.xlane.f32.xlu0 %v379_v29  ;;  %v7737_v28 = vld [vmem:[%s11936_s6] ss:$0 sm:$0xff] }
  0xe2   :  { %383 = vadd.xlane.f32.xlu1 %v382_v30  ;;  %v7738_v30 = vld [vmem:[%s11936_s6 + $0x1] ss:$0 sm:$0xff] }
 0x15f   :  { %v369_v31 = vpop.xlane.xlu0 %368 }
 0x160   :  { %v386_v32 = vmul.f32 0.03125, %v369_v31 }
 0x162   :  { %v10236_v33 = vsub.f32 %v10199_v11, %v386_v32 }
 0x163   :  { %v375_v34 = vpop.xlane.xlu1 %374  ;;  %v372_v35 = vpop.xlane.xlu0 %371 }
 0x164   :  { %v388_v36 = vmul.f32 0.03125, %v375_v34  ;;  %v387_v37 = vmul.f32 0.03125, %v372_v35  ;;  %v398_v38 = vmul.f32 %v10236_v33, %v10236_v33 }
 0x166   :  { %v10241_v39 = vsub.f32 %v10213_v19, %v388_v36  ;;  %v10244_v40 = vsub.f32 %v10207_v15, %v387_v37  ;;  %v404_v41 = vsel %vm11939_vm1, %v398_v38, 0.0 }
 0x167   :  { %v378_v42 = vpop.xlane.xlu1 %377  ;;  %405 = vadd.xlane.f32.xlu0 %v404_v41  ;;  %v381_v43 = vpop.xlane.xlu0 %380 }
 0x168   :  { %v389_v44 = vmul.f32 0.03125, %v378_v42  ;;  %v390_v45 = vmul.f32 0.03125, %v381_v43  ;;  %v400_v46 = vmul.f32 %v10241_v39, %v10241_v39  ;;  %v399_v47 = vmul.f32 %v10244_v40, %v10244_v40 }
 0x16a   :  { %v10252_v48 = vsub.f32 %v10211_v18, %v389_v44  ;;  %v10255_v49 = vsub.f32 %v10227_v27, %v390_v45  ;;  %v410_v50 = vsel %vm11939_vm1, %v400_v46, 0.0  ;;  %v407_v51 = vsel %vm11939_vm1, %v399_v47, 0.0  ;;  %v474_v47 = vld [vmem:[#allocation2 + $0xb0] sm:$0xff] }
 0x16b   :  { %v384_v52 = vpop.xlane.xlu1 %383  ;;  %411 = vadd.xlane.f32.xlu0 %v410_v50  ;;  %408 = vadd.xlane.f32.xlu1 %v407_v51  ;;  %v473_v51 = vld [vmem:[#allocation2 + $0xa8] sm:$0xff] }
 0x16c   :  { %v391_v53 = vmul.f32 0.03125, %v384_v52  ;;  %v401_v54 = vmul.f32 %v10252_v48, %v10252_v48  ;;  %v402_v55 = vmul.f32 %v10255_v49, %v10255_v49 }
 0x16e   :  { %v10264_v56 = vsub.f32 %v10225_v26, %v391_v53  ;;  %v413_v57 = vsel %vm11939_vm1, %v401_v54, 0.0  ;;  %v416_v58 = vsel %vm11939_vm1, %v402_v55, 0.0  ;;  %v472_v53 = vld [vmem:[#allocation2 + $0xa0] sm:$0xff]  ;;  %v480_v55 = vld [vmem:[#allocation2 + $0x150] sm:$0xff] }
 0x16f   :  { %414 = vadd.xlane.f32.xlu1 %v413_v57  ;;  %417 = vadd.xlane.f32.xlu0 %v416_v58  ;;  %v478_v58 = vld [vmem:[#allocation2 + $0x140] sm:$0xff] }
 0x170   :  { %v403_v59 = vmul.f32 %v10264_v56, %v10264_v56 }
 0x172   :  { %v419_v60 = vsel %vm11939_vm1, %v403_v59, 0.0 }
 0x173   :  { %420 = vadd.xlane.f32.xlu1 %v419_v60  ;;  %v10335_v60 = vld [vmem:[#allocation2 + $0x20] ss:$0 sm:$0xff] }
 0x1f0   :  { %v406_v3 = vpop.xlane.xlu0 %405 }
 0x1f1   :  { %v422_v4 = vmul.f32 0.03125, %v406_v3 }
 0x1f3   :  { %v428_v5 = vadd.f32 1e-05, %v422_v4 }
 0x1f4   :  { %v409_v6 = vpop.xlane.xlu1 %408  ;;  %v412_v7 = vpop.xlane.xlu0 %411 }
 0x1f5   :  { %9815 = vrsqrt.f32 %v428_v5  ;;  %v423_v8 = vmul.f32 0.03125, %v409_v6  ;;  %v424_v9 = vmul.f32 0.03125, %v412_v7 }
 0x1f7   :  { %v429_v10 = vadd.f32 1e-05, %v423_v8  ;;  %v430_v12 = vadd.f32 1e-05, %v424_v9  ;;  %v7746_v8 = vld [vmem:[#allocation2 + $0xc0] ss:$0 sm:$0xff] }
 0x1f8   :  { %v415_v13 = vpop.xlane.xlu1 %414  ;;  %v418_v14 = vpop.xlane.xlu0 %417 }
 0x1f9   :  { %9817 = vrsqrt.f32 %v429_v10  ;;  %v425_v16 = vmul.f32 0.03125, %v415_v13  ;;  %v426_v17 = vmul.f32 0.03125, %v418_v14 }
 0x1fa   :  { %9819 = vrsqrt.f32 %v430_v12 }
 0x1fb   :  { %v431_v20 = vadd.f32 1e-05, %v425_v16  ;;  %v432_v21 = vadd.f32 1e-05, %v426_v17 }
 0x1fc   :  { %v421_v22 = vpop.xlane.xlu1 %420 }
 0x1fd   :  { %9821 = vrsqrt.f32 %v431_v20  ;;  %v427_v23 = vmul.f32 0.03125, %v421_v22  ;;  %v7753_v20 = vld [vmem:[#allocation2 + $0x160] ss:$0 sm:$0xff] }
 0x1fe   :  { %9823 = vrsqrt.f32 %v432_v21 }
 0x1ff   :  { %v433_v24 = vadd.f32 1e-05, %v427_v23 }
 0x201   :  { %9825 = vrsqrt.f32 %v433_v24 }
 0x202   :  { %v9816_v25 = vpop.eup %9815 }
 0x203   :  { %v440_v29 = vmul.f32 %v9816_v25, %v10236_v33 }
 0x205   :  { %v450_v31 = vmul.f32 %v7737_v28, %v440_v29 }
 0x206   :  { %v9818_v32 = vpop.eup %9817 }
 0x207   :  { %v9820_v34 = vpop.eup %9819  ;;  %v10281_v35 = vadd.f32 %v7738_v30, %v450_v31  ;;  %v441_v36 = vmul.f32 %v9818_v32, %v10244_v40 }
 0x208   :  { %v442_v37 = vmul.f32 %v9820_v34, %v10241_v39 }
 0x209   :  { %v451_v38 = vmul.f32 %v7737_v28, %v441_v36  ;;  %8797 = vmatprep.mubr.msk.f32.mxu0 %vm11939_vm1, %v10281_v35 }
 0x20a   :  { %v9822_v41 = vpop.eup %9821  ;;  %v452_v42 = vmul.f32 %v7737_v28, %v442_v37  ;;  %v1124_v37 = vld [vmem:[#allocation2 + $0xe0] sm:$0xff] }
 0x20b   :  { %v9824_v33 = vpop.eup %9823  ;;  %v10287_v43 = vadd.f32 %v7738_v30, %v451_v38  ;;  %v443_v44 = vmul.f32 %v9822_v41, %v10252_v48 }
 0x20c   :  { %v10290_v45 = vadd.f32 %v7738_v30, %v452_v42  ;;  %v444_v46 = vmul.f32 %v9824_v33, %v10255_v49  ;;  %v1123_v42 = vld [vmem:[#allocation2 + $0xd8] sm:$0xff]  ;;  %v1122_v33 = vld [vmem:[#allocation2 + $0xd0] sm:$0xff] }
 0x20d   :  { %v453_v50 = vmul.f32 %v7737_v28, %v443_v44  ;;  %8798 = vmatmul.mubr.msk.f32.vlgmr.msra.gmra.mxu0 %vm11939_vm1, %v10287_v43 }
 0x20e   :  { %v9826_v39 = vpop.eup %9825  ;;  %v454_v40 = vmul.f32 %v7737_v28, %v444_v46  ;;  %8800 = vmatprep.mubr.msk.f32.mxu1 %vm11939_vm1, %v10290_v45  ;;  %8807 = vmatpush3.msra.mxu0 %v475_v1 }
 0x20f   :  { %v10297_v52 = vadd.f32 %v7738_v30, %v453_v50  ;;  %v445_v48 = vmul.f32 %v9826_v39, %v10264_v56  ;;  %8808 = vmatprep.subr.mxu0 %v474_v47  ;;  %8814 = vmatprep.mubr.msk.f32.mxu0 %vm11939_vm1, %v10281_v35  ;;  %v479_v56 = vld [vmem:[#allocation2 + $0x148] sm:$0xff]  ;;  %v43_v39 = vlaneseq }
 0x210   :  { %v10302_v49 = vadd.f32 %v7738_v30, %v454_v40  ;;  %8809 = vmatpush3.msra.mxu0 %v474_v47  ;;  %v1121_v47 = vld [vmem:[#allocation2 + $0xc8] sm:$0xff] }
 0x211   :  { %v455_v54 = vmul.f32 %v7737_v28, %v445_v48  ;;  %8810 = vmatprep.subr.mxu0 %v473_v51  ;;  %8801 = vmatmul.mubr.msk.f32.vlgmr.msra.gmra.mxu1 %vm11939_vm1, %v10297_v52  ;;  %v10379_v40 = vand.u32 127, %v43_v39 }
 0x212   :  { %8811 = vmatpush3.msra.mxu0 %v473_v51  ;;  %8803 = vmatprep.mubr.msk.f32.mxu1 %vm11939_vm1, %v10302_v49  ;;  %v10116_v51 = vmov 0  }
 0x213   :  { %v10308_v57 = vadd.f32 %v7738_v30, %v455_v54  ;;  %8812 = vmatprep.subr.mxu0 %v472_v53  ;;  %8824 = vmatpush3.msra.mxu1 %v10271_v2  ;;  %vm64_vm2 = vcmp.ge.s32.totalorder %v10379_v40, 6  ;;  %vm84_vm3 = vcmp.ge.s32.totalorder %v10379_v40, 12  ;;  %vm105_vm4 = vcmp.ge.s32.totalorder %v10379_v40, 18 }
 0x214   :  { %8813 = vmatpush3.msra.mxu0 %v472_v53  ;;  %8825 = vmatprep.subr.mxu1 %v480_v55  ;;  %v65_v48 = vsel %vm64_vm2, 1, %v10116_v51  ;;  %v85_v53 = vsel %vm84_vm3, 1, %v10116_v51  ;;  %vm126_vm5 = vcmp.ge.s32.totalorder %v10379_v40, 24  ;;  %vm147_vm6 = vcmp.ge.s32.totalorder %v10379_v40, 30 }
 0x215   :  { %8815 = vmatmul.mubr.msk.f32.vlgmr.msra.gmra.mxu0 %vm11939_vm1, %v10287_v43  ;;  %8826 = vmatpush3.msra.mxu1 %v480_v55  ;;  %v86_v54 = vadd.s32 %v85_v53, %v65_v48  ;;  %v106_v55 = vsel %vm105_vm4, 1, %v10116_v51  ;;  %vm168_vm7 = vcmp.ge.s32.totalorder %v10379_v40, 36  ;;  %vm189_vm8 = vcmp.ge.s32.totalorder %v10379_v40, 42 }
 0x216   :  { %8804 = vmatmul.mubr.msk.f32.gmra.mxu1 %vm11939_vm1, %v10308_v57  ;;  %8817 = vmatprep.mubr.msk.f32.mxu0 %vm11939_vm1, %v10290_v45 }
 0x217   :  { %8827 = vmatprep.subr.mxu1 %v479_v56  ;;  %8831 = vmatprep.mubr.msk.f32.mxu1 %vm11939_vm1, %v10281_v35 }
 0x218   :  { %8828 = vmatpush3.msra.mxu1 %v479_v56  ;;  %v107_v56 = vadd.s32 %v106_v55, %v86_v54 }
 0x219   :  { %8829 = vmatprep.subr.mxu1 %v478_v58  ;;  %8818 = vmatmul.mubr.msk.f32.gmra.mxu0 %vm11939_vm1, %v10297_v52 }
 0x21a   :  { %8830 = vmatpush3.msra.mxu1 %v478_v58  ;;  %8820 = vmatprep.mubr.msk.f32.mxu0 %vm11939_vm1, %v10302_v49  ;;  %v127_v58 = vsel %vm126_vm5, 1, %v10116_v51 }
 0x21b   :  { %8832 = vmatmul.mubr.msk.f32.vlgmr.msra.gmra.mxu1 %vm11939_vm1, %v10287_v43 }
 0x21c   :  { %8834 = vmatprep.mubr.msk.f32.mxu1 %vm11939_vm1, %v10290_v45 }
 0x21d   :  { %8821 = vmatmul.mubr.msk.f32.gmra.mxu0 %vm11939_vm1, %v10308_v57 }
 0x21f   :  { %8835 = vmatmul.mubr.msk.f32.gmra.mxu1 %vm11939_vm1, %v10297_v52 }
 0x220   :  { %8837 = vmatprep.mubr.msk.f32.mxu1 %vm11939_vm1, %v10302_v49 }
 0x223   :  { %8838 = vmatmul.mubr.msk.f32.gmra.mxu1 %vm11939_vm1, %v10308_v57 }
 0x2cd   :  { %v8799_v59 = vpop.f32.mrf.mxu0 }
 0x2ce   :  { %v582_v38 = vadd.f32 %v8799_v59, %v10335_v60  ;;  %v128_v59 = vadd.s32 %v127_v58, %v107_v56 }
 0x2cf   :  { %v576_v61 = vpop.f32.mrf.mxu0 }
 0x2d0   :  { %v577_v62 = vadd.f32 %v10335_v60, %v576_v61 }
 0x2d1   :  { %v10338_v63 = vpop.f32.mrf.mxu1 }
 0x2d2   :  { %8852 = vmatprep.mubr.msk.f32.mxu0 %vm11940_vm0, %v577_v62  ;;  %v592_v44 = vadd.f32 %v10338_v63, %v10335_v60  ;;  %v44_v62 = vshrl.u32 %v43_v39, 7  ;;  %v169_v63 = vsel %vm168_vm7, 1, %v10116_v51 }
 0x2d3   :  { %v586_v0 = vpop.f32.mrf.mxu1 }
 0x2d4   :  { %v587_v41 = vadd.f32 %v10335_v60, %v586_v0  ;;  %vm52_vm11 = vcmp.ge.s32.totalorder %v44_v62, 6  ;;  %vm200_vm7 = vcmp.le.s32.totalorder %v10379_v40, %v44_v62 }
 0x2d5   :  { %v8816_v1 = vpop.f32.mrf.mxu0 }
 0x2d6   :  { %v10341_v2 = vpop.f32.mrf.mxu1  ;;  %v681_v31 = vadd.f32 %v8816_v1, %v7746_v8  ;;  %v45_v1 = vadd.s32 8, %v44_v62 }
 0x2d7   :  { %v675_v3 = vpop.f32.mrf.mxu0  ;;  %v602_v50 = vadd.f32 %v10341_v2, %v10335_v60  ;;  %v190_v2 = vsel %vm189_vm8, 1, %v10116_v51  ;;  %vm213_vm8 = vcmp.eq.s32.totalorder %v10379_v40, %v44_v62 }
 0x2d8   :  { %v596_v4 = vpop.f32.mrf.mxu1  ;;  %v676_v36 = vadd.f32 %v7746_v8, %v675_v3  ;;  %vm67_vm9 = vcmp.ge.s32.totalorder %v45_v1, 12  ;;  %vm201_vm14 = vcmp.le.s32.totalorder %v10379_v40, %v45_v1  ;;  %vm214_vm2 = vcmp.eq.s32.totalorder %v10379_v40, %v45_v1 }
 0x2d9   :  { %v8819_v5 = vpop.f32.mrf.mxu0  ;;  %v597_v46 = vadd.f32 %v10335_v60, %v596_v4  ;;  %v148_v60 = vsel %vm147_vm6, 1, %v10116_v51  ;;  %v73_v4 = vsel %vm67_vm9, 1, %v10116_v51 }
 0x2da   :  { %v691_v22 = vadd.f32 %v8819_v5, %v7746_v8  ;;  %v149_v61 = vadd.s32 %v148_v60, %v128_v59 }
 0x2db   :  { %v8833_v6 = vpop.f32.mrf.mxu1  ;;  %v685_v7 = vpop.f32.mrf.mxu0 }
 0x2dc   :  { %v686_v28 = vadd.f32 %v7746_v8, %v685_v7  ;;  %v780_v32 = vadd.f32 %v8833_v6, %v7753_v20  ;;  %v170_v0 = vadd.s32 %v169_v63, %v149_v61  ;;  %v47_v6 = vadd.s32 24, %v44_v62 }
 0x2dd   :  { %v774_v9 = vpop.f32.mrf.mxu1  ;;  %v8822_v10 = vpop.f32.mrf.mxu0  ;;  %v46_v7 = vadd.s32 16, %v44_v62 }
 0x2de   :  { %v701_v12 = vadd.f32 %v8822_v10, %v7746_v8  ;;  %v775_v34 = vadd.f32 %v7753_v20, %v774_v9  ;;  %v10388_v3 = vadd.s32 %v190_v2, %v170_v0  ;;  %vm132_vm10 = vcmp.ge.s32.totalorder %v47_v6, 30 }
 0x2df   :  { %v8836_v13 = vpop.f32.mrf.mxu1  ;;  %v695_v14 = vpop.f32.mrf.mxu0  ;;  %vm89_vm12 = vcmp.ge.s32.totalorder %v46_v7, 18  ;;  %v138_v10 = vsel %vm132_vm10, 1, %v10116_v51 }
 0x2e0   :  { %v696_v16 = vadd.f32 %v7746_v8, %v695_v14  ;;  %8840 = vmatprep.subr.msk.mxu0 %vm11940_vm0, %v701_v12  ;;  %v790_v29 = vadd.f32 %v8836_v13, %v7753_v20  ;;  %v192_v5 = vmul.u32 6, %v10388_v3  ;;  %v79_v8 = vadd.s32 1, %v73_v4 }
 0x2e1   :  { %v784_v17 = vpop.f32.mrf.mxu1  ;;  %8841 = vmatpush3.xpose.msk.msra.mxu0 %vm11940_vm0, %v701_v12  ;;  %v49_v12 = vadd.s32 40, %v44_v62  ;;  %v58_v13 = vsel %vm52_vm11, 1, %v10116_v51  ;;  %v95_v14 = vsel %vm89_vm12, 1, %v10116_v51  ;;  %vm203_vm12 = vcmp.le.s32.totalorder %v10379_v40, %v47_v6 }
 0x2e2   :  { %8842 = vmatprep.subr.msk.mxu0 %vm11940_vm0, %v696_v16  ;;  %v785_v30 = vadd.f32 %v7753_v20, %v784_v17  ;;  %v193_v9 = vsub.s32 %v10379_v40, %v192_v5  ;;  %vm195_vm13 = vcmp.eq.s32.totalorder %v79_v8, %v10388_v3  ;;  %vm194_vm6 = vcmp.eq.s32.totalorder %v58_v13, %v10388_v3 }
 0x2e3   :  { %v8839_v21 = vpop.f32.mrf.mxu1  ;;  %vm10395_vm3 = vmand %vm195_vm13, %vm201_vm14  ;;  %vm176_vm5 = vcmp.ge.s32.totalorder %v49_v12, 42  ;;  %vm216_vm14 = vcmp.eq.s32.totalorder %v10379_v40, %v47_v6 }
 0x2e4   :  { %v800_v23 = vadd.f32 %v8839_v21, %v7753_v20  ;;  %vm11941_vm15 = vcmp.lt.s32.totalorder %v193_v9, 4  ;;  %vm10413_vm13 = vmand %vm194_vm6, %vm200_vm7 }
 0x2e5   :  { %v794_v24 = vpop.f32.mrf.mxu1  ;;  %8843 = vmatpush3.xpose.msk.msra.mxu0 %vm11940_vm0, %v696_v16  ;;  %v48_v16 = vadd.s32 32, %v44_v62  ;;  %vm10400_vm4 = vmor %vm11941_vm15, %vm214_vm2 }
 0x2e6   :  { %v795_v25 = vadd.f32 %v7753_v20, %v794_v24  ;;  %8861 = vmatprep.subr.mxu1 %v800_v23  ;;  %8844 = vmatprep.subr.msk.mxu0 %vm11940_vm0, %v691_v22  ;;  %v144_v20 = vadd.s32 4, %v138_v10  ;;  %vm10419_vm2 = vmor %vm11941_vm15, %vm213_vm8  ;;  %v7785_v10 = vld [vmem:[#allocation2 + $0xe8] ss:$0 sm:$0xff] }
 0x2e7   :  { %8862 = vmatpush3.msra.mxu1 %v800_v23  ;;  %vm154_vm9 = vcmp.ge.s32.totalorder %v48_v16, 36  ;;  %v182_v23 = vsel %vm176_vm5, 1, %v10116_v51  ;;  %vm215_vm5 = vcmp.eq.s32.totalorder %v10379_v40, %v46_v7  ;;  %vm10431_vm6 = vmor %vm11941_vm15, %vm216_vm14 }
 0x2e8   :  { %8863 = vmatprep.subr.mxu1 %v795_v25  ;;  %vm197_vm11 = vcmp.eq.s32.totalorder %v144_v20, %v10388_v3  ;;  %vm10440_vm8 = vmor %vm11941_vm15, %vm215_vm5  ;;  %vm204_vm5 = vcmp.le.s32.totalorder %v10379_v40, %v48_v16  ;;  %vm217_vm15 = vcmp.eq.s32.totalorder %v10379_v40, %v48_v16 }
 0x2e9   :  { %8864 = vmatpush3.msra.mxu1 %v795_v25  ;;  %8845 = vmatpush3.xpose.msk.msra.mxu0 %vm11940_vm0, %v691_v22  ;;  %v101_v22 = vadd.s32 2, %v95_v14  ;;  %vm10425_vm10 = vmand %vm197_vm11, %vm203_vm12  ;;  %vm205_vm12 = vcmp.le.s32.totalorder %v10379_v40, %v49_v12 }
 0x2ea   :  { %8865 = vmatprep.subr.mxu1 %v790_v29  ;;  %8846 = vmatprep.subr.msk.mxu0 %vm11940_vm0, %v686_v28  ;;  %vm11958_vm14 = vmand %vm10395_vm3, %vm10400_vm4  ;;  %vm934_vm3 = vcmask 392192   ;;  %vm11961_vm4 = vcmp.lt.s32.totalorder %v193_v9, 4 }
 0x2eb   :  { %8866 = vmatpush3.msra.mxu1 %v790_v29 }
 0x2ec   :  { %8867 = vmatprep.subr.mxu1 %v785_v30 }
 0x2ed   :  { %8868 = vmatpush3.msra.mxu1 %v785_v30  ;;  %8847 = vmatpush3.xpose.msk.msra.mxu0 %vm11940_vm0, %v686_v28  ;;  %v160_v28 = vsel %vm154_vm9, 1, %v10116_v51  ;;  %v188_v30 = vadd.s32 6, %v182_v23  ;;  %vm225_vm9 = vmand %vm10413_vm13, %vm10419_vm2 }
 0x2ee   :  { %8869 = vmatprep.subr.mxu1 %v780_v32  ;;  %8848 = vmatprep.subr.msk.mxu0 %vm11940_vm0, %v681_v31 }
 0x2ef   :  { %8870 = vmatpush3.msra.mxu1 %v780_v32  ;;  %vm199_vm11 = vcmp.eq.s32.totalorder %v188_v30, %v10388_v3 }
 0x2f0   :  { %8871 = vmatprep.subr.mxu1 %v775_v34 }
 0x2f1   :  { %8872 = vmatpush3.msra.mxu1 %v775_v34  ;;  %8849 = vmatpush3.xpose.msk.msra.mxu0 %vm11940_vm0, %v681_v31  ;;  %v166_v34 = vadd.s32 5, %v160_v28 }
 0x2f2   :  { %8850 = vmatprep.subr.msk.mxu0 %vm11940_vm0, %v676_v36 }
 0x2f3   :  { %vm198_vm2 = vcmp.eq.s32.totalorder %v166_v34, %v10388_v3 }
 0x2f4   :  { %vm10481_vm13 = vmand %vm198_vm2, %vm204_vm5 }
 0x2f5   :  { %8851 = vmatpush3.xpose.msk.msra.mxu0 %vm11940_vm0, %v676_v36 }
 0x2f6   :  { %8899 = vmatprep.subr.mxu0 %v1124_v37 }
 0x2f8   :  { %8853 = vmatmul.mubr.msk.f32.vlgmr.msra.gmra.mxu0 %vm11940_vm0, %v582_v38 }
 0x2f9   :  { %8855 = vmatprep.mubr.msk.f32.mxu0 %vm11940_vm0, %v587_v41  ;;  %8900 = vmatpush3.msra.mxu0 %v1124_v37  ;;  %v10117_v37 = vmov -1e+30  }
 0x2fa   :  { %8901 = vmatprep.subr.mxu0 %v1123_v42  ;;  %v10460_v38 = vsel %vm11958_vm14, 0.0, %v10117_v37 }
 0x2fb   :  { %8902 = vmatpush3.msra.mxu0 %v1123_v42 }
 0x2fc   :  { %8856 = vmatmul.mubr.msk.f32.gmra.mxu0 %vm11940_vm0, %v592_v44  ;;  %8903 = vmatprep.subr.mxu0 %v1122_v33 }
 0x2fd   :  { %8858 = vmatprep.mubr.msk.f32.mxu0 %vm11940_vm0, %v597_v46  ;;  %8904 = vmatpush3.msra.mxu0 %v1122_v33  ;;  %v10473_v33 = vsel %vm225_vm9, 0.0, %v10117_v37  ;;  %vm11967_vm9 = vmmov %vm11961_vm4 }
 0x2fe   :  { %8905 = vmatprep.subr.mxu0 %v1121_v47 }
 0x2ff   :  { %8906 = vmatpush3.msra.mxu0 %v1121_v47 }
 0x300   :  { %8859 = vmatmul.mubr.msk.f32.gmra.mxu0 %vm11940_vm0, %v602_v50  ;;  %vm202_vm0 = vcmp.le.s32.totalorder %v10379_v40, %v46_v7 }
 0x301   :  { %8907 = vmatprep.mubr.msk.f32.mxu0 %vm11939_vm1, %v10281_v35 }
 0x304   :  { %8908 = vmatmul.mubr.msk.f32.vlgmr.msra.gmra.mxu0 %vm11939_vm1, %v10287_v43 }
 0x305   :  { %8910 = vmatprep.mubr.msk.f32.mxu0 %vm11939_vm1, %v10290_v45 }
 0x308   :  { %8911 = vmatmul.mubr.msk.f32.gmra.mxu0 %vm11939_vm1, %v10297_v52 }
 0x309   :  { %8913 = vmatprep.mubr.msk.f32.mxu0 %vm11939_vm1, %v10302_v49 }
 0x30c   :  { %8914 = vmatmul.mubr.msk.f32.gmra.mxu0 %vm11939_vm1, %v10308_v57  ;;  %vm196_vm1 = vcmp.eq.s32.totalorder %v101_v22, %v10388_v3 }
 0x30d   :  { %vm10435_vm7 = vmand %vm196_vm1, %vm202_vm0  ;;  %vm218_vm1 = vcmp.eq.s32.totalorder %v10379_v40, %v49_v12 }
 0x30e   :  { %vm10468_vm0 = vmand %vm199_vm11, %vm205_vm12 }
 0x30f   :  { %vm10476_vm14 = vmor %vm11961_vm4, %vm218_vm1 }
 0x310   :  { %vm11966_vm11 = vmand %vm10425_vm10, %vm10431_vm6  ;;  %vm11971_vm6 = vcmask 64512  }
 0x311   :  { %v10490_v39 = vsel %vm11966_vm11, 0.0, %v10117_v37  ;;  %vm10493_vm12 = vmor %vm11967_vm9, %vm217_vm15 }
 0x312   :  { %vm230_vm1 = vmand %vm10468_vm0, %vm10476_vm14 }
 0x313   :  { %vm11970_vm10 = vmand %vm10435_vm7, %vm10440_vm8  ;;  %v10516_v59 = vsel %vm230_vm1, 0.0, %v10117_v37  ;;  %vm11983_vm1 = vcmask 261120  }
 0x314   :  { %v10508_v54 = vsel %vm11970_vm10, 0.0, %v10117_v37  ;;  %vm229_vm15 = vmand %vm10481_vm13, %vm10493_vm12 }
 0x315   :  { %v10520_v63 = vsel %vm229_vm15, 0.0, %v10117_v37  ;;  %vm11972_vm7 = vmmov %vm11971_vm6 }
 0x316   :  { %vm11973_vm8 = vmmov %vm11971_vm6 }
 0x317   :  { %vm11974_vm0 = vmmov %vm11971_vm6 }
 0x318   :  { %vm11975_vm13 = vmmov %vm11974_vm0 }
 0x319   :  { %vm11976_vm2 = vmmov %vm11974_vm0 }
 0x31a   :  { %vm11977_vm5 = vmmov %vm11974_vm0 }
 0x31b   :  { %vm11978_vm4 = vmmov %vm11974_vm0 }
 0x31c   :  { %vm11979_vm14 = vmmov %vm11974_vm0 }
 0x31d   :  { %vm11980_vm11 = vmmov %vm11974_vm0 }
 0x31e   :  { %vm11981_vm9 = vmmov %vm11974_vm0 }
 0x31f   :  { %vm11982_vm12 = vmmov %vm11974_vm0 }
 0x320   :  { %vm11984_vm10 = vmmov %vm11983_vm1 }
 0x321   :  { %vm11985_vm15 = vmmov %vm11983_vm1 }
 0x3b8   :  { %v8854_v42 = vpop.f32.mrf.mxu0 }
 0x3b9   :  { %v911_v46 = vadd.f32 %v8854_v42, %v10460_v38 }
 0x3ba   :  { %v905_v50 = vpop.f32.mrf.mxu0 }
 0x3bb   :  { %v906_v51 = vadd.f32 %v905_v50, %v10473_v33  ;;  %v938_v48 = vsel %vm934_vm3, %v911_v46, -inf }
 0x3bc   :  { %939 = vmax.xlane.f32.xlu1 %v938_v48  ;;  %v8857_v53 = vpop.f32.mrf.mxu0 }
 0x3bd   :  { %v921_v55 = vadd.f32 %v8857_v53, %v10490_v39  ;;  %v935_v56 = vsel %vm934_vm3, %v906_v51, -inf }
 0x3be   :  { %v915_v58 = vpop.f32.mrf.mxu0  ;;  %936 = vmax.xlane.f32.xlu0 %v935_v56 }
 0x3bf   :  { %v916_v60 = vadd.f32 %v915_v58, %v10508_v54  ;;  %v944_v61 = vsel %vm934_vm3, %v921_v55, -inf }
 0x3c0   :  { %945 = vmax.xlane.f32.xlu1 %v944_v61  ;;  %v8860_v62 = vpop.f32.mrf.mxu0 }
 0x3c1   :  { %v931_v0 = vadd.f32 %v8860_v62, %v10516_v59  ;;  %v941_v1 = vsel %vm934_vm3, %v916_v60, -inf }
 0x3c2   :  { %942 = vmax.xlane.f32.xlu0 %v941_v1  ;;  %v925_v2 = vpop.f32.mrf.mxu0 }
 0x3c3   :  { %v926_v3 = vadd.f32 %v925_v2, %v10520_v63  ;;  %v950_v4 = vsel %vm934_vm3, %v931_v0, -inf }
 0x3c4   :  { %951 = vmax.xlane.f32.xlu1 %v950_v4  ;;  %v8909_v5 = vpop.f32.mrf.mxu0 }
 0x3c5   :  { %v947_v6 = vsel %vm934_vm3, %v926_v3, -inf  ;;  %v1312_v21 = vadd.f32 %v8909_v5, %v7785_v10 }
 0x3c6   :  { %v1306_v7 = vpop.f32.mrf.mxu0  ;;  %948 = vmax.xlane.f32.xlu0 %v947_v6 }
 0x3c7   :  { %v1307_v22 = vadd.f32 %v7785_v10, %v1306_v7 }
 0x3c8   :  { %v8912_v8 = vpop.f32.mrf.mxu0 }
 0x3c9   :  { %v1322_v17 = vadd.f32 %v8912_v8, %v7785_v10 }
 0x3ca   :  { %v1316_v9 = vpop.f32.mrf.mxu0 }
 0x3cb   :  { %v1317_v20 = vadd.f32 %v7785_v10, %v1316_v9 }
 0x3cc   :  { %v8915_v12 = vpop.f32.mrf.mxu0 }
 0x3cd   :  { %v1332_v13 = vadd.f32 %v8915_v12, %v7785_v10 }
 0x3ce   :  { %v1326_v14 = vpop.f32.mrf.mxu0 }
 0x3cf   :  { %v1327_v16 = vadd.f32 %v7785_v10, %v1326_v14  ;;  %8933 = vmatprep.subr.msk.mxu0 %vm11971_vm6, %v1332_v13  ;;  %vm11986_vm6 = vmmov %vm11983_vm1 }
 0x3d0   :  { %8934 = vmatpush3.xpose.msk.msra.mxu0 %vm11972_vm7, %v1332_v13  ;;  %vm11987_vm7 = vmmov %vm11983_vm1 }
 0x3d1   :  { %8935 = vmatprep.subr.msk.mxu0 %vm11973_vm8, %v1327_v16  ;;  %vm11988_vm8 = vmmov %vm11983_vm1 }
 0x3d4   :  { %8936 = vmatpush3.xpose.msk.msra.mxu0 %vm11974_vm0, %v1327_v16  ;;  %vm11989_vm0 = vmmov %vm11983_vm1 }
 0x3d5   :  { %8937 = vmatprep.subr.msk.mxu0 %vm11975_vm13, %v1322_v17  ;;  %vm11990_vm13 = vmmov %vm11989_vm0 }
 0x3d8   :  { %8938 = vmatpush3.xpose.msk.msra.mxu0 %vm11976_vm2, %v1322_v17  ;;  %v1117_v17 = vld [vmem:[#allocation2 + $0x38] sm:$0xff]  ;;  %vm11991_vm2 = vmmov %vm11989_vm0 }
 0x3d9   :  { %8939 = vmatprep.subr.msk.mxu0 %vm11977_vm5, %v1317_v20  ;;  %vm11992_vm5 = vmmov %vm11989_vm0 }
 0x3dc   :  { %8940 = vmatpush3.xpose.msk.msra.mxu0 %vm11978_vm4, %v1317_v20  ;;  %vm11993_vm4 = vmmov %vm11989_vm0 }
 0x3dd   :  { %8941 = vmatprep.subr.msk.mxu0 %vm11979_vm14, %v1312_v21  ;;  %vm11994_vm14 = vmmov %vm11989_vm0 }
 0x3e0   :  { %8942 = vmatpush3.xpose.msk.msra.mxu0 %vm11980_vm11, %v1312_v21  ;;  %vm11995_vm11 = vmmov %vm11981_vm9 }
 0x3e1   :  { %8943 = vmatprep.subr.msk.mxu0 %vm11981_vm9, %v1307_v22 }
 0x3e4   :  { %8944 = vmatpush3.xpose.msk.msra.mxu0 %vm11982_vm12, %v1307_v22  ;;  %v1116_v22 = vld [vmem:[#allocation2 + $0x30] sm:$0xff]  ;;  %vm11996_vm12 = vmmov %vm11981_vm9 }
 0x445   :  { %v940_v23 = vpop.xlane.xlu1 %939 }
 0x446   :  { %v954_v24 = vsub.f32 %v911_v46, %v940_v23 }
 0x447   :  { %v937_v25 = vpop.xlane.xlu0 %936 }
 0x448   :  { %v961_v28 = vmul.f32 1.442695, %v954_v24  ;;  %v953_v29 = vsub.f32 %v906_v51, %v937_v25  ;;  %v1115_v25 = vld [vmem:[#allocation2 + $0x28] sm:$0xff] }
 0x449   :  { %v946_v30 = vpop.xlane.xlu1 %945 }
 0x44a   :  { %9827 = vpow2.f32 %v961_v28  ;;  %v959_v31 = vmul.f32 1.442695, %v953_v29  ;;  %v956_v32 = vsub.f32 %v921_v55, %v946_v30  ;;  %v1130_v30 = vld [vmem:[#allocation2 + $0x180] sm:$0xff] }
 0x44b   :  { %v943_v34 = vpop.xlane.xlu0 %942 }
 0x44c   :  { %9829 = vpow2.f32 %v959_v31  ;;  %v965_v36 = vmul.f32 1.442695, %v956_v32  ;;  %v955_v37 = vsub.f32 %v916_v60, %v943_v34  ;;  %v1129_v32 = vld [vmem:[#allocation2 + $0x178] sm:$0xff]  ;;  %v1128_v34 = vld [vmem:[#allocation2 + $0x170] sm:$0xff] }
 0x44d   :  { %v952_v41 = vpop.xlane.xlu1 %951 }
 0x44e   :  { %9831 = vpow2.f32 %v965_v36  ;;  %v963_v42 = vmul.f32 1.442695, %v955_v37  ;;  %v958_v44 = vsub.f32 %v931_v0, %v952_v41  ;;  %v1127_v36 = vld [vmem:[#allocation2 + $0x168] sm:$0xff]  ;;  %v487_v37 = vld [vmem:[#allocation2 + $0x1f8] sm:$0xff] }
 0x44f   :  { %v949_v47 = vpop.xlane.xlu0 %948  ;;  %8992 = vmatprep.subr.msk.mxu0 %vm11995_vm11, %v487_v37 }
 0x450   :  { %9833 = vpow2.f32 %v963_v42  ;;  %v969_v50 = vmul.f32 1.442695, %v958_v44  ;;  %v957_v40 = vsub.f32 %v926_v3, %v949_v47  ;;  %v1118_v3 = vld [vmem:[#allocation2 + $0x40] sm:$0xff] }
 0x451   :  { %8882 = vmatprep.subr.mxu1 %v1118_v3 }
 0x452   :  { %9835 = vpow2.f32 %v969_v50  ;;  %v967_v46 = vmul.f32 1.442695, %v957_v40 }
 0x454   :  { %9837 = vpow2.f32 %v967_v46 }
 0x457   :  { %v9828_v51 = vpop.eup %9827 }
 0x458   :  { %v974_v48 = vsel %vm934_vm3, %v9828_v51, 0.0 }
 0x459   :  { %v9830_v53 = vpop.eup %9829  ;;  %975 = vadd.xlane.f32.xlu1 %v974_v48 }
 0x45a   :  { %v971_v55 = vsel %vm934_vm3, %v9830_v53, 0.0 }
 0x45b   :  { %v9832_v56 = vpop.eup %9831  ;;  %972 = vadd.xlane.f32.xlu0 %v971_v55 }
 0x45c   :  { %v980_v58 = vsel %vm934_vm3, %v9832_v56, 0.0 }
 0x45d   :  { %v9834_v60 = vpop.eup %9833  ;;  %981 = vadd.xlane.f32.xlu1 %v980_v58  ;;  %v486_v58 = vld [vmem:[#allocation2 + $0x1f0] sm:$0xff] }
 0x45e   :  { %v977_v61 = vsel %vm934_vm3, %v9834_v60, 0.0 }
 0x45f   :  { %v9836_v62 = vpop.eup %9835  ;;  %978 = vadd.xlane.f32.xlu0 %v977_v61 }
 0x460   :  { %v986_v0 = vsel %vm934_vm3, %v9836_v62, 0.0 }
 0x461   :  { %v9838_v1 = vpop.eup %9837  ;;  %987 = vadd.xlane.f32.xlu1 %v986_v0 }
 0x462   :  { %v983_v2 = vsel %vm934_vm3, %v9838_v1, 0.0 }
 0x463   :  { %984 = vadd.xlane.f32.xlu0 %v983_v2 }
 0x4e2   :  { %v976_v4 = vpop.xlane.xlu1 %975 }
 0x4e3   :  { %9839 = vrcp.f32 %v976_v4 }
 0x4e4   :  { %v973_v5 = vpop.xlane.xlu0 %972 }
 0x4e5   :  { %9841 = vrcp.f32 %v973_v5 }
 0x4e6   :  { %v982_v6 = vpop.xlane.xlu1 %981 }
 0x4e7   :  { %9843 = vrcp.f32 %v982_v6  ;;  %v484_v6 = vld [vmem:[#allocation2 + $0x1e0] sm:$0xff] }
 0x4e8   :  { %v979_v7 = vpop.xlane.xlu0 %978 }
 0x4e9   :  { %9845 = vrcp.f32 %v979_v7 }
 0x4ea   :  { %v988_v8 = vpop.xlane.xlu1 %987 }
 0x4eb   :  { %9847 = vrcp.f32 %v988_v8 }
 0x4ec   :  { %v985_v9 = vpop.xlane.xlu0 %984 }
 0x4ed   :  { %9849 = vrcp.f32 %v985_v9  ;;  %v2004_v9 = vld [vmem:[#allocation2 + $0x108] sm:$0xff] }
 0x4f0   :  { %v9840_v10 = vpop.eup %9839 }
 0x4f1   :  { %v996_v14 = vmul.f32 %v9840_v10, %v9828_v51  ;;  %v7778_v51 = vld [vmem:[#allocation2 + $0x48] ss:$0 sm:$0xff] }
 0x4f2   :  { %v9842_v12 = vpop.eup %9841 }
 0x4f3   :  { %v995_v13 = vmul.f32 %v9842_v12, %v9830_v53  ;;  %v7792_v12 = vld [vmem:[#allocation2 + $0x188] ss:$0 sm:$0xff] }
 0x4f4   :  { %v9844_v16 = vpop.eup %9843 }
 0x4f5   :  { %8873 = vmatprep.mubr.msk.f32.mxu1 %vm934_vm3, %v995_v13  ;;  %v998_v23 = vmul.f32 %v9844_v16, %v9832_v56 }
 0x4f6   :  { %v9846_v20 = vpop.eup %9845  ;;  %8874 = vmatmul.mubr.msk.f32.vlgmr.msra.gmra.mxu1 %vm934_vm3, %v996_v14 }
 0x4f7   :  { %8883 = vmatpush3.msra.mxu1 %v1118_v3  ;;  %v997_v21 = vmul.f32 %v9846_v20, %v9834_v60 }
 0x4f8   :  { %8884 = vmatprep.subr.mxu1 %v1117_v17  ;;  %v9848_v24 = vpop.eup %9847 }
 0x4f9   :  { %8876 = vmatprep.mubr.msk.f32.mxu1 %vm934_vm3, %v997_v21  ;;  %8885 = vmatpush3.msra.mxu1 %v1117_v17  ;;  %v1000_v31 = vmul.f32 %v9848_v24, %v9836_v62  ;;  %v2003_v17 = vld [vmem:[#allocation2 + $0x100] sm:$0xff]  ;;  %v2001_v24 = vld [vmem:[#allocation2 + $0xf0] sm:$0xff] }
 0x4fa   :  { %v9850_v28 = vpop.eup %9849  ;;  %8877 = vmatmul.mubr.msk.f32.gmra.mxu1 %vm934_vm3, %v998_v23  ;;  %8886 = vmatprep.subr.mxu1 %v1116_v22 }
 0x4fb   :  { %v999_v29 = vmul.f32 %v9850_v28, %v9838_v1  ;;  %8887 = vmatpush3.msra.mxu1 %v1116_v22  ;;  %v485_v1 = vld [vmem:[#allocation2 + $0x1e8] sm:$0xff]  ;;  %v2002_v22 = vld [vmem:[#allocation2 + $0xf8] sm:$0xff] }
 0x4fc   :  { %8888 = vmatprep.subr.mxu1 %v1115_v25 }
 0x4fd   :  { %8879 = vmatprep.mubr.msk.f32.mxu1 %vm934_vm3, %v999_v29  ;;  %8889 = vmatpush3.msra.mxu1 %v1115_v25 }
 0x4fe   :  { %8880 = vmatmul.mubr.msk.f32.gmra.mxu1 %vm934_vm3, %v1000_v31  ;;  %8916 = vmatprep.subr.mxu1 %v1130_v30 }
 0x4ff   :  { %8890 = vmatprep.mubr.msk.f32.mxu1 %vm11983_vm1, %v10281_v35  ;;  %vm11997_vm1 = vmmov %vm11981_vm9 }
 0x502   :  { %8891 = vmatmul.mubr.msk.f32.vlgmr.msra.gmra.mxu1 %vm11984_vm10, %v10287_v43  ;;  %vm11998_vm10 = vmmov %vm11997_vm1 }
 0x503   :  { %8893 = vmatprep.mubr.msk.f32.mxu1 %vm11985_vm15, %v10290_v45  ;;  %8917 = vmatpush3.msra.mxu1 %v1130_v30  ;;  %vm11999_vm15 = vmmov %vm11997_vm1 }
 0x504   :  { %8918 = vmatprep.subr.mxu1 %v1129_v32 }
 0x505   :  { %8919 = vmatpush3.msra.mxu1 %v1129_v32 }
 0x506   :  { %8894 = vmatmul.mubr.msk.f32.gmra.mxu1 %vm11986_vm6, %v10297_v52  ;;  %8920 = vmatprep.subr.mxu1 %v1128_v34  ;;  %vm12000_vm6 = vmmov %vm11997_vm1 }
 0x507   :  { %8896 = vmatprep.mubr.msk.f32.mxu1 %vm11987_vm7, %v10302_v49  ;;  %8921 = vmatpush3.msra.mxu1 %v1128_v34  ;;  %vm12001_vm7 = vmmov %vm11997_vm1 }
 0x508   :  { %8922 = vmatprep.subr.mxu1 %v1127_v36 }
 0x509   :  { %8923 = vmatpush3.msra.mxu1 %v1127_v36 }
 0x50a   :  { %8897 = vmatmul.mubr.msk.f32.gmra.mxu1 %vm11988_vm8, %v10308_v57  ;;  %vm12002_vm8 = vmmov %vm11997_vm1 }
 0x50b   :  { %8924 = vmatprep.mubr.msk.f32.mxu1 %vm11989_vm0, %v10281_v35  ;;  %vm12003_vm0 = vmmov %vm11997_vm1 }
 0x50c   :  { %vm12009_vm11 = vmmov %vm12003_vm0 }
 0x50e   :  { %8925 = vmatmul.mubr.msk.f32.vlgmr.msra.gmra.mxu1 %vm11990_vm13, %v10287_v43  ;;  %vm12004_vm13 = vmmov %vm12003_vm0 }
 0x50f   :  { %8927 = vmatprep.mubr.msk.f32.mxu1 %vm11991_vm2, %v10290_v45  ;;  %vm12005_vm2 = vmmov %vm12003_vm0 }
 0x512   :  { %8928 = vmatmul.mubr.msk.f32.gmra.mxu1 %vm11992_vm5, %v10297_v52  ;;  %vm12006_vm5 = vmmov %vm12003_vm0 }
 0x513   :  { %8930 = vmatprep.mubr.msk.f32.mxu1 %vm11993_vm4, %v10302_v49  ;;  %vm12007_vm4 = vmmov %vm12003_vm0 }
 0x516   :  { %8931 = vmatmul.mubr.msk.f32.gmra.mxu1 %vm11994_vm14, %v10308_v57  ;;  %vm12008_vm14 = vmmov %vm12003_vm0 }
 0x5b6   :  { %v8875_v41 = vpop.f32.mrf.mxu1 }
 0x5b8   :  { %v1085_v42 = vpop.f32.mrf.mxu1 }
 0x5ba   :  { %v8878_v44 = vpop.f32.mrf.mxu1 }
 0x5bc   :  { %v1095_v47 = vpop.f32.mrf.mxu1 }
 0x5be   :  { %v10576_v50 = vpop.f32.mrf.mxu1 }
 0x5c0   :  { %v1105_v40 = vpop.f32.mrf.mxu1 }
 0x5c2   :  { %v8892_v46 = vpop.f32.mrf.mxu1 }
 0x5c3   :  { %v1213_v55 = vadd.f32 %v8892_v46, %v7778_v51 }
 0x5c4   :  { %v1207_v48 = vpop.f32.mrf.mxu1 }
 0x5c5   :  { %v1208_v53 = vadd.f32 %v7778_v51, %v1207_v48 }
 0x5c6   :  { %v8895_v56 = vpop.f32.mrf.mxu1 }
 0x5c7   :  { %8945 = vmatprep.mubr.msk.f32.mxu0 %vm11981_vm9, %v1208_v53  ;;  %v1223_v62 = vadd.f32 %v8895_v56, %v7778_v51  ;;  %vm12010_vm9 = vmmov %vm12003_vm0 }
 0x5c8   :  { %v1217_v60 = vpop.f32.mrf.mxu1  ;;  %8946 = vmatmul.mubr.msk.f32.vlgmr.msra.gmra.mxu0 %vm11996_vm12, %v1213_v55  ;;  %vm12011_vm12 = vmmov %vm12003_vm0 }
 0x5c9   :  { %v1218_v61 = vadd.f32 %v7778_v51, %v1217_v60  ;;  %8993 = vmatpush3.xpose.msk.msra.mxu0 %vm11997_vm1, %v487_v37  ;;  %vm12012_vm1 = vmmov %vm12003_vm0 }
 0x5ca   :  { %v8898_v0 = vpop.f32.mrf.mxu1  ;;  %8994 = vmatprep.subr.msk.mxu0 %vm11998_vm10, %v486_v58  ;;  %vm12013_vm10 = vmmov %vm12003_vm0 }
 0x5cb   :  { %8948 = vmatprep.mubr.msk.f32.mxu0 %vm11999_vm15, %v1218_v61  ;;  %v1233_v4 = vadd.f32 %v8898_v0, %v7778_v51  ;;  %vm12014_vm15 = vcmask 261120  }
 0x5cc   :  { %v1227_v2 = vpop.f32.mrf.mxu1  ;;  %8949 = vmatmul.mubr.msk.f32.gmra.mxu0 %vm12000_vm6, %v1223_v62  ;;  %vm12015_vm6 = vmmov %vm12014_vm15 }
 0x5cd   :  { %v1228_v3 = vadd.f32 %v7778_v51, %v1227_v2  ;;  %8995 = vmatpush3.xpose.msk.msra.mxu0 %vm12001_vm7, %v486_v58  ;;  %vm12016_vm7 = vmmov %vm12015_vm6 }
 0x5ce   :  { %v8926_v5 = vpop.f32.mrf.mxu1  ;;  %8996 = vmatprep.subr.msk.mxu0 %vm12002_vm8, %v485_v1  ;;  %vm12017_vm8 = vmmov %vm12015_vm6 }
 0x5cf   :  { %8951 = vmatprep.mubr.msk.f32.mxu0 %vm12003_vm0, %v1228_v3  ;;  %v1411_v25 = vadd.f32 %v8926_v5, %v7792_v12  ;;  %vm12018_vm0 = vmmov %vm12015_vm6  ;;  %v7844_v5 = vld [vmem:[#allocation2 + $0x110] ss:$0 sm:$0xff] }
 0x5d0   :  { %v1405_v7 = vpop.f32.mrf.mxu1  ;;  %8952 = vmatmul.mubr.msk.f32.gmra.mxu0 %vm12004_vm13, %v1233_v4  ;;  %vm12019_vm13 = vmmov %vm12018_vm0 }
 0x5d1   :  { %8997 = vmatpush3.xpose.msk.msra.mxu0 %vm12005_vm2, %v485_v1  ;;  %9000 = vmatprep.mubr.msk.f32.mxu0 %vm12006_vm5, %v1085_v42  ;;  %v1406_v28 = vadd.f32 %v7792_v12, %v1405_v7  ;;  %vm12020_vm2 = vmmov %vm12012_vm1 }
 0x5d2   :  { %v8929_v8 = vpop.f32.mrf.mxu1  ;;  %8998 = vmatprep.subr.msk.mxu0 %vm12007_vm4, %v484_v6  ;;  %vm12021_vm5 = vmmov %vm12012_vm1 }
 0x5d3   :  { %v1421_v21 = vadd.f32 %v8929_v8, %v7792_v12  ;;  %vm12022_vm4 = vmmov %vm12012_vm1 }
 0x5d4   :  { %v1415_v10 = vpop.f32.mrf.mxu1 }
 0x5d5   :  { %8999 = vmatpush3.xpose.msk.msra.mxu0 %vm12008_vm14, %v484_v6  ;;  %v1416_v23 = vadd.f32 %v7792_v12, %v1415_v10  ;;  %vm12023_vm14 = vmmov %vm12012_vm1 }
 0x5d6   :  { %v8932_v13 = vpop.f32.mrf.mxu1  ;;  %9026 = vmatprep.subr.mxu0 %v2004_v9 }
 0x5d7   :  { %v1431_v14 = vadd.f32 %v8932_v13, %v7792_v12 }
 0x5d8   :  { %9001 = vmatmul.mubr.msk.f32.vlgmr.msra.gmra.mxu0 %vm12009_vm11, %v8875_v41  ;;  %v1425_v16 = vpop.f32.mrf.mxu1  ;;  %vm12024_vm11 = vmmov %vm12012_vm1 }
 0x5d9   :  { %v1426_v20 = vadd.f32 %v7792_v12, %v1425_v16  ;;  %9003 = vmatprep.mubr.msk.f32.mxu0 %vm12010_vm9, %v1095_v47  ;;  %8954 = vmatprep.subr.mxu1 %v1431_v14  ;;  %vm12025_vm9 = vmmov %vm12012_vm1 }
 0x5da   :  { %8955 = vmatpush3.msra.mxu1 %v1431_v14  ;;  %9027 = vmatpush3.msra.mxu0 %v2004_v9 }
 0x5db   :  { %8956 = vmatprep.subr.mxu1 %v1426_v20  ;;  %9028 = vmatprep.subr.mxu0 %v2003_v17 }
 0x5dc   :  { %9004 = vmatmul.mubr.msk.f32.gmra.mxu0 %vm12011_vm12, %v8878_v44  ;;  %8957 = vmatpush3.msra.mxu1 %v1426_v20  ;;  %vm12026_vm12 = vmmov %vm12012_vm1 }
 0x5dd   :  { %9006 = vmatprep.mubr.msk.f32.mxu0 %vm12012_vm1, %v1105_v40  ;;  %8958 = vmatprep.subr.mxu1 %v1421_v21 }
 0x5de   :  { %8959 = vmatpush3.msra.mxu1 %v1421_v21  ;;  %9029 = vmatpush3.msra.mxu0 %v2003_v17 }
 0x5df   :  { %8960 = vmatprep.subr.mxu1 %v1416_v23  ;;  %9030 = vmatprep.subr.mxu0 %v2002_v22 }
 0x5e0   :  { %9007 = vmatmul.mubr.msk.f32.gmra.mxu0 %vm12013_vm10, %v10576_v50  ;;  %8961 = vmatpush3.msra.mxu1 %v1416_v23  ;;  %vm12027_vm10 = vmmov %vm12012_vm1 }
 0x5e1   :  { %9031 = vmatpush3.msra.mxu0 %v2002_v22  ;;  %9034 = vmatprep.mubr.msk.f32.mxu0 %vm12014_vm15, %v10281_v35  ;;  %vm12028_vm15 = vmmov %vm12012_vm1 }
 0x5e2   :  { %8962 = vmatprep.subr.mxu1 %v1411_v25  ;;  %9032 = vmatprep.subr.mxu0 %v2001_v24 }
 0x5e3   :  { %8963 = vmatpush3.msra.mxu1 %v1411_v25  ;;  %9033 = vmatpush3.msra.mxu0 %v2001_v24 }
 0x5e4   :  { %8964 = vmatprep.subr.mxu1 %v1406_v28  ;;  %9035 = vmatmul.mubr.msk.f32.vlgmr.msra.gmra.mxu0 %vm12015_vm6, %v10287_v43  ;;  %vm12029_vm6 = vmmov %vm12012_vm1 }
 0x5e5   :  { %8965 = vmatpush3.msra.mxu1 %v1406_v28  ;;  %9037 = vmatprep.mubr.msk.f32.mxu0 %vm12016_vm7, %v10290_v45  ;;  %vm12030_vm7 = vmmov %vm12012_vm1 }
 0x5e8   :  { %9038 = vmatmul.mubr.msk.f32.gmra.mxu0 %vm12017_vm8, %v10297_v52  ;;  %vm12031_vm8 = vmmov %vm12012_vm1 }
 0x5e9   :  { %9040 = vmatprep.mubr.msk.f32.mxu0 %vm12018_vm0, %v10302_v49  ;;  %vm12032_vm0 = vmmov %vm12012_vm1 }
 0x5ec   :  { %9041 = vmatmul.mubr.msk.f32.gmra.mxu0 %vm12019_vm13, %v10308_v57  ;;  %vm12033_vm13 = vmmov %vm12032_vm0 }
 0x688   :  { %v8947_v29 = vpop.f32.mrf.mxu0 }
 0x689   :  { %v1542_v30 = vadd.f32 %v8947_v29, %v10460_v38 }
 0x68a   :  { %v1536_v31 = vpop.f32.mrf.mxu0 }
 0x68b   :  { %v1537_v32 = vadd.f32 %v1536_v31, %v10473_v33  ;;  %v1568_v34 = vsel %vm934_vm3, %v1542_v30, -inf }
 0x68c   :  { %1569 = vmax.xlane.f32.xlu1 %v1568_v34  ;;  %v8950_v36 = vpop.f32.mrf.mxu0 }
 0x68d   :  { %v1552_v37 = vadd.f32 %v8950_v36, %v10490_v39  ;;  %v1565_v41 = vsel %vm934_vm3, %v1537_v32, -inf }
 0x68e   :  { %v1546_v42 = vpop.f32.mrf.mxu0  ;;  %1566 = vmax.xlane.f32.xlu0 %v1565_v41 }
 0x68f   :  { %v1547_v44 = vadd.f32 %v1546_v42, %v10508_v54  ;;  %v1574_v47 = vsel %vm934_vm3, %v1552_v37, -inf }
 0x690   :  { %1575 = vmax.xlane.f32.xlu1 %v1574_v47  ;;  %v8953_v50 = vpop.f32.mrf.mxu0 }
 0x691   :  { %v1562_v40 = vadd.f32 %v8953_v50, %v10516_v59  ;;  %v1571_v46 = vsel %vm934_vm3, %v1547_v44, -inf }
 0x692   :  { %v1556_v51 = vpop.f32.mrf.mxu0  ;;  %1572 = vmax.xlane.f32.xlu0 %v1571_v46 }
 0x693   :  { %v1557_v48 = vadd.f32 %v1556_v51, %v10520_v63  ;;  %v1580_v53 = vsel %vm934_vm3, %v1562_v40, -inf }
 0x694   :  { %1581 = vmax.xlane.f32.xlu1 %v1580_v53 }
 0x695   :  { %v1577_v55 = vsel %vm934_vm3, %v1557_v48, -inf }
 0x696   :  { %1578 = vmax.xlane.f32.xlu0 %v1577_v55 }
 0x698   :  { %v10622_v56 = vpop.f32.mrf.mxu0 }
 0x69a   :  { %v10624_v58 = vpop.f32.mrf.mxu0 }
 0x69c   :  { %v10626_v60 = vpop.f32.mrf.mxu0 }
 0x69e   :  { %v10628_v61 = vpop.f32.mrf.mxu0 }
 0x6a0   :  { %v10630_v62 = vpop.f32.mrf.mxu0 }
 0x6a2   :  { %v10632_v0 = vpop.f32.mrf.mxu0 }
 0x6a4   :  { %v9036_v1 = vpop.f32.mrf.mxu0 }
 0x6a5   :  { %v2192_v13 = vadd.f32 %v9036_v1, %v7844_v5 }
 0x6a6   :  { %v2186_v2 = vpop.f32.mrf.mxu0 }
 0x6a7   :  { %v2187_v14 = vadd.f32 %v7844_v5, %v2186_v2 }
 0x6a8   :  { %v9039_v3 = vpop.f32.mrf.mxu0 }
 0x6a9   :  { %v2202_v10 = vadd.f32 %v9039_v3, %v7844_v5 }
 0x6aa   :  { %v2196_v4 = vpop.f32.mrf.mxu0 }
 0x6ab   :  { %v2197_v12 = vadd.f32 %v7844_v5, %v2196_v4  ;;  %v1136_v4 = vld [vmem:[#allocation2 + $0x220] sm:$0xff] }
 0x6ac   :  { %v9042_v6 = vpop.f32.mrf.mxu0  ;;  %8975 = vmatprep.subr.msk.mxu1 %vm12031_vm8, %v1136_v4 }
 0x6ad   :  { %v2212_v7 = vadd.f32 %v9042_v6, %v7844_v5 }
 0x6ae   :  { %v2206_v8 = vpop.f32.mrf.mxu0 }
 0x6af   :  { %v2207_v9 = vadd.f32 %v7844_v5, %v2206_v8  ;;  %9060 = vmatprep.subr.msk.mxu0 %vm12020_vm2, %v2212_v7  ;;  %vm12034_vm2 = vmmov %vm12032_vm0 }
 0x6b0   :  { %9061 = vmatpush3.xpose.msk.msra.mxu0 %vm12021_vm5, %v2212_v7  ;;  %vm12035_vm5 = vmmov %vm12032_vm0 }
 0x6b1   :  { %9062 = vmatprep.subr.msk.mxu0 %vm12022_vm4, %v2207_v9  ;;  %vm12036_vm4 = vmmov %vm12032_vm0 }
 0x6b4   :  { %9063 = vmatpush3.xpose.msk.msra.mxu0 %vm12023_vm14, %v2207_v9  ;;  %vm12037_vm14 = vmmov %vm12032_vm0 }
 0x6b5   :  { %9064 = vmatprep.subr.msk.mxu0 %vm12024_vm11, %v2202_v10  ;;  %vm12038_vm11 = vmmov %vm12032_vm0 }
 0x6b8   :  { %9065 = vmatpush3.xpose.msk.msra.mxu0 %vm12025_vm9, %v2202_v10  ;;  %vm12039_vm9 = vmmov %vm12032_vm0 }
 0x6b9   :  { %9066 = vmatprep.subr.msk.mxu0 %vm12026_vm12, %v2197_v12  ;;  %vm12040_vm12 = vmmov %vm12032_vm0 }
 0x6bc   :  { %9067 = vmatpush3.xpose.msk.msra.mxu0 %vm12012_vm1, %v2197_v12  ;;  %vm12041_vm1 = vmmov %vm12032_vm0 }
 0x6bd   :  { %9068 = vmatprep.subr.msk.mxu0 %vm12027_vm10, %v2192_v13  ;;  %vm12042_vm10 = vmmov %vm12032_vm0 }
 0x6c0   :  { %9069 = vmatpush3.xpose.msk.msra.mxu0 %vm12028_vm15, %v2192_v13  ;;  %vm12043_vm15 = vmmov %vm12032_vm0 }
 0x6c1   :  { %9070 = vmatprep.subr.msk.mxu0 %vm12029_vm6, %v2187_v14  ;;  %vm12044_vm6 = vmmov %vm12032_vm0 }
 0x6c4   :  { %9071 = vmatpush3.xpose.msk.msra.mxu0 %vm12030_vm7, %v2187_v14  ;;  %vm12045_vm7 = vcmask 261120  }
 0x6c5   :  { %vm12046_vm8 = vmmov %vm12045_vm7 }
 0x715   :  { %v1570_v16 = vpop.xlane.xlu1 %1569 }
 0x716   :  { %v1584_v17 = vsub.f32 %v1542_v30, %v1570_v16 }
 0x717   :  { %v1567_v20 = vpop.xlane.xlu0 %1566 }
 0x718   :  { %v1591_v21 = vmul.f32 1.442695, %v1584_v17  ;;  %v1583_v22 = vsub.f32 %v1537_v32, %v1567_v20  ;;  %v1135_v20 = vld [vmem:[#allocation2 + $0x218] sm:$0xff] }
 0x719   :  { %v1576_v23 = vpop.xlane.xlu1 %1575 }
 0x71a   :  { %9851 = vpow2.f32 %v1591_v21  ;;  %v1589_v24 = vmul.f32 1.442695, %v1583_v22  ;;  %v1586_v25 = vsub.f32 %v1552_v37, %v1576_v23 }
 0x71b   :  { %v1573_v28 = vpop.xlane.xlu0 %1572 }
 0x71c   :  { %9853 = vpow2.f32 %v1589_v24  ;;  %v1595_v29 = vmul.f32 1.442695, %v1586_v25  ;;  %v1585_v31 = vsub.f32 %v1547_v44, %v1573_v28  ;;  %v1134_v25 = vld [vmem:[#allocation2 + $0x210] sm:$0xff] }
 0x71d   :  { %v1582_v34 = vpop.xlane.xlu1 %1581 }
 0x71e   :  { %9855 = vpow2.f32 %v1595_v29  ;;  %v1593_v36 = vmul.f32 1.442695, %v1585_v31  ;;  %v1588_v41 = vsub.f32 %v1562_v40, %v1582_v34  ;;  %v1133_v34 = vld [vmem:[#allocation2 + $0x208] sm:$0xff] }
 0x71f   :  { %v1579_v42 = vpop.xlane.xlu0 %1578 }
 0x720   :  { %9857 = vpow2.f32 %v1593_v36  ;;  %v1599_v47 = vmul.f32 1.442695, %v1588_v41  ;;  %v1587_v50 = vsub.f32 %v1557_v48, %v1579_v42  ;;  %v1998_v36 = vld [vmem:[#allocation2 + $0x68] sm:$0xff] }
 0x722   :  { %9859 = vpow2.f32 %v1599_v47  ;;  %v1597_v30 = vmul.f32 1.442695, %v1587_v50  ;;  %v1997_v47 = vld [vmem:[#allocation2 + $0x60] sm:$0xff] }
 0x724   :  { %9861 = vpow2.f32 %v1597_v30  ;;  %v1996_v30 = vld [vmem:[#allocation2 + $0x58] sm:$0xff] }
 0x727   :  { %v9852_v32 = vpop.eup %9851 }
 0x728   :  { %v1604_v46 = vsel %vm934_vm3, %v9852_v32, 0.0 }
 0x729   :  { %v9854_v51 = vpop.eup %9853  ;;  %1605 = vadd.xlane.f32.xlu1 %v1604_v46  ;;  %v1995_v46 = vld [vmem:[#allocation2 + $0x50] sm:$0xff] }
 0x72a   :  { %v1601_v37 = vsel %vm934_vm3, %v9854_v51, 0.0 }
 0x72b   :  { %v9856_v53 = vpop.eup %9855  ;;  %1602 = vadd.xlane.f32.xlu0 %v1601_v37  ;;  %v2010_v37 = vld [vmem:[#allocation2 + $0x1a8] sm:$0xff] }
 0x72c   :  { %v1610_v44 = vsel %vm934_vm3, %v9856_v53, 0.0 }
 0x72d   :  { %v9858_v55 = vpop.eup %9857  ;;  %1611 = vadd.xlane.f32.xlu1 %v1610_v44  ;;  %v2009_v44 = vld [vmem:[#allocation2 + $0x1a0] sm:$0xff] }
 0x72e   :  { %v1607_v40 = vsel %vm934_vm3, %v9858_v55, 0.0 }
 0x72f   :  { %v9860_v1 = vpop.eup %9859  ;;  %1608 = vadd.xlane.f32.xlu0 %v1607_v40  ;;  %v2007_v40 = vld [vmem:[#allocation2 + $0x190] sm:$0xff] }
 0x730   :  { %v1616_v48 = vsel %vm934_vm3, %v9860_v1, 0.0 }
 0x731   :  { %v9862_v2 = vpop.eup %9861  ;;  %1617 = vadd.xlane.f32.xlu1 %v1616_v48 }
 0x732   :  { %v1613_v3 = vsel %vm934_vm3, %v9862_v2, 0.0 }
 0x733   :  { %1614 = vadd.xlane.f32.xlu0 %v1613_v3 }
 0x7b2   :  { %v1606_v5 = vpop.xlane.xlu1 %1605 }
 0x7b3   :  { %9863 = vrcp.f32 %v1606_v5 }
 0x7b4   :  { %v1603_v6 = vpop.xlane.xlu0 %1602 }
 0x7b5   :  { %9865 = vrcp.f32 %v1603_v6 }
 0x7b6   :  { %v1612_v7 = vpop.xlane.xlu1 %1611 }
 0x7b7   :  { %9867 = vrcp.f32 %v1612_v7 }
 0x7b8   :  { %v1609_v8 = vpop.xlane.xlu0 %1608 }
 0x7b9   :  { %9869 = vrcp.f32 %v1609_v8  ;;  %v7837_v8 = vld [vmem:[#allocation2 + $0x70] ss:$0 sm:$0xff] }
 0x7ba   :  { %v1618_v9 = vpop.xlane.xlu1 %1617 }
 0x7bb   :  { %9871 = vrcp.f32 %v1618_v9 }
 0x7bc   :  { %v1615_v10 = vpop.xlane.xlu0 %1614 }
 0x7bd   :  { %9873 = vrcp.f32 %v1615_v10 }
 0x7c0   :  { %v9864_v12 = vpop.eup %9863 }
 0x7c1   :  { %v1626_v16 = vmul.f32 %v9864_v12, %v9852_v32 }
 0x7c2   :  { %v9866_v13 = vpop.eup %9865 }
 0x7c3   :  { %v1625_v14 = vmul.f32 %v9866_v13, %v9854_v51 }
 0x7c4   :  { %v9868_v17 = vpop.eup %9867 }
 0x7c5   :  { %8966 = vmatprep.mubr.msk.f32.mxu1 %vm934_vm3, %v1625_v14  ;;  %v1628_v23 = vmul.f32 %v9868_v17, %v9856_v53  ;;  %v2758_v14 = vld [vmem:[#allocation2 + $0x88] sm:$0xff] }
 0x7c6   :  { %v9870_v21 = vpop.eup %9869  ;;  %8967 = vmatmul.mubr.msk.f32.vlgmr.msra.gmra.mxu1 %vm934_vm3, %v1626_v16 }
 0x7c7   :  { %v1627_v22 = vmul.f32 %v9870_v21, %v9858_v55  ;;  %8976 = vmatpush3.xpose.msk.msra.mxu1 %vm12032_vm0, %v1136_v4  ;;  %vm12047_vm0 = vmmov %vm12045_vm7  ;;  %v2008_v55 = vld [vmem:[#allocation2 + $0x198] sm:$0xff] }
 0x7c8   :  { %8977 = vmatprep.subr.msk.mxu1 %vm12033_vm13, %v1135_v20  ;;  %v9872_v24 = vpop.eup %9871  ;;  %vm12048_vm13 = vmmov %vm12047_vm0 }
 0x7c9   :  { %8969 = vmatprep.mubr.msk.f32.mxu1 %vm934_vm3, %v1627_v22  ;;  %v1630_v31 = vmul.f32 %v9872_v24, %v9860_v1  ;;  %v2759_v1 = vld [vmem:[#allocation2 + $0x90] sm:$0xff] }
 0x7ca   :  { %v9874_v28 = vpop.eup %9873  ;;  %8970 = vmatmul.mubr.msk.f32.gmra.mxu1 %vm934_vm3, %v1628_v23  ;;  %9119 = vmatprep.subr.mxu0 %v2759_v1  ;;  %v2756_v23 = vld [vmem:[#allocation2 + $0x78] sm:$0xff] }
 0x7cb   :  { %v1629_v29 = vmul.f32 %v9874_v28, %v9862_v2  ;;  %8978 = vmatpush3.xpose.msk.msra.mxu1 %vm12034_vm2, %v1135_v20  ;;  %vm12049_vm2 = vmmov %vm12047_vm0  ;;  %v2757_v20 = vld [vmem:[#allocation2 + $0x80] sm:$0xff]  ;;  %v2771_v28 = vld [vmem:[#allocation2 + $0x1d0] sm:$0xff] }
 0x7cc   :  { %8979 = vmatprep.subr.msk.mxu1 %vm12035_vm5, %v1134_v25  ;;  %vm12050_vm5 = vmmov %vm12047_vm0 }
 0x7cd   :  { %8972 = vmatprep.mubr.msk.f32.mxu1 %vm934_vm3, %v1629_v29 }
 0x7ce   :  { %8973 = vmatmul.mubr.msk.f32.gmra.mxu1 %vm934_vm3, %v1630_v31 }
 0x7cf   :  { %8980 = vmatpush3.xpose.msk.msra.mxu1 %vm12036_vm4, %v1134_v25  ;;  %vm12051_vm4 = vmmov %vm12047_vm0 }
 0x7d0   :  { %8981 = vmatprep.subr.msk.mxu1 %vm12037_vm14, %v1133_v34  ;;  %vm12052_vm14 = vmmov %vm12047_vm0 }
 0x7d3   :  { %8982 = vmatpush3.xpose.msk.msra.mxu1 %vm12038_vm11, %v1133_v34  ;;  %vm12053_vm11 = vmmov %vm12047_vm0 }
 0x7d4   :  { %9009 = vmatprep.subr.mxu1 %v1998_v36 }
 0x886   :  { %v8968_v41 = vpop.f32.mrf.mxu1 }
 0x888   :  { %v1715_v42 = vpop.f32.mrf.mxu1 }
 0x889   :  { %8983 = vmatprep.mubr.msk.f32.mxu1 %vm12039_vm9, %v1715_v42  ;;  %vm12054_vm9 = vmmov %vm12047_vm0 }
 0x88a   :  { %v8971_v50 = vpop.f32.mrf.mxu1  ;;  %8984 = vmatmul.mubr.msk.f32.vlgmr.msra.gmra.mxu1 %vm12040_vm12, %v8968_v41  ;;  %vm12055_vm12 = vmmov %vm12047_vm0  ;;  %v2770_v41 = vld [vmem:[#allocation2 + $0x1c8] sm:$0xff] }
 0x88b   :  { %9010 = vmatpush3.msra.mxu1 %v1998_v36 }
 0x88c   :  { %v1725_v32 = vpop.f32.mrf.mxu1  ;;  %9011 = vmatprep.subr.mxu1 %v1997_v47 }
 0x88d   :  { %8986 = vmatprep.mubr.msk.f32.mxu1 %vm12041_vm1, %v1725_v32  ;;  %9012 = vmatpush3.msra.mxu1 %v1997_v47  ;;  %vm12056_vm1 = vmmov %vm12047_vm0  ;;  %v2769_v47 = vld [vmem:[#allocation2 + $0x1c0] sm:$0xff] }
 0x88e   :  { %v8974_v51 = vpop.f32.mrf.mxu1  ;;  %8987 = vmatmul.mubr.msk.f32.gmra.mxu1 %vm12042_vm10, %v8971_v50  ;;  %9013 = vmatprep.subr.mxu1 %v1996_v30  ;;  %vm12057_vm10 = vmmov %vm12044_vm6  ;;  %v7851_v50 = vld [vmem:[#allocation2 + $0x1b0] ss:$0 sm:$0xff] }
 0x88f   :  { %9014 = vmatpush3.msra.mxu1 %v1996_v30 }
 0x890   :  { %v1735_v53 = vpop.f32.mrf.mxu1  ;;  %9015 = vmatprep.subr.mxu1 %v1995_v46 }
 0x891   :  { %8989 = vmatprep.mubr.msk.f32.mxu1 %vm12043_vm15, %v1735_v53  ;;  %9016 = vmatpush3.msra.mxu1 %v1995_v46  ;;  %vm12058_vm15 = vmmov %vm12044_vm6 }
 0x892   :  { %8990 = vmatmul.mubr.msk.f32.gmra.mxu1 %vm12044_vm6, %v8974_v51  ;;  %9043 = vmatprep.subr.mxu1 %v2010_v37  ;;  %v2768_v51 = vld [vmem:[#allocation2 + $0x1b8] sm:$0xff] }
 0x893   :  { %9017 = vmatprep.mubr.msk.f32.mxu1 %vm12045_vm7, %v10281_v35  ;;  %vm12059_vm7 = vmmov %vm12044_vm6 }
 0x896   :  { %9018 = vmatmul.mubr.msk.f32.vlgmr.msra.gmra.mxu1 %vm12046_vm8, %v10287_v43  ;;  %vm12060_vm8 = vmmov %vm12044_vm6 }
 0x897   :  { %9020 = vmatprep.mubr.msk.f32.mxu1 %vm12047_vm0, %v10290_v45  ;;  %9044 = vmatpush3.msra.mxu1 %v2010_v37  ;;  %vm12061_vm0 = vmmov %vm12044_vm6 }
 0x898   :  { %9045 = vmatprep.subr.mxu1 %v2009_v44 }
 0x899   :  { %9046 = vmatpush3.msra.mxu1 %v2009_v44 }
 0x89a   :  { %9021 = vmatmul.mubr.msk.f32.gmra.mxu1 %vm12048_vm13, %v10297_v52  ;;  %9047 = vmatprep.subr.mxu1 %v2008_v55  ;;  %vm12062_vm13 = vmmov %vm12056_vm1 }
 0x89b   :  { %9023 = vmatprep.mubr.msk.f32.mxu1 %vm12049_vm2, %v10302_v49  ;;  %9048 = vmatpush3.msra.mxu1 %v2008_v55  ;;  %vm12063_vm2 = vmmov %vm12056_vm1 }
 0x89c   :  { %9049 = vmatprep.subr.mxu1 %v2007_v40 }
 0x89d   :  { %9050 = vmatpush3.msra.mxu1 %v2007_v40 }
 0x89e   :  { %9024 = vmatmul.mubr.msk.f32.gmra.mxu1 %vm12050_vm5, %v10308_v57  ;;  %vm12064_vm5 = vmmov %vm12056_vm1 }
 0x89f   :  { %9051 = vmatprep.mubr.msk.f32.mxu1 %vm12051_vm4, %v10281_v35  ;;  %vm12065_vm4 = vmmov %vm12056_vm1 }
 0x8a2   :  { %9052 = vmatmul.mubr.msk.f32.vlgmr.msra.gmra.mxu1 %vm12052_vm14, %v10287_v43  ;;  %vm12066_vm14 = vmmov %vm12056_vm1 }
 0x8a3   :  { %9054 = vmatprep.mubr.msk.f32.mxu1 %vm12053_vm11, %v10290_v45  ;;  %vm12067_vm11 = vmmov %vm12056_vm1 }
 0x8a6   :  { %9055 = vmatmul.mubr.msk.f32.gmra.mxu1 %vm12054_vm9, %v10297_v52  ;;  %vm12068_vm9 = vmmov %vm12056_vm1 }
 0x8a7   :  { %9057 = vmatprep.mubr.msk.f32.mxu1 %vm12055_vm12, %v10302_v49  ;;  %vm12069_vm12 = vmmov %vm12056_vm1 }
 0x8aa   :  { %9058 = vmatmul.mubr.msk.f32.gmra.mxu1 %vm12056_vm1, %v10308_v57 }
 0x94a   :  { %v10696_v48 = vpop.f32.mrf.mxu1 }
 0x94c   :  { %v10698_v2 = vpop.f32.mrf.mxu1 }
 0x94e   :  { %v10700_v3 = vpop.f32.mrf.mxu1 }
 0x950   :  { %v10702_v4 = vpop.f32.mrf.mxu1 }
 0x952   :  { %v10704_v5 = vpop.f32.mrf.mxu1 }
 0x954   :  { %v10706_v6 = vpop.f32.mrf.mxu1 }
 0x956   :  { %v9019_v7 = vpop.f32.mrf.mxu1 }
 0x957   :  { %v2093_v12 = vadd.f32 %v9019_v7, %v7837_v8 }
 0x958   :  { %v2087_v9 = vpop.f32.mrf.mxu1 }
 0x959   :  { %v2088_v10 = vadd.f32 %v7837_v8, %v2087_v9 }
 0x95a   :  { %v9022_v13 = vpop.f32.mrf.mxu1 }
 0x95b   :  { %9072 = vmatprep.mubr.msk.f32.mxu0 %vm12057_vm10, %v2088_v10  ;;  %v2103_v21 = vadd.f32 %v9022_v13, %v7837_v8  ;;  %vm12070_vm10 = vmmov %vm12056_vm1 }
 0x95c   :  { %v2097_v16 = vpop.f32.mrf.mxu1  ;;  %9073 = vmatmul.mubr.msk.f32.vlgmr.msra.gmra.mxu0 %vm12058_vm15, %v2093_v12  ;;  %vm12071_vm15 = vmmov %vm12056_vm1 }
 0x95d   :  { %v2098_v17 = vadd.f32 %v7837_v8, %v2097_v16  ;;  %9120 = vmatpush3.msra.mxu0 %v2759_v1 }
 0x95e   :  { %v9025_v22 = vpop.f32.mrf.mxu1  ;;  %9121 = vmatprep.subr.mxu0 %v2758_v14 }
 0x95f   :  { %9075 = vmatprep.mubr.msk.f32.mxu0 %vm12044_vm6, %v2098_v17  ;;  %9122 = vmatpush3.msra.mxu0 %v2758_v14  ;;  %v2113_v29 = vadd.f32 %v9025_v22, %v7837_v8  ;;  %vm12072_vm6 = vmmov %vm12056_vm1 }
 0x960   :  { %v2107_v24 = vpop.f32.mrf.mxu1  ;;  %9076 = vmatmul.mubr.msk.f32.gmra.mxu0 %vm12059_vm7, %v2103_v21  ;;  %9123 = vmatprep.subr.mxu0 %v2757_v20  ;;  %vm12073_vm7 = vmmov %vm12061_vm0 }
 0x961   :  { %v2108_v25 = vadd.f32 %v7837_v8, %v2107_v24  ;;  %9124 = vmatpush3.msra.mxu0 %v2757_v20 }
 0x962   :  { %v9053_v31 = vpop.f32.mrf.mxu1  ;;  %9125 = vmatprep.subr.mxu0 %v2756_v23 }
 0x963   :  { %9078 = vmatprep.mubr.msk.f32.mxu0 %vm12060_vm8, %v2108_v25  ;;  %9126 = vmatpush3.msra.mxu0 %v2756_v23  ;;  %v2291_v55 = vadd.f32 %v9053_v31, %v7851_v50  ;;  %v10761_v25 = vld [vmem:[#allocation2 + $0x98] ss:$0 sm:$0xff]  ;;  %vm12074_vm8 = vmmov %vm12061_vm0 }
 0x964   :  { %v2285_v34 = vpop.f32.mrf.mxu1  ;;  %9079 = vmatmul.mubr.msk.f32.gmra.mxu0 %vm12061_vm0, %v2113_v29  ;;  %9153 = vmatprep.subr.mxu0 %v2771_v28 }
 0x965   :  { %9127 = vmatprep.mubr.msk.f32.mxu0 %vm12062_vm13, %v10281_v35  ;;  %v2286_v40 = vadd.f32 %v7851_v50, %v2285_v34  ;;  %vm12075_vm13 = vmmov %vm12061_vm0 }
 0x966   :  { %v9056_v36 = vpop.f32.mrf.mxu1 }
 0x967   :  { %v2301_v53 = vadd.f32 %v9056_v36, %v7851_v50 }
 0x968   :  { %v2295_v42 = vpop.f32.mrf.mxu1  ;;  %9128 = vmatmul.mubr.msk.f32.vlgmr.msra.gmra.mxu0 %vm12063_vm2, %v10287_v43  ;;  %vm12076_vm2 = vmmov %vm12061_vm0 }
 0x969   :  { %9130 = vmatprep.mubr.msk.f32.mxu0 %vm12064_vm5, %v10290_v45  ;;  %9154 = vmatpush3.msra.mxu0 %v2771_v28  ;;  %v2296_v44 = vadd.f32 %v7851_v50, %v2295_v42  ;;  %vm12077_vm5 = vmmov %vm12061_vm0 }
 0x96a   :  { %v9059_v30 = vpop.f32.mrf.mxu1  ;;  %9155 = vmatprep.subr.mxu0 %v2770_v41 }
 0x96b   :  { %v2311_v32 = vadd.f32 %v9059_v30, %v7851_v50  ;;  %9156 = vmatpush3.msra.mxu0 %v2770_v41 }
 0x96c   :  { %v2305_v46 = vpop.f32.mrf.mxu1  ;;  %9131 = vmatmul.mubr.msk.f32.gmra.mxu0 %vm12065_vm4, %v10297_v52  ;;  %9157 = vmatprep.subr.mxu0 %v2769_v47  ;;  %vm12078_vm4 = vmmov %vm12061_vm0 }
 0x96d   :  { %v2306_v37 = vadd.f32 %v7851_v50, %v2305_v46  ;;  %9081 = vmatprep.subr.mxu1 %v2311_v32  ;;  %9133 = vmatprep.mubr.msk.f32.mxu0 %vm12066_vm14, %v10302_v49  ;;  %vm12079_vm14 = vmmov %vm12061_vm0 }
 0x96e   :  { %9082 = vmatpush3.msra.mxu1 %v2311_v32  ;;  %9158 = vmatpush3.msra.mxu0 %v2769_v47 }
 0x96f   :  { %9083 = vmatprep.subr.mxu1 %v2306_v37  ;;  %9159 = vmatprep.subr.mxu0 %v2768_v51 }
 0x970   :  { %9084 = vmatpush3.msra.mxu1 %v2306_v37  ;;  %9134 = vmatmul.mubr.msk.f32.gmra.mxu0 %vm12067_vm11, %v10308_v57  ;;  %vm12080_vm11 = vmmov %vm12061_vm0 }
 0x971   :  { %9085 = vmatprep.subr.mxu1 %v2301_v53  ;;  %9161 = vmatprep.mubr.msk.f32.mxu0 %vm12068_vm9, %v10281_v35  ;;  %vm12081_vm9 = vmmov %vm12061_vm0 }
 0x972   :  { %9086 = vmatpush3.msra.mxu1 %v2301_v53  ;;  %9160 = vmatpush3.msra.mxu0 %v2768_v51 }
 0x973   :  { %9087 = vmatprep.subr.mxu1 %v2296_v44 }
 0x974   :  { %9088 = vmatpush3.msra.mxu1 %v2296_v44  ;;  %9162 = vmatmul.mubr.msk.f32.vlgmr.msra.gmra.mxu0 %vm12069_vm12, %v10287_v43  ;;  %vm12082_vm12 = vmmov %vm12061_vm0 }
 0x975   :  { %9089 = vmatprep.subr.mxu1 %v2291_v55  ;;  %9164 = vmatprep.mubr.msk.f32.mxu0 %vm12056_vm1, %v10290_v45  ;;  %vm12083_vm1 = vmmov %vm12061_vm0 }
 0x976   :  { %9090 = vmatpush3.msra.mxu1 %v2291_v55 }
 0x977   :  { %9091 = vmatprep.subr.mxu1 %v2286_v40 }
 0x978   :  { %9092 = vmatpush3.msra.mxu1 %v2286_v40  ;;  %9165 = vmatmul.mubr.msk.f32.gmra.mxu0 %vm12070_vm10, %v10297_v52  ;;  %vm12084_vm10 = vmmov %vm12061_vm0 }
 0x979   :  { %9167 = vmatprep.mubr.msk.f32.mxu0 %vm12071_vm15, %v10302_v49  ;;  %vm12085_vm15 = vmmov %vm12061_vm0 }
 0x97c   :  { %9168 = vmatmul.mubr.msk.f32.gmra.mxu0 %vm12072_vm6, %v10308_v57 }
 0xa1c   :  { %v9074_v1 = vpop.f32.mrf.mxu0 }
 0xa1d   :  { %v10739_v7 = vadd.f32 %v9074_v1, %v10460_v38  ;;  %v7900_v1 = vld [vmem:[#allocation2 + $0x1d8] ss:$0 sm:$0xff] }
 0xa1e   :  { %v2416_v8 = vpop.f32.mrf.mxu0 }
 0xa1f   :  { %v10742_v9 = vadd.f32 %v2416_v8, %v10473_v33  ;;  %v2448_v10 = vsel %vm934_vm3, %v10739_v7, -inf }
 0xa20   :  { %2449 = vmax.xlane.f32.xlu1 %v2448_v10  ;;  %v9077_v12 = vpop.f32.mrf.mxu0 }
 0xa21   :  { %v10747_v13 = vadd.f32 %v9077_v12, %v10490_v39  ;;  %v2445_v14 = vsel %vm934_vm3, %v10742_v9, -inf }
 0xa22   :  { %v2426_v16 = vpop.f32.mrf.mxu0  ;;  %2446 = vmax.xlane.f32.xlu0 %v2445_v14 }
 0xa23   :  { %v10752_v17 = vadd.f32 %v2426_v16, %v10508_v54  ;;  %v2454_v20 = vsel %vm934_vm3, %v10747_v13, -inf }
 0xa24   :  { %2455 = vmax.xlane.f32.xlu1 %v2454_v20  ;;  %v9080_v21 = vpop.f32.mrf.mxu0 }
 0xa25   :  { %v10757_v22 = vadd.f32 %v9080_v21, %v10516_v59  ;;  %v2451_v23 = vsel %vm934_vm3, %v10752_v17, -inf }
 0xa26   :  { %v2436_v24 = vpop.f32.mrf.mxu0  ;;  %2452 = vmax.xlane.f32.xlu0 %v2451_v23 }
 0xa27   :  { %v10764_v28 = vadd.f32 %v2436_v24, %v10520_v63  ;;  %v2460_v29 = vsel %vm934_vm3, %v10757_v22, -inf }
 0xa28   :  { %2461 = vmax.xlane.f32.xlu1 %v2460_v29  ;;  %v9129_v31 = vpop.f32.mrf.mxu0 }
 0xa29   :  { %v10769_v34 = vadd.f32 %v9129_v31, %v10761_v25  ;;  %v2457_v36 = vsel %vm934_vm3, %v10764_v28, -inf }
 0xa2a   :  { %v10773_v41 = vpop.f32.mrf.mxu0  ;;  %2458 = vmax.xlane.f32.xlu0 %v2457_v36 }
 0xa2c   :  { %v9132_v42 = vpop.f32.mrf.mxu0 }
 0xa2d   :  { %v10776_v47 = vadd.f32 %v9132_v42, %v10761_v25 }
 0xa2e   :  { %v2858_v50 = vpop.f32.mrf.mxu0 }
 0xa2f   :  { %v10779_v30 = vadd.f32 %v10761_v25, %v2858_v50 }
 0xa30   :  { %v9135_v32 = vpop.f32.mrf.mxu0 }
 0xa31   :  { %v10782_v46 = vadd.f32 %v9135_v32, %v10761_v25 }
 0xa32   :  { %v2868_v51 = vpop.f32.mrf.mxu0 }
 0xa33   :  { %v10785_v37 = vadd.f32 %v10761_v25, %v2868_v51 }
 0xa34   :  { %v9163_v53 = vpop.f32.mrf.mxu0 }
 0xa35   :  { %v3052_v21 = vadd.f32 %v9163_v53, %v7900_v1 }
 0xa36   :  { %v3046_v44 = vpop.f32.mrf.mxu0 }
 0xa37   :  { %v3047_v23 = vadd.f32 %v7900_v1, %v3046_v44 }
 0xa38   :  { %v9166_v55 = vpop.f32.mrf.mxu0 }
 0xa39   :  { %v3062_v16 = vadd.f32 %v9166_v55, %v7900_v1 }
 0xa3a   :  { %v3056_v40 = vpop.f32.mrf.mxu0 }
 0xa3b   :  { %v3057_v20 = vadd.f32 %v7900_v1, %v3056_v40 }
 0xa3c   :  { %v9169_v8 = vpop.f32.mrf.mxu0 }
 0xa3d   :  { %v3072_v10 = vadd.f32 %v9169_v8, %v7900_v1 }
 0xa3e   :  { %v3066_v12 = vpop.f32.mrf.mxu0 }
 0xa3f   :  { %v3067_v14 = vadd.f32 %v7900_v1, %v3066_v12  ;;  %9191 = vmatprep.subr.mxu0 %v3072_v10 }
 0xa40   :  { %9192 = vmatpush3.msra.mxu0 %v3072_v10 }
 0xa41   :  { %9193 = vmatprep.subr.mxu0 %v3067_v14 }
 0xa42   :  { %9194 = vmatpush3.msra.mxu0 %v3067_v14 }
 0xa43   :  { %9195 = vmatprep.subr.mxu0 %v3062_v16 }
 0xa44   :  { %9196 = vmatpush3.msra.mxu0 %v3062_v16 }
 0xa45   :  { %9197 = vmatprep.subr.mxu0 %v3057_v20 }
 0xa46   :  { %9198 = vmatpush3.msra.mxu0 %v3057_v20 }
 0xa47   :  { %9199 = vmatprep.subr.mxu0 %v3052_v21 }
 0xa48   :  { %9200 = vmatpush3.msra.mxu0 %v3052_v21 }
 0xa49   :  { %9201 = vmatprep.subr.mxu0 %v3047_v23 }
 0xa4a   :  { %9202 = vmatpush3.msra.mxu0 %v3047_v23 }
 0xaa9   :  { %v2450_v24 = vpop.xlane.xlu1 %2449 }
 0xaaa   :  { %v2464_v29 = vsub.f32 %v10739_v7, %v2450_v24 }
 0xaab   :  { %v2447_v31 = vpop.xlane.xlu0 %2446 }
 0xaac   :  { %v2471_v36 = vmul.f32 1.442695, %v2464_v29  ;;  %v2463_v42 = vsub.f32 %v10742_v9, %v2447_v31 }
 0xaad   :  { %v2456_v50 = vpop.xlane.xlu1 %2455 }
 0xaae   :  { %9875 = vpow2.f32 %v2471_v36  ;;  %v2469_v32 = vmul.f32 1.442695, %v2463_v42  ;;  %v2466_v51 = vsub.f32 %v10747_v13, %v2456_v50  ;;  %v2016_v36 = vld [vmem:[#allocation2 + $0x248] sm:$0xff] }
 0xaaf   :  { %v2453_v53 = vpop.xlane.xlu0 %2452  ;;  %9102 = vmatprep.subr.msk.mxu1 %vm12073_vm7, %v2016_v36  ;;  %vm12086_vm7 = vmmov %vm12072_vm6 }
 0xab0   :  { %9877 = vpow2.f32 %v2469_v32  ;;  %v2475_v55 = vmul.f32 1.442695, %v2466_v51  ;;  %v2465_v44 = vsub.f32 %v10752_v17, %v2453_v53 }
 0xab1   :  { %v2462_v40 = vpop.xlane.xlu1 %2461 }
 0xab2   :  { %9879 = vpow2.f32 %v2475_v55  ;;  %v2473_v1 = vmul.f32 1.442695, %v2465_v44  ;;  %v2468_v8 = vsub.f32 %v10757_v22, %v2462_v40 }
 0xab3   :  { %v2459_v7 = vpop.xlane.xlu0 %2458 }
 0xab4   :  { %9881 = vpow2.f32 %v2473_v1  ;;  %v2479_v10 = vmul.f32 1.442695, %v2468_v8  ;;  %v2467_v9 = vsub.f32 %v10764_v28, %v2459_v7 }
 0xab6   :  { %9883 = vpow2.f32 %v2479_v10  ;;  %v2477_v12 = vmul.f32 1.442695, %v2467_v9  ;;  %v2015_v10 = vld [vmem:[#allocation2 + $0x240] sm:$0xff] }
 0xab8   :  { %9885 = vpow2.f32 %v2477_v12 }
 0xabb   :  { %v9876_v14 = vpop.eup %9875 }
 0xabc   :  { %v2484_v13 = vsel %vm934_vm3, %v9876_v14, 0.0 }
 0xabd   :  { %v9878_v16 = vpop.eup %9877  ;;  %2485 = vadd.xlane.f32.xlu1 %v2484_v13 }
 0xabe   :  { %v2481_v17 = vsel %vm934_vm3, %v9878_v16, 0.0 }
 0xabf   :  { %v9880_v20 = vpop.eup %9879  ;;  %2482 = vadd.xlane.f32.xlu0 %v2481_v17 }
 0xac0   :  { %v2490_v21 = vsel %vm934_vm3, %v9880_v20, 0.0 }
 0xac1   :  { %v9882_v22 = vpop.eup %9881  ;;  %2491 = vadd.xlane.f32.xlu1 %v2490_v21  ;;  %v2014_v21 = vld [vmem:[#allocation2 + $0x238] sm:$0xff] }
 0xac2   :  { %v2487_v23 = vsel %vm934_vm3, %v9882_v22, 0.0 }
 0xac3   :  { %v9884_v24 = vpop.eup %9883  ;;  %2488 = vadd.xlane.f32.xlu0 %v2487_v23 }
 0xac4   :  { %v2496_v28 = vsel %vm934_vm3, %v9884_v24, 0.0 }
 0xac5   :  { %v9886_v29 = vpop.eup %9885  ;;  %2497 = vadd.xlane.f32.xlu1 %v2496_v28 }
 0xac6   :  { %v2493_v31 = vsel %vm934_vm3, %v9886_v29, 0.0 }
 0xac7   :  { %2494 = vadd.xlane.f32.xlu0 %v2493_v31 }
 0xb46   :  { %v2486_v42 = vpop.xlane.xlu1 %2485 }
 0xb47   :  { %9887 = vrcp.f32 %v2486_v42 }
 0xb48   :  { %v2483_v50 = vpop.xlane.xlu0 %2482 }
 0xb49   :  { %9889 = vrcp.f32 %v2483_v50  ;;  %v2762_v50 = vld [vmem:[#allocation2 + $0x118] sm:$0xff] }
 0xb4a   :  { %v2492_v32 = vpop.xlane.xlu1 %2491 }
 0xb4b   :  { %9891 = vrcp.f32 %v2492_v32 }
 0xb4c   :  { %v2489_v51 = vpop.xlane.xlu0 %2488 }
 0xb4d   :  { %9893 = vrcp.f32 %v2489_v51 }
 0xb4e   :  { %v2498_v53 = vpop.xlane.xlu1 %2497 }
 0xb4f   :  { %9895 = vrcp.f32 %v2498_v53  ;;  %v2849_v53 = vadd.f32 %v10761_v25, %v10773_v41 }
 0xb50   :  { %v2495_v55 = vpop.xlane.xlu0 %2494 }
 0xb51   :  { %9897 = vrcp.f32 %v2495_v55 }
 0xb54   :  { %v9888_v44 = vpop.eup %9887 }
 0xb55   :  { %v2506_v8 = vmul.f32 %v9888_v44, %v9876_v14 }
 0xb56   :  { %v9890_v40 = vpop.eup %9889 }
 0xb57   :  { %v2505_v1 = vmul.f32 %v9890_v40, %v9878_v16 }
 0xb58   :  { %v9892_v7 = vpop.eup %9891 }
 0xb59   :  { %9093 = vmatprep.mubr.msk.f32.mxu1 %vm934_vm3, %v2505_v1  ;;  %v2508_v13 = vmul.f32 %v9892_v7, %v9880_v20  ;;  %v2013_v20 = vld [vmem:[#allocation2 + $0x230] sm:$0xff] }
 0xb5a   :  { %v9894_v9 = vpop.eup %9893  ;;  %9094 = vmatmul.mubr.msk.f32.vlgmr.msra.gmra.mxu1 %vm934_vm3, %v2506_v8 }
 0xb5b   :  { %v2507_v12 = vmul.f32 %v9894_v9, %v9882_v22  ;;  %9103 = vmatpush3.xpose.msk.msra.mxu1 %vm12074_vm8, %v2016_v36  ;;  %v2765_v22 = vld [vmem:[#allocation2 + $0x130] sm:$0xff]  ;;  %v2763_v36 = vld [vmem:[#allocation2 + $0x120] sm:$0xff]  ;;  %vm12087_vm8 = vmmov %vm12072_vm6 }
 0xb5c   :  { %9104 = vmatprep.subr.msk.mxu1 %vm12061_vm0, %v2015_v10  ;;  %v9896_v17 = vpop.eup %9895  ;;  %vm12088_vm0 = vmmov %vm12072_vm6 }
 0xb5d   :  { %9096 = vmatprep.mubr.msk.f32.mxu1 %vm934_vm3, %v2507_v12  ;;  %v2510_v16 = vmul.f32 %v9896_v17, %v9884_v24  ;;  %v2764_v24 = vld [vmem:[#allocation2 + $0x128] sm:$0xff] }
 0xb5e   :  { %v9898_v23 = vpop.eup %9897  ;;  %9097 = vmatmul.mubr.msk.f32.gmra.mxu1 %vm934_vm3, %v2508_v13 }
 0xb5f   :  { %v2509_v14 = vmul.f32 %v9898_v23, %v9886_v29  ;;  %9105 = vmatpush3.xpose.msk.msra.mxu1 %vm12075_vm13, %v2015_v10  ;;  %vm12089_vm13 = vmmov %vm12088_vm0  ;;  %v7893_v10 = vld [vmem:[#allocation2 + $0x138] ss:$0 sm:$0xff] }
 0xb60   :  { %9106 = vmatprep.subr.msk.mxu1 %vm12076_vm2, %v2014_v21  ;;  %vm12090_vm2 = vmmov %vm12088_vm0 }
 0xb61   :  { %9099 = vmatprep.mubr.msk.f32.mxu1 %vm934_vm3, %v2509_v14 }
 0xb62   :  { %9100 = vmatmul.mubr.msk.f32.gmra.mxu1 %vm934_vm3, %v2510_v16 }
 0xb63   :  { %9107 = vmatpush3.xpose.msk.msra.mxu1 %vm12077_vm5, %v2014_v21  ;;  %vm12091_vm5 = vmmov %vm12083_vm1 }
 0xb64   :  { %9108 = vmatprep.subr.msk.mxu1 %vm12078_vm4, %v2013_v20  ;;  %vm12092_vm4 = vmmov %vm12083_vm1 }
 0xb67   :  { %9109 = vmatpush3.xpose.msk.msra.mxu1 %vm12079_vm14, %v2013_v20  ;;  %vm12093_vm14 = vmmov %vm12083_vm1 }
 0xb68   :  { %9136 = vmatprep.subr.mxu1 %v2765_v22 }
 0xc1a   :  { %v9095_v28 = vpop.f32.mrf.mxu1 }
 0xc1c   :  { %v2595_v29 = vpop.f32.mrf.mxu1 }
 0xc1d   :  { %9110 = vmatprep.mubr.msk.f32.mxu1 %vm12080_vm11, %v2595_v29  ;;  %vm12094_vm11 = vmmov %vm12083_vm1 }
 0xc1e   :  { %v9098_v31 = vpop.f32.mrf.mxu1  ;;  %9111 = vmatmul.mubr.msk.f32.vlgmr.msra.gmra.mxu1 %vm12081_vm9, %v9095_v28  ;;  %vm12095_vm9 = vmmov %vm12083_vm1 }
 0xc1f   :  { %9137 = vmatpush3.msra.mxu1 %v2765_v22 }
 0xc20   :  { %v2605_v42 = vpop.f32.mrf.mxu1  ;;  %9138 = vmatprep.subr.mxu1 %v2764_v24 }
 0xc21   :  { %9113 = vmatprep.mubr.msk.f32.mxu1 %vm12082_vm12, %v2605_v42  ;;  %9139 = vmatpush3.msra.mxu1 %v2764_v24  ;;  %vm12096_vm12 = vmmov %vm12083_vm1 }
 0xc22   :  { %v9101_v32 = vpop.f32.mrf.mxu1  ;;  %9114 = vmatmul.mubr.msk.f32.gmra.mxu1 %vm12083_vm1, %v9098_v31  ;;  %9140 = vmatprep.subr.mxu1 %v2763_v36 }
 0xc23   :  { %9141 = vmatpush3.msra.mxu1 %v2763_v36 }
 0xc24   :  { %v2615_v51 = vpop.f32.mrf.mxu1  ;;  %9142 = vmatprep.subr.mxu1 %v2762_v50 }
 0xc25   :  { %9116 = vmatprep.mubr.msk.f32.mxu1 %vm12084_vm10, %v2615_v51  ;;  %9143 = vmatpush3.msra.mxu1 %v2762_v50  ;;  %vm12097_vm10 = vmmov %vm12083_vm1 }
 0xc26   :  { %9117 = vmatmul.mubr.msk.f32.gmra.mxu1 %vm12085_vm15, %v9101_v32  ;;  %vm12098_vm15 = vmmov %vm12083_vm1 }
 0xc27   :  { %9144 = vmatprep.mubr.msk.f32.mxu1 %vm12072_vm6, %v10281_v35  ;;  %v1971_v35 = vadd.f32 %v10622_v56, %v10696_v48  ;;  %vm12099_vm6 = vmmov %vm12083_vm1 }
 0xc2a   :  { %9145 = vmatmul.mubr.msk.f32.vlgmr.msra.gmra.mxu1 %vm12086_vm7, %v10287_v43  ;;  %vm12100_vm7 = vmmov %vm12083_vm1 }
 0xc2b   :  { %9147 = vmatprep.mubr.msk.f32.mxu1 %vm12087_vm8, %v10290_v45  ;;  %vm12101_vm8 = vmmov %vm12083_vm1 }
 0xc2e   :  { %9148 = vmatmul.mubr.msk.f32.gmra.mxu1 %vm12088_vm0, %v10297_v52  ;;  %v1981_v52 = vadd.f32 %v10626_v60, %v10700_v3  ;;  %vm12102_vm0 = vmmov %vm12083_vm1 }
 0xc2f   :  { %9150 = vmatprep.mubr.msk.f32.mxu1 %vm12089_vm13, %v10302_v49  ;;  %vm12103_vm13 = vmmov %vm12102_vm0 }
 0xc32   :  { %9151 = vmatmul.mubr.msk.f32.gmra.mxu1 %vm12090_vm2, %v10308_v57  ;;  %v1991_v57 = vadd.f32 %v10630_v62, %v10704_v5  ;;  %vm12104_vm2 = vmmov %vm12102_vm0 }
 0xc33   :  { %9182 = vmatprep.mubr.msk.f32.mxu1 %vm12091_vm5, %v2849_v53  ;;  %vm12105_vm5 = vmmov %vm12102_vm0 }
 0xcde   :  { %v9112_v43 = vpop.f32.mrf.mxu1 }
 0xcdf   :  { %v10836_v55 = vadd.f32 %v9112_v43, %v1971_v35 }
 0xce0   :  { %v10838_v45 = vpop.f32.mrf.mxu1 }
 0xce2   :  { %v9115_v49 = vpop.f32.mrf.mxu1 }
 0xce3   :  { %v10842_v44 = vadd.f32 %v9115_v49, %v1981_v52 }
 0xce4   :  { %v10844_v25 = vpop.f32.mrf.mxu1 }
 0xce6   :  { %v9118_v41 = vpop.f32.mrf.mxu1 }
 0xce7   :  { %v10848_v40 = vadd.f32 %v9118_v41, %v1991_v57 }
 0xce8   :  { %v10850_v56 = vpop.f32.mrf.mxu1 }
 0xcea   :  { %v9146_v48 = vpop.f32.mrf.mxu1 }
 0xceb   :  { %v2953_v13 = vadd.f32 %v9146_v48, %v7893_v10 }
 0xcec   :  { %v2947_v1 = vpop.f32.mrf.mxu1 }
 0xced   :  { %v2948_v17 = vadd.f32 %v7893_v10, %v2947_v1 }
 0xcee   :  { %v9149_v8 = vpop.f32.mrf.mxu1 }
 0xcef   :  { %v2963_v62 = vadd.f32 %v9149_v8, %v7893_v10 }
 0xcf0   :  { %v2957_v7 = vpop.f32.mrf.mxu1 }
 0xcf1   :  { %v2958_v5 = vadd.f32 %v7893_v10, %v2957_v7 }
 0xcf2   :  { %v9152_v9 = vpop.f32.mrf.mxu1 }
 0xcf3   :  { %v2973_v60 = vadd.f32 %v9152_v9, %v7893_v10 }
 0xcf4   :  { %v2967_v3 = vpop.f32.mrf.mxu1 }
 0xcf5   :  { %v2968_v12 = vadd.f32 %v7893_v10, %v2967_v3  ;;  %9170 = vmatprep.subr.msk.mxu1 %vm12092_vm4, %v2973_v60  ;;  %vm12106_vm4 = vmmov %vm12102_vm0 }
 0xcf6   :  { %9171 = vmatpush3.xpose.msk.msra.mxu1 %vm12093_vm14, %v2973_v60  ;;  %vm12107_vm14 = vmmov %vm12102_vm0 }
 0xcf7   :  { %9172 = vmatprep.subr.msk.mxu1 %vm12094_vm11, %v2968_v12  ;;  %vm12108_vm11 = vmmov %vm12102_vm0 }
 0xcfa   :  { %9173 = vmatpush3.xpose.msk.msra.mxu1 %vm12095_vm9, %v2968_v12  ;;  %vm12109_vm9 = vmmov %vm12102_vm0 }
 0xcfb   :  { %9174 = vmatprep.subr.msk.mxu1 %vm12096_vm12, %v2963_v62  ;;  %vm12110_vm12 = vmmov %vm12102_vm0 }
 0xcfe   :  { %9175 = vmatpush3.xpose.msk.msra.mxu1 %vm12083_vm1, %v2963_v62  ;;  %vm12111_vm1 = vmmov %vm12102_vm0 }
 0xcff   :  { %9176 = vmatprep.subr.msk.mxu1 %vm12097_vm10, %v2958_v5  ;;  %vm12112_vm10 = vmmov %vm12102_vm0 }
 0xd02   :  { %9177 = vmatpush3.xpose.msk.msra.mxu1 %vm12098_vm15, %v2958_v5  ;;  %vm12113_vm15 = vmmov %vm12102_vm0 }
 0xd03   :  { %9178 = vmatprep.subr.msk.mxu1 %vm12099_vm6, %v2953_v13  ;;  %vm12114_vm6 = vmmov %vm12102_vm0 }
 0xd06   :  { %9179 = vmatpush3.xpose.msk.msra.mxu1 %vm12100_vm7, %v2953_v13  ;;  %vm12115_vm7 = vmmov %vm12102_vm0 }
 0xd07   :  { %9180 = vmatprep.subr.msk.mxu1 %vm12101_vm8, %v2948_v17  ;;  %vm12116_vm8 = vmmov %vm12102_vm0 }
 0xd0a   :  { %9181 = vmatpush3.xpose.msk.msra.mxu1 %vm12102_vm0, %v2948_v17 }
 0xd0d   :  { %9183 = vmatmul.mubr.msk.f32.vlgmr.msra.gmra.mxu1 %vm12103_vm13, %v10769_v34  ;;  %vm12117_vm13 = vmmov %vm12102_vm0 }
 0xd0e   :  { %9185 = vmatprep.mubr.msk.f32.mxu1 %vm12104_vm2, %v10779_v30  ;;  %vm12118_vm2 = vmmov %vm12102_vm0 }
 0xd11   :  { %9186 = vmatmul.mubr.msk.f32.gmra.mxu1 %vm12105_vm5, %v10776_v47  ;;  %vm12119_vm5 = vmmov %vm12102_vm0 }
 0xd12   :  { %9188 = vmatprep.mubr.msk.f32.mxu1 %vm12106_vm4, %v10785_v37  ;;  %vm12120_vm4 = vmmov %vm12102_vm0 }
 0xd15   :  { %9189 = vmatmul.mubr.msk.f32.gmra.mxu1 %vm12107_vm14, %v10782_v46  ;;  %vm12121_vm14 = vcmask 261120  }
 0xdcd   :  { %v9184_v21 = vpop.f32.mrf.mxu1 }
 0xdce   :  { %v3183_v23 = vadd.f32 %v9184_v21, %v10460_v38 }
 0xdcf   :  { %v3177_v14 = vpop.f32.mrf.mxu1 }
 0xdd0   :  { %v3178_v16 = vadd.f32 %v3177_v14, %v10473_v33  ;;  %v3209_v34 = vsel %vm934_vm3, %v3183_v23, -inf }
 0xdd1   :  { %3210 = vmax.xlane.f32.xlu1 %v3209_v34  ;;  %v9187_v20 = vpop.f32.mrf.mxu1 }
 0xdd2   :  { %v3193_v30 = vadd.f32 %v9187_v20, %v10490_v39  ;;  %v3206_v47 = vsel %vm934_vm3, %v3178_v16, -inf }
 0xdd3   :  { %v3187_v22 = vpop.f32.mrf.mxu1  ;;  %3207 = vmax.xlane.f32.xlu0 %v3206_v47 }
 0xdd4   :  { %v3188_v37 = vadd.f32 %v3187_v22, %v10508_v54  ;;  %v3215_v46 = vsel %vm934_vm3, %v3193_v30, -inf  ;;  %v2777_v22 = vld [vmem:[#allocation2 + $0x270] sm:$0xff] }
 0xdd5   :  { %3216 = vmax.xlane.f32.xlu1 %v3215_v46  ;;  %v9190_v28 = vpop.f32.mrf.mxu1  ;;  %9212 = vmatprep.subr.msk.mxu0 %vm12108_vm11, %v2777_v22  ;;  %vm12122_vm11 = vmmov %vm12121_vm14 }
 0xdd6   :  { %v3203_v29 = vadd.f32 %v9190_v28, %v10516_v59  ;;  %v3212_v24 = vsel %vm934_vm3, %v3188_v37, -inf }
 0xdd7   :  { %v3197_v31 = vpop.f32.mrf.mxu1  ;;  %3213 = vmax.xlane.f32.xlu0 %v3212_v24 }
 0xdd8   :  { %v3198_v36 = vadd.f32 %v3197_v31, %v10520_v63  ;;  %v3221_v42 = vsel %vm934_vm3, %v3203_v29, -inf }
 0xdd9   :  { %3222 = vmax.xlane.f32.xlu1 %v3221_v42 }
 0xdda   :  { %v3218_v50 = vsel %vm934_vm3, %v3198_v36, -inf }
 0xddb   :  { %3219 = vmax.xlane.f32.xlu0 %v3218_v50 }
 0xe5a   :  { %v3211_v32 = vpop.xlane.xlu1 %3210 }
 0xe5b   :  { %v3225_v51 = vsub.f32 %v3183_v23, %v3211_v32 }
 0xe5c   :  { %v3208_v53 = vpop.xlane.xlu0 %3207 }
 0xe5d   :  { %v3232_v35 = vmul.f32 1.442695, %v3225_v51  ;;  %v3224_v43 = vsub.f32 %v3178_v16, %v3208_v53  ;;  %v2776_v53 = vld [vmem:[#allocation2 + $0x268] sm:$0xff] }
 0xe5e   :  { %v3217_v52 = vpop.xlane.xlu1 %3216 }
 0xe5f   :  { %9899 = vpow2.f32 %v3232_v35  ;;  %v3230_v49 = vmul.f32 1.442695, %v3224_v43  ;;  %v3227_v57 = vsub.f32 %v3193_v30, %v3217_v52 }
 0xe60   :  { %v3214_v41 = vpop.xlane.xlu0 %3213 }
 0xe61   :  { %9901 = vpow2.f32 %v3230_v49  ;;  %v3236_v48 = vmul.f32 1.442695, %v3227_v57  ;;  %v3226_v1 = vsub.f32 %v3188_v37, %v3214_v41  ;;  %v2775_v57 = vld [vmem:[#allocation2 + $0x260] sm:$0xff] }
 0xe62   :  { %v3223_v8 = vpop.xlane.xlu1 %3222 }
 0xe63   :  { %9903 = vpow2.f32 %v3236_v48  ;;  %v3234_v7 = vmul.f32 1.442695, %v3226_v1  ;;  %v3229_v10 = vsub.f32 %v3203_v29, %v3223_v8  ;;  %v2774_v8 = vld [vmem:[#allocation2 + $0x258] sm:$0xff] }
 0xe64   :  { %v3220_v9 = vpop.xlane.xlu0 %3219 }
 0xe65   :  { %9905 = vpow2.f32 %v3234_v7  ;;  %v3240_v60 = vmul.f32 1.442695, %v3229_v10  ;;  %v3228_v3 = vsub.f32 %v3198_v36, %v3220_v9 }
 0xe67   :  { %9907 = vpow2.f32 %v3240_v60  ;;  %v3238_v12 = vmul.f32 1.442695, %v3228_v3 }
 0xe69   :  { %9909 = vpow2.f32 %v3238_v12 }
 0xe6c   :  { %v9900_v62 = vpop.eup %9899 }
 0xe6d   :  { %v3245_v5 = vsel %vm934_vm3, %v9900_v62, 0.0 }
 0xe6e   :  { %v9902_v13 = vpop.eup %9901  ;;  %3246 = vadd.xlane.f32.xlu1 %v3245_v5 }
 0xe6f   :  { %v3242_v17 = vsel %vm934_vm3, %v9902_v13, 0.0 }
 0xe70   :  { %v9904_v21 = vpop.eup %9903  ;;  %3243 = vadd.xlane.f32.xlu0 %v3242_v17 }
 0xe71   :  { %v3251_v23 = vsel %vm934_vm3, %v9904_v21, 0.0 }
 0xe72   :  { %v9906_v14 = vpop.eup %9905  ;;  %3252 = vadd.xlane.f32.xlu1 %v3251_v23 }
 0xe73   :  { %v3248_v16 = vsel %vm934_vm3, %v9906_v14, 0.0 }
 0xe74   :  { %v9908_v34 = vpop.eup %9907  ;;  %3249 = vadd.xlane.f32.xlu0 %v3248_v16 }
 0xe75   :  { %v3257_v20 = vsel %vm934_vm3, %v9908_v34, 0.0 }
 0xe76   :  { %v9910_v30 = vpop.eup %9909  ;;  %3258 = vadd.xlane.f32.xlu1 %v3257_v20 }
 0xe77   :  { %v3254_v47 = vsel %vm934_vm3, %v9910_v30, 0.0 }
 0xe78   :  { %3255 = vadd.xlane.f32.xlu0 %v3254_v47 }
 0xef7   :  { %v3247_v37 = vpop.xlane.xlu1 %3246 }
 0xef8   :  { %9911 = vrcp.f32 %v3247_v37 }
 0xef9   :  { %v3244_v46 = vpop.xlane.xlu0 %3243 }
 0xefa   :  { %9913 = vrcp.f32 %v3244_v46 }
 0xefb   :  { %v3253_v28 = vpop.xlane.xlu1 %3252 }
 0xefc   :  { %9915 = vrcp.f32 %v3253_v28 }
 0xefd   :  { %v3250_v29 = vpop.xlane.xlu0 %3249 }
 0xefe   :  { %9917 = vrcp.f32 %v3250_v29 }
 0xeff   :  { %v3259_v24 = vpop.xlane.xlu1 %3258 }
 0xf00   :  { %9919 = vrcp.f32 %v3259_v24 }
 0xf01   :  { %v3256_v31 = vpop.xlane.xlu0 %3255 }
 0xf02   :  { %9921 = vrcp.f32 %v3256_v31 }
 0xf05   :  { %v9912_v36 = vpop.eup %9911 }
 0xf06   :  { %v3267_v32 = vmul.f32 %v9912_v36, %v9900_v62  ;;  %v1966_v62 = vadd.f32 %v10624_v58, %v10698_v2 }
 0xf07   :  { %v9914_v42 = vpop.eup %9913 }
 0xf08   :  { %v3266_v50 = vmul.f32 %v9914_v42, %v9902_v13  ;;  %v2749_v13 = vadd.f32 %v10838_v45, %v1966_v62  ;;  %v1986_v45 = vadd.f32 %v10632_v0, %v10706_v6 }
 0xf09   :  { %v9916_v51 = vpop.eup %9915 }
 0xf0a   :  { %9203 = vmatprep.mubr.msk.f32.mxu0 %vm934_vm3, %v3266_v50  ;;  %v3269_v52 = vmul.f32 %v9916_v51, %v9904_v21  ;;  %v7935_v21 = vld [vmem:[%s11936_s6 + $0x2] ss:$0 sm:$0xff] }
 0xf0b   :  { %v9918_v35 = vpop.eup %9917  ;;  %9204 = vmatmul.mubr.msk.f32.vlgmr.msra.gmra.mxu0 %vm934_vm3, %v3267_v32 }
 0xf0c   :  { %v3268_v43 = vmul.f32 %v9918_v35, %v9906_v14  ;;  %9213 = vmatpush3.xpose.msk.msra.mxu0 %vm12109_vm9, %v2777_v22  ;;  %v1976_v14 = vadd.f32 %v10628_v61, %v10702_v4  ;;  %vm12123_vm9 = vmmov %vm12122_vm11 }
 0xf0d   :  { %9214 = vmatprep.subr.msk.mxu0 %vm12110_vm12, %v2776_v53  ;;  %v9920_v49 = vpop.eup %9919  ;;  %vm12124_vm12 = vmmov %vm12123_vm9 }
 0xf0e   :  { %9206 = vmatprep.mubr.msk.f32.mxu0 %vm934_vm3, %v3268_v43  ;;  %v3271_v1 = vmul.f32 %v9920_v49, %v9908_v34 }
 0xf0f   :  { %v9922_v41 = vpop.eup %9921  ;;  %9207 = vmatmul.mubr.msk.f32.gmra.mxu0 %vm934_vm3, %v3269_v52 }
 0xf10   :  { %v3270_v48 = vmul.f32 %v9922_v41, %v9910_v30  ;;  %9215 = vmatpush3.xpose.msk.msra.mxu0 %vm12111_vm1, %v2776_v53  ;;  %v2751_v30 = vadd.f32 %v10844_v25, %v1976_v14  ;;  %v2753_v25 = vadd.f32 %v10850_v56, %v1986_v45  ;;  %vm12125_vm1 = vmmov %vm12123_vm9 }
 0xf11   :  { %9216 = vmatprep.subr.msk.mxu0 %vm12112_vm10, %v2775_v57  ;;  %vm12126_vm10 = vmmov %vm12125_vm1 }
 0xf12   :  { %9209 = vmatprep.mubr.msk.f32.mxu0 %vm934_vm3, %v3270_v48 }
 0xf13   :  { %9210 = vmatmul.mubr.msk.f32.gmra.mxu0 %vm934_vm3, %v3271_v1 }
 0xf14   :  { %9217 = vmatpush3.xpose.msk.msra.mxu0 %vm12113_vm15, %v2775_v57  ;;  %vm12127_vm15 = vmmov %vm12125_vm1 }
 0xf15   :  { %9218 = vmatprep.subr.msk.mxu0 %vm12114_vm6, %v2774_v8  ;;  %vm12128_vm6 = vmmov %vm12125_vm1 }
 0xf18   :  { %9219 = vmatpush3.xpose.msk.msra.mxu0 %vm12115_vm7, %v2774_v8  ;;  %vm12129_vm7 = vmmov %vm12125_vm1 }
 0xfcb   :  { %v9205_v7 = vpop.f32.mrf.mxu0 }
 0xfcd   :  { %v3356_v10 = vpop.f32.mrf.mxu0 }
 0xfce   :  { %9220 = vmatprep.mubr.msk.f32.mxu0 %vm12116_vm8, %v3356_v10  ;;  %vm12130_vm8 = vmmov %vm12125_vm1 }
 0xfcf   :  { %v9208_v9 = vpop.f32.mrf.mxu0  ;;  %9221 = vmatmul.mubr.msk.f32.vlgmr.msra.gmra.mxu0 %vm12102_vm0, %v9205_v7  ;;  %vm12131_vm0 = vmmov %vm12125_vm1 }
 0xfd1   :  { %v3366_v60 = vpop.f32.mrf.mxu0 }
 0xfd2   :  { %9223 = vmatprep.mubr.msk.f32.mxu0 %vm12117_vm13, %v3366_v60  ;;  %vm12132_vm13 = vmmov %vm12131_vm0 }
 0xfd3   :  { %v9211_v3 = vpop.f32.mrf.mxu0  ;;  %9224 = vmatmul.mubr.msk.f32.gmra.mxu0 %vm12118_vm2, %v9208_v9  ;;  %vm12133_vm2 = vmmov %vm12131_vm0 }
 0xfd5   :  { %v3376_v12 = vpop.f32.mrf.mxu0 }
 0xfd6   :  { %9226 = vmatprep.mubr.msk.f32.mxu0 %vm12119_vm5, %v3376_v12  ;;  %vm12134_vm5 = vmmov %vm12131_vm0 }
 0xfd7   :  { %9227 = vmatmul.mubr.msk.f32.gmra.mxu0 %vm12120_vm4, %v9211_v3  ;;  %vm12135_vm4 = vmmov %vm12131_vm0 }
0x108f   :  { %v9222_v5 = vpop.f32.mrf.mxu0 }
0x1090   :  { %v3511_v17 = vadd.f32 %v9222_v5, %v10836_v55 }
0x1091   :  { %v3481_v23 = vpop.f32.mrf.mxu0 }
0x1092   :  { %v3517_v16 = vadd.f32 %v3511_v17, %v10207_v15  ;;  %v3510_v34 = vadd.f32 %v3481_v23, %v2749_v13 }
0x1093   :  { %v9225_v20 = vpop.f32.mrf.mxu0 }
0x1094   :  { %v10923_v58 = vadd.f32 %v7935_v21, %v3517_v16  ;;  %v3516_v2 = vadd.f32 %v3510_v34, %v10199_v11  ;;  %v3513_v55 = vadd.f32 %v9225_v20, %v10842_v44  ;;  %v3636_v20 = vld [vmem:[%s11934_s4 + $0x18] sm:$0xff] }
0x1095   :  { %v3491_v47 = vpop.f32.mrf.mxu0  ;;  %9229 = vmatprep.subr.mxu1 %v3636_v20 }
0x1096   :  { %v10929_v22 = vadd.f32 %v7935_v21, %v3516_v2  ;;  %v3519_v61 = vadd.f32 %v3513_v55, %v10211_v18  ;;  %v3512_v4 = vadd.f32 %v3491_v47, %v2751_v30  ;;  %v3538_v15 = vsel %vm12121_vm14, %v10923_v58, 0.0  ;;  %v3635_v30 = vld [vmem:[%s11934_s4 + $0x10] sm:$0xff]  ;;  %9230 = vmatpush3.msra.mxu1 %v3636_v20  ;;  %v3634_v2 = vld [vmem:[%s11934_s4 + $0x8] sm:$0xff]  ;;  %v3633_v55 = vld [vmem:[%s11934_s4] sm:$0xff] }
0x1097   :  { %3539 = vadd.xlane.f32.xlu1 %v3538_v15  ;;  %v9228_v37 = vpop.f32.mrf.mxu0  ;;  %9231 = vmatprep.subr.mxu1 %v3635_v30  ;;  %vm12136_vm14 = vmmov %vm12131_vm0  ;;  %v3820_v20 = vld [vmem:[%s11935_s5 + $0x58] sm:$0xff] }
0x1098   :  { %v10935_v46 = vadd.f32 %v7935_v21, %v3519_v61  ;;  %v3518_v11 = vadd.f32 %v3512_v4, %v10213_v19  ;;  %v3515_v44 = vadd.f32 %v9228_v37, %v10848_v40  ;;  %v3535_v0 = vsel %vm12122_vm11, %v10929_v22, 0.0  ;;  %9232 = vmatpush3.msra.mxu1 %v3635_v30  ;;  %vm12137_vm11 = vmmov %vm12131_vm0  ;;  %v3819_v30 = vld [vmem:[%s11935_s5 + $0x50] sm:$0xff] }
0x1099   :  { %3536 = vadd.xlane.f32.xlu0 %v3535_v0  ;;  %v3501_v6 = vpop.f32.mrf.mxu0  ;;  %9233 = vmatprep.subr.mxu1 %v3634_v2 }
0x109a   :  { %v10941_v18 = vadd.f32 %v7935_v21, %v3518_v11  ;;  %v3521_v28 = vadd.f32 %v3515_v44, %v10225_v26  ;;  %v3514_v29 = vadd.f32 %v3501_v6, %v2753_v25  ;;  %v3544_v56 = vsel %vm12123_vm9, %v10935_v46, 0.0  ;;  %9234 = vmatpush3.msra.mxu1 %v3634_v2  ;;  %vm12138_vm9 = vmmov %vm12131_vm0  ;;  %v3818_v2 = vld [vmem:[%s11935_s5 + $0x48] sm:$0xff] }
0x109b   :  { %3545 = vadd.xlane.f32.xlu1 %v3544_v56  ;;  %9235 = vmatprep.subr.mxu1 %v3633_v55 }
0x109c   :  { %v10946_v24 = vadd.f32 %v7935_v21, %v3521_v28  ;;  %v3520_v19 = vadd.f32 %v3514_v29, %v10227_v27  ;;  %v3541_v40 = vsel %vm12124_vm12, %v10941_v18, 0.0  ;;  %9236 = vmatpush3.msra.mxu1 %v3633_v55  ;;  %v3817_v55 = vld [vmem:[%s11935_s5 + $0x40] sm:$0xff]  ;;  %vm12139_vm12 = vmmov %vm12131_vm0 }
0x109d   :  { %3542 = vadd.xlane.f32.xlu0 %v3541_v40 }
0x109e   :  { %v10951_v31 = vadd.f32 %v7935_v21, %v3520_v19  ;;  %v3550_v36 = vsel %vm12125_vm1, %v10946_v24, 0.0  ;;  %vm12140_vm1 = vmmov %vm12131_vm0 }
0x109f   :  { %3551 = vadd.xlane.f32.xlu1 %v3550_v36 }
0x10a0   :  { %v3547_v26 = vsel %vm12126_vm10, %v10951_v31, 0.0  ;;  %vm12141_vm10 = vmmov %vm12131_vm0 }
0x10a1   :  { %3548 = vadd.xlane.f32.xlu0 %v3547_v26 }
0x1120   :  { %v3540_v42 = vpop.xlane.xlu1 %3539 }
0x1121   :  { %v3554_v50 = vmul.f32 0.03125, %v3540_v42 }
0x1122   :  { %v3537_v32 = vpop.xlane.xlu0 %3536 }
0x1123   :  { %v10958_v51 = vsub.f32 %v10923_v58, %v3554_v50  ;;  %v3553_v27 = vmul.f32 0.03125, %v3537_v32  ;;  %v7936_v50 = vld [vmem:[%s11936_s6 + $0x3] ss:$0 sm:$0xff] }
0x1124   :  { %v3546_v53 = vpop.xlane.xlu1 %3545 }
0x1125   :  { %v10961_v35 = vsub.f32 %v10929_v22, %v3553_v27  ;;  %v3556_v43 = vmul.f32 0.03125, %v3546_v53  ;;  %v3566_v52 = vmul.f32 %v10958_v51, %v10958_v51 }
0x1126   :  { %v3543_v49 = vpop.xlane.xlu0 %3542 }
0x1127   :  { %v10966_v57 = vsub.f32 %v10935_v46, %v3556_v43  ;;  %v3555_v41 = vmul.f32 0.03125, %v3543_v49  ;;  %v3574_v48 = vsel %vm12127_vm15, %v3566_v52, 0.0  ;;  %v3565_v1 = vmul.f32 %v10961_v35, %v10961_v35  ;;  %v7937_v49 = vld [vmem:[%s11936_s6 + $0x4] ss:$0 sm:$0xff]  ;;  %vm12142_vm15 = vmmov %vm12131_vm0 }
0x1128   :  { %3575 = vadd.xlane.f32.xlu1 %v3574_v48  ;;  %v3552_v8 = vpop.xlane.xlu1 %3551 }
0x1129   :  { %v10972_v7 = vsub.f32 %v10941_v18, %v3555_v41  ;;  %v3558_v10 = vmul.f32 0.03125, %v3552_v8  ;;  %v3571_v9 = vsel %vm12128_vm6, %v3565_v1, 0.0  ;;  %v3568_v60 = vmul.f32 %v10966_v57, %v10966_v57  ;;  %vm12143_vm6 = vmmov %vm12131_vm0 }
0x112a   :  { %3572 = vadd.xlane.f32.xlu0 %v3571_v9  ;;  %v3549_v3 = vpop.xlane.xlu0 %3548 }
0x112b   :  { %v10978_v12 = vsub.f32 %v10946_v24, %v3558_v10  ;;  %v3557_v62 = vmul.f32 0.03125, %v3549_v3  ;;  %v3580_v5 = vsel %vm12129_vm7, %v3568_v60, 0.0  ;;  %v3567_v13 = vmul.f32 %v10972_v7, %v10972_v7  ;;  %vm12144_vm7 = vmmov %vm12131_vm0 }
0x112c   :  { %3581 = vadd.xlane.f32.xlu1 %v3580_v5 }
0x112d   :  { %v10984_v17 = vsub.f32 %v10951_v31, %v3557_v62  ;;  %v3577_v21 = vsel %vm12130_vm8, %v3567_v13, 0.0  ;;  %v3570_v23 = vmul.f32 %v10978_v12, %v10978_v12  ;;  %vm12145_vm8 = vmmov %vm12131_vm0 }
0x112e   :  { %3578 = vadd.xlane.f32.xlu0 %v3577_v21 }
0x112f   :  { %v3586_v14 = vsel %vm12131_vm0, %v3570_v23, 0.0  ;;  %v3569_v16 = vmul.f32 %v10984_v17, %v10984_v17 }
0x1130   :  { %3587 = vadd.xlane.f32.xlu1 %v3586_v14 }
0x1131   :  { %v3583_v34 = vsel %vm12132_vm13, %v3569_v16, 0.0  ;;  %v3822_v16 = vld [vmem:[%s11935_s5 + $0x68] sm:$0xff]  ;;  %vm12146_vm13 = vmmov %vm12131_vm0 }
0x1132   :  { %3584 = vadd.xlane.f32.xlu0 %v3583_v34  ;;  %v3821_v34 = vld [vmem:[%s11935_s5 + $0x60] sm:$0xff] }
0x11b1   :  { %v3576_v45 = vpop.xlane.xlu1 %3575 }
0x11b2   :  { %v3590_v47 = vmul.f32 0.03125, %v3576_v45  ;;  %v3816_v45 = vld [vmem:[%s11935_s5 + $0x38] sm:$0xff] }
0x11b3   :  { %v3573_v61 = vpop.xlane.xlu0 %3572 }
0x11b4   :  { %v3596_v4 = vadd.f32 1e-05, %v3590_v47  ;;  %v3589_v15 = vmul.f32 0.03125, %v3573_v61  ;;  %v3815_v47 = vld [vmem:[%s11935_s5 + $0x30] sm:$0xff]  ;;  %v3814_v61 = vld [vmem:[%s11935_s5 + $0x28] sm:$0xff] }
0x11b5   :  { %v3582_v25 = vpop.xlane.xlu1 %3581 }
0x11b6   :  { %9923 = vrsqrt.f32 %v3596_v4  ;;  %v3595_v37 = vadd.f32 1e-05, %v3589_v15  ;;  %v3592_v11 = vmul.f32 0.03125, %v3582_v25  ;;  %v3813_v4 = vld [vmem:[%s11935_s5 + $0x20] sm:$0xff]  ;;  %v3812_v15 = vld [vmem:[%s11935_s5 + $0x18] sm:$0xff]  ;;  %v3811_v25 = vld [vmem:[%s11935_s5 + $0x10] sm:$0xff] }
0x11b7   :  { %v3579_v44 = vpop.xlane.xlu0 %3578 }
0x11b8   :  { %9925 = vrsqrt.f32 %v3595_v37  ;;  %v3598_v0 = vadd.f32 1e-05, %v3592_v11  ;;  %v3591_v6 = vmul.f32 0.03125, %v3579_v44  ;;  %v3810_v37 = vld [vmem:[%s11935_s5 + $0x8] sm:$0xff]  ;;  %v3809_v11 = vld [vmem:[%s11935_s5] sm:$0xff] }
0x11b9   :  { %v3588_v28 = vpop.xlane.xlu1 %3587  ;;  %v7938_v44 = vld [vmem:[%s11934_s4 + $0x20] ss:$0 sm:$0xff] }
0x11ba   :  { %9927 = vrsqrt.f32 %v3598_v0  ;;  %v3597_v29 = vadd.f32 1e-05, %v3591_v6  ;;  %v3594_v56 = vmul.f32 0.03125, %v3588_v28 }
0x11bb   :  { %v3585_v19 = vpop.xlane.xlu0 %3584 }
0x11bc   :  { %9929 = vrsqrt.f32 %v3597_v29  ;;  %v3600_v40 = vadd.f32 1e-05, %v3594_v56  ;;  %v3593_v36 = vmul.f32 0.03125, %v3585_v19 }
0x11be   :  { %9931 = vrsqrt.f32 %v3600_v40  ;;  %v3599_v26 = vadd.f32 1e-05, %v3593_v36 }
0x11c0   :  { %9933 = vrsqrt.f32 %v3599_v26 }
0x11c3   :  { %v9924_v42 = vpop.eup %9923 }
0x11c4   :  { %v3608_v32 = vmul.f32 %v9924_v42, %v10958_v51 }
0x11c5   :  { %v9926_v27 = vpop.eup %9925 }
0x11c6   :  { %v3607_v53 = vmul.f32 %v9926_v27, %v10961_v35  ;;  %v3618_v52 = vmul.f32 %v7936_v50, %v3608_v32 }
0x11c7   :  { %v9928_v43 = vpop.eup %9927 }
0x11c8   :  { %v3617_v41 = vmul.f32 %v7936_v50, %v3607_v53  ;;  %v3610_v48 = vmul.f32 %v9928_v43, %v10966_v57  ;;  %v3628_v60 = vadd.f32 %v7937_v49, %v3618_v52 }
0x11c9   :  { %v9930_v1 = vpop.eup %9929 }
0x11ca   :  { %v3627_v8 = vadd.f32 %v7937_v49, %v3617_v41  ;;  %v3609_v10 = vmul.f32 %v9930_v1, %v10972_v7  ;;  %v3620_v3 = vmul.f32 %v7936_v50, %v3610_v48 }
0x11cb   :  { %v9932_v9 = vpop.eup %9931 }
0x11cc   :  { %9237 = vmatprep.mubr.msk.f32.mxu1 %vm12133_vm2, %v3627_v8  ;;  %v3619_v51 = vmul.f32 %v7936_v50, %v3609_v10  ;;  %v3612_v35 = vmul.f32 %v9932_v9, %v10978_v12  ;;  %v3630_v21 = vadd.f32 %v7937_v49, %v3620_v3  ;;  %v3824_v12 = vld [vmem:[%s11935_s5 + $0x78] sm:$0xff]  ;;  %vm12147_vm2 = vmmov %vm12131_vm0 }
0x11cd   :  { %v9934_v62 = vpop.eup %9933  ;;  %9238 = vmatmul.mubr.msk.f32.vlgmr.msra.gmra.mxu1 %vm12134_vm5, %v3628_v60  ;;  %9246 = vmatprep.subr.mxu0 %v3824_v12  ;;  %vm12148_vm5 = vmmov %vm12131_vm0 }
0x11ce   :  { %v3629_v5 = vadd.f32 %v7937_v49, %v3619_v51  ;;  %v3611_v13 = vmul.f32 %v9934_v62, %v10984_v17  ;;  %v3622_v57 = vmul.f32 %v7936_v50, %v3612_v35  ;;  %9247 = vmatpush3.msra.mxu0 %v3824_v12  ;;  %v3823_v17 = vld [vmem:[%s11935_s5 + $0x70] sm:$0xff] }
0x11cf   :  { %9248 = vmatprep.subr.mxu0 %v3823_v17 }
0x11d0   :  { %9240 = vmatprep.mubr.msk.f32.mxu1 %vm12135_vm4, %v3629_v5  ;;  %v3621_v23 = vmul.f32 %v7936_v50, %v3611_v13  ;;  %v3632_v14 = vadd.f32 %v7937_v49, %v3622_v57  ;;  %9249 = vmatpush3.msra.mxu0 %v3823_v17  ;;  %vm12149_vm4 = vmmov %vm12131_vm0 }
0x11d1   :  { %9241 = vmatmul.mubr.msk.f32.gmra.mxu1 %vm12136_vm14, %v3630_v21  ;;  %9250 = vmatprep.subr.mxu0 %v3822_v16  ;;  %vm12150_vm14 = vmmov %vm12131_vm0 }
0x11d2   :  { %v3631_v7 = vadd.f32 %v7937_v49, %v3621_v23  ;;  %9251 = vmatpush3.msra.mxu0 %v3822_v16 }
0x11d3   :  { %9252 = vmatprep.subr.mxu0 %v3821_v34 }
0x11d4   :  { %9243 = vmatprep.mubr.msk.f32.mxu1 %vm12137_vm11, %v3631_v7  ;;  %9253 = vmatpush3.msra.mxu0 %v3821_v34  ;;  %vm12151_vm11 = vmmov %vm12131_vm0 }
0x11d5   :  { %9244 = vmatmul.mubr.msk.f32.gmra.mxu1 %vm12138_vm9, %v3632_v14  ;;  %9254 = vmatprep.subr.mxu0 %v3820_v20  ;;  %vm12152_vm9 = vmmov %vm12131_vm0 }
0x11d6   :  { %9255 = vmatpush3.msra.mxu0 %v3820_v20 }
0x11d7   :  { %9256 = vmatprep.subr.mxu0 %v3819_v30 }
0x11d8   :  { %9257 = vmatpush3.msra.mxu0 %v3819_v30 }
0x11d9   :  { %9258 = vmatprep.subr.mxu0 %v3818_v2 }
0x11da   :  { %9259 = vmatpush3.msra.mxu0 %v3818_v2 }
0x11db   :  { %9260 = vmatprep.subr.mxu0 %v3817_v55 }
0x11dc   :  { %9261 = vmatpush3.msra.mxu0 %v3817_v55 }
0x11dd   :  { %9262 = vmatprep.subr.mxu0 %v3816_v45 }
0x11de   :  { %9263 = vmatpush3.msra.mxu0 %v3816_v45 }
0x11df   :  { %9264 = vmatprep.subr.mxu0 %v3815_v47 }
0x11e0   :  { %9265 = vmatpush3.msra.mxu0 %v3815_v47 }
0x11e1   :  { %9266 = vmatprep.subr.mxu0 %v3814_v61 }
0x11e2   :  { %9267 = vmatpush3.msra.mxu0 %v3814_v61 }
0x11e3   :  { %9268 = vmatprep.subr.mxu0 %v3813_v4 }
0x11e4   :  { %9269 = vmatpush3.msra.mxu0 %v3813_v4 }
0x11e5   :  { %9270 = vmatprep.subr.mxu0 %v3812_v15 }
0x11e6   :  { %9271 = vmatpush3.msra.mxu0 %v3812_v15 }
0x11e7   :  { %9272 = vmatprep.subr.mxu0 %v3811_v25 }
0x11e8   :  { %9273 = vmatpush3.msra.mxu0 %v3811_v25 }
0x11e9   :  { %9274 = vmatprep.subr.mxu0 %v3810_v37 }
0x11ea   :  { %9275 = vmatpush3.msra.mxu0 %v3810_v37 }
0x11eb   :  { %9276 = vmatprep.subr.mxu0 %v3809_v11 }
0x11ec   :  { %9277 = vmatpush3.msra.mxu0 %v3809_v11 }
0x128d   :  { %v9239_v0 = vpop.f32.mrf.mxu1 }
0x128e   :  { %v3732_v6 = vadd.f32 %v9239_v0, %v7938_v44 }
0x128f   :  { %v3726_v28 = vpop.f32.mrf.mxu1 }
0x1290   :  { %v3762_v29 = vmul.f32 0.044715, %v3732_v6  ;;  %v3727_v56 = vadd.f32 %v7938_v44, %v3726_v28  ;;  %v3756_v25 = vmul.f32 0.5, %v3732_v6 }
0x1291   :  { %v9242_v19 = vpop.f32.mrf.mxu1 }
0x1292   :  { %v3768_v40 = vmul.f32 %v3762_v29, %v3732_v6  ;;  %v3761_v36 = vmul.f32 0.044715, %v3727_v56  ;;  %v3742_v26 = vadd.f32 %v9242_v19, %v7938_v44  ;;  %v3755_v61 = vmul.f32 0.5, %v3727_v56 }
0x1293   :  { %v3736_v42 = vpop.f32.mrf.mxu1 }
0x1294   :  { %v3774_v50 = vmul.f32 %v3768_v40, %v3732_v6  ;;  %v3767_v32 = vmul.f32 %v3761_v36, %v3727_v56  ;;  %v3764_v27 = vmul.f32 0.044715, %v3742_v26  ;;  %v3737_v53 = vadd.f32 %v7938_v44, %v3736_v42 }
0x1295   :  { %v9245_v43 = vpop.f32.mrf.mxu1  ;;  %v3758_v36 = vmul.f32 0.5, %v3742_v26 }
0x1296   :  { %v3780_v52 = vadd.f32 %v3774_v50, %v3732_v6  ;;  %v3770_v49 = vmul.f32 %v3764_v27, %v3742_v26  ;;  %v3763_v41 = vmul.f32 0.044715, %v3737_v53  ;;  %v3752_v48 = vadd.f32 %v9245_v43, %v7938_v44 }
0x1297   :  { %v3746_v1 = vpop.f32.mrf.mxu1  ;;  %v3773_v8 = vmul.f32 %v3767_v32, %v3727_v56  ;;  %v3757_v0 = vmul.f32 0.5, %v3737_v53 }
0x1298   :  { %v3786_v10 = vmul.f32 0.7978846, %v3780_v52  ;;  %v3769_v9 = vmul.f32 %v3763_v41, %v3737_v53  ;;  %v3766_v60 = vmul.f32 0.044715, %v3752_v48  ;;  %v3747_v3 = vadd.f32 %v7938_v44, %v3746_v1 }
0x1299   :  { %v3779_v51 = vadd.f32 %v3773_v8, %v3727_v56  ;;  %v3776_v35 = vmul.f32 %v3770_v49, %v3742_v26  ;;  %v3760_v6 = vmul.f32 0.5, %v3752_v48 }
0x129a   :  { %9935 = vtanh.f32 %v3786_v10  ;;  %v3772_v62 = vmul.f32 %v3766_v60, %v3752_v48  ;;  %v3765_v5 = vmul.f32 0.044715, %v3747_v3  ;;  %v3775_v13 = vmul.f32 %v3769_v9, %v3737_v53 }
0x129b   :  { %v3785_v21 = vmul.f32 0.7978846, %v3779_v51  ;;  %v3782_v57 = vadd.f32 %v3776_v35, %v3742_v26  ;;  %v3759_v32 = vmul.f32 0.5, %v3747_v3 }
0x129c   :  { %v3771_v23 = vmul.f32 %v3765_v5, %v3747_v3  ;;  %v3781_v7 = vadd.f32 %v3775_v13, %v3737_v53  ;;  %v3778_v14 = vmul.f32 %v3772_v62, %v3752_v48  ;;  %v7945_v53 = vld [vmem:[%s11936_s6 + $0x5] ss:$0 sm:$0xff] }
0x129d   :  { %9937 = vtanh.f32 %v3785_v21  ;;  %v3788_v12 = vmul.f32 0.7978846, %v3782_v57 }
0x129e   :  { %v3787_v17 = vmul.f32 0.7978846, %v3781_v7  ;;  %v3777_v16 = vmul.f32 %v3771_v23, %v3747_v3  ;;  %v3784_v34 = vadd.f32 %v3778_v14, %v3752_v48 }
0x129f   :  { %9939 = vtanh.f32 %v3788_v12 }
0x12a0   :  { %9941 = vtanh.f32 %v3787_v17  ;;  %v3783_v20 = vadd.f32 %v3777_v16, %v3747_v3  ;;  %v3790_v30 = vmul.f32 0.7978846, %v3784_v34 }
0x12a2   :  { %v3789_v2 = vmul.f32 0.7978846, %v3783_v20  ;;  %9943 = vtanh.f32 %v3790_v30 }
0x12a4   :  { %9945 = vtanh.f32 %v3789_v2 }
0x12a7   :  { %v9936_v55 = vpop.eup %9935 }
0x12a8   :  { %v3798_v47 = vadd.f32 1.0, %v9936_v55 }
0x12aa   :  { %v9938_v45 = vpop.eup %9937  ;;  %v3804_v44 = vmul.f32 %v3798_v47, %v3756_v25 }
0x12ab   :  { %v3797_v4 = vadd.f32 1.0, %v9938_v45 }
0x12ac   :  { %v9940_v15 = vpop.eup %9939 }
0x12ad   :  { %v9942_v37 = vpop.eup %9941  ;;  %v3803_v11 = vmul.f32 %v3797_v4, %v3755_v61  ;;  %v3800_v29 = vadd.f32 1.0, %v9940_v15 }
0x12ae   :  { %v3799_v28 = vadd.f32 1.0, %v9942_v37 }
0x12af   :  { %v9944_v19 = vpop.eup %9943  ;;  %9278 = vmatprep.mubr.f32.mxu0 %v3803_v11  ;;  %v3806_v50 = vmul.f32 %v3800_v29, %v3758_v36 }
0x12b0   :  { %9279 = vmatmul.mubr.f32.vlgmr.msra.gmra.mxu0 %v3804_v44  ;;  %v3805_v40 = vmul.f32 %v3799_v28, %v3757_v0  ;;  %v3802_v56 = vadd.f32 1.0, %v9944_v19 }
0x12b1   :  { %v9946_v42 = vpop.eup %9945 }
0x12b2   :  { %9281 = vmatprep.mubr.f32.mxu0 %v3805_v40  ;;  %v3801_v27 = vadd.f32 1.0, %v9946_v42  ;;  %v3808_v52 = vmul.f32 %v3802_v56, %v3760_v6  ;;  %v4034_v6 = vld [vmem:[#allocation2 + $0x290] sm:$0xff] }
0x12b4   :  { %9282 = vmatmul.mubr.f32.gmra.mxu0 %v3806_v50  ;;  %v3807_v43 = vmul.f32 %v3801_v27, %v3759_v32 }
0x12b6   :  { %9284 = vmatprep.mubr.f32.mxu0 %v3807_v43  ;;  %v4035_v43 = vld [vmem:[#allocation2 + $0x298] sm:$0xff] }
0x12b7   :  { %9287 = vmatprep.subr.mxu1 %v4035_v43 }
0x12b8   :  { %9285 = vmatmul.mubr.f32.gmra.mxu0 %v3808_v52  ;;  %9288 = vmatpush3.msra.mxu1 %v4035_v43  ;;  %v4033_v52 = vld [vmem:[#allocation2 + $0x288] sm:$0xff] }
0x12b9   :  { %9289 = vmatprep.subr.mxu1 %v4034_v6 }
0x12ba   :  { %9290 = vmatpush3.msra.mxu1 %v4034_v6  ;;  %v4046_v6 = vld [vmem:[#allocation2 + $0x3d0] sm:$0xff] }
0x12bb   :  { %9291 = vmatprep.subr.mxu1 %v4033_v52 }
0x12bc   :  { %9292 = vmatpush3.msra.mxu1 %v4033_v52  ;;  %v4045_v52 = vld [vmem:[#allocation2 + $0x3c8] sm:$0xff] }
0x1370   :  { %v9280_v49 = vpop.f32.mrf.mxu0 }
0x1371   :  { %v3902_v41 = vadd.f32 %v9280_v49, %v7945_v53  ;;  %v4041_v49 = vld [vmem:[#allocation2 + $0x338] sm:$0xff] }
0x1372   :  { %v3896_v1 = vpop.f32.mrf.mxu0 }
0x1373   :  { %v11078_v26 = vadd.f32 %v3902_v41, %v10923_v58  ;;  %v3897_v8 = vadd.f32 %v7945_v53, %v3896_v1 }
0x1374   :  { %v9283_v10 = vpop.f32.mrf.mxu0 }
0x1375   :  { %v11081_v9 = vadd.f32 %v3897_v8, %v10929_v22  ;;  %v3912_v60 = vadd.f32 %v9283_v10, %v7945_v53  ;;  %v3936_v48 = vsel %vm12139_vm12, %v11078_v26, 0.0  ;;  %vm12153_vm12 = vmmov %vm12131_vm0 }
0x1376   :  { %3937 = vadd.xlane.f32.xlu1 %v3936_v48  ;;  %v3906_v3 = vpop.f32.mrf.mxu0 }
0x1377   :  { %v11086_v51 = vadd.f32 %v3912_v60, %v10935_v46  ;;  %v3907_v35 = vadd.f32 %v7945_v53, %v3906_v3  ;;  %v3933_v62 = vsel %vm12140_vm1, %v11081_v9, 0.0  ;;  %vm12154_vm1 = vmmov %vm12131_vm0 }
0x1378   :  { %3934 = vadd.xlane.f32.xlu0 %v3933_v62  ;;  %v9286_v58 = vpop.f32.mrf.mxu0 }
0x1379   :  { %v11091_v5 = vadd.f32 %v3907_v35, %v10941_v18  ;;  %v3922_v22 = vadd.f32 %v9286_v58, %v7945_v53  ;;  %v3942_v13 = vsel %vm12141_vm10, %v11086_v51, 0.0  ;;  %vm12155_vm10 = vmmov %vm12131_vm0 }
0x137a   :  { %3943 = vadd.xlane.f32.xlu1 %v3942_v13  ;;  %v3916_v21 = vpop.f32.mrf.mxu0 }
0x137b   :  { %v11096_v57 = vadd.f32 %v3922_v22, %v10946_v24  ;;  %v3917_v46 = vadd.f32 %v7945_v53, %v3916_v21  ;;  %v3939_v23 = vsel %vm12142_vm15, %v11091_v5, 0.0  ;;  %v4032_v53 = vld [vmem:[#allocation2 + $0x280] sm:$0xff]  ;;  %vm12156_vm15 = vmmov %vm12131_vm0 }
0x137c   :  { %3940 = vadd.xlane.f32.xlu0 %v3939_v23  ;;  %9293 = vmatprep.subr.mxu1 %v4032_v53 }
0x137d   :  { %v11101_v7 = vadd.f32 %v3917_v46, %v10951_v31  ;;  %v3948_v18 = vsel %vm12143_vm6, %v11096_v57, 0.0  ;;  %9294 = vmatpush3.msra.mxu1 %v4032_v53  ;;  %vm12157_vm6 = vmmov %vm12131_vm0  ;;  %v4044_v53 = vld [vmem:[#allocation2 + $0x3c0] sm:$0xff] }
0x137e   :  { %3949 = vadd.xlane.f32.xlu1 %v3948_v18  ;;  %9304 = vmatprep.subr.mxu1 %v4041_v49 }
0x137f   :  { %v3945_v14 = vsel %vm12144_vm7, %v11101_v7, 0.0  ;;  %vm12158_vm7 = vmmov %vm12131_vm0 }
0x1380   :  { %3946 = vadd.xlane.f32.xlu0 %v3945_v14 }
0x13ff   :  { %v3938_v12 = vpop.xlane.xlu1 %3937 }
0x1400   :  { %v3952_v17 = vmul.f32 0.03125, %v3938_v12 }
0x1401   :  { %v3935_v24 = vpop.xlane.xlu0 %3934 }
0x1402   :  { %v11108_v16 = vsub.f32 %v11078_v26, %v3952_v17  ;;  %v3951_v34 = vmul.f32 0.03125, %v3935_v24  ;;  %v7946_v24 = vld [vmem:[%s11936_s6 + $0x6] ss:$0 sm:$0xff] }
0x1403   :  { %v3944_v20 = vpop.xlane.xlu1 %3943 }
0x1404   :  { %v11111_v30 = vsub.f32 %v11081_v9, %v3951_v34  ;;  %v3954_v31 = vmul.f32 0.03125, %v3944_v20  ;;  %v3964_v2 = vmul.f32 %v11108_v16, %v11108_v16 }
0x1405   :  { %v3941_v55 = vpop.xlane.xlu0 %3940 }
0x1406   :  { %v11116_v45 = vsub.f32 %v11086_v51, %v3954_v31  ;;  %v3953_v47 = vmul.f32 0.03125, %v3941_v55  ;;  %v3972_v61 = vsel %vm12145_vm8, %v3964_v2, 0.0  ;;  %v3963_v4 = vmul.f32 %v11111_v30, %v11111_v30  ;;  %vm12159_vm8 = vmmov %vm12131_vm0 }
0x1407   :  { %3973 = vadd.xlane.f32.xlu1 %v3972_v61  ;;  %v3950_v15 = vpop.xlane.xlu1 %3949 }
0x1408   :  { %v11122_v25 = vsub.f32 %v11091_v5, %v3953_v47  ;;  %v3956_v37 = vmul.f32 0.03125, %v3950_v15  ;;  %v3969_v11 = vsel %vm12131_vm0, %v3963_v4, 0.0  ;;  %v3966_v44 = vmul.f32 %v11116_v45, %v11116_v45  ;;  %v7947_v47 = vld [vmem:[%s11936_s6 + $0x7] ss:$0 sm:$0xff] }
0x1409   :  { %3970 = vadd.xlane.f32.xlu0 %v3969_v11  ;;  %v3947_v0 = vpop.xlane.xlu0 %3946 }
0x140a   :  { %v11128_v28 = vsub.f32 %v11096_v57, %v3956_v37  ;;  %v3955_v29 = vmul.f32 0.03125, %v3947_v0  ;;  %v3978_v19 = vsel %vm12146_vm13, %v3966_v44, 0.0  ;;  %v3965_v40 = vmul.f32 %v11122_v25, %v11122_v25  ;;  %vm12160_vm13 = vmmov %vm12131_vm0 }
0x140b   :  { %3979 = vadd.xlane.f32.xlu1 %v3978_v19  ;;  %v4040_v19 = vld [vmem:[#allocation2 + $0x330] sm:$0xff] }
0x140c   :  { %v11134_v36 = vsub.f32 %v11101_v7, %v3955_v29  ;;  %v3975_v42 = vsel %vm12147_vm2, %v3965_v40, 0.0  ;;  %v3968_v50 = vmul.f32 %v11128_v28, %v11128_v28  ;;  %vm12161_vm2 = vmmov %vm12131_vm0 }
0x140d   :  { %3976 = vadd.xlane.f32.xlu0 %v3975_v42 }
0x140e   :  { %v3984_v32 = vsel %vm12148_vm5, %v3968_v50, 0.0  ;;  %v3967_v27 = vmul.f32 %v11134_v36, %v11134_v36  ;;  %vm12162_vm5 = vmmov %vm12131_vm0 }
0x140f   :  { %3985 = vadd.xlane.f32.xlu1 %v3984_v32 }
0x1410   :  { %v3981_v56 = vsel %vm12149_vm4, %v3967_v27, 0.0  ;;  %vm12163_vm4 = vmmov %vm12131_vm0 }
0x1411   :  { %3982 = vadd.xlane.f32.xlu0 %v3981_v56 }
0x1490   :  { %v3974_v41 = vpop.xlane.xlu1 %3973 }
0x1491   :  { %v3988_v1 = vmul.f32 0.03125, %v3974_v41  ;;  %v11203_v41 = vld [vmem:[#allocation2 + $0x2a0] ss:$0 sm:$0xff] }
0x1492   :  { %v3971_v8 = vpop.xlane.xlu0 %3970 }
0x1493   :  { %v3994_v10 = vadd.f32 1e-05, %v3988_v1  ;;  %v3987_v60 = vmul.f32 0.03125, %v3971_v8 }
0x1494   :  { %v3980_v48 = vpop.xlane.xlu1 %3979 }
0x1495   :  { %9947 = vrsqrt.f32 %v3994_v10  ;;  %v3993_v3 = vadd.f32 1e-05, %v3987_v60  ;;  %v3990_v35 = vmul.f32 0.03125, %v3980_v48 }
0x1496   :  { %v3977_v62 = vpop.xlane.xlu0 %3976 }
0x1497   :  { %9949 = vrsqrt.f32 %v3993_v3  ;;  %v3996_v58 = vadd.f32 1e-05, %v3990_v35  ;;  %v3989_v22 = vmul.f32 0.03125, %v3977_v62 }
0x1498   :  { %v3986_v13 = vpop.xlane.xlu1 %3985 }
0x1499   :  { %9951 = vrsqrt.f32 %v3996_v58  ;;  %v3995_v21 = vadd.f32 1e-05, %v3989_v22  ;;  %v3992_v46 = vmul.f32 0.03125, %v3986_v13  ;;  %v7955_v13 = vld [vmem:[#allocation2 + $0x340] ss:$0 sm:$0xff] }
0x149a   :  { %v3983_v23 = vpop.xlane.xlu0 %3982 }
0x149b   :  { %9953 = vrsqrt.f32 %v3995_v21  ;;  %v3998_v18 = vadd.f32 1e-05, %v3992_v46  ;;  %v3991_v14 = vmul.f32 0.03125, %v3983_v23 }
0x149d   :  { %9955 = vrsqrt.f32 %v3998_v18  ;;  %v3997_v12 = vadd.f32 1e-05, %v3991_v14 }
0x149f   :  { %9957 = vrsqrt.f32 %v3997_v12 }
0x14a2   :  { %v9948_v17 = vpop.eup %9947 }
0x14a3   :  { %v4006_v34 = vmul.f32 %v9948_v17, %v11108_v16 }
0x14a4   :  { %v9950_v20 = vpop.eup %9949 }
0x14a5   :  { %v4005_v31 = vmul.f32 %v9950_v20, %v11111_v30  ;;  %v4016_v55 = vmul.f32 %v7946_v24, %v4006_v34 }
0x14a6   :  { %v9952_v2 = vpop.eup %9951 }
0x14a7   :  { %v4015_v61 = vmul.f32 %v7946_v24, %v4005_v31  ;;  %v4008_v4 = vmul.f32 %v9952_v2, %v11116_v45  ;;  %v11155_v0 = vadd.f32 %v7947_v47, %v4016_v55  ;;  %v7962_v31 = vld [vmem:[#allocation2 + $0x3e0] ss:$0 sm:$0xff] }
0x14a8   :  { %v9954_v15 = vpop.eup %9953 }
0x14a9   :  { %v11152_v37 = vadd.f32 %v7947_v47, %v4015_v61  ;;  %v4007_v11 = vmul.f32 %v9954_v15, %v11122_v25  ;;  %v4018_v16 = vmul.f32 %v7946_v24, %v4008_v4  ;;  %v4039_v25 = vld [vmem:[#allocation2 + $0x328] sm:$0xff] }
0x14aa   :  { %v9956_v44 = vpop.eup %9955 }
0x14ab   :  { %v4017_v29 = vmul.f32 %v7946_v24, %v4007_v11  ;;  %v4010_v30 = vmul.f32 %v9956_v44, %v11128_v28  ;;  %9295 = vmatprep.mubr.msk.f32.mxu1 %vm12150_vm14, %v11152_v37  ;;  %v11165_v50 = vadd.f32 %v7947_v47, %v4018_v16  ;;  %v4038_v28 = vld [vmem:[#allocation2 + $0x320] sm:$0xff]  ;;  %vm12164_vm14 = vmmov %vm12131_vm0 }
0x14ac   :  { %v9958_v40 = vpop.eup %9957  ;;  %9296 = vmatmul.mubr.msk.f32.vlgmr.msra.gmra.mxu1 %vm12151_vm11, %v11155_v0  ;;  %vm12165_vm11 = vmmov %vm12131_vm0 }
0x14ad   :  { %v11162_v45 = vadd.f32 %v7947_v47, %v4017_v29  ;;  %v4009_v42 = vmul.f32 %v9958_v40, %v11134_v36  ;;  %9305 = vmatpush3.msra.mxu1 %v4041_v49  ;;  %v4020_v32 = vmul.f32 %v7946_v24, %v4010_v30  ;;  %v4047_v36 = vld [vmem:[#allocation2 + $0x3d8] sm:$0xff]  ;;  %v4689_v29 = vld [vmem:[#allocation2 + $0x360] sm:$0xff] }
0x14ae   :  { %9306 = vmatprep.subr.mxu1 %v4040_v19 }
0x14af   :  { %v4019_v27 = vmul.f32 %v7946_v24, %v4009_v42  ;;  %9298 = vmatprep.mubr.msk.f32.mxu1 %vm12152_vm9, %v11162_v45  ;;  %9307 = vmatpush3.msra.mxu1 %v4040_v19  ;;  %v11173_v43 = vadd.f32 %v7947_v47, %v4020_v32  ;;  %vm12166_vm9 = vmmov %vm12131_vm0  ;;  %v4688_v42 = vld [vmem:[#allocation2 + $0x358] sm:$0xff] }
0x14b0   :  { %9299 = vmatmul.mubr.msk.f32.gmra.mxu1 %vm12153_vm12, %v11165_v50  ;;  %9308 = vmatprep.subr.mxu1 %v4039_v25  ;;  %vm12167_vm12 = vcmask 64512  }
0x14b1   :  { %v11171_v56 = vadd.f32 %v7947_v47, %v4019_v27  ;;  %9309 = vmatpush3.msra.mxu1 %v4039_v25  ;;  %v4687_v25 = vld [vmem:[#allocation2 + $0x350] sm:$0xff] }
0x14b2   :  { %9310 = vmatprep.subr.mxu1 %v4038_v28 }
0x14b3   :  { %9301 = vmatprep.mubr.msk.f32.mxu1 %vm12154_vm1, %v11171_v56  ;;  %9311 = vmatpush3.msra.mxu1 %v4038_v28  ;;  %vm12168_vm1 = vmmov %vm12167_vm12  ;;  %v4686_v28 = vld [vmem:[#allocation2 + $0x348] sm:$0xff] }
0x14b4   :  { %9302 = vmatmul.mubr.msk.f32.gmra.mxu1 %vm12155_vm10, %v11173_v43  ;;  %9321 = vmatprep.subr.mxu1 %v4047_v36  ;;  %vm12169_vm10 = vmmov %vm12168_vm1 }
0x14b5   :  { %9312 = vmatprep.mubr.msk.f32.mxu1 %vm12156_vm15, %v11152_v37  ;;  %vm12170_vm15 = vmmov %vm12168_vm1 }
0x14b8   :  { %9313 = vmatmul.mubr.msk.f32.vlgmr.msra.gmra.mxu1 %vm12157_vm6, %v11155_v0  ;;  %vm12171_vm6 = vmmov %vm12168_vm1 }
0x14b9   :  { %9315 = vmatprep.mubr.msk.f32.mxu1 %vm12158_vm7, %v11162_v45  ;;  %9322 = vmatpush3.msra.mxu1 %v4047_v36  ;;  %vm12172_vm7 = vmmov %vm12168_vm1 }
0x14ba   :  { %9323 = vmatprep.subr.mxu1 %v4046_v6 }
0x14bb   :  { %9324 = vmatpush3.msra.mxu1 %v4046_v6 }
0x14bc   :  { %9316 = vmatmul.mubr.msk.f32.gmra.mxu1 %vm12159_vm8, %v11165_v50  ;;  %9325 = vmatprep.subr.mxu1 %v4045_v52  ;;  %vm12173_vm8 = vmmov %vm12168_vm1 }
0x14bd   :  { %9318 = vmatprep.mubr.msk.f32.mxu1 %vm12131_vm0, %v11171_v56  ;;  %9326 = vmatpush3.msra.mxu1 %v4045_v52  ;;  %vm12174_vm0 = vmmov %vm12168_vm1 }
0x14be   :  { %9327 = vmatprep.subr.mxu1 %v4044_v53 }
0x14bf   :  { %9328 = vmatpush3.msra.mxu1 %v4044_v53 }
0x14c0   :  { %9319 = vmatmul.mubr.msk.f32.gmra.mxu1 %vm12160_vm13, %v11173_v43  ;;  %vm12175_vm13 = vmmov %vm12174_vm0 }
0x14c1   :  { %9329 = vmatprep.mubr.msk.f32.mxu1 %vm12161_vm2, %v11152_v37  ;;  %vm12176_vm2 = vmmov %vm12174_vm0 }
0x14c4   :  { %9330 = vmatmul.mubr.msk.f32.vlgmr.msra.gmra.mxu1 %vm12162_vm5, %v11155_v0  ;;  %vm12177_vm5 = vmmov %vm12174_vm0 }
0x14c5   :  { %9332 = vmatprep.mubr.msk.f32.mxu1 %vm12163_vm4, %v11162_v45  ;;  %vm12178_vm4 = vmmov %vm12174_vm0 }
0x14c8   :  { %9333 = vmatmul.mubr.msk.f32.gmra.mxu1 %vm12164_vm14, %v11165_v50  ;;  %vm12179_vm14 = vmmov %vm12174_vm0 }
0x14c9   :  { %9335 = vmatprep.mubr.msk.f32.mxu1 %vm12165_vm11, %v11171_v56  ;;  %vm12180_vm11 = vmmov %vm12174_vm0 }
0x14cc   :  { %9336 = vmatmul.mubr.msk.f32.gmra.mxu1 %vm12166_vm9, %v11173_v43  ;;  %vm12181_vm9 = vmmov %vm12174_vm0 }
0x156c   :  { %v9297_v49 = vpop.f32.mrf.mxu1 }
0x156d   :  { %v4148_v19 = vadd.f32 %v9297_v49, %v11203_v41 }
0x156e   :  { %v4142_v1 = vpop.f32.mrf.mxu1 }
0x156f   :  { %v4143_v8 = vadd.f32 %v11203_v41, %v4142_v1 }
0x1570   :  { %v11206_v10 = vpop.f32.mrf.mxu1 }
0x1571   :  { %9350 = vmatprep.mubr.msk.f32.mxu0 %vm12167_vm12, %v4143_v8  ;;  %v4158_v32 = vadd.f32 %v11206_v10, %v11203_v41  ;;  %vm12182_vm12 = vmmov %vm12174_vm0 }
0x1572   :  { %v4152_v60 = vpop.f32.mrf.mxu1 }
0x1573   :  { %v4153_v40 = vadd.f32 %v11203_v41, %v4152_v60 }
0x1574   :  { %v11209_v48 = vpop.f32.mrf.mxu1 }
0x1575   :  { %v4168_v36 = vadd.f32 %v11209_v48, %v11203_v41 }
0x1576   :  { %v4162_v3 = vpop.f32.mrf.mxu1 }
0x1577   :  { %v4163_v27 = vadd.f32 %v11203_v41, %v4162_v3 }
0x1578   :  { %v9314_v35 = vpop.f32.mrf.mxu1 }
0x1579   :  { %v4247_v61 = vadd.f32 %v9314_v35, %v7955_v13 }
0x157a   :  { %v4241_v62 = vpop.f32.mrf.mxu1 }
0x157b   :  { %v4242_v11 = vadd.f32 %v7955_v13, %v4241_v62 }
0x157c   :  { %v9317_v58 = vpop.f32.mrf.mxu1 }
0x157d   :  { %v4257_v17 = vadd.f32 %v9317_v58, %v7955_v13 }
0x157e   :  { %v4251_v22 = vpop.f32.mrf.mxu1 }
0x157f   :  { %v4252_v20 = vadd.f32 %v7955_v13, %v4251_v22 }
0x1580   :  { %v9320_v21 = vpop.f32.mrf.mxu1 }
0x1581   :  { %v4267_v46 = vadd.f32 %v9320_v21, %v7955_v13 }
0x1582   :  { %v4261_v23 = vpop.f32.mrf.mxu1 }
0x1583   :  { %v4262_v18 = vadd.f32 %v7955_v13, %v4261_v23  ;;  %9338 = vmatprep.subr.msk.mxu0 %vm12168_vm1, %v4267_v46  ;;  %vm12183_vm1 = vmmov %vm12174_vm0 }
0x1584   :  { %v9331_v14 = vpop.f32.mrf.mxu1  ;;  %9339 = vmatpush3.xpose.msk.msra.mxu0 %vm12169_vm10, %v4267_v46  ;;  %vm12184_vm10 = vmmov %vm12174_vm0 }
0x1585   :  { %9340 = vmatprep.subr.msk.mxu0 %vm12170_vm15, %v4262_v18  ;;  %v4346_v16 = vadd.f32 %v9331_v14, %v7962_v31  ;;  %vm12185_vm15 = vcmask 261120  }
0x1586   :  { %v4340_v12 = vpop.f32.mrf.mxu1 }
0x1587   :  { %v4341_v30 = vadd.f32 %v7962_v31, %v4340_v12 }
0x1588   :  { %v9334_v24 = vpop.f32.mrf.mxu1  ;;  %9341 = vmatpush3.xpose.msk.msra.mxu0 %vm12171_vm6, %v4262_v18  ;;  %vm12186_vm6 = vmmov %vm12185_vm15 }
0x1589   :  { %9342 = vmatprep.subr.msk.mxu0 %vm12172_vm7, %v4257_v17  ;;  %v4356_v15 = vadd.f32 %v9334_v24, %v7962_v31  ;;  %vm12187_vm7 = vmmov %vm12186_vm6 }
0x158a   :  { %v4350_v34 = vpop.f32.mrf.mxu1 }
0x158b   :  { %v4351_v44 = vadd.f32 %v7962_v31, %v4350_v34 }
0x158c   :  { %v9337_v2 = vpop.f32.mrf.mxu1  ;;  %9343 = vmatpush3.xpose.msk.msra.mxu0 %vm12173_vm8, %v4257_v17  ;;  %vm12188_vm8 = vmmov %vm12186_vm6  ;;  %v7994_v17 = vld [vmem:[#allocation2 + $0x368] ss:$0 sm:$0xff] }
0x158d   :  { %v4366_v55 = vadd.f32 %v9337_v2, %v7962_v31  ;;  %9344 = vmatprep.subr.msk.mxu0 %vm12174_vm0, %v4252_v20  ;;  %vm12189_vm0 = vmmov %vm12186_vm6 }
0x158e   :  { %v4360_v47 = vpop.f32.mrf.mxu1 }
0x158f   :  { %v4361_v4 = vadd.f32 %v7962_v31, %v4360_v47  ;;  %9359 = vmatprep.subr.mxu1 %v4366_v55 }
0x1590   :  { %9345 = vmatpush3.xpose.msk.msra.mxu0 %vm12175_vm13, %v4252_v20  ;;  %9360 = vmatpush3.msra.mxu1 %v4366_v55  ;;  %vm12190_vm13 = vmmov %vm12189_vm0 }
0x1591   :  { %9346 = vmatprep.subr.msk.mxu0 %vm12176_vm2, %v4247_v61  ;;  %9361 = vmatprep.subr.mxu1 %v4361_v4  ;;  %vm12191_vm2 = vmmov %vm12183_vm1 }
0x1592   :  { %9362 = vmatpush3.msra.mxu1 %v4361_v4 }
0x1593   :  { %9363 = vmatprep.subr.mxu1 %v4356_v15 }
0x1594   :  { %9347 = vmatpush3.xpose.msk.msra.mxu0 %vm12177_vm5, %v4247_v61  ;;  %9364 = vmatpush3.msra.mxu1 %v4356_v15  ;;  %vm12192_vm5 = vmmov %vm12183_vm1 }
0x1595   :  { %9348 = vmatprep.subr.msk.mxu0 %vm12178_vm4, %v4242_v11  ;;  %9365 = vmatprep.subr.mxu1 %v4351_v44  ;;  %vm12193_vm4 = vmmov %vm12183_vm1 }
0x1596   :  { %9366 = vmatpush3.msra.mxu1 %v4351_v44 }
0x1597   :  { %9367 = vmatprep.subr.mxu1 %v4346_v16 }
0x1598   :  { %9349 = vmatpush3.xpose.msk.msra.mxu0 %vm12179_vm14, %v4242_v11  ;;  %9368 = vmatpush3.msra.mxu1 %v4346_v16  ;;  %vm12194_vm14 = vmmov %vm12183_vm1 }
0x1599   :  { %9369 = vmatprep.subr.mxu1 %v4341_v30  ;;  %9397 = vmatprep.subr.mxu0 %v4689_v29 }
0x159a   :  { %9370 = vmatpush3.msra.mxu1 %v4341_v30 }
0x159b   :  { %9351 = vmatmul.mubr.msk.f32.vlgmr.msra.gmra.mxu0 %vm12180_vm11, %v4148_v19  ;;  %vm12195_vm11 = vmmov %vm12183_vm1 }
0x159c   :  { %9353 = vmatprep.mubr.msk.f32.mxu0 %vm12181_vm9, %v4153_v40  ;;  %9398 = vmatpush3.msra.mxu0 %v4689_v29  ;;  %vm12196_vm9 = vmmov %vm12183_vm1 }
0x159d   :  { %9399 = vmatprep.subr.mxu0 %v4688_v42 }
0x159e   :  { %9400 = vmatpush3.msra.mxu0 %v4688_v42 }
0x159f   :  { %9354 = vmatmul.mubr.msk.f32.gmra.mxu0 %vm12182_vm12, %v4158_v32  ;;  %9401 = vmatprep.subr.mxu0 %v4687_v25  ;;  %vm12197_vm12 = vmmov %vm12183_vm1 }
0x15a0   :  { %9356 = vmatprep.mubr.msk.f32.mxu0 %vm12183_vm1, %v4163_v27  ;;  %9402 = vmatpush3.msra.mxu0 %v4687_v25 }
0x15a1   :  { %9403 = vmatprep.subr.mxu0 %v4686_v28 }
0x15a2   :  { %9404 = vmatpush3.msra.mxu0 %v4686_v28 }
0x15a3   :  { %9357 = vmatmul.mubr.msk.f32.gmra.mxu0 %vm12184_vm10, %v4168_v36  ;;  %vm12198_vm10 = vmmov %vm12183_vm1 }
0x15a4   :  { %9405 = vmatprep.mubr.msk.f32.mxu0 %vm12185_vm15, %v11152_v37  ;;  %vm12199_vm15 = vmmov %vm12183_vm1 }
0x15a7   :  { %9406 = vmatmul.mubr.msk.f32.vlgmr.msra.gmra.mxu0 %vm12186_vm6, %v11155_v0  ;;  %vm12200_vm6 = vmmov %vm12183_vm1 }
0x15a8   :  { %9408 = vmatprep.mubr.msk.f32.mxu0 %vm12187_vm7, %v11162_v45  ;;  %vm12201_vm7 = vmmov %vm12183_vm1 }
0x15ab   :  { %9409 = vmatmul.mubr.msk.f32.gmra.mxu0 %vm12188_vm8, %v11165_v50  ;;  %vm12202_vm8 = vmmov %vm12189_vm0 }
0x15ac   :  { %9411 = vmatprep.mubr.msk.f32.mxu0 %vm12189_vm0, %v11171_v56 }
0x15af   :  { %9412 = vmatmul.mubr.msk.f32.gmra.mxu0 %vm12190_vm13, %v11173_v43  ;;  %vm12203_vm13 = vmmov %vm12189_vm0 }
0x165b   :  { %v9352_v6 = vpop.f32.mrf.mxu0 }
0x165c   :  { %v4477_v52 = vadd.f32 %v9352_v6, %v10460_v38 }
0x165d   :  { %v4471_v53 = vpop.f32.mrf.mxu0 }
0x165e   :  { %v4472_v49 = vadd.f32 %v4471_v53, %v10473_v33  ;;  %v4503_v41 = vsel %vm934_vm3, %v4477_v52, -inf }
0x165f   :  { %4504 = vmax.xlane.f32.xlu1 %v4503_v41  ;;  %v9355_v1 = vpop.f32.mrf.mxu0 }
0x1660   :  { %v4487_v8 = vadd.f32 %v9355_v1, %v10490_v39  ;;  %v4500_v10 = vsel %vm934_vm3, %v4472_v49, -inf }
0x1661   :  { %v4481_v60 = vpop.f32.mrf.mxu0  ;;  %4501 = vmax.xlane.f32.xlu0 %v4500_v10 }
0x1662   :  { %v4482_v48 = vadd.f32 %v4481_v60, %v10508_v54  ;;  %v4509_v3 = vsel %vm934_vm3, %v4487_v8, -inf }
0x1663   :  { %4510 = vmax.xlane.f32.xlu1 %v4509_v3  ;;  %v9358_v35 = vpop.f32.mrf.mxu0 }
0x1664   :  { %v4497_v62 = vadd.f32 %v9358_v35, %v10516_v59  ;;  %v4506_v58 = vsel %vm934_vm3, %v4482_v48, -inf }
0x1665   :  { %4507 = vmax.xlane.f32.xlu0 %v4506_v58  ;;  %v4491_v22 = vpop.f32.mrf.mxu0 }
0x1666   :  { %v4492_v13 = vadd.f32 %v4491_v22, %v10520_v63  ;;  %v4515_v21 = vsel %vm934_vm3, %v4497_v62, -inf }
0x1667   :  { %4516 = vmax.xlane.f32.xlu1 %v4515_v21  ;;  %v9407_v46 = vpop.f32.mrf.mxu0 }
0x1668   :  { %v4512_v23 = vsel %vm934_vm3, %v4492_v13, -inf  ;;  %v4877_v47 = vadd.f32 %v9407_v46, %v7994_v17 }
0x1669   :  { %v4871_v18 = vpop.f32.mrf.mxu0  ;;  %4513 = vmax.xlane.f32.xlu0 %v4512_v23 }
0x166a   :  { %v4872_v61 = vadd.f32 %v7994_v17, %v4871_v18 }
0x166b   :  { %v9410_v14 = vpop.f32.mrf.mxu0 }
0x166c   :  { %v4887_v2 = vadd.f32 %v9410_v14, %v7994_v17 }
0x166d   :  { %v4881_v12 = vpop.f32.mrf.mxu0 }
0x166e   :  { %v4882_v55 = vadd.f32 %v7994_v17, %v4881_v12 }
0x166f   :  { %v9413_v24 = vpop.f32.mrf.mxu0 }
0x1670   :  { %v4897_v34 = vadd.f32 %v9413_v24, %v7994_v17 }
0x1671   :  { %v4891_v20 = vpop.f32.mrf.mxu0 }
0x1672   :  { %v4892_v31 = vadd.f32 %v7994_v17, %v4891_v20  ;;  %9431 = vmatprep.subr.msk.mxu0 %vm12191_vm2, %v4897_v34  ;;  %vm12204_vm2 = vmmov %vm12189_vm0 }
0x1673   :  { %9432 = vmatpush3.xpose.msk.msra.mxu0 %vm12192_vm5, %v4897_v34  ;;  %vm12205_vm5 = vmmov %vm12189_vm0 }
0x1674   :  { %9433 = vmatprep.subr.msk.mxu0 %vm12193_vm4, %v4892_v31  ;;  %vm12206_vm4 = vmmov %vm12189_vm0 }
0x1677   :  { %9434 = vmatpush3.xpose.msk.msra.mxu0 %vm12194_vm14, %v4892_v31  ;;  %vm12207_vm14 = vmmov %vm12189_vm0 }
0x1678   :  { %9435 = vmatprep.subr.msk.mxu0 %vm12195_vm11, %v4887_v2  ;;  %vm12208_vm11 = vmmov %vm12189_vm0 }
0x167b   :  { %9436 = vmatpush3.xpose.msk.msra.mxu0 %vm12196_vm9, %v4887_v2  ;;  %v4682_v2 = vld [vmem:[#allocation2 + $0x2b8] sm:$0xff]  ;;  %vm12209_vm9 = vmmov %vm12189_vm0 }
0x167c   :  { %9437 = vmatprep.subr.msk.mxu0 %vm12197_vm12, %v4882_v55  ;;  %vm12210_vm12 = vmmov %vm12189_vm0 }
0x167f   :  { %9438 = vmatpush3.xpose.msk.msra.mxu0 %vm12183_vm1, %v4882_v55  ;;  %vm12211_vm1 = vmmov %vm12189_vm0 }
0x1680   :  { %9439 = vmatprep.subr.msk.mxu0 %vm12198_vm10, %v4877_v47  ;;  %vm12212_vm10 = vmmov %vm12189_vm0 }
0x1683   :  { %9440 = vmatpush3.xpose.msk.msra.mxu0 %vm12199_vm15, %v4877_v47  ;;  %vm12213_vm15 = vmmov %vm12200_vm6 }
0x1684   :  { %9441 = vmatprep.subr.msk.mxu0 %vm12200_vm6, %v4872_v61 }
0x1687   :  { %9442 = vmatpush3.xpose.msk.msra.mxu0 %vm12201_vm7, %v4872_v61  ;;  %v4681_v61 = vld [vmem:[#allocation2 + $0x2b0] sm:$0xff]  ;;  %vm12214_vm7 = vmmov %vm12200_vm6 }
0x16e8   :  { %v4505_v4 = vpop.xlane.xlu1 %4504 }
0x16e9   :  { %v4519_v15 = vsub.f32 %v4477_v52, %v4505_v4 }
0x16ea   :  { %v4502_v11 = vpop.xlane.xlu0 %4501 }
0x16eb   :  { %v4526_v44 = vmul.f32 1.442695, %v4519_v15  ;;  %v4518_v16 = vsub.f32 %v4472_v49, %v4502_v11  ;;  %v4680_v11 = vld [vmem:[#allocation2 + $0x2a8] sm:$0xff] }
0x16ec   :  { %v4511_v29 = vpop.xlane.xlu1 %4510 }
0x16ed   :  { %9959 = vpow2.f32 %v4526_v44  ;;  %v4524_v30 = vmul.f32 1.442695, %v4518_v16  ;;  %v4521_v19 = vsub.f32 %v4487_v8, %v4511_v29  ;;  %v4695_v29 = vld [vmem:[#allocation2 + $0x400] sm:$0xff] }
0x16ee   :  { %v4508_v40 = vpop.xlane.xlu0 %4507 }
0x16ef   :  { %9961 = vpow2.f32 %v4524_v30  ;;  %v4530_v42 = vmul.f32 1.442695, %v4521_v19  ;;  %v4520_v25 = vsub.f32 %v4482_v48, %v4508_v40  ;;  %v4694_v19 = vld [vmem:[#allocation2 + $0x3f8] sm:$0xff]  ;;  %v4693_v40 = vld [vmem:[#allocation2 + $0x3f0] sm:$0xff] }
0x16f0   :  { %v4517_v32 = vpop.xlane.xlu1 %4516 }
0x16f1   :  { %9963 = vpow2.f32 %v4530_v42  ;;  %v4528_v27 = vmul.f32 1.442695, %v4520_v25  ;;  %v4523_v28 = vsub.f32 %v4497_v62, %v4517_v32  ;;  %v4692_v42 = vld [vmem:[#allocation2 + $0x3e8] sm:$0xff]  ;;  %v4053_v25 = vld [vmem:[#allocation2 + $0x478] sm:$0xff] }
0x16f2   :  { %v4514_v36 = vpop.xlane.xlu0 %4513  ;;  %9490 = vmatprep.subr.msk.mxu0 %vm12213_vm15, %v4053_v25 }
0x16f3   :  { %9965 = vpow2.f32 %v4528_v27  ;;  %v4534_v6 = vmul.f32 1.442695, %v4523_v28  ;;  %v4522_v53 = vsub.f32 %v4492_v13, %v4514_v36  ;;  %v4683_v13 = vld [vmem:[#allocation2 + $0x2c0] sm:$0xff] }
0x16f4   :  { %9380 = vmatprep.subr.mxu1 %v4683_v13 }
0x16f5   :  { %9967 = vpow2.f32 %v4534_v6  ;;  %v4532_v52 = vmul.f32 1.442695, %v4522_v53 }
0x16f7   :  { %9969 = vpow2.f32 %v4532_v52 }
0x16fa   :  { %v9960_v49 = vpop.eup %9959 }
0x16fb   :  { %v4539_v41 = vsel %vm934_vm3, %v9960_v49, 0.0 }
0x16fc   :  { %v9962_v1 = vpop.eup %9961  ;;  %4540 = vadd.xlane.f32.xlu1 %v4539_v41 }
0x16fd   :  { %v4536_v8 = vsel %vm934_vm3, %v9962_v1, 0.0 }
0x16fe   :  { %v9964_v10 = vpop.eup %9963  ;;  %4537 = vadd.xlane.f32.xlu0 %v4536_v8 }
0x16ff   :  { %v4545_v60 = vsel %vm934_vm3, %v9964_v10, 0.0 }
0x1700   :  { %v9966_v48 = vpop.eup %9965  ;;  %4546 = vadd.xlane.f32.xlu1 %v4545_v60  ;;  %v4052_v60 = vld [vmem:[#allocation2 + $0x470] sm:$0xff] }
0x1701   :  { %v4542_v3 = vsel %vm934_vm3, %v9966_v48, 0.0 }
0x1702   :  { %v9968_v35 = vpop.eup %9967  ;;  %4543 = vadd.xlane.f32.xlu0 %v4542_v3 }
0x1703   :  { %v4551_v62 = vsel %vm934_vm3, %v9968_v35, 0.0 }
0x1704   :  { %v9970_v58 = vpop.eup %9969  ;;  %4552 = vadd.xlane.f32.xlu1 %v4551_v62 }
0x1705   :  { %v4548_v22 = vsel %vm934_vm3, %v9970_v58, 0.0 }
0x1706   :  { %4549 = vadd.xlane.f32.xlu0 %v4548_v22 }
0x1785   :  { %v4541_v21 = vpop.xlane.xlu1 %4540 }
0x1786   :  { %9971 = vrcp.f32 %v4541_v21 }
0x1787   :  { %v4538_v46 = vpop.xlane.xlu0 %4537 }
0x1788   :  { %9973 = vrcp.f32 %v4538_v46 }
0x1789   :  { %v4547_v23 = vpop.xlane.xlu1 %4546 }
0x178a   :  { %9975 = vrcp.f32 %v4547_v23  ;;  %v4050_v23 = vld [vmem:[#allocation2 + $0x460] sm:$0xff] }
0x178b   :  { %v4544_v18 = vpop.xlane.xlu0 %4543 }
0x178c   :  { %9977 = vrcp.f32 %v4544_v18 }
0x178d   :  { %v4553_v14 = vpop.xlane.xlu1 %4552 }
0x178e   :  { %9979 = vrcp.f32 %v4553_v14 }
0x178f   :  { %v4550_v12 = vpop.xlane.xlu0 %4549 }
0x1790   :  { %9981 = vrcp.f32 %v4550_v12  ;;  %v5569_v12 = vld [vmem:[#allocation2 + $0x388] sm:$0xff] }
0x1793   :  { %v9972_v17 = vpop.eup %9971 }
0x1794   :  { %v4561_v20 = vmul.f32 %v9972_v17, %v9960_v49  ;;  %v7987_v49 = vld [vmem:[#allocation2 + $0x2c8] ss:$0 sm:$0xff] }
0x1795   :  { %v9974_v24 = vpop.eup %9973 }
0x1796   :  { %v4560_v34 = vmul.f32 %v9974_v24, %v9962_v1  ;;  %v8001_v24 = vld [vmem:[#allocation2 + $0x408] ss:$0 sm:$0xff] }
0x1797   :  { %v9976_v31 = vpop.eup %9975 }
0x1798   :  { %9371 = vmatprep.mubr.msk.f32.mxu1 %vm934_vm3, %v4560_v34  ;;  %v4563_v4 = vmul.f32 %v9976_v31, %v9964_v10 }
0x1799   :  { %v9978_v55 = vpop.eup %9977  ;;  %9372 = vmatmul.mubr.msk.f32.vlgmr.msra.gmra.mxu1 %vm934_vm3, %v4561_v20 }
0x179a   :  { %9381 = vmatpush3.msra.mxu1 %v4683_v13  ;;  %v4562_v47 = vmul.f32 %v9978_v55, %v9966_v48 }
0x179b   :  { %9382 = vmatprep.subr.mxu1 %v4682_v2  ;;  %v9980_v15 = vpop.eup %9979 }
0x179c   :  { %9374 = vmatprep.mubr.msk.f32.mxu1 %vm934_vm3, %v4562_v47  ;;  %9383 = vmatpush3.msra.mxu1 %v4682_v2  ;;  %v4565_v30 = vmul.f32 %v9980_v15, %v9968_v35  ;;  %v5568_v2 = vld [vmem:[#allocation2 + $0x380] sm:$0xff]  ;;  %v5566_v15 = vld [vmem:[#allocation2 + $0x370] sm:$0xff] }
0x179d   :  { %v9982_v44 = vpop.eup %9981  ;;  %9375 = vmatmul.mubr.msk.f32.gmra.mxu1 %vm934_vm3, %v4563_v4  ;;  %9384 = vmatprep.subr.mxu1 %v4681_v61 }
0x179e   :  { %v4564_v16 = vmul.f32 %v9982_v44, %v9970_v58  ;;  %9385 = vmatpush3.msra.mxu1 %v4681_v61  ;;  %v4051_v58 = vld [vmem:[#allocation2 + $0x468] sm:$0xff]  ;;  %v5567_v61 = vld [vmem:[#allocation2 + $0x378] sm:$0xff] }
0x179f   :  { %9386 = vmatprep.subr.mxu1 %v4680_v11 }
0x17a0   :  { %9377 = vmatprep.mubr.msk.f32.mxu1 %vm934_vm3, %v4564_v16  ;;  %9387 = vmatpush3.msra.mxu1 %v4680_v11 }
0x17a1   :  { %9378 = vmatmul.mubr.msk.f32.gmra.mxu1 %vm934_vm3, %v4565_v30  ;;  %9414 = vmatprep.subr.mxu1 %v4695_v29 }
0x17a2   :  { %9388 = vmatprep.mubr.msk.f32.mxu1 %vm12202_vm8, %v11152_v37  ;;  %vm12215_vm8 = vmmov %vm12200_vm6 }
0x17a5   :  { %9389 = vmatmul.mubr.msk.f32.vlgmr.msra.gmra.mxu1 %vm12189_vm0, %v11155_v0  ;;  %vm12216_vm0 = vmmov %vm12200_vm6 }
0x17a6   :  { %9391 = vmatprep.mubr.msk.f32.mxu1 %vm12203_vm13, %v11162_v45  ;;  %9415 = vmatpush3.msra.mxu1 %v4695_v29  ;;  %vm12217_vm13 = vmmov %vm12216_vm0 }
0x17a7   :  { %9416 = vmatprep.subr.mxu1 %v4694_v19  ;;  %vm12227_vm15 = vmmov %vm12216_vm0 }
0x17a8   :  { %9417 = vmatpush3.msra.mxu1 %v4694_v19 }
0x17a9   :  { %9392 = vmatmul.mubr.msk.f32.gmra.mxu1 %vm12204_vm2, %v11165_v50  ;;  %9418 = vmatprep.subr.mxu1 %v4693_v40  ;;  %vm12218_vm2 = vmmov %vm12216_vm0 }
0x17aa   :  { %9394 = vmatprep.mubr.msk.f32.mxu1 %vm12205_vm5, %v11171_v56  ;;  %9419 = vmatpush3.msra.mxu1 %v4693_v40  ;;  %vm12219_vm5 = vmmov %vm12216_vm0 }
0x17ab   :  { %9420 = vmatprep.subr.mxu1 %v4692_v42 }
0x17ac   :  { %9421 = vmatpush3.msra.mxu1 %v4692_v42 }
0x17ad   :  { %9395 = vmatmul.mubr.msk.f32.gmra.mxu1 %vm12206_vm4, %v11173_v43  ;;  %vm12220_vm4 = vmmov %vm12216_vm0 }
0x17ae   :  { %9422 = vmatprep.mubr.msk.f32.mxu1 %vm12207_vm14, %v11152_v37  ;;  %vm12221_vm14 = vmmov %vm12216_vm0 }
0x17b1   :  { %9423 = vmatmul.mubr.msk.f32.vlgmr.msra.gmra.mxu1 %vm12208_vm11, %v11155_v0  ;;  %vm12222_vm11 = vmmov %vm12216_vm0 }
0x17b2   :  { %9425 = vmatprep.mubr.msk.f32.mxu1 %vm12209_vm9, %v11162_v45  ;;  %vm12223_vm9 = vmmov %vm12216_vm0 }
0x17b5   :  { %9426 = vmatmul.mubr.msk.f32.gmra.mxu1 %vm12210_vm12, %v11165_v50  ;;  %vm12224_vm12 = vmmov %vm12216_vm0 }
0x17b6   :  { %9428 = vmatprep.mubr.msk.f32.mxu1 %vm12211_vm1, %v11171_v56  ;;  %vm12225_vm1 = vmmov %vm12216_vm0 }
0x17b9   :  { %9429 = vmatmul.mubr.msk.f32.gmra.mxu1 %vm12212_vm10, %v11173_v43  ;;  %vm12226_vm10 = vmmov %vm12216_vm0 }
0x1859   :  { %v9373_v32 = vpop.f32.mrf.mxu1 }
0x185b   :  { %v4650_v27 = vpop.f32.mrf.mxu1 }
0x185d   :  { %v9376_v28 = vpop.f32.mrf.mxu1 }
0x185f   :  { %v4660_v36 = vpop.f32.mrf.mxu1 }
0x1861   :  { %v11308_v6 = vpop.f32.mrf.mxu1 }
0x1863   :  { %v4670_v53 = vpop.f32.mrf.mxu1 }
0x1865   :  { %v9390_v52 = vpop.f32.mrf.mxu1 }
0x1866   :  { %v4778_v8 = vadd.f32 %v9390_v52, %v7987_v49 }
0x1867   :  { %v4772_v41 = vpop.f32.mrf.mxu1 }
0x1868   :  { %v4773_v1 = vadd.f32 %v7987_v49, %v4772_v41 }
0x1869   :  { %v9393_v10 = vpop.f32.mrf.mxu1 }
0x186a   :  { %9443 = vmatprep.mubr.msk.f32.mxu0 %vm12200_vm6, %v4773_v1  ;;  %v4788_v35 = vadd.f32 %v9393_v10, %v7987_v49  ;;  %vm12228_vm6 = vmmov %vm12216_vm0 }
0x186b   :  { %v4782_v48 = vpop.f32.mrf.mxu1  ;;  %9444 = vmatmul.mubr.msk.f32.vlgmr.msra.gmra.mxu0 %vm12214_vm7, %v4778_v8  ;;  %vm12229_vm7 = vmmov %vm12216_vm0 }
0x186c   :  { %v4783_v3 = vadd.f32 %v7987_v49, %v4782_v48  ;;  %9491 = vmatpush3.xpose.msk.msra.mxu0 %vm12215_vm8, %v4053_v25  ;;  %vm12230_vm8 = vmmov %vm12216_vm0 }
0x186d   :  { %v9396_v62 = vpop.f32.mrf.mxu1  ;;  %9492 = vmatprep.subr.msk.mxu0 %vm12216_vm0, %v4052_v60 }
0x186e   :  { %9446 = vmatprep.mubr.msk.f32.mxu0 %vm12217_vm13, %v4783_v3  ;;  %v4798_v21 = vadd.f32 %v9396_v62, %v7987_v49  ;;  %vm12231_vm13 = vcmask 261120  }
0x186f   :  { %v4792_v22 = vpop.f32.mrf.mxu1  ;;  %9447 = vmatmul.mubr.msk.f32.gmra.mxu0 %vm12218_vm2, %v4788_v35  ;;  %vm12232_vm2 = vmmov %vm12231_vm13 }
0x1870   :  { %v4793_v13 = vadd.f32 %v7987_v49, %v4792_v22  ;;  %9493 = vmatpush3.xpose.msk.msra.mxu0 %vm12219_vm5, %v4052_v60  ;;  %vm12233_vm5 = vmmov %vm12232_vm2 }
0x1871   :  { %v9424_v46 = vpop.f32.mrf.mxu1  ;;  %9494 = vmatprep.subr.msk.mxu0 %vm12220_vm4, %v4051_v58  ;;  %vm12234_vm4 = vmmov %vm12232_vm2 }
0x1872   :  { %9449 = vmatprep.mubr.msk.f32.mxu0 %vm12221_vm14, %v4793_v13  ;;  %v4976_v11 = vadd.f32 %v9424_v46, %v8001_v24  ;;  %vm12235_vm14 = vmmov %vm12232_vm2  ;;  %v8053_v46 = vld [vmem:[#allocation2 + $0x390] ss:$0 sm:$0xff] }
0x1873   :  { %v4970_v18 = vpop.f32.mrf.mxu1  ;;  %9450 = vmatmul.mubr.msk.f32.gmra.mxu0 %vm12222_vm11, %v4798_v21  ;;  %vm12236_vm11 = vmmov %vm12232_vm2 }
0x1874   :  { %9495 = vmatpush3.xpose.msk.msra.mxu0 %vm12223_vm9, %v4051_v58  ;;  %9498 = vmatprep.mubr.msk.f32.mxu0 %vm12224_vm12, %v4650_v27  ;;  %v4971_v44 = vadd.f32 %v8001_v24, %v4970_v18  ;;  %vm12237_vm9 = vmmov %vm12216_vm0 }
0x1875   :  { %v9427_v14 = vpop.f32.mrf.mxu1  ;;  %9496 = vmatprep.subr.msk.mxu0 %vm12225_vm1, %v4050_v23  ;;  %vm12238_vm12 = vmmov %vm12216_vm0 }
0x1876   :  { %v4986_v47 = vadd.f32 %v9427_v14, %v8001_v24  ;;  %vm12239_vm1 = vmmov %vm12216_vm0 }
0x1877   :  { %v4980_v17 = vpop.f32.mrf.mxu1 }
0x1878   :  { %9497 = vmatpush3.xpose.msk.msra.mxu0 %vm12226_vm10, %v4050_v23  ;;  %v4981_v4 = vadd.f32 %v8001_v24, %v4980_v17  ;;  %vm12240_vm10 = vmmov %vm12216_vm0 }
0x1879   :  { %v9430_v34 = vpop.f32.mrf.mxu1  ;;  %9524 = vmatprep.subr.mxu0 %v5569_v12 }
0x187a   :  { %v4996_v20 = vadd.f32 %v9430_v34, %v8001_v24 }
0x187b   :  { %9499 = vmatmul.mubr.msk.f32.vlgmr.msra.gmra.mxu0 %vm12227_vm15, %v9373_v32  ;;  %v4990_v31 = vpop.f32.mrf.mxu1  ;;  %vm12241_vm15 = vmmov %vm12216_vm0 }
0x187c   :  { %v4991_v55 = vadd.f32 %v8001_v24, %v4990_v31  ;;  %9501 = vmatprep.mubr.msk.f32.mxu0 %vm12228_vm6, %v4660_v36  ;;  %9452 = vmatprep.subr.mxu1 %v4996_v20  ;;  %vm12242_vm6 = vmmov %vm12216_vm0 }
0x187d   :  { %9453 = vmatpush3.msra.mxu1 %v4996_v20  ;;  %9525 = vmatpush3.msra.mxu0 %v5569_v12 }
0x187e   :  { %9454 = vmatprep.subr.mxu1 %v4991_v55  ;;  %9526 = vmatprep.subr.mxu0 %v5568_v2 }
0x187f   :  { %9502 = vmatmul.mubr.msk.f32.gmra.mxu0 %vm12229_vm7, %v9376_v28  ;;  %9455 = vmatpush3.msra.mxu1 %v4991_v55  ;;  %vm12243_vm7 = vmmov %vm12216_vm0 }
0x1880   :  { %9504 = vmatprep.mubr.msk.f32.mxu0 %vm12230_vm8, %v4670_v53  ;;  %9456 = vmatprep.subr.mxu1 %v4986_v47  ;;  %vm12244_vm8 = vmmov %vm12216_vm0 }
0x1881   :  { %9457 = vmatpush3.msra.mxu1 %v4986_v47  ;;  %9527 = vmatpush3.msra.mxu0 %v5568_v2 }
0x1882   :  { %9458 = vmatprep.subr.mxu1 %v4981_v4  ;;  %9528 = vmatprep.subr.mxu0 %v5567_v61 }
0x1883   :  { %9505 = vmatmul.mubr.msk.f32.gmra.mxu0 %vm12216_vm0, %v11308_v6  ;;  %9459 = vmatpush3.msra.mxu1 %v4981_v4 }
0x1884   :  { %9529 = vmatpush3.msra.mxu0 %v5567_v61  ;;  %9532 = vmatprep.mubr.msk.f32.mxu0 %vm12231_vm13, %v11152_v37  ;;  %vm12245_vm13 = vmmov %vm12216_vm0 }
0x1885   :  { %9460 = vmatprep.subr.mxu1 %v4976_v11  ;;  %9530 = vmatprep.subr.mxu0 %v5566_v15 }
0x1886   :  { %9461 = vmatpush3.msra.mxu1 %v4976_v11  ;;  %9531 = vmatpush3.msra.mxu0 %v5566_v15 }
0x1887   :  { %9462 = vmatprep.subr.mxu1 %v4971_v44  ;;  %9533 = vmatmul.mubr.msk.f32.vlgmr.msra.gmra.mxu0 %vm12232_vm2, %v11155_v0  ;;  %vm12246_vm2 = vmmov %vm12216_vm0 }
0x1888   :  { %9463 = vmatpush3.msra.mxu1 %v4971_v44  ;;  %9535 = vmatprep.mubr.msk.f32.mxu0 %vm12233_vm5, %v11162_v45  ;;  %vm12247_vm5 = vmmov %vm12216_vm0 }
0x188b   :  { %9536 = vmatmul.mubr.msk.f32.gmra.mxu0 %vm12234_vm4, %v11165_v50  ;;  %vm12248_vm4 = vmmov %vm12216_vm0 }
0x188c   :  { %9538 = vmatprep.mubr.msk.f32.mxu0 %vm12235_vm14, %v11171_v56  ;;  %vm12249_vm14 = vmmov %vm12216_vm0 }
0x188f   :  { %9539 = vmatmul.mubr.msk.f32.gmra.mxu0 %vm12236_vm11, %v11173_v43  ;;  %vm12250_vm11 = vmmov %vm12216_vm0 }
0x192b   :  { %v9445_v16 = vpop.f32.mrf.mxu0 }
0x192c   :  { %v5107_v29 = vadd.f32 %v9445_v16, %v10460_v38 }
0x192d   :  { %v5101_v30 = vpop.f32.mrf.mxu0 }
0x192e   :  { %v5102_v19 = vadd.f32 %v5101_v30, %v10473_v33  ;;  %v5133_v40 = vsel %vm934_vm3, %v5107_v29, -inf }
0x192f   :  { %5134 = vmax.xlane.f32.xlu1 %v5133_v40  ;;  %v9448_v42 = vpop.f32.mrf.mxu0 }
0x1930   :  { %v5117_v25 = vadd.f32 %v9448_v42, %v10490_v39  ;;  %v5130_v32 = vsel %vm934_vm3, %v5102_v19, -inf }
0x1931   :  { %v5111_v27 = vpop.f32.mrf.mxu0  ;;  %5131 = vmax.xlane.f32.xlu0 %v5130_v32 }
0x1932   :  { %v5112_v28 = vadd.f32 %v5111_v27, %v10508_v54  ;;  %v5139_v36 = vsel %vm934_vm3, %v5117_v25, -inf }
0x1933   :  { %5140 = vmax.xlane.f32.xlu1 %v5139_v36  ;;  %v9451_v6 = vpop.f32.mrf.mxu0 }
0x1934   :  { %v5127_v53 = vadd.f32 %v9451_v6, %v10516_v59  ;;  %v5136_v52 = vsel %vm934_vm3, %v5112_v28, -inf }
0x1935   :  { %v5121_v49 = vpop.f32.mrf.mxu0  ;;  %5137 = vmax.xlane.f32.xlu0 %v5136_v52 }
0x1936   :  { %v5122_v41 = vadd.f32 %v5121_v49, %v10520_v63  ;;  %v5145_v1 = vsel %vm934_vm3, %v5127_v53, -inf }
0x1937   :  { %5146 = vmax.xlane.f32.xlu1 %v5145_v1 }
0x1938   :  { %v5142_v8 = vsel %vm934_vm3, %v5122_v41, -inf }
0x1939   :  { %5143 = vmax.xlane.f32.xlu0 %v5142_v8 }
0x193b   :  { %v11354_v10 = vpop.f32.mrf.mxu0 }
0x193d   :  { %v11356_v60 = vpop.f32.mrf.mxu0 }
0x193f   :  { %v11358_v48 = vpop.f32.mrf.mxu0 }
0x1941   :  { %v11360_v3 = vpop.f32.mrf.mxu0 }
0x1943   :  { %v11362_v35 = vpop.f32.mrf.mxu0 }
0x1945   :  { %v11364_v62 = vpop.f32.mrf.mxu0 }
0x1947   :  { %v9534_v58 = vpop.f32.mrf.mxu0 }
0x1948   :  { %v5757_v34 = vadd.f32 %v9534_v58, %v8053_v46 }
0x1949   :  { %v5751_v22 = vpop.f32.mrf.mxu0 }
0x194a   :  { %v5752_v20 = vadd.f32 %v8053_v46, %v5751_v22 }
0x194b   :  { %v9537_v13 = vpop.f32.mrf.mxu0 }
0x194c   :  { %v5767_v17 = vadd.f32 %v9537_v13, %v8053_v46 }
0x194d   :  { %v5761_v21 = vpop.f32.mrf.mxu0 }
0x194e   :  { %v5762_v24 = vadd.f32 %v8053_v46, %v5761_v21  ;;  %v4701_v21 = vld [vmem:[#allocation2 + $0x4a0] sm:$0xff] }
0x194f   :  { %v9540_v23 = vpop.f32.mrf.mxu0  ;;  %9473 = vmatprep.subr.msk.mxu1 %vm12248_vm4, %v4701_v21 }
0x1950   :  { %v5777_v18 = vadd.f32 %v9540_v23, %v8053_v46 }
0x1951   :  { %v5771_v14 = vpop.f32.mrf.mxu0 }
0x1952   :  { %v5772_v12 = vadd.f32 %v8053_v46, %v5771_v14  ;;  %9558 = vmatprep.subr.msk.mxu0 %vm12237_vm9, %v5777_v18  ;;  %vm12251_vm9 = vmmov %vm12216_vm0 }
0x1953   :  { %9559 = vmatpush3.xpose.msk.msra.mxu0 %vm12238_vm12, %v5777_v18  ;;  %vm12252_vm12 = vmmov %vm12216_vm0 }
0x1954   :  { %9560 = vmatprep.subr.msk.mxu0 %vm12239_vm1, %v5772_v12  ;;  %vm12253_vm1 = vmmov %vm12216_vm0 }
0x1957   :  { %9561 = vmatpush3.xpose.msk.msra.mxu0 %vm12240_vm10, %v5772_v12  ;;  %vm12254_vm10 = vmmov %vm12216_vm0 }
0x1958   :  { %9562 = vmatprep.subr.msk.mxu0 %vm12241_vm15, %v5767_v17  ;;  %vm12255_vm15 = vmmov %vm12216_vm0 }
0x195b   :  { %9563 = vmatpush3.xpose.msk.msra.mxu0 %vm12242_vm6, %v5767_v17  ;;  %vm12256_vm6 = vmmov %vm12216_vm0 }
0x195c   :  { %9564 = vmatprep.subr.msk.mxu0 %vm12243_vm7, %v5762_v24  ;;  %vm12257_vm7 = vmmov %vm12216_vm0 }
0x195f   :  { %9565 = vmatpush3.xpose.msk.msra.mxu0 %vm12244_vm8, %v5762_v24  ;;  %vm12258_vm8 = vmmov %vm12216_vm0 }
0x1960   :  { %9566 = vmatprep.subr.msk.mxu0 %vm12216_vm0, %v5757_v34 }
0x1963   :  { %9567 = vmatpush3.xpose.msk.msra.mxu0 %vm12245_vm13, %v5757_v34  ;;  %vm12259_vm13 = vmmov %vm12216_vm0 }
0x1964   :  { %9568 = vmatprep.subr.msk.mxu0 %vm12246_vm2, %v5752_v20  ;;  %vm12260_vm2 = vmmov %vm12216_vm0 }
0x1967   :  { %9569 = vmatpush3.xpose.msk.msra.mxu0 %vm12247_vm5, %v5752_v20  ;;  %vm12261_vm5 = vcmask 261120  }
0x1968   :  { %vm12262_vm4 = vmmov %vm12261_vm5 }
0x19b8   :  { %v5135_v31 = vpop.xlane.xlu1 %5134 }
0x19b9   :  { %v5149_v2 = vsub.f32 %v5107_v29, %v5135_v31 }
0x19ba   :  { %v5132_v55 = vpop.xlane.xlu0 %5131 }
0x19bb   :  { %v5156_v47 = vmul.f32 1.442695, %v5149_v2  ;;  %v5148_v61 = vsub.f32 %v5102_v19, %v5132_v55  ;;  %v4700_v55 = vld [vmem:[#allocation2 + $0x498] sm:$0xff] }
0x19bc   :  { %v5141_v4 = vpop.xlane.xlu1 %5140 }
0x19bd   :  { %9983 = vpow2.f32 %v5156_v47  ;;  %v5154_v15 = vmul.f32 1.442695, %v5148_v61  ;;  %v5151_v11 = vsub.f32 %v5117_v25, %v5141_v4 }
0x19be   :  { %v5138_v44 = vpop.xlane.xlu0 %5137 }
0x19bf   :  { %9985 = vpow2.f32 %v5154_v15  ;;  %v5160_v16 = vmul.f32 1.442695, %v5151_v11  ;;  %v5150_v30 = vsub.f32 %v5112_v28, %v5138_v44  ;;  %v4699_v11 = vld [vmem:[#allocation2 + $0x490] sm:$0xff] }
0x19c0   :  { %v5147_v40 = vpop.xlane.xlu1 %5146 }
0x19c1   :  { %9987 = vpow2.f32 %v5160_v16  ;;  %v5158_v42 = vmul.f32 1.442695, %v5150_v30  ;;  %v5153_v32 = vsub.f32 %v5127_v53, %v5147_v40  ;;  %v4698_v40 = vld [vmem:[#allocation2 + $0x488] sm:$0xff] }
0x19c2   :  { %v5144_v27 = vpop.xlane.xlu0 %5143 }
0x19c3   :  { %9989 = vpow2.f32 %v5158_v42  ;;  %v5164_v36 = vmul.f32 1.442695, %v5153_v32  ;;  %v5152_v6 = vsub.f32 %v5122_v41, %v5144_v27  ;;  %v5563_v42 = vld [vmem:[#allocation2 + $0x2e8] sm:$0xff] }
0x19c5   :  { %9991 = vpow2.f32 %v5164_v36  ;;  %v5162_v29 = vmul.f32 1.442695, %v5152_v6  ;;  %v5562_v36 = vld [vmem:[#allocation2 + $0x2e0] sm:$0xff] }
0x19c7   :  { %9993 = vpow2.f32 %v5162_v29  ;;  %v5561_v29 = vld [vmem:[#allocation2 + $0x2d8] sm:$0xff] }
0x19ca   :  { %v9984_v19 = vpop.eup %9983 }
0x19cb   :  { %v5169_v52 = vsel %vm934_vm3, %v9984_v19, 0.0 }
0x19cc   :  { %v9986_v49 = vpop.eup %9985  ;;  %5170 = vadd.xlane.f32.xlu1 %v5169_v52  ;;  %v5560_v52 = vld [vmem:[#allocation2 + $0x2d0] sm:$0xff] }
0x19cd   :  { %v5166_v25 = vsel %vm934_vm3, %v9986_v49, 0.0 }
0x19ce   :  { %v9988_v1 = vpop.eup %9987  ;;  %5167 = vadd.xlane.f32.xlu0 %v5166_v25  ;;  %v5575_v25 = vld [vmem:[#allocation2 + $0x428] sm:$0xff] }
0x19cf   :  { %v5175_v28 = vsel %vm934_vm3, %v9988_v1, 0.0 }
0x19d0   :  { %v9990_v8 = vpop.eup %9989  ;;  %5176 = vadd.xlane.f32.xlu1 %v5175_v28  ;;  %v5574_v28 = vld [vmem:[#allocation2 + $0x420] sm:$0xff] }
0x19d1   :  { %v5172_v53 = vsel %vm934_vm3, %v9990_v8, 0.0 }
0x19d2   :  { %v9992_v58 = vpop.eup %9991  ;;  %5173 = vadd.xlane.f32.xlu0 %v5172_v53  ;;  %v5572_v53 = vld [vmem:[#allocation2 + $0x410] sm:$0xff] }
0x19d3   :  { %v5181_v41 = vsel %vm934_vm3, %v9992_v58, 0.0 }
0x19d4   :  { %v9994_v22 = vpop.eup %9993  ;;  %5182 = vadd.xlane.f32.xlu1 %v5181_v41 }
0x19d5   :  { %v5178_v13 = vsel %vm934_vm3, %v9994_v22, 0.0 }
0x19d6   :  { %5179 = vadd.xlane.f32.xlu0 %v5178_v13 }
0x1a55   :  { %v5171_v46 = vpop.xlane.xlu1 %5170 }
0x1a56   :  { %9995 = vrcp.f32 %v5171_v46 }
0x1a57   :  { %v5168_v23 = vpop.xlane.xlu0 %5167 }
0x1a58   :  { %9997 = vrcp.f32 %v5168_v23 }
0x1a59   :  { %v5177_v18 = vpop.xlane.xlu1 %5176 }
0x1a5a   :  { %9999 = vrcp.f32 %v5177_v18 }
0x1a5b   :  { %v5174_v14 = vpop.xlane.xlu0 %5173 }
0x1a5c   :  { %10001 = vrcp.f32 %v5174_v14  ;;  %v8046_v14 = vld [vmem:[#allocation2 + $0x2f0] ss:$0 sm:$0xff] }
0x1a5d   :  { %v5183_v12 = vpop.xlane.xlu1 %5182 }
0x1a5e   :  { %10003 = vrcp.f32 %v5183_v12 }
0x1a5f   :  { %v5180_v17 = vpop.xlane.xlu0 %5179 }
0x1a60   :  { %10005 = vrcp.f32 %v5180_v17 }
0x1a63   :  { %v9996_v24 = vpop.eup %9995 }
0x1a64   :  { %v5191_v31 = vmul.f32 %v9996_v24, %v9984_v19 }
0x1a65   :  { %v9998_v34 = vpop.eup %9997 }
0x1a66   :  { %v5190_v20 = vmul.f32 %v9998_v34, %v9986_v49 }
0x1a67   :  { %v10000_v2 = vpop.eup %9999 }
0x1a68   :  { %9464 = vmatprep.mubr.msk.f32.mxu1 %vm934_vm3, %v5190_v20  ;;  %v5193_v4 = vmul.f32 %v10000_v2, %v9988_v1  ;;  %v6323_v20 = vld [vmem:[#allocation2 + $0x308] sm:$0xff] }
0x1a69   :  { %v10002_v47 = vpop.eup %10001  ;;  %9465 = vmatmul.mubr.msk.f32.vlgmr.msra.gmra.mxu1 %vm934_vm3, %v5191_v31 }
0x1a6a   :  { %v5192_v61 = vmul.f32 %v10002_v47, %v9990_v8  ;;  %9474 = vmatpush3.xpose.msk.msra.mxu1 %vm12249_vm14, %v4701_v21  ;;  %vm12263_vm14 = vmmov %vm12262_vm4  ;;  %v5573_v8 = vld [vmem:[#allocation2 + $0x418] sm:$0xff] }
0x1a6b   :  { %9475 = vmatprep.subr.msk.mxu1 %vm12250_vm11, %v4700_v55  ;;  %v10004_v15 = vpop.eup %10003  ;;  %vm12264_vm11 = vmmov %vm12262_vm4 }
0x1a6c   :  { %9467 = vmatprep.mubr.msk.f32.mxu1 %vm934_vm3, %v5192_v61  ;;  %v5195_v30 = vmul.f32 %v10004_v15, %v9992_v58  ;;  %v6324_v58 = vld [vmem:[#allocation2 + $0x310] sm:$0xff] }
0x1a6d   :  { %v10006_v44 = vpop.eup %10005  ;;  %9468 = vmatmul.mubr.msk.f32.gmra.mxu1 %vm934_vm3, %v5193_v4  ;;  %9617 = vmatprep.subr.mxu0 %v6324_v58  ;;  %v6321_v4 = vld [vmem:[#allocation2 + $0x2f8] sm:$0xff] }
0x1a6e   :  { %v5194_v16 = vmul.f32 %v10006_v44, %v9994_v22  ;;  %9476 = vmatpush3.xpose.msk.msra.mxu1 %vm12251_vm9, %v4700_v55  ;;  %vm12265_vm9 = vmmov %vm12262_vm4  ;;  %v6322_v55 = vld [vmem:[#allocation2 + $0x300] sm:$0xff]  ;;  %v6330_v44 = vld [vmem:[#allocation2 + $0x3b0] sm:$0xff] }
0x1a6f   :  { %9477 = vmatprep.subr.msk.mxu1 %vm12252_vm12, %v4699_v11  ;;  %vm12266_vm12 = vmmov %vm12262_vm4 }
0x1a70   :  { %9470 = vmatprep.mubr.msk.f32.mxu1 %vm934_vm3, %v5194_v16 }
0x1a71   :  { %9471 = vmatmul.mubr.msk.f32.gmra.mxu1 %vm934_vm3, %v5195_v30 }
0x1a72   :  { %9478 = vmatpush3.xpose.msk.msra.mxu1 %vm12253_vm1, %v4699_v11  ;;  %vm12267_vm1 = vmmov %vm12262_vm4 }
0x1a73   :  { %9479 = vmatprep.subr.msk.mxu1 %vm12254_vm10, %v4698_v40  ;;  %vm12268_vm10 = vmmov %vm12267_vm1 }
0x1a76   :  { %9480 = vmatpush3.xpose.msk.msra.mxu1 %vm12255_vm15, %v4698_v40  ;;  %vm12269_vm15 = vmmov %vm12267_vm1 }
0x1a77   :  { %9507 = vmatprep.subr.mxu1 %v5563_v42 }
0x1b29   :  { %v9466_v32 = vpop.f32.mrf.mxu1 }
0x1b2b   :  { %v5280_v27 = vpop.f32.mrf.mxu1 }
0x1b2c   :  { %9481 = vmatprep.mubr.msk.f32.mxu1 %vm12256_vm6, %v5280_v27  ;;  %vm12270_vm6 = vmmov %vm12267_vm1 }
0x1b2d   :  { %v9469_v6 = vpop.f32.mrf.mxu1  ;;  %9482 = vmatmul.mubr.msk.f32.vlgmr.msra.gmra.mxu1 %vm12257_vm7, %v9466_v32  ;;  %vm12271_vm7 = vmmov %vm12267_vm1  ;;  %v6329_v32 = vld [vmem:[#allocation2 + $0x3a8] sm:$0xff] }
0x1b2e   :  { %9508 = vmatpush3.msra.mxu1 %v5563_v42 }
0x1b2f   :  { %v5290_v19 = vpop.f32.mrf.mxu1  ;;  %9509 = vmatprep.subr.mxu1 %v5562_v36 }
0x1b30   :  { %9484 = vmatprep.mubr.msk.f32.mxu1 %vm12258_vm8, %v5290_v19  ;;  %9510 = vmatpush3.msra.mxu1 %v5562_v36  ;;  %vm12272_vm8 = vmmov %vm12267_vm1  ;;  %v6328_v36 = vld [vmem:[#allocation2 + $0x3a0] sm:$0xff] }
0x1b31   :  { %v9472_v49 = vpop.f32.mrf.mxu1  ;;  %9485 = vmatmul.mubr.msk.f32.gmra.mxu1 %vm12216_vm0, %v9469_v6  ;;  %9511 = vmatprep.subr.mxu1 %v5561_v29  ;;  %v8060_v6 = vld [vmem:[#allocation2 + $0x430] ss:$0 sm:$0xff] }
0x1b32   :  { %9512 = vmatpush3.msra.mxu1 %v5561_v29 }
0x1b33   :  { %v5300_v1 = vpop.f32.mrf.mxu1  ;;  %9513 = vmatprep.subr.mxu1 %v5560_v52 }
0x1b34   :  { %9487 = vmatprep.mubr.msk.f32.mxu1 %vm12259_vm13, %v5300_v1  ;;  %9514 = vmatpush3.msra.mxu1 %v5560_v52  ;;  %vm12273_vm13 = vmmov %vm12216_vm0 }
0x1b35   :  { %9488 = vmatmul.mubr.msk.f32.gmra.mxu1 %vm12260_vm2, %v9472_v49  ;;  %9541 = vmatprep.subr.mxu1 %v5575_v25  ;;  %vm12274_vm2 = vmmov %vm12216_vm0  ;;  %v6327_v49 = vld [vmem:[#allocation2 + $0x398] sm:$0xff] }
0x1b36   :  { %9515 = vmatprep.mubr.msk.f32.mxu1 %vm12261_vm5, %v11152_v37  ;;  %vm12275_vm5 = vmmov %vm12216_vm0 }
0x1b39   :  { %9516 = vmatmul.mubr.msk.f32.vlgmr.msra.gmra.mxu1 %vm12262_vm4, %v11155_v0  ;;  %vm12276_vm4 = vmmov %vm12216_vm0 }
0x1b3a   :  { %9518 = vmatprep.mubr.msk.f32.mxu1 %vm12263_vm14, %v11162_v45  ;;  %9542 = vmatpush3.msra.mxu1 %v5575_v25  ;;  %vm12277_vm14 = vmmov %vm12216_vm0 }
0x1b3b   :  { %9543 = vmatprep.subr.mxu1 %v5574_v28 }
0x1b3c   :  { %9544 = vmatpush3.msra.mxu1 %v5574_v28 }
0x1b3d   :  { %9519 = vmatmul.mubr.msk.f32.gmra.mxu1 %vm12264_vm11, %v11165_v50  ;;  %9545 = vmatprep.subr.mxu1 %v5573_v8  ;;  %vm12278_vm11 = vmmov %vm12267_vm1 }
0x1b3e   :  { %9521 = vmatprep.mubr.msk.f32.mxu1 %vm12265_vm9, %v11171_v56  ;;  %9546 = vmatpush3.msra.mxu1 %v5573_v8  ;;  %vm12279_vm9 = vmmov %vm12267_vm1 }
0x1b3f   :  { %9547 = vmatprep.subr.mxu1 %v5572_v53 }
0x1b40   :  { %9548 = vmatpush3.msra.mxu1 %v5572_v53 }
0x1b41   :  { %9522 = vmatmul.mubr.msk.f32.gmra.mxu1 %vm12266_vm12, %v11173_v43  ;;  %vm12280_vm12 = vmmov %vm12267_vm1 }
0x1b42   :  { %9549 = vmatprep.mubr.msk.f32.mxu1 %vm12267_vm1, %v11152_v37 }
0x1b45   :  { %9550 = vmatmul.mubr.msk.f32.vlgmr.msra.gmra.mxu1 %vm12268_vm10, %v11155_v0  ;;  %vm12281_vm10 = vmmov %vm12267_vm1 }
0x1b46   :  { %9552 = vmatprep.mubr.msk.f32.mxu1 %vm12269_vm15, %v11162_v45  ;;  %vm12282_vm15 = vmmov %vm12267_vm1 }
0x1b49   :  { %9553 = vmatmul.mubr.msk.f32.gmra.mxu1 %vm12270_vm6, %v11165_v50  ;;  %vm12283_vm6 = vmmov %vm12267_vm1 }
0x1b4a   :  { %9555 = vmatprep.mubr.msk.f32.mxu1 %vm12271_vm7, %v11171_v56  ;;  %vm12284_vm7 = vmmov %vm12267_vm1 }
0x1b4d   :  { %9556 = vmatmul.mubr.msk.f32.gmra.mxu1 %vm12272_vm8, %v11173_v43  ;;  %vm12285_vm8 = vmmov %vm12267_vm1 }
0x1bed   :  { %v11428_v41 = vpop.f32.mrf.mxu1 }
0x1bef   :  { %v11430_v22 = vpop.f32.mrf.mxu1 }
0x1bf1   :  { %v11432_v13 = vpop.f32.mrf.mxu1 }
0x1bf3   :  { %v11434_v21 = vpop.f32.mrf.mxu1 }
0x1bf5   :  { %v11436_v46 = vpop.f32.mrf.mxu1 }
0x1bf7   :  { %v11438_v23 = vpop.f32.mrf.mxu1 }
0x1bf9   :  { %v9517_v18 = vpop.f32.mrf.mxu1 }
0x1bfa   :  { %v5658_v24 = vadd.f32 %v9517_v18, %v8046_v14 }
0x1bfb   :  { %v5652_v12 = vpop.f32.mrf.mxu1 }
0x1bfc   :  { %v5653_v17 = vadd.f32 %v8046_v14, %v5652_v12 }
0x1bfd   :  { %v9520_v34 = vpop.f32.mrf.mxu1 }
0x1bfe   :  { %9570 = vmatprep.mubr.msk.f32.mxu0 %vm12216_vm0, %v5653_v17  ;;  %v5668_v47 = vadd.f32 %v9520_v34, %v8046_v14  ;;  %vm12286_vm0 = vmmov %vm12267_vm1 }
0x1bff   :  { %v5662_v31 = vpop.f32.mrf.mxu1  ;;  %9571 = vmatmul.mubr.msk.f32.vlgmr.msra.gmra.mxu0 %vm12273_vm13, %v5658_v24  ;;  %vm12287_vm13 = vmmov %vm12286_vm0 }
0x1c00   :  { %v5663_v2 = vadd.f32 %v8046_v14, %v5662_v31  ;;  %9618 = vmatpush3.msra.mxu0 %v6324_v58 }
0x1c01   :  { %v9523_v61 = vpop.f32.mrf.mxu1  ;;  %9619 = vmatprep.subr.mxu0 %v6323_v20 }
0x1c02   :  { %9573 = vmatprep.mubr.msk.f32.mxu0 %vm12274_vm2, %v5663_v2  ;;  %9620 = vmatpush3.msra.mxu0 %v6323_v20  ;;  %v5678_v16 = vadd.f32 %v9523_v61, %v8046_v14  ;;  %vm12288_vm2 = vmmov %vm12286_vm0 }
0x1c03   :  { %v5672_v15 = vpop.f32.mrf.mxu1  ;;  %9574 = vmatmul.mubr.msk.f32.gmra.mxu0 %vm12275_vm5, %v5668_v47  ;;  %9621 = vmatprep.subr.mxu0 %v6322_v55  ;;  %vm12289_vm5 = vmmov %vm12276_vm4 }
0x1c04   :  { %v5673_v11 = vadd.f32 %v8046_v14, %v5672_v15  ;;  %9622 = vmatpush3.msra.mxu0 %v6322_v55 }
0x1c05   :  { %v9551_v30 = vpop.f32.mrf.mxu1  ;;  %9623 = vmatprep.subr.mxu0 %v6321_v4 }
0x1c06   :  { %9576 = vmatprep.mubr.msk.f32.mxu0 %vm12276_vm4, %v5673_v11  ;;  %9624 = vmatpush3.msra.mxu0 %v6321_v4  ;;  %v5856_v8 = vadd.f32 %v9551_v30, %v8060_v6 }
0x1c07   :  { %v5850_v40 = vpop.f32.mrf.mxu1  ;;  %9577 = vmatmul.mubr.msk.f32.gmra.mxu0 %vm12277_vm14, %v5678_v16  ;;  %9634 = vmatprep.subr.mxu0 %v6330_v44  ;;  %vm12290_vm14 = vmmov %vm12276_vm4 }
0x1c08   :  { %9625 = vmatprep.mubr.msk.f32.mxu0 %vm12278_vm11, %v11152_v37  ;;  %v5851_v53 = vadd.f32 %v8060_v6, %v5850_v40  ;;  %v8095_v40 = vld [vmem:[#allocation2 + $0x318] ss:$0 sm:$0xff]  ;;  %vm12291_vm11 = vmmov %vm12276_vm4 }
0x1c09   :  { %v9554_v42 = vpop.f32.mrf.mxu1 }
0x1c0a   :  { %v5866_v1 = vadd.f32 %v9554_v42, %v8060_v6 }
0x1c0b   :  { %v5860_v27 = vpop.f32.mrf.mxu1  ;;  %9626 = vmatmul.mubr.msk.f32.vlgmr.msra.gmra.mxu0 %vm12279_vm9, %v11155_v0  ;;  %vm12292_vm9 = vmmov %vm12276_vm4 }
0x1c0c   :  { %9628 = vmatprep.mubr.msk.f32.mxu0 %vm12280_vm12, %v11162_v45  ;;  %9635 = vmatpush3.msra.mxu0 %v6330_v44  ;;  %v5861_v28 = vadd.f32 %v8060_v6, %v5860_v27  ;;  %vm12293_vm12 = vmmov %vm12276_vm4 }
0x1c0d   :  { %v9557_v29 = vpop.f32.mrf.mxu1  ;;  %9636 = vmatprep.subr.mxu0 %v6329_v32 }
0x1c0e   :  { %v5876_v19 = vadd.f32 %v9557_v29, %v8060_v6  ;;  %9637 = vmatpush3.msra.mxu0 %v6329_v32 }
0x1c0f   :  { %v5870_v52 = vpop.f32.mrf.mxu1  ;;  %9629 = vmatmul.mubr.msk.f32.gmra.mxu0 %vm12267_vm1, %v11165_v50  ;;  %9638 = vmatprep.subr.mxu0 %v6328_v36  ;;  %vm12294_vm1 = vmmov %vm12276_vm4 }
0x1c10   :  { %v5871_v25 = vadd.f32 %v8060_v6, %v5870_v52  ;;  %9579 = vmatprep.subr.mxu1 %v5876_v19  ;;  %9631 = vmatprep.mubr.msk.f32.mxu0 %vm12281_vm10, %v11171_v56  ;;  %vm12295_vm10 = vmmov %vm12294_vm1 }
0x1c11   :  { %9580 = vmatpush3.msra.mxu1 %v5876_v19  ;;  %9639 = vmatpush3.msra.mxu0 %v6328_v36 }
0x1c12   :  { %9581 = vmatprep.subr.mxu1 %v5871_v25  ;;  %9640 = vmatprep.subr.mxu0 %v6327_v49 }
0x1c13   :  { %9582 = vmatpush3.msra.mxu1 %v5871_v25  ;;  %9632 = vmatmul.mubr.msk.f32.gmra.mxu0 %vm12282_vm15, %v11173_v43  ;;  %vm12296_vm15 = vmmov %vm12294_vm1 }
0x1c14   :  { %9583 = vmatprep.subr.mxu1 %v5866_v1  ;;  %9642 = vmatprep.mubr.msk.f32.mxu0 %vm12283_vm6, %v11152_v37  ;;  %vm12297_vm6 = vmmov %vm12294_vm1 }
0x1c15   :  { %9584 = vmatpush3.msra.mxu1 %v5866_v1  ;;  %9641 = vmatpush3.msra.mxu0 %v6327_v49  ;;  %v8102_v1 = vld [vmem:[#allocation2 + $0x3b8] ss:$0 sm:$0xff] }
0x1c16   :  { %9585 = vmatprep.subr.mxu1 %v5861_v28 }
0x1c17   :  { %9586 = vmatpush3.msra.mxu1 %v5861_v28  ;;  %9643 = vmatmul.mubr.msk.f32.vlgmr.msra.gmra.mxu0 %vm12284_vm7, %v11155_v0  ;;  %vm12298_vm7 = vmmov %vm12294_vm1 }
0x1c18   :  { %9587 = vmatprep.subr.mxu1 %v5856_v8  ;;  %9645 = vmatprep.mubr.msk.f32.mxu0 %vm12285_vm8, %v11162_v45  ;;  %vm12299_vm8 = vmmov %vm12294_vm1 }
0x1c19   :  { %9588 = vmatpush3.msra.mxu1 %v5856_v8 }
0x1c1a   :  { %9589 = vmatprep.subr.mxu1 %v5851_v53 }
0x1c1b   :  { %9590 = vmatpush3.msra.mxu1 %v5851_v53  ;;  %9646 = vmatmul.mubr.msk.f32.gmra.mxu0 %vm12286_vm0, %v11165_v50  ;;  %vm12300_vm0 = vmmov %vm12294_vm1 }
0x1c1c   :  { %9648 = vmatprep.mubr.msk.f32.mxu0 %vm12287_vm13, %v11171_v56  ;;  %vm12301_vm13 = vmmov %vm12300_vm0 }
0x1c1f   :  { %9649 = vmatmul.mubr.msk.f32.gmra.mxu0 %vm12288_vm2, %v11173_v43  ;;  %vm12302_vm2 = vmmov %vm12300_vm0 }
0x1cbf   :  { %v9572_v58 = vpop.f32.mrf.mxu0 }
0x1cc0   :  { %v11471_v18 = vadd.f32 %v9572_v58, %v10460_v38 }
0x1cc1   :  { %v5981_v14 = vpop.f32.mrf.mxu0 }
0x1cc2   :  { %v11474_v12 = vadd.f32 %v5981_v14, %v10473_v33  ;;  %v6013_v17 = vsel %vm934_vm3, %v11471_v18, -inf }
0x1cc3   :  { %6014 = vmax.xlane.f32.xlu1 %v6013_v17  ;;  %v9575_v24 = vpop.f32.mrf.mxu0 }
0x1cc4   :  { %v11479_v34 = vadd.f32 %v9575_v24, %v10490_v39  ;;  %v6010_v20 = vsel %vm934_vm3, %v11474_v12, -inf }
0x1cc5   :  { %v5991_v31 = vpop.f32.mrf.mxu0  ;;  %6011 = vmax.xlane.f32.xlu0 %v6010_v20 }
0x1cc6   :  { %v11484_v2 = vadd.f32 %v5991_v31, %v10508_v54  ;;  %v6019_v55 = vsel %vm934_vm3, %v11479_v34, -inf }
0x1cc7   :  { %6020 = vmax.xlane.f32.xlu1 %v6019_v55  ;;  %v9578_v47 = vpop.f32.mrf.mxu0 }
0x1cc8   :  { %v11489_v61 = vadd.f32 %v9578_v47, %v10516_v59  ;;  %v6016_v4 = vsel %vm934_vm3, %v11484_v2, -inf }
0x1cc9   :  { %v6001_v15 = vpop.f32.mrf.mxu0  ;;  %6017 = vmax.xlane.f32.xlu0 %v6016_v4 }
0x1cca   :  { %v11494_v11 = vadd.f32 %v6001_v15, %v10520_v63  ;;  %v6025_v44 = vsel %vm934_vm3, %v11489_v61, -inf }
0x1ccb   :  { %6026 = vmax.xlane.f32.xlu1 %v6025_v44  ;;  %v9627_v16 = vpop.f32.mrf.mxu0 }
0x1ccc   :  { %v6022_v30 = vsel %vm934_vm3, %v11494_v11, -inf  ;;  %v6419_v31 = vadd.f32 %v9627_v16, %v8095_v40 }
0x1ccd   :  { %v6413_v42 = vpop.f32.mrf.mxu0  ;;  %6023 = vmax.xlane.f32.xlu0 %v6022_v30 }
0x1cce   :  { %v6414_v32 = vadd.f32 %v8095_v40, %v6413_v42 }
0x1ccf   :  { %v9630_v27 = vpop.f32.mrf.mxu0 }
0x1cd0   :  { %9680 = vmatprep.mubr.msk.f32.mxu0 %vm12289_vm5, %v6414_v32  ;;  %v6429_v47 = vadd.f32 %v9630_v27, %v8095_v40  ;;  %vm12303_vm5 = vmmov %vm12300_vm0 }
0x1cd1   :  { %v6423_v36 = vpop.f32.mrf.mxu0 }
0x1cd2   :  { %v6424_v55 = vadd.f32 %v8095_v40, %v6423_v36 }
0x1cd3   :  { %v9633_v6 = vpop.f32.mrf.mxu0 }
0x1cd4   :  { %v6439_v15 = vadd.f32 %v9633_v6, %v8095_v40 }
0x1cd5   :  { %v6433_v29 = vpop.f32.mrf.mxu0 }
0x1cd6   :  { %v6434_v4 = vadd.f32 %v8095_v40, %v6433_v29 }
0x1cd7   :  { %v9644_v19 = vpop.f32.mrf.mxu0 }
0x1cd8   :  { %v6518_v24 = vadd.f32 %v9644_v19, %v8102_v1 }
0x1cd9   :  { %v6512_v52 = vpop.f32.mrf.mxu0 }
0x1cda   :  { %v6513_v20 = vadd.f32 %v8102_v1, %v6512_v52 }
0x1cdb   :  { %v9647_v49 = vpop.f32.mrf.mxu0 }
0x1cdc   :  { %v6528_v14 = vadd.f32 %v9647_v49, %v8102_v1 }
0x1cdd   :  { %v6522_v25 = vpop.f32.mrf.mxu0 }
0x1cde   :  { %v6523_v17 = vadd.f32 %v8102_v1, %v6522_v25 }
0x1cdf   :  { %v9650_v28 = vpop.f32.mrf.mxu0 }
0x1ce0   :  { %v6538_v8 = vadd.f32 %v9650_v28, %v8102_v1 }
0x1ce1   :  { %v6532_v53 = vpop.f32.mrf.mxu0 }
0x1ce2   :  { %v6533_v58 = vadd.f32 %v8102_v1, %v6532_v53  ;;  %9668 = vmatprep.subr.msk.mxu0 %vm12276_vm4, %v6538_v8  ;;  %vm12304_vm4 = vmmov %vm12300_vm0 }
0x1ce3   :  { %9669 = vmatpush3.xpose.msk.msra.mxu0 %vm12290_vm14, %v6538_v8  ;;  %vm12305_vm14 = vmmov %vm12300_vm0 }
0x1ce4   :  { %9670 = vmatprep.subr.msk.mxu0 %vm12291_vm11, %v6533_v58  ;;  %vm12306_vm11 = vmmov %vm12300_vm0 }
0x1ce7   :  { %9671 = vmatpush3.xpose.msk.msra.mxu0 %vm12292_vm9, %v6533_v58  ;;  %vm12307_vm9 = vmmov %vm12300_vm0 }
0x1ce8   :  { %9672 = vmatprep.subr.msk.mxu0 %vm12293_vm12, %v6528_v14  ;;  %vm12308_vm12 = vmmov %vm12300_vm0 }
0x1ceb   :  { %9673 = vmatpush3.xpose.msk.msra.mxu0 %vm12294_vm1, %v6528_v14  ;;  %vm12309_vm1 = vmmov %vm12300_vm0 }
0x1cec   :  { %9674 = vmatprep.subr.msk.mxu0 %vm12295_vm10, %v6523_v17  ;;  %vm12310_vm10 = vmmov %vm12300_vm0 }
0x1cef   :  { %9675 = vmatpush3.xpose.msk.msra.mxu0 %vm12296_vm15, %v6523_v17  ;;  %vm12311_vm15 = vmmov %vm12300_vm0 }
0x1cf0   :  { %9676 = vmatprep.subr.msk.mxu0 %vm12297_vm6, %v6518_v24  ;;  %vm12312_vm6 = vmmov %vm12300_vm0 }
0x1cf3   :  { %9677 = vmatpush3.xpose.msk.msra.mxu0 %vm12298_vm7, %v6518_v24  ;;  %vm12313_vm7 = vmmov %vm12300_vm0 }
0x1cf4   :  { %9678 = vmatprep.subr.msk.mxu0 %vm12299_vm8, %v6513_v20  ;;  %vm12314_vm8 = vmmov %vm12300_vm0 }
0x1cf7   :  { %9679 = vmatpush3.xpose.msk.msra.mxu0 %vm12300_vm0, %v6513_v20 }
0x1cfa   :  { %9681 = vmatmul.mubr.msk.f32.vlgmr.msra.gmra.mxu0 %vm12301_vm13, %v6419_v31  ;;  %vm12315_vm13 = vmmov %vm12300_vm0 }
0x1cfb   :  { %9683 = vmatprep.mubr.msk.f32.mxu0 %vm12302_vm2, %v6424_v55  ;;  %vm12316_vm2 = vmmov %vm12300_vm0 }
0x1cfe   :  { %9684 = vmatmul.mubr.msk.f32.gmra.mxu0 %vm12303_vm5, %v6429_v47  ;;  %vm12317_vm5 = vmmov %vm12300_vm0 }
0x1cff   :  { %9686 = vmatprep.mubr.msk.f32.mxu0 %vm12304_vm4, %v6434_v4  ;;  %vm12318_vm4 = vmmov %vm12300_vm0 }
0x1d02   :  { %9687 = vmatmul.mubr.msk.f32.gmra.mxu0 %vm12305_vm14, %v6439_v15  ;;  %vm12319_vm14 = vcmask 261120  }
0x1d4c   :  { %v6015_v44 = vpop.xlane.xlu1 %6014 }
0x1d4d   :  { %v6029_v30 = vsub.f32 %v11471_v18, %v6015_v44 }
0x1d4e   :  { %v6012_v42 = vpop.xlane.xlu0 %6011 }
0x1d4f   :  { %v6036_v32 = vmul.f32 1.442695, %v6029_v30  ;;  %v6028_v16 = vsub.f32 %v11474_v12, %v6012_v42 }
0x1d50   :  { %v6021_v36 = vpop.xlane.xlu1 %6020 }
0x1d51   :  { %10007 = vpow2.f32 %v6036_v32  ;;  %v6034_v19 = vmul.f32 1.442695, %v6028_v16  ;;  %v6031_v27 = vsub.f32 %v11479_v34, %v6021_v36 }
0x1d52   :  { %v6018_v29 = vpop.xlane.xlu0 %6017 }
0x1d53   :  { %10009 = vpow2.f32 %v6034_v19  ;;  %v6040_v52 = vmul.f32 1.442695, %v6031_v27  ;;  %v6030_v49 = vsub.f32 %v11484_v2, %v6018_v29 }
0x1d54   :  { %v6027_v40 = vpop.xlane.xlu1 %6026 }
0x1d55   :  { %10011 = vpow2.f32 %v6040_v52  ;;  %v6038_v6 = vmul.f32 1.442695, %v6030_v49  ;;  %v6033_v25 = vsub.f32 %v11489_v61, %v6027_v40  ;;  %v5581_v49 = vld [vmem:[#allocation2 + $0x4c8] sm:$0xff] }
0x1d56   :  { %v6024_v18 = vpop.xlane.xlu0 %6023  ;;  %9600 = vmatprep.subr.msk.mxu1 %vm12306_vm11, %v5581_v49  ;;  %vm12320_vm11 = vmmov %vm12319_vm14 }
0x1d57   :  { %10013 = vpow2.f32 %v6038_v6  ;;  %v6044_v1 = vmul.f32 1.442695, %v6033_v25  ;;  %v6032_v12 = vsub.f32 %v11494_v11, %v6024_v18 }
0x1d59   :  { %10015 = vpow2.f32 %v6044_v1  ;;  %v6042_v28 = vmul.f32 1.442695, %v6032_v12 }
0x1d5b   :  { %10017 = vpow2.f32 %v6042_v28 }
0x1d5e   :  { %v10008_v8 = vpop.eup %10007 }
0x1d5f   :  { %v6049_v34 = vsel %vm934_vm3, %v10008_v8, 0.0 }
0x1d60   :  { %v10010_v53 = vpop.eup %10009  ;;  %6050 = vadd.xlane.f32.xlu1 %v6049_v34 }
0x1d61   :  { %v6046_v2 = vsel %vm934_vm3, %v10010_v53, 0.0 }
0x1d62   :  { %v10012_v58 = vpop.eup %10011  ;;  %6047 = vadd.xlane.f32.xlu0 %v6046_v2 }
0x1d63   :  { %v6055_v14 = vsel %vm934_vm3, %v10012_v58, 0.0 }
0x1d64   :  { %v10014_v61 = vpop.eup %10013  ;;  %6056 = vadd.xlane.f32.xlu1 %v6055_v14  ;;  %v5580_v14 = vld [vmem:[#allocation2 + $0x4c0] sm:$0xff] }
0x1d65   :  { %v6052_v17 = vsel %vm934_vm3, %v10014_v61, 0.0 }
0x1d66   :  { %v11528_v24 = vpop.eup %10015  ;;  %6053 = vadd.xlane.f32.xlu0 %v6052_v17 }
0x1d67   :  { %v6061_v11 = vsel %vm934_vm3, %v11528_v24, 0.0 }
0x1d68   :  { %v10018_v20 = vpop.eup %10017  ;;  %6062 = vadd.xlane.f32.xlu1 %v6061_v11 }
0x1d69   :  { %v6058_v31 = vsel %vm934_vm3, %v10018_v20, 0.0 }
0x1d6a   :  { %6059 = vadd.xlane.f32.xlu0 %v6058_v31 }
0x1dba   :  { %v9682_v55 = vpop.f32.mrf.mxu0 }
0x1dbb   :  { %v11534_v47 = vadd.f32 %v9682_v55, %v10460_v38 }
0x1dbc   :  { %v6742_v4 = vpop.f32.mrf.mxu0 }
0x1dbd   :  { %v11537_v15 = vadd.f32 %v6742_v4, %v10473_v33  ;;  %v6774_v44 = vsel %vm934_vm3, %v11534_v47, -inf  ;;  %v5579_v4 = vld [vmem:[#allocation2 + $0x4b8] sm:$0xff] }
0x1dbe   :  { %6775 = vmax.xlane.f32.xlu1 %v6774_v44  ;;  %v9685_v30 = vpop.f32.mrf.mxu0 }
0x1dbf   :  { %v11542_v42 = vadd.f32 %v9685_v30, %v10490_v39  ;;  %v6771_v32 = vsel %vm934_vm3, %v11537_v15, -inf }
0x1dc0   :  { %v6752_v16 = vpop.f32.mrf.mxu0  ;;  %6772 = vmax.xlane.f32.xlu0 %v6771_v32 }
0x1dc1   :  { %v11547_v38 = vadd.f32 %v6752_v16, %v10508_v54  ;;  %v6780_v33 = vsel %vm934_vm3, %v11542_v42, -inf }
0x1dc2   :  { %6781 = vmax.xlane.f32.xlu1 %v6780_v33  ;;  %v9688_v36 = vpop.f32.mrf.mxu0 }
0x1dc3   :  { %v11552_v19 = vadd.f32 %v9688_v36, %v10516_v59  ;;  %v6777_v39 = vsel %vm934_vm3, %v11547_v38, -inf }
0x1dc4   :  { %v6762_v27 = vpop.f32.mrf.mxu0  ;;  %6778 = vmax.xlane.f32.xlu0 %v6777_v39 }
0x1dc5   :  { %v11557_v29 = vadd.f32 %v6762_v27, %v10520_v63  ;;  %v6786_v54 = vsel %vm934_vm3, %v11552_v19, -inf }
0x1dc6   :  { %6787 = vmax.xlane.f32.xlu1 %v6786_v54 }
0x1dc7   :  { %v6783_v52 = vsel %vm934_vm3, %v11557_v29, -inf }
0x1dc8   :  { %6784 = vmax.xlane.f32.xlu0 %v6783_v52 }
0x1de9   :  { %v6051_v59 = vpop.xlane.xlu1 %6050 }
0x1dea   :  { %10019 = vrcp.f32 %v6051_v59 }
0x1deb   :  { %v6048_v40 = vpop.xlane.xlu0 %6047 }
0x1dec   :  { %10021 = vrcp.f32 %v6048_v40 }
0x1ded   :  { %v6057_v6 = vpop.xlane.xlu1 %6056 }
0x1dee   :  { %10023 = vrcp.f32 %v6057_v6 }
0x1def   :  { %v6054_v25 = vpop.xlane.xlu0 %6053 }
0x1df0   :  { %10025 = vrcp.f32 %v6054_v25 }
0x1df1   :  { %v6063_v63 = vpop.xlane.xlu1 %6062 }
0x1df2   :  { %10027 = vrcp.f32 %v6063_v63 }
0x1df3   :  { %v6060_v18 = vpop.xlane.xlu0 %6059 }
0x1df4   :  { %10029 = vrcp.f32 %v6060_v18 }
0x1df7   :  { %v10020_v1 = vpop.eup %10019 }
0x1df8   :  { %v6071_v34 = vmul.f32 %v10020_v1, %v10008_v8 }
0x1df9   :  { %v10022_v12 = vpop.eup %10021 }
0x1dfa   :  { %v6070_v28 = vmul.f32 %v10022_v12, %v10010_v53 }
0x1dfb   :  { %v10024_v2 = vpop.eup %10023 }
0x1dfc   :  { %9591 = vmatprep.mubr.msk.f32.mxu1 %vm934_vm3, %v6070_v28  ;;  %v6073_v31 = vmul.f32 %v10024_v2, %v10012_v58  ;;  %v5578_v58 = vld [vmem:[#allocation2 + $0x4b0] sm:$0xff] }
0x1dfd   :  { %v10026_v17 = vpop.eup %10025  ;;  %9592 = vmatmul.mubr.msk.f32.vlgmr.msra.gmra.mxu1 %vm934_vm3, %v6071_v34 }
0x1dfe   :  { %v6072_v11 = vmul.f32 %v10026_v17, %v10014_v61  ;;  %9601 = vmatpush3.xpose.msk.msra.mxu1 %vm12307_vm9, %v5581_v49  ;;  %v6336_v61 = vld [vmem:[#allocation2 + $0x450] sm:$0xff]  ;;  %vm12321_vm9 = vmmov %vm12320_vm11 }
0x1dff   :  { %9602 = vmatprep.subr.msk.mxu1 %vm12308_vm12, %v5580_v14  ;;  %v10028_v55 = vpop.eup %10027  ;;  %vm12322_vm12 = vmmov %vm12321_vm9 }
0x1e00   :  { %9594 = vmatprep.mubr.msk.f32.mxu1 %vm934_vm3, %v6072_v11  ;;  %v6075_v53 = vmul.f32 %v10028_v55, %v11528_v24 }
0x1e01   :  { %v10030_v44 = vpop.eup %10029  ;;  %9595 = vmatmul.mubr.msk.f32.gmra.mxu1 %vm934_vm3, %v6073_v31  ;;  %v6335_v31 = vld [vmem:[#allocation2 + $0x448] sm:$0xff] }
0x1e02   :  { %v6074_v8 = vmul.f32 %v10030_v44, %v10018_v20  ;;  %9603 = vmatpush3.xpose.msk.msra.mxu1 %vm12309_vm1, %v5580_v14  ;;  %vm12323_vm1 = vmmov %vm12321_vm9 }
0x1e03   :  { %9604 = vmatprep.subr.msk.mxu1 %vm12310_vm10, %v5579_v4  ;;  %vm12324_vm10 = vmmov %vm12323_vm1 }
0x1e04   :  { %9597 = vmatprep.mubr.msk.f32.mxu1 %vm934_vm3, %v6074_v8  ;;  %v6333_v8 = vld [vmem:[#allocation2 + $0x438] sm:$0xff] }
0x1e05   :  { %9598 = vmatmul.mubr.msk.f32.gmra.mxu1 %vm934_vm3, %v6075_v53 }
0x1e06   :  { %9605 = vmatpush3.xpose.msk.msra.mxu1 %vm12311_vm15, %v5579_v4  ;;  %v6334_v4 = vld [vmem:[#allocation2 + $0x440] sm:$0xff]  ;;  %vm12325_vm15 = vmmov %vm12300_vm0 }
0x1e07   :  { %9606 = vmatprep.subr.msk.mxu1 %vm12312_vm6, %v5578_v58  ;;  %vm12326_vm6 = vmmov %vm12300_vm0 }
0x1e0a   :  { %9607 = vmatpush3.xpose.msk.msra.mxu1 %vm12313_vm7, %v5578_v58  ;;  %vm12327_vm7 = vmmov %vm12300_vm0 }
0x1e0b   :  { %9651 = vmatprep.subr.mxu1 %v6336_v61 }
0x1e47   :  { %v6776_v20 = vpop.xlane.xlu1 %6775 }
0x1e48   :  { %v6790_v30 = vsub.f32 %v11534_v47, %v6776_v20 }
0x1e49   :  { %v6773_v32 = vpop.xlane.xlu0 %6772 }
0x1e4a   :  { %v6797_v24 = vmul.f32 1.442695, %v6790_v30  ;;  %v6789_v16 = vsub.f32 %v11537_v15, %v6773_v32 }
0x1e4b   :  { %v6782_v33 = vpop.xlane.xlu1 %6781 }
0x1e4c   :  { %10031 = vpow2.f32 %v6797_v24  ;;  %v6795_v36 = vmul.f32 1.442695, %v6789_v16  ;;  %v6792_v39 = vsub.f32 %v11542_v42, %v6782_v33  ;;  %v5541_v16 = vadd.f32 %v11360_v3, %v11434_v21 }
0x1e4d   :  { %v6779_v27 = vpop.xlane.xlu0 %6778 }
0x1e4e   :  { %10033 = vpow2.f32 %v6795_v36  ;;  %v6801_v54 = vmul.f32 1.442695, %v6792_v39  ;;  %v6791_v52 = vsub.f32 %v11547_v38, %v6779_v27 }
0x1e4f   :  { %v6788_v49 = vpop.xlane.xlu1 %6787 }
0x1e50   :  { %10035 = vpow2.f32 %v6801_v54  ;;  %v6799_v59 = vmul.f32 1.442695, %v6791_v52  ;;  %v6794_v40 = vsub.f32 %v11552_v19, %v6788_v49 }
0x1e51   :  { %v6785_v47 = vpop.xlane.xlu0 %6784 }
0x1e52   :  { %10037 = vpow2.f32 %v6799_v59  ;;  %v6805_v6 = vmul.f32 1.442695, %v6794_v40  ;;  %v6793_v15 = vsub.f32 %v11557_v29, %v6785_v47  ;;  %v8109_v59 = vld [vmem:[#allocation2 + $0x458] ss:$0 sm:$0xff] }
0x1e54   :  { %10039 = vpow2.f32 %v6805_v6  ;;  %v6803_v25 = vmul.f32 1.442695, %v6793_v15 }
0x1e56   :  { %10041 = vpow2.f32 %v6803_v25 }
0x1e59   :  { %v11584_v63 = vpop.eup %10031 }
0x1e5a   :  { %v6810_v42 = vsel %vm934_vm3, %v11584_v63, 0.0 }
0x1e5b   :  { %v10034_v18 = vpop.eup %10033  ;;  %6811 = vadd.xlane.f32.xlu1 %v6810_v42 }
0x1e5c   :  { %v6807_v38 = vsel %vm934_vm3, %v10034_v18, 0.0 }
0x1e5d   :  { %v11589_v1 = vpop.eup %10035  ;;  %6808 = vadd.xlane.f32.xlu0 %v6807_v38 }
0x1e5e   :  { %v6816_v19 = vsel %vm934_vm3, %v11589_v1, 0.0 }
0x1e5f   :  { %v11593_v12 = vpop.eup %10037  ;;  %6817 = vadd.xlane.f32.xlu1 %v6816_v19 }
0x1e60   :  { %v6813_v29 = vsel %vm934_vm3, %v11593_v12, 0.0 }
0x1e61   :  { %v11597_v28 = vpop.eup %10039  ;;  %6814 = vadd.xlane.f32.xlu0 %v6813_v29  ;;  %v6342_v29 = vld [vmem:[#allocation2 + $0x4f0] sm:$0xff] }
0x1e62   :  { %v6822_v34 = vsel %vm934_vm3, %v11597_v28, 0.0 }
0x1e63   :  { %v11601_v2 = vpop.eup %10041  ;;  %6823 = vadd.xlane.f32.xlu1 %v6822_v34 }
0x1e64   :  { %v6819_v14 = vsel %vm934_vm3, %v11601_v2, 0.0 }
0x1e65   :  { %6820 = vadd.xlane.f32.xlu0 %v6819_v14 }
0x1ebd   :  { %v9593_v17 = vpop.f32.mrf.mxu1 }
0x1ebf   :  { %v6160_v11 = vpop.f32.mrf.mxu1 }
0x1ec0   :  { %9608 = vmatprep.mubr.msk.f32.mxu1 %vm12314_vm8, %v6160_v11  ;;  %v6341_v11 = vld [vmem:[#allocation2 + $0x4e8] sm:$0xff]  ;;  %vm12328_vm8 = vmmov %vm12300_vm0 }
0x1ec1   :  { %v9596_v55 = vpop.f32.mrf.mxu1  ;;  %9609 = vmatmul.mubr.msk.f32.vlgmr.msra.gmra.mxu1 %vm12300_vm0, %v9593_v17 }
0x1ec2   :  { %9652 = vmatpush3.msra.mxu1 %v6336_v61 }
0x1ec3   :  { %v6170_v44 = vpop.f32.mrf.mxu1  ;;  %9653 = vmatprep.subr.mxu1 %v6335_v31 }
0x1ec4   :  { %9611 = vmatprep.mubr.msk.f32.mxu1 %vm12315_vm13, %v6170_v44  ;;  %9654 = vmatpush3.msra.mxu1 %v6335_v31  ;;  %v6340_v44 = vld [vmem:[#allocation2 + $0x4e0] sm:$0xff]  ;;  %vm12329_vm13 = vmmov %vm12300_vm0 }
0x1ec5   :  { %v9599_v53 = vpop.f32.mrf.mxu1  ;;  %9612 = vmatmul.mubr.msk.f32.gmra.mxu1 %vm12316_vm2, %v9596_v55  ;;  %9655 = vmatprep.subr.mxu1 %v6334_v4  ;;  %vm12330_vm2 = vmmov %vm12300_vm0 }
0x1ec6   :  { %9656 = vmatpush3.msra.mxu1 %v6334_v4 }
0x1ec7   :  { %v6180_v58 = vpop.f32.mrf.mxu1  ;;  %9657 = vmatprep.subr.mxu1 %v6333_v8 }
0x1ec8   :  { %9614 = vmatprep.mubr.msk.f32.mxu1 %vm12317_vm5, %v6180_v58  ;;  %9658 = vmatpush3.msra.mxu1 %v6333_v8  ;;  %vm12331_vm5 = vmmov %vm12300_vm0 }
0x1ec9   :  { %9615 = vmatmul.mubr.msk.f32.gmra.mxu1 %vm12318_vm4, %v9599_v53  ;;  %vm12332_vm4 = vmmov %vm12300_vm0 }
0x1eca   :  { %9659 = vmatprep.mubr.msk.f32.mxu1 %vm12319_vm14, %v11152_v37  ;;  %v5536_v37 = vadd.f32 %v11354_v10, %v11428_v41  ;;  %v5556_v10 = vadd.f32 %v11362_v35, %v11436_v46  ;;  %vm12333_vm14 = vmmov %vm12300_vm0 }
0x1ecd   :  { %9660 = vmatmul.mubr.msk.f32.vlgmr.msra.gmra.mxu1 %vm12320_vm11, %v11155_v0  ;;  %vm12334_vm11 = vmmov %vm12300_vm0 }
0x1ece   :  { %9662 = vmatprep.mubr.msk.f32.mxu1 %vm12321_vm9, %v11162_v45  ;;  %v5531_v45 = vadd.f32 %v11356_v60, %v11430_v22  ;;  %v5551_v22 = vadd.f32 %v11364_v62, %v11438_v23  ;;  %vm12335_vm9 = vmmov %vm12300_vm0 }
0x1ed1   :  { %9663 = vmatmul.mubr.msk.f32.gmra.mxu1 %vm12322_vm12, %v11165_v50  ;;  %vm12337_vm12 = vmmov %vm12300_vm0 }
0x1ed2   :  { %9665 = vmatprep.mubr.msk.f32.mxu1 %vm12323_vm1, %v11171_v56  ;;  %v5546_v56 = vadd.f32 %v11358_v48, %v11432_v13 }
0x1ed5   :  { %9666 = vmatmul.mubr.msk.f32.gmra.mxu1 %vm12324_vm10, %v11173_v43  ;;  %vm12338_vm10 = vmmov %vm12323_vm1 }
0x1ee4   :  { %v6812_v48 = vpop.xlane.xlu1 %6811 }
0x1ee6   :  { %v6809_v61 = vpop.xlane.xlu0 %6808 }
0x1ee7   :  { %10043 = vrcp.f32 %v6809_v61 }
0x1ee8   :  { %v6818_v52 = vpop.xlane.xlu1 %6817  ;;  %10045 = vrcp.f32 %v6812_v48 }
0x1eea   :  { %v6815_v3 = vpop.xlane.xlu0 %6814 }
0x1eeb   :  { %10047 = vrcp.f32 %v6815_v3 }
0x1eec   :  { %10049 = vrcp.f32 %v6818_v52  ;;  %v6824_v62 = vpop.xlane.xlu1 %6823 }
0x1eee   :  { %v6821_v46 = vpop.xlane.xlu0 %6820 }
0x1eef   :  { %10051 = vrcp.f32 %v6821_v46 }
0x1ef0   :  { %10053 = vrcp.f32 %v6824_v62 }
0x1ef4   :  { %v10044_v20 = vpop.eup %10043 }
0x1ef5   :  { %v6831_v30 = vmul.f32 %v10044_v20, %v10034_v18  ;;  %v10046_v18 = vpop.eup %10045 }
0x1ef6   :  { %v6832_v34 = vmul.f32 %v10046_v18, %v11584_v63 }
0x1ef7   :  { %9701 = vmatprep.mubr.msk.f32.mxu1 %vm934_vm3, %v6831_v30 }
0x1ef8   :  { %v10048_v38 = vpop.eup %10047 }
0x1ef9   :  { %v10050_v14 = vpop.eup %10049  ;;  %v6833_v17 = vmul.f32 %v10048_v38, %v11593_v12 }
0x1efa   :  { %v6834_v55 = vmul.f32 %v10050_v14, %v11589_v1  ;;  %v6339_v1 = vld [vmem:[#allocation2 + $0x4d8] sm:$0xff] }
0x1efc   :  { %v10052_v31 = vpop.eup %10051 }
0x1efd   :  { %v10054_v63 = vpop.eup %10053  ;;  %v6835_v4 = vmul.f32 %v10052_v31, %v11601_v2 }
0x1efe   :  { %v6836_v12 = vmul.f32 %v10054_v63, %v11597_v28 }
0x1f81   :  { %v9610_v0 = vpop.f32.mrf.mxu1 }
0x1f82   :  { %v11628_v50 = vadd.f32 %v9610_v0, %v5536_v37  ;;  %v8144_v37 = vld [vmem:[%s11936_s6 + $0x8] ss:$0 sm:$0xff] }
0x1f83   :  { %v6285_v32 = vpop.f32.mrf.mxu1 }
0x1f84   :  { %v11632_v43 = vadd.f32 %v6285_v32, %v5531_v45 }
0x1f85   :  { %v9613_v24 = vpop.f32.mrf.mxu1 }
0x1f86   :  { %v11636_v33 = vadd.f32 %v9613_v24, %v5546_v56 }
0x1f87   :  { %v6295_v36 = vpop.f32.mrf.mxu1 }
0x1f88   :  { %v11640_v41 = vadd.f32 %v6295_v36, %v5541_v16 }
0x1f89   :  { %v9616_v60 = vpop.f32.mrf.mxu1 }
0x1f8a   :  { %v11644_v39 = vadd.f32 %v9616_v60, %v5556_v10 }
0x1f8b   :  { %v6305_v13 = vpop.f32.mrf.mxu1 }
0x1f8c   :  { %v11646_v27 = vadd.f32 %v6305_v13, %v5551_v22 }
0x1f8d   :  { %v9661_v54 = vpop.f32.mrf.mxu1 }
0x1f8e   :  { %v6617_v42 = vadd.f32 %v9661_v54, %v8109_v59 }
0x1f8f   :  { %v6611_v21 = vpop.f32.mrf.mxu1 }
0x1f90   :  { %v6612_v19 = vadd.f32 %v8109_v59, %v6611_v21 }
0x1f91   :  { %v9664_v49 = vpop.f32.mrf.mxu1 }
0x1f92   :  { %v6627_v15 = vadd.f32 %v9664_v49, %v8109_v59 }
0x1f93   :  { %v6621_v35 = vpop.f32.mrf.mxu1 }
0x1f94   :  { %v6622_v25 = vadd.f32 %v8109_v59, %v6621_v35 }
0x1f95   :  { %v9667_v40 = vpop.f32.mrf.mxu1 }
0x1f96   :  { %v6637_v47 = vadd.f32 %v9667_v40, %v8109_v59 }
0x1f97   :  { %v6631_v23 = vpop.f32.mrf.mxu1 }
0x1f98   :  { %v6632_v6 = vadd.f32 %v8109_v59, %v6631_v23  ;;  %9689 = vmatprep.subr.mxu1 %v6637_v47 }
0x1f99   :  { %9690 = vmatpush3.msra.mxu1 %v6637_v47 }
0x1f9a   :  { %9691 = vmatprep.subr.mxu1 %v6632_v6 }
0x1f9b   :  { %9692 = vmatpush3.msra.mxu1 %v6632_v6 }
0x1f9c   :  { %9693 = vmatprep.subr.mxu1 %v6627_v15 }
0x1f9d   :  { %9694 = vmatpush3.msra.mxu1 %v6627_v15 }
0x1f9e   :  { %9695 = vmatprep.subr.mxu1 %v6622_v25 }
0x1f9f   :  { %9696 = vmatpush3.msra.mxu1 %v6622_v25 }
0x1fa0   :  { %9697 = vmatprep.subr.mxu1 %v6617_v42 }
0x1fa1   :  { %9698 = vmatpush3.msra.mxu1 %v6617_v42 }
0x1fa2   :  { %9699 = vmatprep.subr.mxu1 %v6612_v19 }
0x1fa3   :  { %9700 = vmatpush3.msra.mxu1 %v6612_v19 }
0x1fa4   :  { %9702 = vmatmul.mubr.msk.f32.vlgmr.msra.gmra.mxu1 %vm934_vm3, %v6832_v34  ;;  %9710 = vmatprep.subr.msk.mxu1 %vm12325_vm15, %v6342_v29  ;;  %vm12339_vm15 = vmmov %vm12323_vm1 }
0x1fa5   :  { %9704 = vmatprep.mubr.msk.f32.mxu1 %vm934_vm3, %v6833_v17  ;;  %9711 = vmatpush3.xpose.msk.msra.mxu1 %vm12326_vm6, %v6342_v29  ;;  %vm12340_vm6 = vmmov %vm12323_vm1 }
0x1fa6   :  { %9712 = vmatprep.subr.msk.mxu1 %vm12327_vm7, %v6341_v11  ;;  %vm12341_vm7 = vmmov %vm12323_vm1 }
0x1fa8   :  { %9705 = vmatmul.mubr.msk.f32.gmra.mxu1 %vm934_vm3, %v6834_v55 }
0x1fa9   :  { %9707 = vmatprep.mubr.msk.f32.mxu1 %vm934_vm3, %v6835_v4  ;;  %9713 = vmatpush3.xpose.msk.msra.mxu1 %vm12328_vm8, %v6341_v11  ;;  %vm12342_vm8 = vmmov %vm12323_vm1 }
0x1faa   :  { %9714 = vmatprep.subr.msk.mxu1 %vm12300_vm0, %v6340_v44 }
0x1fac   :  { %9708 = vmatmul.mubr.msk.f32.gmra.mxu1 %vm934_vm3, %v6836_v12  ;;  %vm12336_vm3 = vmmov %vm12300_vm0 }
0x1fad   :  { %9715 = vmatpush3.xpose.msk.msra.mxu1 %vm12329_vm13, %v6340_v44  ;;  %vm12343_vm0 = vmmov %vm12323_vm1 }
0x1fae   :  { %9716 = vmatprep.subr.msk.mxu1 %vm12330_vm2, %v6339_v1  ;;  %vm12344_vm13 = vmmov %vm12343_vm0 }
0x1faf   :  { %vm12345_vm2 = vmmov %vm12343_vm0 }
0x1fb1   :  { %9717 = vmatpush3.xpose.msk.msra.mxu1 %vm12331_vm5, %v6339_v1  ;;  %vm12346_vm5 = vmmov %vm12343_vm0 }
0x2064   :  { %v9703_v2 = vpop.f32.mrf.mxu1 }
0x2066   :  { %v6921_v8 = vpop.f32.mrf.mxu1 }
0x2067   :  { %9718 = vmatprep.mubr.msk.f32.mxu1 %vm12332_vm4, %v6921_v8  ;;  %vm12347_vm4 = vmmov %vm12343_vm0 }
0x2068   :  { %v9706_v53 = vpop.f32.mrf.mxu1  ;;  %9719 = vmatmul.mubr.msk.f32.vlgmr.msra.gmra.mxu1 %vm12333_vm14, %v9703_v2  ;;  %vm12348_vm14 = vmmov %vm12343_vm0 }
0x206a   :  { %v6931_v58 = vpop.f32.mrf.mxu1 }
0x206b   :  { %9721 = vmatprep.mubr.msk.f32.mxu1 %vm12334_vm11, %v6931_v58  ;;  %v8150_v58 = vld [vmem:[%s11934_s4 + $0x40] sm:$0xff]  ;;  %vm12349_vm11 = vmmov %vm12343_vm0 }
0x206c   :  { %v9709_v28 = vpop.f32.mrf.mxu1  ;;  %9722 = vmatmul.mubr.msk.f32.gmra.mxu1 %vm12335_vm9, %v9706_v53  ;;  %9727 = vmatprep.subr.mxu0 %v8150_v58  ;;  %vm12350_vm9 = vmmov %vm12343_vm0 }
0x206d   :  { %9728 = vmatpush3.msra.mxu0 %v8150_v58  ;;  %v8164_v58 = vld [vmem:[%s11935_s5 + $0xa8] sm:$0xff] }
0x206e   :  { %v6941_v61 = vpop.f32.mrf.mxu1 }
0x206f   :  { %9724 = vmatprep.mubr.msk.f32.mxu1 %vm12336_vm3, %v6941_v61  ;;  %v8148_v61 = vld [vmem:[%s11934_s4 + $0x30] sm:$0xff]  ;;  %vm12351_vm3 = vmmov %vm12343_vm0 }
0x2070   :  { %9725 = vmatmul.mubr.msk.f32.gmra.mxu1 %vm12337_vm12, %v9709_v28  ;;  %v8149_v28 = vld [vmem:[%s11934_s4 + $0x38] sm:$0xff]  ;;  %vm12352_vm12 = vmmov %vm12343_vm0 }
0x2071   :  { %9729 = vmatprep.subr.mxu0 %v8149_v28 }
0x2072   :  { %9730 = vmatpush3.msra.mxu0 %v8149_v28  ;;  %v8163_v28 = vld [vmem:[%s11935_s5 + $0xa0] sm:$0xff] }
0x2073   :  { %9731 = vmatprep.subr.mxu0 %v8148_v61 }
0x2074   :  { %9732 = vmatpush3.msra.mxu0 %v8148_v61  ;;  %v8162_v61 = vld [vmem:[%s11935_s5 + $0x98] sm:$0xff] }
0x2128   :  { %v9720_v20 = vpop.f32.mrf.mxu1 }
0x2129   :  { %v7076_v30 = vadd.f32 %v9720_v20, %v11628_v50  ;;  %v8147_v20 = vld [vmem:[%s11934_s4 + $0x28] sm:$0xff] }
0x212a   :  { %v7046_v0 = vpop.f32.mrf.mxu1  ;;  %9733 = vmatprep.subr.mxu0 %v8147_v20 }
0x212b   :  { %v7082_v45 = vadd.f32 %v7076_v30, %v11078_v26  ;;  %v7075_v32 = vadd.f32 %v7046_v0, %v11632_v43  ;;  %9734 = vmatpush3.msra.mxu0 %v8147_v20  ;;  %v8161_v20 = vld [vmem:[%s11935_s5 + $0x90] sm:$0xff] }
0x212c   :  { %v9723_v56 = vpop.f32.mrf.mxu1 }
0x212d   :  { %v11678_v24 = vadd.f32 %v8144_v37, %v7082_v45  ;;  %v7081_v16 = vadd.f32 %v7075_v32, %v11081_v9  ;;  %v7078_v36 = vadd.f32 %v9723_v56, %v11636_v33 }
0x212e   :  { %v7056_v10 = vpop.f32.mrf.mxu1 }
0x212f   :  { %v11682_v60 = vadd.f32 %v8144_v37, %v7081_v16  ;;  %v7084_v50 = vadd.f32 %v7078_v36, %v11086_v51  ;;  %v7077_v22 = vadd.f32 %v7056_v10, %v11640_v41  ;;  %v7103_v48 = vsel %vm12323_vm1, %v11678_v24, 0.0  ;;  %vm12353_vm1 = vmmov %vm12343_vm0 }
0x2130   :  { %7104 = vadd.xlane.f32.xlu1 %v7103_v48  ;;  %v9726_v26 = vpop.f32.mrf.mxu1 }
0x2131   :  { %v11688_v43 = vadd.f32 %v8144_v37, %v7084_v50  ;;  %v7083_v13 = vadd.f32 %v7077_v22, %v11091_v5  ;;  %v7080_v9 = vadd.f32 %v9726_v26, %v11644_v39  ;;  %v7100_v33 = vsel %vm12338_vm10, %v11682_v60, 0.0  ;;  %vm12354_vm10 = vmmov %vm12343_vm0 }
0x2132   :  { %7101 = vadd.xlane.f32.xlu0 %v7100_v33  ;;  %v7066_v54 = vpop.f32.mrf.mxu1 }
0x2133   :  { %v11694_v3 = vadd.f32 %v8144_v37, %v7083_v13  ;;  %v7086_v51 = vadd.f32 %v7080_v9, %v11096_v57  ;;  %v7079_v41 = vadd.f32 %v7066_v54, %v11646_v27  ;;  %v7109_v21 = vsel %vm12339_vm15, %v11688_v43, 0.0  ;;  %vm12355_vm15 = vmmov %vm12343_vm0 }
0x2134   :  { %7110 = vadd.xlane.f32.xlu1 %v7109_v21  ;;  %v8145_v21 = vld [vmem:[%s11936_s6 + $0x9] ss:$0 sm:$0xff] }
0x2135   :  { %v11700_v52 = vadd.f32 %v8144_v37, %v7086_v51  ;;  %v7085_v5 = vadd.f32 %v7079_v41, %v11101_v7  ;;  %v7106_v39 = vsel %vm12340_vm6, %v11694_v3, 0.0  ;;  %vm12356_vm6 = vmmov %vm12343_vm0 }
0x2136   :  { %7107 = vadd.xlane.f32.xlu0 %v7106_v39 }
0x2137   :  { %v11705_v49 = vadd.f32 %v8144_v37, %v7085_v5  ;;  %v7115_v35 = vsel %vm12341_vm7, %v11700_v52, 0.0  ;;  %vm12357_vm7 = vmmov %vm12343_vm0 }
0x2138   :  { %7116 = vadd.xlane.f32.xlu1 %v7115_v35 }
0x2139   :  { %v7112_v57 = vsel %vm12342_vm8, %v11705_v49, 0.0  ;;  %vm12358_vm8 = vmmov %vm12343_vm0 }
0x213a   :  { %7113 = vadd.xlane.f32.xlu0 %v7112_v57 }
0x21b9   :  { %v7105_v27 = vpop.xlane.xlu1 %7104 }
0x21ba   :  { %v7119_v46 = vmul.f32 0.03125, %v7105_v27 }
0x21bb   :  { %v7102_v59 = vpop.xlane.xlu0 %7101 }
0x21bc   :  { %v11712_v40 = vsub.f32 %v11678_v24, %v7119_v46  ;;  %v7118_v7 = vmul.f32 0.03125, %v7102_v59  ;;  %v8146_v59 = vld [vmem:[%s11936_s6 + $0xa] ss:$0 sm:$0xff] }
0x21bd   :  { %v7111_v47 = vpop.xlane.xlu1 %7110 }
0x21be   :  { %v11715_v62 = vsub.f32 %v11682_v60, %v7118_v7  ;;  %v7121_v23 = vmul.f32 0.03125, %v7111_v47  ;;  %v7131_v6 = vmul.f32 %v11712_v40, %v11712_v40 }
0x21bf   :  { %v7108_v15 = vpop.xlane.xlu0 %7107 }
0x21c0   :  { %v11720_v25 = vsub.f32 %v11688_v43, %v7121_v23  ;;  %v7120_v42 = vmul.f32 0.03125, %v7108_v15  ;;  %v7139_v18 = vsel %vm12343_vm0, %v7131_v6, 0.0  ;;  %v7130_v38 = vmul.f32 %v11715_v62, %v11715_v62 }
0x21c1   :  { %7140 = vadd.xlane.f32.xlu1 %v7139_v18  ;;  %v7117_v19 = vpop.xlane.xlu1 %7116 }
0x21c2   :  { %v11726_v29 = vsub.f32 %v11694_v3, %v7120_v42  ;;  %v7123_v34 = vmul.f32 0.03125, %v7117_v19  ;;  %v7136_v14 = vsel %vm12344_vm13, %v7130_v38, 0.0  ;;  %v7133_v17 = vmul.f32 %v11720_v25, %v11720_v25  ;;  %vm12359_vm13 = vmmov %vm12343_vm0 }
0x21c3   :  { %7137 = vadd.xlane.f32.xlu0 %v7136_v14  ;;  %v7114_v11 = vpop.xlane.xlu0 %7113 }
0x21c4   :  { %v11732_v31 = vsub.f32 %v11700_v52, %v7123_v34  ;;  %v7122_v55 = vmul.f32 0.03125, %v7114_v11  ;;  %v7145_v63 = vsel %vm12345_vm2, %v7133_v17, 0.0  ;;  %v7132_v4 = vmul.f32 %v11726_v29, %v11726_v29  ;;  %vm12360_vm2 = vmmov %vm12343_vm0 }
0x21c5   :  { %7146 = vadd.xlane.f32.xlu1 %v7145_v63  ;;  %v8172_v63 = vld [vmem:[%s11935_s5 + $0xe8] sm:$0xff] }
0x21c6   :  { %v11738_v44 = vsub.f32 %v11705_v49, %v7122_v55  ;;  %v7142_v12 = vsel %vm12346_vm5, %v7132_v4, 0.0  ;;  %v7135_v1 = vmul.f32 %v11732_v31, %v11732_v31  ;;  %v8173_v55 = vld [vmem:[%s11935_s5 + $0xf0] sm:$0xff]  ;;  %v8171_v4 = vld [vmem:[%s11935_s5 + $0xe0] sm:$0xff]  ;;  %vm12361_vm5 = vmmov %vm12343_vm0 }
0x21c7   :  { %7143 = vadd.xlane.f32.xlu0 %v7142_v12  ;;  %v8169_v12 = vld [vmem:[%s11935_s5 + $0xd0] sm:$0xff] }
0x21c8   :  { %v7151_v2 = vsel %vm12347_vm4, %v7135_v1, 0.0  ;;  %v7134_v8 = vmul.f32 %v11738_v44, %v11738_v44  ;;  %v8168_v1 = vld [vmem:[%s11935_s5 + $0xc8] sm:$0xff]  ;;  %vm12362_vm4 = vmmov %vm12343_vm0 }
0x21c9   :  { %7152 = vadd.xlane.f32.xlu1 %v7151_v2  ;;  %v8167_v2 = vld [vmem:[%s11935_s5 + $0xc0] sm:$0xff] }
0x21ca   :  { %v7148_v53 = vsel %vm12348_vm14, %v7134_v8, 0.0  ;;  %v8166_v8 = vld [vmem:[%s11935_s5 + $0xb8] sm:$0xff]  ;;  %vm12363_vm14 = vmmov %vm12343_vm0 }
0x21cb   :  { %7149 = vadd.xlane.f32.xlu0 %v7148_v53  ;;  %v8165_v53 = vld [vmem:[%s11935_s5 + $0xb0] sm:$0xff] }
0x224a   :  { %v7141_v30 = vpop.xlane.xlu1 %7140 }
0x224b   :  { %v7155_v37 = vmul.f32 0.03125, %v7141_v30  ;;  %v8160_v30 = vld [vmem:[%s11935_s5 + $0x88] sm:$0xff] }
0x224c   :  { %v7138_v0 = vpop.xlane.xlu0 %7137 }
0x224d   :  { %v7161_v45 = vadd.f32 1e-05, %v7155_v37  ;;  %v7154_v32 = vmul.f32 0.03125, %v7138_v0  ;;  %v8159_v37 = vld [vmem:[%s11935_s5 + $0x80] sm:$0xff]  ;;  %v8152_v0 = vld [vmem:[%s11934_s4 + $0x48] ss:$0 sm:$0xff] }
0x224e   :  { %v7147_v56 = vpop.xlane.xlu1 %7146 }
0x224f   :  { %10055 = vrsqrt.f32 %v7161_v45  ;;  %v7160_v16 = vadd.f32 1e-05, %v7154_v32  ;;  %v7157_v36 = vmul.f32 0.03125, %v7147_v56 }
0x2250   :  { %v7144_v10 = vpop.xlane.xlu0 %7143 }
0x2251   :  { %10057 = vrsqrt.f32 %v7160_v16  ;;  %v7163_v50 = vadd.f32 1e-05, %v7157_v36  ;;  %v7156_v22 = vmul.f32 0.03125, %v7144_v10 }
0x2252   :  { %v7153_v48 = vpop.xlane.xlu1 %7152 }
0x2253   :  { %10059 = vrsqrt.f32 %v7163_v50  ;;  %v7162_v26 = vadd.f32 1e-05, %v7156_v22  ;;  %v7159_v13 = vmul.f32 0.03125, %v7153_v48 }
0x2254   :  { %v7150_v9 = vpop.xlane.xlu0 %7149 }
0x2255   :  { %10061 = vrsqrt.f32 %v7162_v26  ;;  %v7165_v33 = vadd.f32 1e-05, %v7159_v13  ;;  %v7158_v54 = vmul.f32 0.03125, %v7150_v9 }
0x2257   :  { %10063 = vrsqrt.f32 %v7165_v33  ;;  %v7164_v51 = vadd.f32 1e-05, %v7158_v54 }
0x2259   :  { %10065 = vrsqrt.f32 %v7164_v51 }
0x225c   :  { %v10056_v41 = vpop.eup %10055 }
0x225d   :  { %v7173_v5 = vmul.f32 %v10056_v41, %v11712_v40 }
0x225e   :  { %v10058_v39 = vpop.eup %10057 }
0x225f   :  { %v7172_v35 = vmul.f32 %v10058_v39, %v11715_v62  ;;  %v7183_v27 = vmul.f32 %v8145_v21, %v7173_v5 }
0x2260   :  { %v10060_v57 = vpop.eup %10059 }
0x2261   :  { %v7175_v46 = vmul.f32 %v10060_v57, %v11720_v25  ;;  %v7182_v7 = vmul.f32 %v8145_v21, %v7172_v35  ;;  %v7193_v42 = vadd.f32 %v8146_v59, %v7183_v27 }
0x2262   :  { %v10062_v47 = vpop.eup %10061 }
0x2263   :  { %v7192_v23 = vadd.f32 %v8146_v59, %v7182_v7  ;;  %v7174_v6 = vmul.f32 %v10062_v47, %v11726_v29  ;;  %v7185_v18 = vmul.f32 %v8145_v21, %v7175_v46 }
0x2264   :  { %v10064_v15 = vpop.eup %10063 }
0x2265   :  { %v7177_v40 = vmul.f32 %v10064_v15, %v11732_v31  ;;  %9735 = vmatprep.mubr.msk.f32.mxu0 %vm12349_vm11, %v7192_v23  ;;  %v7184_v62 = vmul.f32 %v8145_v21, %v7174_v6  ;;  %v7195_v34 = vadd.f32 %v8146_v59, %v7185_v18  ;;  %v8174_v31 = vld [vmem:[%s11935_s5 + $0xf8] sm:$0xff]  ;;  %vm12364_vm11 = vmmov %vm12343_vm0 }
0x2266   :  { %v10066_v38 = vpop.eup %10065  ;;  %9736 = vmatmul.mubr.msk.f32.vlgmr.msra.gmra.mxu0 %vm12350_vm9, %v7193_v42  ;;  %9744 = vmatprep.subr.mxu1 %v8174_v31  ;;  %vm12365_vm9 = vmmov %vm12343_vm0 }
0x2267   :  { %v7194_v25 = vadd.f32 %v8146_v59, %v7184_v62  ;;  %v7176_v19 = vmul.f32 %v10066_v38, %v11738_v44  ;;  %v7187_v14 = vmul.f32 %v8145_v21, %v7177_v40  ;;  %9745 = vmatpush3.msra.mxu1 %v8174_v31  ;;  %v8170_v44 = vld [vmem:[%s11935_s5 + $0xd8] sm:$0xff] }
0x2268   :  { %9746 = vmatprep.subr.mxu1 %v8173_v55 }
0x2269   :  { %9738 = vmatprep.mubr.msk.f32.mxu0 %vm12351_vm3, %v7194_v25  ;;  %v7186_v17 = vmul.f32 %v8145_v21, %v7176_v19  ;;  %v7197_v11 = vadd.f32 %v8146_v59, %v7187_v14  ;;  %9747 = vmatpush3.msra.mxu1 %v8173_v55  ;;  %vm12366_vm3 = vmmov %vm12343_vm0 }
0x226a   :  { %9739 = vmatmul.mubr.msk.f32.gmra.mxu0 %vm12352_vm12, %v7195_v34  ;;  %9748 = vmatprep.subr.mxu1 %v8172_v63  ;;  %vm12367_vm12 = vmmov %vm12343_vm0 }
0x226b   :  { %v7196_v29 = vadd.f32 %v8146_v59, %v7186_v17  ;;  %9749 = vmatpush3.msra.mxu1 %v8172_v63 }
0x226c   :  { %9750 = vmatprep.subr.mxu1 %v8171_v4 }
0x226d   :  { %9741 = vmatprep.mubr.msk.f32.mxu0 %vm12353_vm1, %v7196_v29  ;;  %9751 = vmatpush3.msra.mxu1 %v8171_v4  ;;  %vm12368_vm1 = vmmov %vm12343_vm0 }
0x226e   :  { %9742 = vmatmul.mubr.msk.f32.gmra.mxu0 %vm12354_vm10, %v7197_v11  ;;  %9752 = vmatprep.subr.mxu1 %v8170_v44  ;;  %vm12369_vm10 = vmmov %vm12343_vm0 }
0x226f   :  { %9753 = vmatpush3.msra.mxu1 %v8170_v44 }
0x2270   :  { %9754 = vmatprep.subr.mxu1 %v8169_v12 }
0x2271   :  { %9755 = vmatpush3.msra.mxu1 %v8169_v12 }
0x2272   :  { %9756 = vmatprep.subr.mxu1 %v8168_v1 }
0x2273   :  { %9757 = vmatpush3.msra.mxu1 %v8168_v1 }
0x2274   :  { %9758 = vmatprep.subr.mxu1 %v8167_v2 }
0x2275   :  { %9759 = vmatpush3.msra.mxu1 %v8167_v2 }
0x2276   :  { %9760 = vmatprep.subr.mxu1 %v8166_v8 }
0x2277   :  { %9761 = vmatpush3.msra.mxu1 %v8166_v8 }
0x2278   :  { %9762 = vmatprep.subr.mxu1 %v8165_v53 }
0x2279   :  { %9763 = vmatpush3.msra.mxu1 %v8165_v53 }
0x227a   :  { %9764 = vmatprep.subr.mxu1 %v8164_v58 }
0x227b   :  { %9765 = vmatpush3.msra.mxu1 %v8164_v58 }
0x227c   :  { %9766 = vmatprep.subr.mxu1 %v8163_v28 }
0x227d   :  { %9767 = vmatpush3.msra.mxu1 %v8163_v28 }
0x227e   :  { %9768 = vmatprep.subr.mxu1 %v8162_v61 }
0x227f   :  { %9769 = vmatpush3.msra.mxu1 %v8162_v61 }
0x2280   :  { %9770 = vmatprep.subr.mxu1 %v8161_v20 }
0x2281   :  { %9771 = vmatpush3.msra.mxu1 %v8161_v20 }
0x2282   :  { %9772 = vmatprep.subr.mxu1 %v8160_v30 }
0x2283   :  { %9773 = vmatpush3.msra.mxu1 %v8160_v30 }
0x2284   :  { %9774 = vmatprep.subr.mxu1 %v8159_v37 }
0x2285   :  { %9775 = vmatpush3.msra.mxu1 %v8159_v37 }
0x2326   :  { %v9737_v45 = vpop.f32.mrf.mxu0 }
0x2327   :  { %v7298_v32 = vadd.f32 %v9737_v45, %v8152_v0 }
0x2328   :  { %v7292_v56 = vpop.f32.mrf.mxu0 }
0x2329   :  { %v7328_v16 = vmul.f32 0.044715, %v7298_v32  ;;  %v7293_v36 = vadd.f32 %v8152_v0, %v7292_v56  ;;  %v7322_v2 = vmul.f32 0.5, %v7298_v32 }
0x232a   :  { %v9740_v10 = vpop.f32.mrf.mxu0 }
0x232b   :  { %v7334_v50 = vmul.f32 %v7328_v16, %v7298_v32  ;;  %v7327_v22 = vmul.f32 0.044715, %v7293_v36  ;;  %v7308_v48 = vadd.f32 %v9740_v10, %v8152_v0  ;;  %v7321_v12 = vmul.f32 0.5, %v7293_v36 }
0x232c   :  { %v7302_v26 = vpop.f32.mrf.mxu0 }
0x232d   :  { %v7340_v13 = vmul.f32 %v7334_v50, %v7298_v32  ;;  %v7333_v9 = vmul.f32 %v7327_v22, %v7293_v36  ;;  %v7330_v33 = vmul.f32 0.044715, %v7308_v48  ;;  %v7303_v54 = vadd.f32 %v8152_v0, %v7302_v26  ;;  %v8175_v26 = vld [vmem:[%s11936_s6 + $0xb] ss:$0 sm:$0xff] }
0x232e   :  { %v9743_v51 = vpop.f32.mrf.mxu0 }
0x232f   :  { %v7346_v41 = vadd.f32 %v7340_v13, %v7298_v32  ;;  %v7336_v21 = vmul.f32 %v7330_v33, %v7308_v48  ;;  %v7329_v5 = vmul.f32 0.044715, %v7303_v54  ;;  %v7318_v39 = vadd.f32 %v9743_v51, %v8152_v0 }
0x2330   :  { %v7312_v35 = vpop.f32.mrf.mxu0  ;;  %v7339_v57 = vmul.f32 %v7333_v9, %v7293_v36  ;;  %v7323_v28 = vmul.f32 0.5, %v7303_v54 }
0x2331   :  { %v7352_v27 = vmul.f32 0.7978846, %v7346_v41  ;;  %v7342_v46 = vmul.f32 %v7336_v21, %v7308_v48  ;;  %v7335_v59 = vmul.f32 %v7329_v5, %v7303_v54  ;;  %v7332_v7 = vmul.f32 0.044715, %v7318_v39 }
0x2332   :  { %v7313_v47 = vadd.f32 %v8152_v0, %v7312_v35  ;;  %v7345_v23 = vadd.f32 %v7339_v57, %v7293_v36  ;;  %v7324_v0 = vmul.f32 0.5, %v7308_v48  ;;  %v7326_v36 = vmul.f32 0.5, %v7318_v39 }
0x2333   :  { %10067 = vtanh.f32 %v7352_v27  ;;  %v7348_v6 = vadd.f32 %v7342_v46, %v7308_v48  ;;  %v7338_v15 = vmul.f32 %v7332_v7, %v7318_v39  ;;  %v7341_v42 = vmul.f32 %v7335_v59, %v7303_v54 }
0x2334   :  { %v7331_v18 = vmul.f32 0.044715, %v7313_v47  ;;  %v7351_v40 = vmul.f32 0.7978846, %v7345_v23  ;;  %v7325_v10 = vmul.f32 0.5, %v7313_v47 }
0x2335   :  { %v7344_v62 = vmul.f32 %v7338_v15, %v7318_v39  ;;  %v7347_v38 = vadd.f32 %v7341_v42, %v7303_v54  ;;  %v7354_v25 = vmul.f32 0.7978846, %v7348_v6 }
0x2336   :  { %v7337_v19 = vmul.f32 %v7331_v18, %v7313_v47  ;;  %10069 = vtanh.f32 %v7351_v40 }
0x2337   :  { %v7350_v34 = vadd.f32 %v7344_v62, %v7318_v39  ;;  %v7353_v14 = vmul.f32 0.7978846, %v7347_v38  ;;  %10071 = vtanh.f32 %v7354_v25 }
0x2338   :  { %v7343_v17 = vmul.f32 %v7337_v19, %v7313_v47 }
0x2339   :  { %10073 = vtanh.f32 %v7353_v14  ;;  %v7356_v29 = vmul.f32 0.7978846, %v7350_v34 }
0x233a   :  { %v7349_v11 = vadd.f32 %v7343_v17, %v7313_v47 }
0x233b   :  { %10075 = vtanh.f32 %v7356_v29 }
0x233c   :  { %v7355_v31 = vmul.f32 0.7978846, %v7349_v11 }
0x233e   :  { %10077 = vtanh.f32 %v7355_v31 }
0x2340   :  { %v10068_v55 = vpop.eup %10067 }
0x2341   :  { %v7364_v4 = vadd.f32 1.0, %v10068_v55 }
0x2343   :  { %v10070_v63 = vpop.eup %10069  ;;  %v7370_v58 = vmul.f32 %v7364_v4, %v7322_v2 }
0x2344   :  { %v10072_v44 = vpop.eup %10071  ;;  %v7363_v1 = vadd.f32 1.0, %v10070_v63 }
0x2345   :  { %v7366_v20 = vadd.f32 1.0, %v10072_v44 }
0x2346   :  { %v10074_v8 = vpop.eup %10073  ;;  %v7369_v53 = vmul.f32 %v7363_v1, %v7321_v12 }
0x2347   :  { %v7365_v61 = vadd.f32 1.0, %v10074_v8  ;;  %v7372_v56 = vmul.f32 %v7366_v20, %v7324_v0  ;;  %v7601_v0 = vld [vmem:[%s11937_s7 + $0x18] sm:$0xff] }
0x2348   :  { %v10076_v30 = vpop.eup %10075  ;;  %9776 = vmatprep.mubr.f32.mxu1 %v7369_v53  ;;  %9785 = vmatprep.subr.mxu0 %v7601_v0 }
0x2349   :  { %9777 = vmatmul.mubr.f32.vlgmr.msra.gmra.mxu1 %v7370_v58  ;;  %v7371_v37 = vmul.f32 %v7365_v61, %v7323_v28  ;;  %v7368_v16 = vadd.f32 1.0, %v10076_v30  ;;  %9786 = vmatpush3.msra.mxu0 %v7601_v0 }
0x234b   :  { %v10078_v45 = vpop.eup %10077  ;;  %9779 = vmatprep.mubr.f32.mxu1 %v7371_v37  ;;  %v7374_v22 = vmul.f32 %v7368_v16, %v7326_v36  ;;  %v7598_v16 = vld [vmem:[%s11937_s7] sm:$0xff] }
0x234c   :  { %v7367_v50 = vadd.f32 1.0, %v10078_v45  ;;  %v7600_v45 = vld [vmem:[%s11937_s7 + $0x10] sm:$0xff] }
0x234d   :  { %9780 = vmatmul.mubr.f32.gmra.mxu1 %v7372_v56  ;;  %9787 = vmatprep.subr.mxu0 %v7600_v45  ;;  %v7599_v56 = vld [vmem:[%s11937_s7 + $0x8] sm:$0xff] }
0x234e   :  { %v7373_v32 = vmul.f32 %v7367_v50, %v7325_v10  ;;  %9788 = vmatpush3.msra.mxu0 %v7600_v45 }
0x234f   :  { %9789 = vmatprep.subr.mxu0 %v7599_v56 }
0x2350   :  { %9782 = vmatprep.mubr.f32.mxu1 %v7373_v32  ;;  %9790 = vmatpush3.msra.mxu0 %v7599_v56 }
0x2351   :  { %9783 = vmatmul.mubr.f32.gmra.mxu1 %v7374_v22  ;;  %9791 = vmatprep.subr.mxu0 %v7598_v16 }
0x2352   :  { %9792 = vmatpush3.msra.mxu0 %v7598_v16 }
0x2409   :  { %v9778_v13 = vpop.f32.mrf.mxu1 }
0x240a   :  { %v7469_v9 = vadd.f32 %v9778_v13, %v8175_v26 }
0x240b   :  { %v7463_v33 = vpop.f32.mrf.mxu1 }
0x240c   :  { %v7493_v48 = vadd.f32 %v7469_v9, %v11678_v24  ;;  %v7464_v54 = vadd.f32 %v8175_v26, %v7463_v33 }
0x240d   :  { %v9781_v51 = vpop.f32.mrf.mxu1 }
0x240e   :  { %v7492_v41 = vadd.f32 %v7464_v54, %v11682_v60  ;;  %v7479_v21 = vadd.f32 %v9781_v51, %v8175_v26  ;;  %v7503_v5 = vsel %vm12355_vm15, %v7493_v48, 0.0  ;;  %vm12370_vm15 = vmmov %vm12343_vm0 }
0x240f   :  { %7504 = vadd.xlane.f32.xlu1 %v7503_v5  ;;  %v7473_v39 = vpop.f32.mrf.mxu1 }
0x2410   :  { %v7495_v35 = vadd.f32 %v7479_v21, %v11688_v43  ;;  %v7474_v57 = vadd.f32 %v8175_v26, %v7473_v39  ;;  %v7500_v27 = vsel %vm12356_vm6, %v7492_v41, 0.0  ;;  %vm12371_vm6 = vmmov %vm12343_vm0 }
0x2411   :  { %7501 = vadd.xlane.f32.xlu0 %v7500_v27  ;;  %v9784_v46 = vpop.f32.mrf.mxu1 }
0x2412   :  { %v7494_v59 = vadd.f32 %v7474_v57, %v11694_v3  ;;  %v7489_v7 = vadd.f32 %v9784_v46, %v8175_v26  ;;  %v7509_v24 = vsel %vm12357_vm7, %v7495_v35, 0.0  ;;  %v8176_v46 = vld [vmem:[%s11936_s6 + $0xc] ss:$0 sm:$0xff]  ;;  %vm12372_vm7 = vcmask 64512  }
0x2413   :  { %7510 = vadd.xlane.f32.xlu1 %v7509_v24  ;;  %v7483_v47 = vpop.f32.mrf.mxu1 }
0x2414   :  { %v7497_v60 = vadd.f32 %v7489_v7, %v11700_v52  ;;  %v7484_v23 = vadd.f32 %v8175_v26, %v7483_v47  ;;  %v7506_v6 = vsel %vm12358_vm8, %v7494_v59, 0.0  ;;  %vm12373_vm8 = vmmov %vm12372_vm7 }
0x2415   :  { %7507 = vadd.xlane.f32.xlu0 %v7506_v6  ;;  %v8177_v6 = vld [vmem:[%s11936_s6 + $0xd] ss:$0 sm:$0xff] }
0x2416   :  { %v7496_v43 = vadd.f32 %v7484_v23, %v11705_v49  ;;  %v7515_v15 = vsel %vm12343_vm0, %v7497_v60, 0.0  ;;  %vm12374_vm0 = vmmov %vm12372_vm7 }
0x2417   :  { %7516 = vadd.xlane.f32.xlu1 %v7515_v15 }
0x2418   :  { %v7512_v42 = vsel %vm12359_vm13, %v7496_v43, 0.0  ;;  %vm12375_vm13 = vmmov %vm12374_vm0 }
0x2419   :  { %7513 = vadd.xlane.f32.xlu0 %v7512_v42 }
0x2498   :  { %v7505_v3 = vpop.xlane.xlu1 %7504 }
0x2499   :  { %v7519_v18 = vmul.f32 0.03125, %v7505_v3 }
0x249a   :  { %v7502_v40 = vpop.xlane.xlu0 %7501 }
0x249b   :  { %v11843_v62 = vsub.f32 %v7493_v48, %v7519_v18  ;;  %v7518_v38 = vmul.f32 0.03125, %v7502_v40 }
0x249c   :  { %v7511_v25 = vpop.xlane.xlu1 %7510 }
0x249d   :  { %v11845_v52 = vsub.f32 %v7492_v41, %v7518_v38  ;;  %v7521_v19 = vmul.f32 0.03125, %v7511_v25  ;;  %v7531_v34 = vmul.f32 %v11843_v62, %v11843_v62 }
0x249e   :  { %v7508_v49 = vpop.xlane.xlu0 %7507 }
0x249f   :  { %v11849_v14 = vsub.f32 %v7495_v35, %v7521_v19  ;;  %v7520_v17 = vmul.f32 0.03125, %v7508_v49  ;;  %v7539_v29 = vsel %vm12360_vm2, %v7531_v34, 0.0  ;;  %v7530_v11 = vmul.f32 %v11845_v52, %v11845_v52  ;;  %vm12376_vm2 = vmmov %vm12374_vm0 }
0x24a0   :  { %7540 = vadd.xlane.f32.xlu1 %v7539_v29  ;;  %v7517_v31 = vpop.xlane.xlu1 %7516 }
0x24a1   :  { %v11854_v55 = vsub.f32 %v7494_v59, %v7520_v17  ;;  %v7523_v63 = vmul.f32 0.03125, %v7517_v31  ;;  %v7536_v4 = vsel %vm12361_vm5, %v7530_v11, 0.0  ;;  %v7533_v44 = vmul.f32 %v11849_v14, %v11849_v14  ;;  %v8178_v31 = vld [vmem:[%s11937_s7 + $0x20] ss:$0 sm:$0xff]  ;;  %vm12377_vm5 = vmmov %vm12374_vm0 }
0x24a2   :  { %7537 = vadd.xlane.f32.xlu0 %v7536_v4  ;;  %v7514_v12 = vpop.xlane.xlu0 %7513 }
0x24a3   :  { %v11859_v1 = vsub.f32 %v7497_v60, %v7523_v63  ;;  %v7522_v2 = vmul.f32 0.03125, %v7514_v12  ;;  %v7545_v8 = vsel %vm12362_vm4, %v7533_v44, 0.0  ;;  %v7532_v53 = vmul.f32 %v11854_v55, %v11854_v55 }
0x24a4   :  { %7546 = vadd.xlane.f32.xlu1 %v7545_v8 }
0x24a5   :  { %v11864_v58 = vsub.f32 %v7496_v43, %v7522_v2  ;;  %v7542_v28 = vsel %vm12363_vm14, %v7532_v53, 0.0  ;;  %v7535_v61 = vmul.f32 %v11859_v1, %v11859_v1 }
0x24a6   :  { %7543 = vadd.xlane.f32.xlu0 %v7542_v28 }
0x24a7   :  { %v7551_v20 = vsel %vm12364_vm11, %v7535_v61, 0.0  ;;  %v7534_v30 = vmul.f32 %v11864_v58, %v11864_v58 }
0x24a8   :  { %7552 = vadd.xlane.f32.xlu1 %v7551_v20 }
0x24a9   :  { %v7548_v37 = vsel %vm12365_vm9, %v7534_v30, 0.0 }
0x24aa   :  { %7549 = vadd.xlane.f32.xlu0 %v7548_v37 }
0x2529   :  { %v7541_v10 = vpop.xlane.xlu1 %7540 }
0x252a   :  { %v7555_v50 = vmul.f32 0.03125, %v7541_v10 }
0x252b   :  { %v7538_v36 = vpop.xlane.xlu0 %7537 }
0x252c   :  { %v7561_v32 = vadd.f32 1e-05, %v7555_v50  ;;  %v7554_v22 = vmul.f32 0.03125, %v7538_v36 }
0x252d   :  { %v7547_v26 = vpop.xlane.xlu1 %7546 }
0x252e   :  { %10079 = vrsqrt.f32 %v7561_v32  ;;  %v7560_v13 = vadd.f32 1e-05, %v7554_v22  ;;  %v7557_v9 = vmul.f32 0.03125, %v7547_v26 }
0x252f   :  { %v7544_v33 = vpop.xlane.xlu0 %7543 }
0x2530   :  { %10081 = vrsqrt.f32 %v7560_v13  ;;  %v7563_v48 = vadd.f32 1e-05, %v7557_v9  ;;  %v7556_v54 = vmul.f32 0.03125, %v7544_v33 }
0x2531   :  { %v7553_v51 = vpop.xlane.xlu1 %7552 }
0x2532   :  { %10083 = vrsqrt.f32 %v7563_v48  ;;  %v7562_v41 = vadd.f32 1e-05, %v7556_v54  ;;  %v7559_v21 = vmul.f32 0.03125, %v7553_v51 }
0x2533   :  { %v7550_v5 = vpop.xlane.xlu0 %7549 }
0x2534   :  { %10085 = vrsqrt.f32 %v7562_v41  ;;  %v7565_v39 = vadd.f32 1e-05, %v7559_v21  ;;  %v7558_v35 = vmul.f32 0.03125, %v7550_v5 }
0x2536   :  { %10087 = vrsqrt.f32 %v7565_v39  ;;  %v7564_v57 = vadd.f32 1e-05, %v7558_v35 }
0x2538   :  { %10089 = vrsqrt.f32 %v7564_v57 }
0x253b   :  { %v10080_v27 = vpop.eup %10079 }
0x253c   :  { %v7573_v59 = vmul.f32 %v10080_v27, %v11843_v62 }
0x253d   :  { %v10082_v7 = vpop.eup %10081 }
0x253e   :  { %v7572_v24 = vmul.f32 %v10082_v7, %v11845_v52  ;;  %v7583_v60 = vmul.f32 %v8176_v46, %v7573_v59 }
0x253f   :  { %v10084_v47 = vpop.eup %10083 }
0x2540   :  { %v7575_v23 = vmul.f32 %v10084_v47, %v11849_v14  ;;  %v7582_v43 = vmul.f32 %v8176_v46, %v7572_v24  ;;  %v7593_v40 = vadd.f32 %v8177_v6, %v7583_v60 }
0x2541   :  { %v10086_v15 = vpop.eup %10085 }
0x2542   :  { %v7592_v42 = vadd.f32 %v8177_v6, %v7582_v43  ;;  %v7574_v3 = vmul.f32 %v10086_v15, %v11854_v55  ;;  %v7585_v38 = vmul.f32 %v8176_v46, %v7575_v23 }
0x2543   :  { %v10088_v18 = vpop.eup %10087 }
0x2544   :  { %v7577_v62 = vmul.f32 %v10088_v18, %v11859_v1  ;;  %9793 = vmatprep.mubr.msk.f32.mxu0 %vm12366_vm3, %v7592_v42  ;;  %v7584_v25 = vmul.f32 %v8176_v46, %v7574_v3  ;;  %v7595_v49 = vadd.f32 %v8177_v6, %v7585_v38 }
0x2545   :  { %v10090_v52 = vpop.eup %10089  ;;  %9794 = vmatmul.mubr.msk.f32.vlgmr.msra.gmra.mxu0 %vm12367_vm12, %v7593_v40 }
0x2546   :  { %v7594_v19 = vadd.f32 %v8177_v6, %v7584_v25  ;;  %v7576_v34 = vmul.f32 %v10090_v52, %v11864_v58  ;;  %v7587_v14 = vmul.f32 %v8176_v46, %v7577_v62 }
0x2548   :  { %9796 = vmatprep.mubr.msk.f32.mxu0 %vm12368_vm1, %v7594_v19  ;;  %v7586_v17 = vmul.f32 %v8176_v46, %v7576_v34  ;;  %v7597_v11 = vadd.f32 %v8177_v6, %v7587_v14 }
0x2549   :  { %9797 = vmatmul.mubr.msk.f32.gmra.mxu0 %vm12369_vm10, %v7595_v49 }
0x254a   :  { %v7596_v29 = vadd.f32 %v8177_v6, %v7586_v17 }
0x254c   :  { %9799 = vmatprep.mubr.msk.f32.mxu0 %vm12370_vm15, %v7596_v29 }
0x254d   :  { %9800 = vmatmul.mubr.msk.f32.gmra.mxu0 %vm12371_vm6, %v7597_v11 }
0x2605   :  { %v9795_v55 = vpop.f32.mrf.mxu0 }
0x2606   :  { %v7697_v63 = vadd.f32 %v9795_v55, %v8178_v31 }
0x2607   :  { %v7691_v4 = vpop.f32.mrf.mxu0 }
0x2608   :  { %7721 = vst.msk [vmem:[%s11938_s8 + $0x8] sm:$0xff] %vm12372_vm7, %v7697_v63  ;;  %v7692_v44 = vadd.f32 %v8178_v31, %v7691_v4 }
0x2609   :  { %v9798_v12 = vpop.f32.mrf.mxu0 }
0x260a   :  { %7720 = vst.msk [vmem:[%s11938_s8] sm:$0xff] %vm12373_vm8, %v7692_v44  ;;  %v7707_v1 = vadd.f32 %v9798_v12, %v8178_v31 }
0x260b   :  { %v7701_v2 = vpop.f32.mrf.mxu0 }
0x260c   :  { %7723 = vst.msk [vmem:[%s11938_s8 + $0x18] sm:$0xff] %vm12374_vm0, %v7707_v1  ;;  %v7702_v8 = vadd.f32 %v8178_v31, %v7701_v2 }
0x260d   :  { %v9801_v53 = vpop.f32.mrf.mxu0 }
0x260e   :  { %7722 = vst.msk [vmem:[%s11938_s8 + $0x10] sm:$0xff] %vm12375_vm13, %v7702_v8  ;;  %v7717_v58 = vadd.f32 %v9801_v53, %v8178_v31 }
0x260f   :  { %v7711_v28 = vpop.f32.mrf.mxu0 }
0x2610   :  { %7725 = vst.msk [vmem:[%s11938_s8 + $0x28] sm:$0xff] %vm12376_vm2, %v7717_v58  ;;  %v7712_v61 = vadd.f32 %v8178_v31, %v7711_v28 }
0x2612   :  { %7724 = vst.msk [vmem:[%s11938_s8 + $0x20] sm:$0xff] %vm12377_vm5, %v7712_v61 }
0x2613   :  { %7730 = vsyncpa [#allocation3], 1 }

</bundles_post_ra>
